<compile_context>
chip_gen: v7x
topology: tpu7x:2x2x1
jax: 0.10.0
libtpu: 0.0.40
codegen_flags: <defaults>
</compile_context>

<pallas_src>
import functools

import jax
import jax.numpy as jnp
from jax.experimental import pallas as pl
from jax.experimental.pallas import tpu as pltpu

EMBED = 128
HID1 = 256
HID2 = 512
NUM_HEADS = 8
HEAD_DIM = HID2 // NUM_HEADS
BN_EPS = 1e-5


@functools.lru_cache(maxsize=None)
def _vmem_limit_bytes():
    # ~75% of physical VMEM (v5e/v6e: 128 MiB -> 96 MiB, v7x: 64 MiB -> 48 MiB).
    try:
        cap = int(getattr(pltpu.get_tpu_info(), "vmem_capacity_bytes", 0))
    except Exception:
        cap = 0
    if cap <= 0:
        cap = 64 * 1024 * 1024
    return int(cap * 3 // 4)


def _cparams(sem):
    return pltpu.CompilerParams(dimension_semantics=sem,
                                vmem_limit_bytes=_vmem_limit_bytes())


# ----------------------------------------------------------------------------
# Kernel 1 (shared by fc1 / fc2 / fc3): 1x1-conv matmul + ReLU, bf16 activation
# output, per-tile BN partial stats written to their own block (parallel grid).
# ----------------------------------------------------------------------------
def matmul_relu_stats_kernel(x_ref, w_ref, b_ref, y_ref, s1_ref, s2_ref, *, rows):
    tm = x_ref.shape[0]
    c = y_ref.shape[1]

    y = jnp.dot(x_ref[...], w_ref[...], preferred_element_type=jnp.float32)
    y = jnp.maximum(y + b_ref[...], 0.0)
    yq = y.astype(y_ref.dtype)                 # bf16 activation written to HBM
    y_ref[...] = yq

    # BN stats are taken on the value actually produced (post-quantization).
    ys = yq.astype(jnp.float32)
    if rows % tm != 0:                         # mask padded rows of the last tile
        row = pl.program_id(0) * tm + jax.lax.broadcasted_iota(jnp.int32, (tm, 1), 0)
        ys = jnp.where(row < rows, ys, 0.0)
    ysq = ys * ys

    # Sublane-grouped partial sums: VPU adds down to (8, C); the single final
    # cross-sublane reduce happens once, outside, on a tiny (nt, 8, C) array.
    if tm % 8 == 0:
        s1 = jnp.sum(ys.reshape(tm // 8, 8, c), axis=0)
        s2 = jnp.sum(ysq.reshape(tm // 8, 8, c), axis=0)
    else:
        pad = jnp.zeros((7, c), jnp.float32)
        s1 = jnp.concatenate([jnp.sum(ys, axis=0, keepdims=True), pad], axis=0)
        s2 = jnp.concatenate([jnp.sum(ysq, axis=0, keepdims=True), pad], axis=0)
    s1_ref[...] = s1.reshape(1, 8, c)
    s2_ref[...] = s2.reshape(1, 8, c)


def matmul_relu_stats(x, w, b, *, tile_rows=1024):
    M, Cin = x.shape
    Cout = w.shape[1]
    tm = M if M <= tile_rows else tile_rows          # tile_rows is a mult. of 16
    nt = pl.cdiv(M, tm)
    kernel = functools.partial(matmul_relu_stats_kernel, rows=M)
    y, p1, p2 = pl.pallas_call(
        kernel,
        grid=(nt,),
        out_shape=(jax.ShapeDtypeStruct((M, Cout), jnp.bfloat16),
                   jax.ShapeDtypeStruct((nt, 8, Cout), jnp.float32),
                   jax.ShapeDtypeStruct((nt, 8, Cout), jnp.float32)),
        in_specs=[pl.BlockSpec((tm, Cin), lambda i: (i, 0)),
                  pl.BlockSpec((Cin, Cout), lambda i: (0, 0)),
                  pl.BlockSpec((1, Cout), lambda i: (0, 0))],
        out_specs=(pl.BlockSpec((tm, Cout), lambda i: (i, 0)),
                   pl.BlockSpec((1, 8, Cout), lambda i: (i, 0, 0)),
                   pl.BlockSpec((1, 8, Cout), lambda i: (i, 0, 0))),
        compiler_params=_cparams(("parallel",)),
    )(x, w, b)
    return y, (p1, p2)


# ----------------------------------------------------------------------------
# BN finalize + fold into the next linear layer (tiny plain-JAX ops).
# ----------------------------------------------------------------------------
def bn_scale_shift(stats, rows, gamma, beta, eps=BN_EPS):
    p1, p2 = stats
    s1 = jnp.sum(p1, axis=(0, 1))
    s2 = jnp.sum(p2, axis=(0, 1))
    mean = s1 / rows
    var = jnp.maximum(s2 / rows - mean * mean, 0.0)   # clamp: single-pass moments
    scale = gamma.reshape(-1) * jax.lax.rsqrt(var + eps)
    shift = beta.reshape(-1) - mean * scale
    return scale, shift


def fold_bn_into_linear(scale, shift, w, b):
    """(x*scale + shift) @ W + b  ==  x @ (scale*W) + (shift @ W + b)."""
    w32 = w.astype(jnp.float32)
    return (w32 * scale[:, None]).astype(w.dtype), b + shift[None, :] @ w32


# ----------------------------------------------------------------------------
# Kernel 2: multi-head self-attention, tiled over the attention-batch axis
# (= the model's original L).  BN2 and the 1/sqrt(head_dim) query scale are
# pre-folded into wqkv/bqkv.  Leading-axes swap is done in VMEM so the kernel
# reads and writes the native (B, L, E) layout (no XLA transposes).
# ----------------------------------------------------------------------------
def mha_kernel(x_ref, wqkv_ref, bqkv_ref, wo_ref, bo_ref, o_ref, *, num_heads):
    S, TN, E = x_ref.shape
    D = E // num_heads
    bf16 = jnp.bfloat16

    # (S=orig batch, TN=orig seq tile, E) -> (TN, S, E): attention over S.
    x = jnp.transpose(x_ref[...], (1, 0, 2))

    qkv = jnp.dot(x.reshape(TN * S, E), wqkv_ref[...],
                  preferred_element_type=jnp.float32) + bqkv_ref[...]
    q = qkv[:, :E].astype(bf16).reshape(TN, S, E)
    k = qkv[:, E:2 * E].astype(bf16).reshape(TN, S, E)
    v = qkv[:, 2 * E:].astype(bf16).reshape(TN, S, E)

    # TODO(synk): the per-head loop is unrolled at trace time; a single
    # head-batched dot_general would further reduce MXU launches.
    outs = []
    for h in range(num_heads):
        qh = q[:, :, h * D:(h + 1) * D]
        kh = k[:, :, h * D:(h + 1) * D]
        vh = v[:, :, h * D:(h + 1) * D]
        s = jnp.einsum('nsd,ntd->nst', qh, kh,
                       preferred_element_type=jnp.float32)        # (TN, S, S)
        s = s - jnp.max(s, axis=-1, keepdims=True)
        p = jnp.exp(s)
        p = p * pl.reciprocal(jnp.sum(p, axis=-1, keepdims=True), approx=True)
        outs.append(jnp.einsum('nst,ntd->nsd', p.astype(bf16), vh,
                               preferred_element_type=jnp.float32))

    # Heads concatenated lane-contiguously, then ONE K=512 out-projection matmul
    # (instead of 8 K=64 matmuls that under-fill the MXU contraction).
    o = jnp.concatenate(outs, axis=-1).reshape(TN * S, E)
    out = jnp.dot(o.astype(bf16), wo_ref[...],
                  preferred_element_type=jnp.float32) + bo_ref[...]
    o_ref[...] = jnp.transpose(out.reshape(TN, S, E), (1, 0, 2)).astype(o_ref.dtype)


def _mha_tile_n(L, S):
    """Tile along the original-L axis; aim for ~512 query rows (tn*S) per tile.
    bf16 blocks need the second-to-last block dim to be a multiple of 16 unless
    it spans the whole axis."""
    if L <= 16:
        return L
    tn = max(16, (max(512 // max(S, 1), 16) // 16) * 16)
    return min(tn, (L // 16) * 16)
    # TODO(synk): for pathologically large original-batch S the per-tile score
    # slabs would need an extra S-tiling (flash-style online softmax).


def mha(x_ble, wqkv, bqkv, wo, bo):
    B, L, E = x_ble.shape
    tn = _mha_tile_n(L, B)
    nt = pl.cdiv(L, tn)
    kernel = functools.partial(mha_kernel, num_heads=NUM_HEADS)
    return pl.pallas_call(
        kernel,
        grid=(nt,),
        out_shape=jax.ShapeDtypeStruct((B, L, E), jnp.bfloat16),
        in_specs=[pl.BlockSpec((B, tn, E), lambda i: (0, i, 0)),
                  pl.BlockSpec((E, 3 * E), lambda i: (0, 0)),
                  pl.BlockSpec((1, 3 * E), lambda i: (0, 0)),
                  pl.BlockSpec((E, E), lambda i: (0, 0)),
                  pl.BlockSpec((1, E), lambda i: (0, 0))],
        out_specs=pl.BlockSpec((B, tn, E), lambda i: (0, i, 0)),
        compiler_params=_cparams(("parallel",)),
    )(x_ble, wqkv, bqkv, wo, bo)


# ----------------------------------------------------------------------------
# Kernel 3: fused tail — BN3 (pre-folded into w4/b4) + fc4 (256->1) + ReLU +
# max over L.  The scalar bias lives in SMEM.
# ----------------------------------------------------------------------------
def head_max_kernel(x_ref, w_ref, b_ref, o_ref):
    x = x_ref[...].astype(jnp.float32)                      # (tb, L, C)
    w = w_ref[...].reshape(1, 1, -1)                        # (1, 1, C)
    z = jnp.sum(x * w, axis=-1) + b_ref[0, 0]               # (tb, L)
    z = jnp.maximum(z, 0.0)
    o_ref[...] = jnp.max(z, axis=-1, keepdims=True)         # (tb, 1)


def head_max(x_blc, w, b, *, block_bytes=4 << 20):
    B, L, C = x_blc.shape
    per_row = L * C * x_blc.dtype.itemsize
    if B <= 8:
        tb = B
    else:
        tb = (block_bytes // max(per_row, 1)) // 8 * 8
        tb = max(8, min(tb, B))
    nt = pl.cdiv(B, tb)
    return pl.pallas_call(
        head_max_kernel,
        grid=(nt,),
        out_shape=jax.ShapeDtypeStruct((B, 1), jnp.float32),
        in_specs=[pl.BlockSpec((tb, L, C), lambda i: (i, 0, 0)),
                  pl.BlockSpec((1, C), lambda i: (0, 0)),
                  pl.BlockSpec(memory_space=pltpu.MemorySpace.SMEM)],
        out_specs=pl.BlockSpec((tb, 1), lambda i: (i, 0)),
        compiler_params=_cparams(("parallel",)),
    )(x_blc, w, b)


# ----------------------------------------------------------------------------
# Parameters (deterministic, synthetic).  Conv1d(k=1) weights are stored
# channels-last (Cin, Cout) in bf16; the MHA in-projection is stored pre-fused
# as (E, 3E) with the 1/sqrt(head_dim) query scale folded in, and the
# out-projection is stored pre-transposed.
# ----------------------------------------------------------------------------
def make_params(vocab_size, key):
    ks = jax.random.split(key, 19)

    def rnd(i, shape, scale=0.05):
        return jax.random.normal(ks[i], shape, dtype=jnp.float32) * scale

    bf16 = jnp.bfloat16
    p = {}
    emb = rnd(0, (vocab_size, EMBED), 0.1)
    p['emb'] = emb.at[1].set(0.0)                         # padding_idx=1 -> zeros
    p['fc1_w'] = rnd(1, (EMBED, HID1)).astype(bf16)
    p['fc1_b'] = rnd(2, (1, HID1))
    p['bn1_g'] = 1.0 + rnd(3, (1, HID1), 0.1); p['bn1_b'] = rnd(4, (1, HID1), 0.1)
    p['fc2_w'] = rnd(5, (HID1, HID2)).astype(bf16)
    p['fc2_b'] = rnd(6, (1, HID2))
    p['bn2_g'] = 1.0 + rnd(7, (1, HID2), 0.1); p['bn2_b'] = rnd(8, (1, HID2), 0.1)

    wqkv = rnd(9, (HID2, 3 * HID2))
    bqkv = rnd(10, (1, 3 * HID2))
    qscale = 1.0 / (HEAD_DIM ** 0.5)
    wqkv = wqkv.at[:, :HID2].multiply(qscale)             # fold the q scale
    bqkv = bqkv.at[:, :HID2].multiply(qscale)
    p['qkv_w'] = wqkv.astype(bf16)
    p['qkv_b'] = bqkv
    p['out_w'] = rnd(11, (HID2, HID2)).astype(bf16)
    p['out_b'] = rnd(12, (1, HID2))

    p['fc3_w'] = rnd(13, (HID2, HID1)).astype(bf16)
    p['fc3_b'] = rnd(14, (1, HID1))
    p['bn3_g'] = 1.0 + rnd(15, (1, HID1), 0.1); p['bn3_b'] = rnd(16, (1, HID1), 0.1)
    p['fc4_w'] = rnd(17, (1, HID1))
    p['fc4_b'] = rnd(18, (1, 1))
    return p


# ----------------------------------------------------------------------------
# Full forward pass.
# ----------------------------------------------------------------------------
def basic_transformer_forward(tokens, params):
    B, L = tokens.shape
    M = B * L
    # TODO(synk): embedding gather stays in plain JAX (XLA); a Pallas DMA gather
    # is not worthwhile at this table size.
    x = params['emb'][tokens].reshape(M, EMBED).astype(jnp.bfloat16)

    # fc1 + ReLU (BN1 partial stats)
    y1, st1 = matmul_relu_stats(x, params['fc1_w'], params['fc1_b'])
    sc1, sh1 = bn_scale_shift(st1, M, params['bn1_g'], params['bn1_b'])
    w2, b2 = fold_bn_into_linear(sc1, sh1, params['fc2_w'], params['fc2_b'])

    # BN1 (folded) + fc2 + ReLU (BN2 partial stats)
    y2, st2 = matmul_relu_stats(y1, w2, b2)
    sc2, sh2 = bn_scale_shift(st2, M, params['bn2_g'], params['bn2_b'])
    wqkv, bqkv = fold_bn_into_linear(sc2, sh2, params['qkv_w'], params['qkv_b'])

    # BN2 (folded into the QKV projection) + multi-head attention.
    attn = mha(y2.reshape(B, L, HID2), wqkv, bqkv,
               params['out_w'], params['out_b'])

    # fc3 + ReLU (BN3 partial stats)
    y3, st3 = matmul_relu_stats(attn.reshape(M, HID2),
                                params['fc3_w'], params['fc3_b'])
    sc3, sh3 = bn_scale_shift(st3, M, params['bn3_g'], params['bn3_b'])
    w4 = params['fc4_w'] * sc3[None, :]
    b4 = params['fc4_b'] + jnp.sum(sh3 * params['fc4_w'].reshape(-1)).reshape(1, 1)

    # BN3 (folded) + fc4 + ReLU + max over L
    return head_max(y3.reshape(B, L, HID1), w4, b4)


# ----------------------------------------------------------------------------
# Pure-JAX reference with the same mixed-precision policy (bf16 activations /
# matmul operands, f32 accumulation), but BN applied unfused to activations and
# exact softmax — an independent check of the kernels' plumbing and folding.
# ----------------------------------------------------------------------------
def reference_forward(tokens, params):
    B, L = tokens.shape
    M = B * L
    bf16, f32 = jnp.bfloat16, jnp.float32

    def q16(a):
        return a.astype(bf16).astype(f32)

    def mm(a, w):
        return jnp.dot(a.astype(bf16), w.astype(bf16), preferred_element_type=f32)

    def bn(y, g, b):
        mean = jnp.mean(y, axis=0, keepdims=True)
        var = jnp.maximum(jnp.mean(y * y, axis=0, keepdims=True) - mean * mean, 0.0)
        return (y - mean) * (g * jax.lax.rsqrt(var + BN_EPS)) + b

    x = q16(params['emb'][tokens].reshape(M, EMBED))
    y1 = q16(jax.nn.relu(mm(x, params['fc1_w']) + params['fc1_b']))
    y2 = q16(jax.nn.relu(mm(bn(y1, params['bn1_g'], params['bn1_b']),
                            params['fc2_w']) + params['fc2_b']))
    x2 = bn(y2, params['bn2_g'], params['bn2_b'])

    E, H, D = HID2, NUM_HEADS, HEAD_DIM
    # batch_first=False quirk: attention over the original batch axis.
    x_nse = jnp.transpose(x2.reshape(B, L, E), (1, 0, 2))          # (L, B, E)
    qkv = mm(x_nse.reshape(L * B, E), params['qkv_w']) + params['qkv_b']
    qkv = qkv.reshape(L, B, 3, H, D)
    q, k, v = q16(qkv[:, :, 0]), q16(qkv[:, :, 1]), q16(qkv[:, :, 2])
    s = jnp.einsum('nshd,nthd->nhst', q, k)
    p = jax.nn.softmax(s, axis=-1)
    o = jnp.einsum('nhst,nthd->nshd', q16(p), v).reshape(L * B, E)
    attn = mm(o, params['out_w']) + params['out_b']
    attn = q16(jnp.transpose(attn.reshape(L, B, E), (1, 0, 2)).reshape(M, E))

    y3 = q16(jax.nn.relu(mm(attn, params['fc3_w']) + params['fc3_b']))
    y3n = bn(y3, params['bn3_g'], params['bn3_b']).reshape(B, L, HID1)
    z = jax.nn.relu(jnp.sum(y3n * params['fc4_w'].reshape(1, 1, -1), axis=-1)
                    + params['fc4_b'].reshape(1, 1))
    return jnp.max(z, axis=1, keepdims=True)


if __name__ == "__main__":
    vocab_size = 100
    B, L = 2, 8
    key = jax.random.PRNGKey(0)
    k_tok, k_par = jax.random.split(key)

    tokens = jax.random.randint(k_tok, (B, L), 0, vocab_size, dtype=jnp.int32)
    tokens = tokens.at[0, 0].set(1)                 # exercise padding_idx=1
    params = make_params(vocab_size, k_par)

    fwd = jax.jit(basic_transformer_forward)
    out = jax.block_until_ready(fwd(tokens, params))
    ref = jax.block_until_ready(reference_forward(tokens, params))

    assert out.shape == (B, 1), out.shape
    # tolerance covers bf16 activation storage / MXU operands, the folded-BN
    # weight rounding and the EUP approx-reciprocal softmax vs the reference.
    if not bool(jnp.allclose(out, ref, rtol=2e-2, atol=2e-2)):
        raise AssertionError(f"mismatch: pallas={out} ref={ref}")
    print("KERNEL_OK")
</pallas_src>

<mosaic_0001>
module attributes {stable_mosaic.version = 11 : i64} {
  func.func @matmul_relu_stats_kernel(%arg0: i32, %arg1: memref<16x128xbf16, #tpu.memory_space<vmem>>, %arg2: memref<128x256xbf16, #tpu.memory_space<vmem>>, %arg3: memref<1x256xf32, #tpu.memory_space<vmem>>, %arg4: memref<16x256xbf16, #tpu.memory_space<vmem>>, %arg5: memref<1x8x256xf32, #tpu.memory_space<vmem>>, %arg6: memref<1x8x256xf32, #tpu.memory_space<vmem>>) attributes {dimension_semantics = [#tpu.dimension_semantics<parallel>], iteration_bounds = array<i64: 1>, scalar_prefetch = 0 : i64, scratch_operands = 0 : i64, tpu.core_type = #tpu.core_type<tc>, window_params = [{transform_indices = @transform_0, window_bounds = array<i64: 16, 128>}, {pipeline_mode = #tpu.pipeline_mode<synchronous>, transform_indices = @transform_1, window_bounds = array<i64: 128, 256>}, {pipeline_mode = #tpu.pipeline_mode<synchronous>, transform_indices = @transform_2, window_bounds = array<i64: 1, 256>}, {transform_indices = @transform_3, window_bounds = array<i64: 16, 256>}, {transform_indices = @transform_4, window_bounds = array<i64: 1, 8, 256>}, {transform_indices = @transform_5, window_bounds = array<i64: 1, 8, 256>}]} {
    %c0 = arith.constant 0 : index
    %c0_0 = arith.constant 0 : index
    %0 = vector.load %arg1[%c0, %c0_0] : memref<16x128xbf16, #tpu.memory_space<vmem>>, vector<16x128xbf16>
    %c0_1 = arith.constant 0 : index
    %c0_2 = arith.constant 0 : index
    %1 = vector.load %arg2[%c0_1, %c0_2] : memref<128x256xbf16, #tpu.memory_space<vmem>>, vector<128x256xbf16>
    %cst = arith.constant dense<0.000000e+00> : vector<16x256xf32>
    %2 = tpu.matmul %0, %1, %cst {dimension_numbers = #tpu.dot_dimension_numbers<[1], [0], [0], [1], [0, 0, 1, 1], [], []>} : vector<16x128xbf16>, vector<128x256xbf16>, vector<16x256xf32> -> vector<16x256xf32>
    %c0_3 = arith.constant 0 : index
    %c0_4 = arith.constant 0 : index
    %3 = vector.load %arg3[%c0_3, %c0_4] : memref<1x256xf32, #tpu.memory_space<vmem>>, vector<1x256xf32>
    %4 = vector.broadcast %3 : vector<1x256xf32> to vector<16x256xf32>
    %5 = arith.addf %2, %4 : vector<16x256xf32>
    %cst_5 = arith.constant 0.000000e+00 : f32
    %6 = vector.broadcast %cst_5 : f32 to vector<16x256xf32>
    %7 = arith.maximumf %5, %6 : vector<16x256xf32>
    %8 = arith.truncf %7 : vector<16x256xf32> to vector<16x256xbf16>
    %c0_6 = arith.constant 0 : index
    %c0_7 = arith.constant 0 : index
    %9 = vector.load %arg4[%c0_6, %c0_7] : memref<16x256xbf16, #tpu.memory_space<vmem>>, vector<16x256xbf16>
    tpu.vector_store %arg4[%c0_6, %c0_7], %8 {strides = array<i32>} : memref<16x256xbf16, #tpu.memory_space<vmem>>, vector<16x256xbf16>,
    %10 = arith.extf %8 : vector<16x256xbf16> to vector<16x256xf32>
    %11 = arith.mulf %10, %10 : vector<16x256xf32>
    %12 = vector.shape_cast %10 : vector<16x256xf32> to vector<2x8x256xf32>
    %cst_8 = arith.constant dense<0.000000e+00> : vector<8x256xf32>
    %13 = vector.multi_reduction <add>, %12, %cst_8 [0] : vector<2x8x256xf32> to vector<8x256xf32>
    %14 = vector.shape_cast %11 : vector<16x256xf32> to vector<2x8x256xf32>
    %cst_9 = arith.constant dense<0.000000e+00> : vector<8x256xf32>
    %15 = vector.multi_reduction <add>, %14, %cst_9 [0] : vector<2x8x256xf32> to vector<8x256xf32>
    %16 = vector.shape_cast %13 : vector<8x256xf32> to vector<1x8x256xf32>
    %c0_10 = arith.constant 0 : index
    %c0_11 = arith.constant 0 : index
    %c0_12 = arith.constant 0 : index
    %17 = vector.load %arg5[%c0_10, %c0_11, %c0_12] : memref<1x8x256xf32, #tpu.memory_space<vmem>>, vector<1x8x256xf32>
    tpu.vector_store %arg5[%c0_10, %c0_11, %c0_12], %16 {strides = array<i32>} : memref<1x8x256xf32, #tpu.memory_space<vmem>>, vector<1x8x256xf32>,
    %18 = vector.shape_cast %15 : vector<8x256xf32> to vector<1x8x256xf32>
    %c0_13 = arith.constant 0 : index
    %c0_14 = arith.constant 0 : index
    %c0_15 = arith.constant 0 : index
    %19 = vector.load %arg6[%c0_13, %c0_14, %c0_15] : memref<1x8x256xf32, #tpu.memory_space<vmem>>, vector<1x8x256xf32>
    tpu.vector_store %arg6[%c0_13, %c0_14, %c0_15], %18 {strides = array<i32>} : memref<1x8x256xf32, #tpu.memory_space<vmem>>, vector<1x8x256xf32>,
    return
  }
  func.func @transform_0(%arg0: i32) -> (i32, i32) {
    %c0_i32 = arith.constant 0 : i32
    %c0_i32_0 = arith.constant 0 : i32
    return %arg0, %c0_i32 : i32, i32
  }
  func.func @transform_1(%arg0: i32) -> (i32, i32) {
    %c0_i32 = arith.constant 0 : i32
    %c0_i32_0 = arith.constant 0 : i32
    %c0_i32_1 = arith.constant 0 : i32
    return %c0_i32, %c0_i32_0 : i32, i32
  }
  func.func @transform_2(%arg0: i32) -> (i32, i32) {
    %c0_i32 = arith.constant 0 : i32
    %c0_i32_0 = arith.constant 0 : i32
    %c0_i32_1 = arith.constant 0 : i32
    return %c0_i32, %c0_i32_0 : i32, i32
  }
  func.func @transform_3(%arg0: i32) -> (i32, i32) {
    %c0_i32 = arith.constant 0 : i32
    %c0_i32_0 = arith.constant 0 : i32
    return %arg0, %c0_i32 : i32, i32
  }
  func.func @transform_4(%arg0: i32) -> (i32, i32, i32) {
    %c0_i32 = arith.constant 0 : i32
    %c0_i32_0 = arith.constant 0 : i32
    %c0_i32_1 = arith.constant 0 : i32
    return %arg0, %c0_i32, %c0_i32_0 : i32, i32, i32
  }
  func.func @transform_5(%arg0: i32) -> (i32, i32, i32) {
    %c0_i32 = arith.constant 0 : i32
    %c0_i32_0 = arith.constant 0 : i32
    %c0_i32_1 = arith.constant 0 : i32
    return %arg0, %c0_i32, %c0_i32_0 : i32, i32, i32
  }
}

module attributes {stable_mosaic.version = 11 : i64} {
  func.func @matmul_relu_stats_kernel(%arg0: i32, %arg1: memref<16x256xbf16, #tpu.memory_space<vmem>>, %arg2: memref<256x512xbf16, #tpu.memory_space<vmem>>, %arg3: memref<1x512xf32, #tpu.memory_space<vmem>>, %arg4: memref<16x512xbf16, #tpu.memory_space<vmem>>, %arg5: memref<1x8x512xf32, #tpu.memory_space<vmem>>, %arg6: memref<1x8x512xf32, #tpu.memory_space<vmem>>) attributes {dimension_semantics = [#tpu.dimension_semantics<parallel>], iteration_bounds = array<i64: 1>, scalar_prefetch = 0 : i64, scratch_operands = 0 : i64, tpu.core_type = #tpu.core_type<tc>, window_params = [{transform_indices = @transform_0, window_bounds = array<i64: 16, 256>}, {pipeline_mode = #tpu.pipeline_mode<synchronous>, transform_indices = @transform_1, window_bounds = array<i64: 256, 512>}, {pipeline_mode = #tpu.pipeline_mode<synchronous>, transform_indices = @transform_2, window_bounds = array<i64: 1, 512>}, {transform_indices = @transform_3, window_bounds = array<i64: 16, 512>}, {transform_indices = @transform_4, window_bounds = array<i64: 1, 8, 512>}, {transform_indices = @transform_5, window_bounds = array<i64: 1, 8, 512>}]} {
    %c0 = arith.constant 0 : index
    %c0_0 = arith.constant 0 : index
    %0 = vector.load %arg1[%c0, %c0_0] : memref<16x256xbf16, #tpu.memory_space<vmem>>, vector<16x256xbf16>
    %c0_1 = arith.constant 0 : index
    %c0_2 = arith.constant 0 : index
    %1 = vector.load %arg2[%c0_1, %c0_2] : memref<256x512xbf16, #tpu.memory_space<vmem>>, vector<256x512xbf16>
    %cst = arith.constant dense<0.000000e+00> : vector<16x512xf32>
    %2 = tpu.matmul %0, %1, %cst {dimension_numbers = #tpu.dot_dimension_numbers<[1], [0], [0], [1], [0, 0, 1, 1], [], []>} : vector<16x256xbf16>, vector<256x512xbf16>, vector<16x512xf32> -> vector<16x512xf32>
    %c0_3 = arith.constant 0 : index
    %c0_4 = arith.constant 0 : index
    %3 = vector.load %arg3[%c0_3, %c0_4] : memref<1x512xf32, #tpu.memory_space<vmem>>, vector<1x512xf32>
    %4 = vector.broadcast %3 : vector<1x512xf32> to vector<16x512xf32>
    %5 = arith.addf %2, %4 : vector<16x512xf32>
    %cst_5 = arith.constant 0.000000e+00 : f32
    %6 = vector.broadcast %cst_5 : f32 to vector<16x512xf32>
    %7 = arith.maximumf %5, %6 : vector<16x512xf32>
    %8 = arith.truncf %7 : vector<16x512xf32> to vector<16x512xbf16>
    %c0_6 = arith.constant 0 : index
    %c0_7 = arith.constant 0 : index
    %9 = vector.load %arg4[%c0_6, %c0_7] : memref<16x512xbf16, #tpu.memory_space<vmem>>, vector<16x512xbf16>
    tpu.vector_store %arg4[%c0_6, %c0_7], %8 {strides = array<i32>} : memref<16x512xbf16, #tpu.memory_space<vmem>>, vector<16x512xbf16>,
    %10 = arith.extf %8 : vector<16x512xbf16> to vector<16x512xf32>
    %11 = arith.mulf %10, %10 : vector<16x512xf32>
    %12 = vector.shape_cast %10 : vector<16x512xf32> to vector<2x8x512xf32>
    %cst_8 = arith.constant dense<0.000000e+00> : vector<8x512xf32>
    %13 = vector.multi_reduction <add>, %12, %cst_8 [0] : vector<2x8x512xf32> to vector<8x512xf32>
    %14 = vector.shape_cast %11 : vector<16x512xf32> to vector<2x8x512xf32>
    %cst_9 = arith.constant dense<0.000000e+00> : vector<8x512xf32>
    %15 = vector.multi_reduction <add>, %14, %cst_9 [0] : vector<2x8x512xf32> to vector<8x512xf32>
    %16 = vector.shape_cast %13 : vector<8x512xf32> to vector<1x8x512xf32>
    %c0_10 = arith.constant 0 : index
    %c0_11 = arith.constant 0 : index
    %c0_12 = arith.constant 0 : index
    %17 = vector.load %arg5[%c0_10, %c0_11, %c0_12] : memref<1x8x512xf32, #tpu.memory_space<vmem>>, vector<1x8x512xf32>
    tpu.vector_store %arg5[%c0_10, %c0_11, %c0_12], %16 {strides = array<i32>} : memref<1x8x512xf32, #tpu.memory_space<vmem>>, vector<1x8x512xf32>,
    %18 = vector.shape_cast %15 : vector<8x512xf32> to vector<1x8x512xf32>
    %c0_13 = arith.constant 0 : index
    %c0_14 = arith.constant 0 : index
    %c0_15 = arith.constant 0 : index
    %19 = vector.load %arg6[%c0_13, %c0_14, %c0_15] : memref<1x8x512xf32, #tpu.memory_space<vmem>>, vector<1x8x512xf32>
    tpu.vector_store %arg6[%c0_13, %c0_14, %c0_15], %18 {strides = array<i32>} : memref<1x8x512xf32, #tpu.memory_space<vmem>>, vector<1x8x512xf32>,
    return
  }
  func.func @transform_0(%arg0: i32) -> (i32, i32) {
    %c0_i32 = arith.constant 0 : i32
    %c0_i32_0 = arith.constant 0 : i32
    return %arg0, %c0_i32 : i32, i32
  }
  func.func @transform_1(%arg0: i32) -> (i32, i32) {
    %c0_i32 = arith.constant 0 : i32
    %c0_i32_0 = arith.constant 0 : i32
    %c0_i32_1 = arith.constant 0 : i32
    return %c0_i32, %c0_i32_0 : i32, i32
  }
  func.func @transform_2(%arg0: i32) -> (i32, i32) {
    %c0_i32 = arith.constant 0 : i32
    %c0_i32_0 = arith.constant 0 : i32
    %c0_i32_1 = arith.constant 0 : i32
    return %c0_i32, %c0_i32_0 : i32, i32
  }
  func.func @transform_3(%arg0: i32) -> (i32, i32) {
    %c0_i32 = arith.constant 0 : i32
    %c0_i32_0 = arith.constant 0 : i32
    return %arg0, %c0_i32 : i32, i32
  }
  func.func @transform_4(%arg0: i32) -> (i32, i32, i32) {
    %c0_i32 = arith.constant 0 : i32
    %c0_i32_0 = arith.constant 0 : i32
    %c0_i32_1 = arith.constant 0 : i32
    return %arg0, %c0_i32, %c0_i32_0 : i32, i32, i32
  }
  func.func @transform_5(%arg0: i32) -> (i32, i32, i32) {
    %c0_i32 = arith.constant 0 : i32
    %c0_i32_0 = arith.constant 0 : i32
    %c0_i32_1 = arith.constant 0 : i32
    return %arg0, %c0_i32, %c0_i32_0 : i32, i32, i32
  }
}

module attributes {stable_mosaic.version = 11 : i64} {
  func.func @mha_kernel(%arg0: i32, %arg1: memref<2x8x512xbf16, #tpu.memory_space<vmem>>, %arg2: memref<512x1536xbf16, #tpu.memory_space<vmem>>, %arg3: memref<1x1536xf32, #tpu.memory_space<vmem>>, %arg4: memref<512x512xbf16, #tpu.memory_space<vmem>>, %arg5: memref<1x512xf32, #tpu.memory_space<vmem>>, %arg6: memref<2x8x512xbf16, #tpu.memory_space<vmem>>) attributes {dimension_semantics = [#tpu.dimension_semantics<parallel>], iteration_bounds = array<i64: 1>, scalar_prefetch = 0 : i64, scratch_operands = 0 : i64, tpu.core_type = #tpu.core_type<tc>, window_params = [{transform_indices = @transform_0, window_bounds = array<i64: 2, 8, 512>}, {pipeline_mode = #tpu.pipeline_mode<synchronous>, transform_indices = @transform_1, window_bounds = array<i64: 512, 1536>}, {pipeline_mode = #tpu.pipeline_mode<synchronous>, transform_indices = @transform_2, window_bounds = array<i64: 1, 1536>}, {pipeline_mode = #tpu.pipeline_mode<synchronous>, transform_indices = @transform_3, window_bounds = array<i64: 512, 512>}, {pipeline_mode = #tpu.pipeline_mode<synchronous>, transform_indices = @transform_4, window_bounds = array<i64: 1, 512>}, {transform_indices = @transform_5, window_bounds = array<i64: 2, 8, 512>}]} {
    %c0 = arith.constant 0 : index
    %c0_0 = arith.constant 0 : index
    %c0_1 = arith.constant 0 : index
    %0 = vector.load %arg1[%c0, %c0_0, %c0_1] : memref<2x8x512xbf16, #tpu.memory_space<vmem>>, vector<2x8x512xbf16>
    %1 = tpu.transpose %0, [1, 0, 2] : vector<2x8x512xbf16> -> vector<8x2x512xbf16>
    %2 = vector.shape_cast %1 : vector<8x2x512xbf16> to vector<16x512xbf16>
    %c0_2 = arith.constant 0 : index
    %c0_3 = arith.constant 0 : index
    %3 = vector.load %arg2[%c0_2, %c0_3] : memref<512x1536xbf16, #tpu.memory_space<vmem>>, vector<512x1536xbf16>
    %cst = arith.constant dense<0.000000e+00> : vector<16x1536xf32>
    %4 = tpu.matmul %2, %3, %cst {dimension_numbers = #tpu.dot_dimension_numbers<[1], [0], [0], [1], [0, 0, 1, 1], [], []>} : vector<16x512xbf16>, vector<512x1536xbf16>, vector<16x1536xf32> -> vector<16x1536xf32>
    %c0_4 = arith.constant 0 : index
    %c0_5 = arith.constant 0 : index
    %5 = vector.load %arg3[%c0_4, %c0_5] : memref<1x1536xf32, #tpu.memory_space<vmem>>, vector<1x1536xf32>
    %6 = vector.broadcast %5 : vector<1x1536xf32> to vector<16x1536xf32>
    %7 = arith.addf %4, %6 : vector<16x1536xf32>
    %8 = vector.extract_strided_slice %7 {offsets = [0, 0], sizes = [16, 512], strides = [1, 1]} : vector<16x1536xf32> to vector<16x512xf32>
    %9 = arith.truncf %8 : vector<16x512xf32> to vector<16x512xbf16>
    %10 = vector.shape_cast %9 : vector<16x512xbf16> to vector<8x2x512xbf16>
    %11 = vector.extract_strided_slice %7 {offsets = [0, 512], sizes = [16, 512], strides = [1, 1]} : vector<16x1536xf32> to vector<16x512xf32>
    %12 = arith.truncf %11 : vector<16x512xf32> to vector<16x512xbf16>
    %13 = vector.shape_cast %12 : vector<16x512xbf16> to vector<8x2x512xbf16>
    %14 = vector.extract_strided_slice %7 {offsets = [0, 1024], sizes = [16, 512], strides = [1, 1]} : vector<16x1536xf32> to vector<16x512xf32>
    %15 = arith.truncf %14 : vector<16x512xf32> to vector<16x512xbf16>
    %16 = vector.shape_cast %15 : vector<16x512xbf16> to vector<8x2x512xbf16>
    %17 = vector.extract_strided_slice %10 {offsets = [0, 0, 0], sizes = [8, 2, 64], strides = [1, 1, 1]} : vector<8x2x512xbf16> to vector<8x2x64xbf16>
    %18 = vector.extract_strided_slice %13 {offsets = [0, 0, 0], sizes = [8, 2, 64], strides = [1, 1, 1]} : vector<8x2x512xbf16> to vector<8x2x64xbf16>
    %19 = vector.extract_strided_slice %16 {offsets = [0, 0, 0], sizes = [8, 2, 64], strides = [1, 1, 1]} : vector<8x2x512xbf16> to vector<8x2x64xbf16>
    "tpu.trace_start"() <{level = 10 : i32, message = "nsd,ntd->nst"}> : () -> ()
    %cst_6 = arith.constant dense<0.000000e+00> : vector<8x2x2xf32>
    %20 = tpu.matmul %17, %18, %cst_6 {dimension_numbers = #tpu.dot_dimension_numbers<[2], [2], [1], [1], [0, 0, 0, 1, 1, 1], [0], [0]>} : vector<8x2x64xbf16>, vector<8x2x64xbf16>, vector<8x2x2xf32> -> vector<8x2x2xf32>
    "tpu.trace_stop"() : () -> ()
    %cst_7 = arith.constant dense<0xFF800000> : vector<8x2xf32>
    %21 = vector.multi_reduction <maximumf>, %20, %cst_7 [2] : vector<8x2x2xf32> to vector<8x2xf32>
    %22 = vector.shape_cast %21 : vector<8x2xf32> to vector<8x2x1xf32>
    %23 = vector.broadcast %22 : vector<8x2x1xf32> to vector<8x2x2xf32>
    %24 = arith.subf %20, %23 : vector<8x2x2xf32>
    %25 = math.exp %24 : vector<8x2x2xf32>
    %cst_8 = arith.constant dense<0.000000e+00> : vector<8x2xf32>
    %26 = vector.multi_reduction <add>, %25, %cst_8 [2] : vector<8x2x2xf32> to vector<8x2xf32>
    %27 = vector.shape_cast %26 : vector<8x2xf32> to vector<8x2x1xf32>
    %28 = tpu.reciprocal %27 {approx = true} : vector<8x2x1xf32> -> vector<8x2x1xf32>
    %29 = vector.broadcast %28 : vector<8x2x1xf32> to vector<8x2x2xf32>
    %30 = arith.mulf %25, %29 : vector<8x2x2xf32>
    %31 = arith.truncf %30 : vector<8x2x2xf32> to vector<8x2x2xbf16>
    "tpu.trace_start"() <{level = 10 : i32, message = "nst,ntd->nsd"}> : () -> ()
    %cst_9 = arith.constant dense<0.000000e+00> : vector<8x2x64xf32>
    %32 = tpu.matmul %31, %19, %cst_9 {dimension_numbers = #tpu.dot_dimension_numbers<[2], [1], [1], [2], [0, 0, 0, 1, 1, 2], [0], [0]>} : vector<8x2x2xbf16>, vector<8x2x64xbf16>, vector<8x2x64xf32> -> vector<8x2x64xf32>
    "tpu.trace_stop"() : () -> ()
    %33 = vector.extract_strided_slice %10 {offsets = [0, 0, 64], sizes = [8, 2, 64], strides = [1, 1, 1]} : vector<8x2x512xbf16> to vector<8x2x64xbf16>
    %34 = vector.extract_strided_slice %13 {offsets = [0, 0, 64], sizes = [8, 2, 64], strides = [1, 1, 1]} : vector<8x2x512xbf16> to vector<8x2x64xbf16>
    %35 = vector.extract_strided_slice %16 {offsets = [0, 0, 64], sizes = [8, 2, 64], strides = [1, 1, 1]} : vector<8x2x512xbf16> to vector<8x2x64xbf16>
    "tpu.trace_start"() <{level = 10 : i32, message = "nsd,ntd->nst"}> : () -> ()
    %cst_10 = arith.constant dense<0.000000e+00> : vector<8x2x2xf32>
    %36 = tpu.matmul %33, %34, %cst_10 {dimension_numbers = #tpu.dot_dimension_numbers<[2], [2], [1], [1], [0, 0, 0, 1, 1, 1], [0], [0]>} : vector<8x2x64xbf16>, vector<8x2x64xbf16>, vector<8x2x2xf32> -> vector<8x2x2xf32>
    "tpu.trace_stop"() : () -> ()
    %cst_11 = arith.constant dense<0xFF800000> : vector<8x2xf32>
    %37 = vector.multi_reduction <maximumf>, %36, %cst_11 [2] : vector<8x2x2xf32> to vector<8x2xf32>
    %38 = vector.shape_cast %37 : vector<8x2xf32> to vector<8x2x1xf32>
    %39 = vector.broadcast %38 : vector<8x2x1xf32> to vector<8x2x2xf32>
    %40 = arith.subf %36, %39 : vector<8x2x2xf32>
    %41 = math.exp %40 : vector<8x2x2xf32>
    %cst_12 = arith.constant dense<0.000000e+00> : vector<8x2xf32>
    %42 = vector.multi_reduction <add>, %41, %cst_12 [2] : vector<8x2x2xf32> to vector<8x2xf32>
    %43 = vector.shape_cast %42 : vector<8x2xf32> to vector<8x2x1xf32>
    %44 = tpu.reciprocal %43 {approx = true} : vector<8x2x1xf32> -> vector<8x2x1xf32>
    %45 = vector.broadcast %44 : vector<8x2x1xf32> to vector<8x2x2xf32>
    %46 = arith.mulf %41, %45 : vector<8x2x2xf32>
    %47 = arith.truncf %46 : vector<8x2x2xf32> to vector<8x2x2xbf16>
    "tpu.trace_start"() <{level = 10 : i32, message = "nst,ntd->nsd"}> : () -> ()
    %cst_13 = arith.constant dense<0.000000e+00> : vector<8x2x64xf32>
    %48 = tpu.matmul %47, %35, %cst_13 {dimension_numbers = #tpu.dot_dimension_numbers<[2], [1], [1], [2], [0, 0, 0, 1, 1, 2], [0], [0]>} : vector<8x2x2xbf16>, vector<8x2x64xbf16>, vector<8x2x64xf32> -> vector<8x2x64xf32>
    "tpu.trace_stop"() : () -> ()
    %49 = vector.extract_strided_slice %10 {offsets = [0, 0, 128], sizes = [8, 2, 64], strides = [1, 1, 1]} : vector<8x2x512xbf16> to vector<8x2x64xbf16>
    %50 = vector.extract_strided_slice %13 {offsets = [0, 0, 128], sizes = [8, 2, 64], strides = [1, 1, 1]} : vector<8x2x512xbf16> to vector<8x2x64xbf16>
    %51 = vector.extract_strided_slice %16 {offsets = [0, 0, 128], sizes = [8, 2, 64], strides = [1, 1, 1]} : vector<8x2x512xbf16> to vector<8x2x64xbf16>
    "tpu.trace_start"() <{level = 10 : i32, message = "nsd,ntd->nst"}> : () -> ()
    %cst_14 = arith.constant dense<0.000000e+00> : vector<8x2x2xf32>
    %52 = tpu.matmul %49, %50, %cst_14 {dimension_numbers = #tpu.dot_dimension_numbers<[2], [2], [1], [1], [0, 0, 0, 1, 1, 1], [0], [0]>} : vector<8x2x64xbf16>, vector<8x2x64xbf16>, vector<8x2x2xf32> -> vector<8x2x2xf32>
    "tpu.trace_stop"() : () -> ()
    %cst_15 = arith.constant dense<0xFF800000> : vector<8x2xf32>
    %53 = vector.multi_reduction <maximumf>, %52, %cst_15 [2] : vector<8x2x2xf32> to vector<8x2xf32>
    %54 = vector.shape_cast %53 : vector<8x2xf32> to vector<8x2x1xf32>
    %55 = vector.broadcast %54 : vector<8x2x1xf32> to vector<8x2x2xf32>
    %56 = arith.subf %52, %55 : vector<8x2x2xf32>
    %57 = math.exp %56 : vector<8x2x2xf32>
    %cst_16 = arith.constant dense<0.000000e+00> : vector<8x2xf32>
    %58 = vector.multi_reduction <add>, %57, %cst_16 [2] : vector<8x2x2xf32> to vector<8x2xf32>
    %59 = vector.shape_cast %58 : vector<8x2xf32> to vector<8x2x1xf32>
    %60 = tpu.reciprocal %59 {approx = true} : vector<8x2x1xf32> -> vector<8x2x1xf32>
    %61 = vector.broadcast %60 : vector<8x2x1xf32> to vector<8x2x2xf32>
    %62 = arith.mulf %57, %61 : vector<8x2x2xf32>
    %63 = arith.truncf %62 : vector<8x2x2xf32> to vector<8x2x2xbf16>
    "tpu.trace_start"() <{level = 10 : i32, message = "nst,ntd->nsd"}> : () -> ()
    %cst_17 = arith.constant dense<0.000000e+00> : vector<8x2x64xf32>
    %64 = tpu.matmul %63, %51, %cst_17 {dimension_numbers = #tpu.dot_dimension_numbers<[2], [1], [1], [2], [0, 0, 0, 1, 1, 2], [0], [0]>} : vector<8x2x2xbf16>, vector<8x2x64xbf16>, vector<8x2x64xf32> -> vector<8x2x64xf32>
    "tpu.trace_stop"() : () -> ()
    %65 = vector.extract_strided_slice %10 {offsets = [0, 0, 192], sizes = [8, 2, 64], strides = [1, 1, 1]} : vector<8x2x512xbf16> to vector<8x2x64xbf16>
    %66 = vector.extract_strided_slice %13 {offsets = [0, 0, 192], sizes = [8, 2, 64], strides = [1, 1, 1]} : vector<8x2x512xbf16> to vector<8x2x64xbf16>
    %67 = vector.extract_strided_slice %16 {offsets = [0, 0, 192], sizes = [8, 2, 64], strides = [1, 1, 1]} : vector<8x2x512xbf16> to vector<8x2x64xbf16>
    "tpu.trace_start"() <{level = 10 : i32, message = "nsd,ntd->nst"}> : () -> ()
    %cst_18 = arith.constant dense<0.000000e+00> : vector<8x2x2xf32>
    %68 = tpu.matmul %65, %66, %cst_18 {dimension_numbers = #tpu.dot_dimension_numbers<[2], [2], [1], [1], [0, 0, 0, 1, 1, 1], [0], [0]>} : vector<8x2x64xbf16>, vector<8x2x64xbf16>, vector<8x2x2xf32> -> vector<8x2x2xf32>
    "tpu.trace_stop"() : () -> ()
    %cst_19 = arith.constant dense<0xFF800000> : vector<8x2xf32>
    %69 = vector.multi_reduction <maximumf>, %68, %cst_19 [2] : vector<8x2x2xf32> to vector<8x2xf32>
    %70 = vector.shape_cast %69 : vector<8x2xf32> to vector<8x2x1xf32>
    %71 = vector.broadcast %70 : vector<8x2x1xf32> to vector<8x2x2xf32>
    %72 = arith.subf %68, %71 : vector<8x2x2xf32>
    %73 = math.exp %72 : vector<8x2x2xf32>
    %cst_20 = arith.constant dense<0.000000e+00> : vector<8x2xf32>
    %74 = vector.multi_reduction <add>, %73, %cst_20 [2] : vector<8x2x2xf32> to vector<8x2xf32>
    %75 = vector.shape_cast %74 : vector<8x2xf32> to vector<8x2x1xf32>
    %76 = tpu.reciprocal %75 {approx = true} : vector<8x2x1xf32> -> vector<8x2x1xf32>
    %77 = vector.broadcast %76 : vector<8x2x1xf32> to vector<8x2x2xf32>
    %78 = arith.mulf %73, %77 : vector<8x2x2xf32>
    %79 = arith.truncf %78 : vector<8x2x2xf32> to vector<8x2x2xbf16>
    "tpu.trace_start"() <{level = 10 : i32, message = "nst,ntd->nsd"}> : () -> ()
    %cst_21 = arith.constant dense<0.000000e+00> : vector<8x2x64xf32>
    %80 = tpu.matmul %79, %67, %cst_21 {dimension_numbers = #tpu.dot_dimension_numbers<[2], [1], [1], [2], [0, 0, 0, 1, 1, 2], [0], [0]>} : vector<8x2x2xbf16>, vector<8x2x64xbf16>, vector<8x2x64xf32> -> vector<8x2x64xf32>
    "tpu.trace_stop"() : () -> ()
    %81 = vector.extract_strided_slice %10 {offsets = [0, 0, 256], sizes = [8, 2, 64], strides = [1, 1, 1]} : vector<8x2x512xbf16> to vector<8x2x64xbf16>
    %82 = vector.extract_strided_slice %13 {offsets = [0, 0, 256], sizes = [8, 2, 64], strides = [1, 1, 1]} : vector<8x2x512xbf16> to vector<8x2x64xbf16>
    %83 = vector.extract_strided_slice %16 {offsets = [0, 0, 256], sizes = [8, 2, 64], strides = [1, 1, 1]} : vector<8x2x512xbf16> to vector<8x2x64xbf16>
    "tpu.trace_start"() <{level = 10 : i32, message = "nsd,ntd->nst"}> : () -> ()
    %cst_22 = arith.constant dense<0.000000e+00> : vector<8x2x2xf32>
    %84 = tpu.matmul %81, %82, %cst_22 {dimension_numbers = #tpu.dot_dimension_numbers<[2], [2], [1], [1], [0, 0, 0, 1, 1, 1], [0], [0]>} : vector<8x2x64xbf16>, vector<8x2x64xbf16>, vector<8x2x2xf32> -> vector<8x2x2xf32>
    "tpu.trace_stop"() : () -> ()
    %cst_23 = arith.constant dense<0xFF800000> : vector<8x2xf32>
    %85 = vector.multi_reduction <maximumf>, %84, %cst_23 [2] : vector<8x2x2xf32> to vector<8x2xf32>
    %86 = vector.shape_cast %85 : vector<8x2xf32> to vector<8x2x1xf32>
    %87 = vector.broadcast %86 : vector<8x2x1xf32> to vector<8x2x2xf32>
    %88 = arith.subf %84, %87 : vector<8x2x2xf32>
    %89 = math.exp %88 : vector<8x2x2xf32>
    %cst_24 = arith.constant dense<0.000000e+00> : vector<8x2xf32>
    %90 = vector.multi_reduction <add>, %89, %cst_24 [2] : vector<8x2x2xf32> to vector<8x2xf32>
    %91 = vector.shape_cast %90 : vector<8x2xf32> to vector<8x2x1xf32>
    %92 = tpu.reciprocal %91 {approx = true} : vector<8x2x1xf32> -> vector<8x2x1xf32>
    %93 = vector.broadcast %92 : vector<8x2x1xf32> to vector<8x2x2xf32>
    %94 = arith.mulf %89, %93 : vector<8x2x2xf32>
    %95 = arith.truncf %94 : vector<8x2x2xf32> to vector<8x2x2xbf16>
    "tpu.trace_start"() <{level = 10 : i32, message = "nst,ntd->nsd"}> : () -> ()
    %cst_25 = arith.constant dense<0.000000e+00> : vector<8x2x64xf32>
    %96 = tpu.matmul %95, %83, %cst_25 {dimension_numbers = #tpu.dot_dimension_numbers<[2], [1], [1], [2], [0, 0, 0, 1, 1, 2], [0], [0]>} : vector<8x2x2xbf16>, vector<8x2x64xbf16>, vector<8x2x64xf32> -> vector<8x2x64xf32>
    "tpu.trace_stop"() : () -> ()
    %97 = vector.extract_strided_slice %10 {offsets = [0, 0, 320], sizes = [8, 2, 64], strides = [1, 1, 1]} : vector<8x2x512xbf16> to vector<8x2x64xbf16>
    %98 = vector.extract_strided_slice %13 {offsets = [0, 0, 320], sizes = [8, 2, 64], strides = [1, 1, 1]} : vector<8x2x512xbf16> to vector<8x2x64xbf16>
    %99 = vector.extract_strided_slice %16 {offsets = [0, 0, 320], sizes = [8, 2, 64], strides = [1, 1, 1]} : vector<8x2x512xbf16> to vector<8x2x64xbf16>
    "tpu.trace_start"() <{level = 10 : i32, message = "nsd,ntd->nst"}> : () -> ()
    %cst_26 = arith.constant dense<0.000000e+00> : vector<8x2x2xf32>
    %100 = tpu.matmul %97, %98, %cst_26 {dimension_numbers = #tpu.dot_dimension_numbers<[2], [2], [1], [1], [0, 0, 0, 1, 1, 1], [0], [0]>} : vector<8x2x64xbf16>, vector<8x2x64xbf16>, vector<8x2x2xf32> -> vector<8x2x2xf32>
    "tpu.trace_stop"() : () -> ()
    %cst_27 = arith.constant dense<0xFF800000> : vector<8x2xf32>
    %101 = vector.multi_reduction <maximumf>, %100, %cst_27 [2] : vector<8x2x2xf32> to vector<8x2xf32>
    %102 = vector.shape_cast %101 : vector<8x2xf32> to vector<8x2x1xf32>
    %103 = vector.broadcast %102 : vector<8x2x1xf32> to vector<8x2x2xf32>
    %104 = arith.subf %100, %103 : vector<8x2x2xf32>
    %105 = math.exp %104 : vector<8x2x2xf32>
    %cst_28 = arith.constant dense<0.000000e+00> : vector<8x2xf32>
    %106 = vector.multi_reduction <add>, %105, %cst_28 [2] : vector<8x2x2xf32> to vector<8x2xf32>
    %107 = vector.shape_cast %106 : vector<8x2xf32> to vector<8x2x1xf32>
    %108 = tpu.reciprocal %107 {approx = true} : vector<8x2x1xf32> -> vector<8x2x1xf32>
    %109 = vector.broadcast %108 : vector<8x2x1xf32> to vector<8x2x2xf32>
    %110 = arith.mulf %105, %109 : vector<8x2x2xf32>
    %111 = arith.truncf %110 : vector<8x2x2xf32> to vector<8x2x2xbf16>
    "tpu.trace_start"() <{level = 10 : i32, message = "nst,ntd->nsd"}> : () -> ()
    %cst_29 = arith.constant dense<0.000000e+00> : vector<8x2x64xf32>
    %112 = tpu.matmul %111, %99, %cst_29 {dimension_numbers = #tpu.dot_dimension_numbers<[2], [1], [1], [2], [0, 0, 0, 1, 1, 2], [0], [0]>} : vector<8x2x2xbf16>, vector<8x2x64xbf16>, vector<8x2x64xf32> -> vector<8x2x64xf32>
    "tpu.trace_stop"() : () -> ()
    %113 = vector.extract_strided_slice %10 {offsets = [0, 0, 384], sizes = [8, 2, 64], strides = [1, 1, 1]} : vector<8x2x512xbf16> to vector<8x2x64xbf16>
    %114 = vector.extract_strided_slice %13 {offsets = [0, 0, 384], sizes = [8, 2, 64], strides = [1, 1, 1]} : vector<8x2x512xbf16> to vector<8x2x64xbf16>
    %115 = vector.extract_strided_slice %16 {offsets = [0, 0, 384], sizes = [8, 2, 64], strides = [1, 1, 1]} : vector<8x2x512xbf16> to vector<8x2x64xbf16>
    "tpu.trace_start"() <{level = 10 : i32, message = "nsd,ntd->nst"}> : () -> ()
    %cst_30 = arith.constant dense<0.000000e+00> : vector<8x2x2xf32>
    %116 = tpu.matmul %113, %114, %cst_30 {dimension_numbers = #tpu.dot_dimension_numbers<[2], [2], [1], [1], [0, 0, 0, 1, 1, 1], [0], [0]>} : vector<8x2x64xbf16>, vector<8x2x64xbf16>, vector<8x2x2xf32> -> vector<8x2x2xf32>
    "tpu.trace_stop"() : () -> ()
    %cst_31 = arith.constant dense<0xFF800000> : vector<8x2xf32>
    %117 = vector.multi_reduction <maximumf>, %116, %cst_31 [2] : vector<8x2x2xf32> to vector<8x2xf32>
    %118 = vector.shape_cast %117 : vector<8x2xf32> to vector<8x2x1xf32>
    %119 = vector.broadcast %118 : vector<8x2x1xf32> to vector<8x2x2xf32>
    %120 = arith.subf %116, %119 : vector<8x2x2xf32>
    %121 = math.exp %120 : vector<8x2x2xf32>
    %cst_32 = arith.constant dense<0.000000e+00> : vector<8x2xf32>
    %122 = vector.multi_reduction <add>, %121, %cst_32 [2] : vector<8x2x2xf32> to vector<8x2xf32>
    %123 = vector.shape_cast %122 : vector<8x2xf32> to vector<8x2x1xf32>
    %124 = tpu.reciprocal %123 {approx = true} : vector<8x2x1xf32> -> vector<8x2x1xf32>
    %125 = vector.broadcast %124 : vector<8x2x1xf32> to vector<8x2x2xf32>
    %126 = arith.mulf %121, %125 : vector<8x2x2xf32>
    %127 = arith.truncf %126 : vector<8x2x2xf32> to vector<8x2x2xbf16>
    "tpu.trace_start"() <{level = 10 : i32, message = "nst,ntd->nsd"}> : () -> ()
    %cst_33 = arith.constant dense<0.000000e+00> : vector<8x2x64xf32>
    %128 = tpu.matmul %127, %115, %cst_33 {dimension_numbers = #tpu.dot_dimension_numbers<[2], [1], [1], [2], [0, 0, 0, 1, 1, 2], [0], [0]>} : vector<8x2x2xbf16>, vector<8x2x64xbf16>, vector<8x2x64xf32> -> vector<8x2x64xf32>
    "tpu.trace_stop"() : () -> ()
    %129 = vector.extract_strided_slice %10 {offsets = [0, 0, 448], sizes = [8, 2, 64], strides = [1, 1, 1]} : vector<8x2x512xbf16> to vector<8x2x64xbf16>
    %130 = vector.extract_strided_slice %13 {offsets = [0, 0, 448], sizes = [8, 2, 64], strides = [1, 1, 1]} : vector<8x2x512xbf16> to vector<8x2x64xbf16>
    %131 = vector.extract_strided_slice %16 {offsets = [0, 0, 448], sizes = [8, 2, 64], strides = [1, 1, 1]} : vector<8x2x512xbf16> to vector<8x2x64xbf16>
    "tpu.trace_start"() <{level = 10 : i32, message = "nsd,ntd->nst"}> : () -> ()
    %cst_34 = arith.constant dense<0.000000e+00> : vector<8x2x2xf32>
    %132 = tpu.matmul %129, %130, %cst_34 {dimension_numbers = #tpu.dot_dimension_numbers<[2], [2], [1], [1], [0, 0, 0, 1, 1, 1], [0], [0]>} : vector<8x2x64xbf16>, vector<8x2x64xbf16>, vector<8x2x2xf32> -> vector<8x2x2xf32>
    "tpu.trace_stop"() : () -> ()
    %cst_35 = arith.constant dense<0xFF800000> : vector<8x2xf32>
    %133 = vector.multi_reduction <maximumf>, %132, %cst_35 [2] : vector<8x2x2xf32> to vector<8x2xf32>
    %134 = vector.shape_cast %133 : vector<8x2xf32> to vector<8x2x1xf32>
    %135 = vector.broadcast %134 : vector<8x2x1xf32> to vector<8x2x2xf32>
    %136 = arith.subf %132, %135 : vector<8x2x2xf32>
    %137 = math.exp %136 : vector<8x2x2xf32>
    %cst_36 = arith.constant dense<0.000000e+00> : vector<8x2xf32>
    %138 = vector.multi_reduction <add>, %137, %cst_36 [2] : vector<8x2x2xf32> to vector<8x2xf32>
    %139 = vector.shape_cast %138 : vector<8x2xf32> to vector<8x2x1xf32>
    %140 = tpu.reciprocal %139 {approx = true} : vector<8x2x1xf32> -> vector<8x2x1xf32>
    %141 = vector.broadcast %140 : vector<8x2x1xf32> to vector<8x2x2xf32>
    %142 = arith.mulf %137, %141 : vector<8x2x2xf32>
    %143 = arith.truncf %142 : vector<8x2x2xf32> to vector<8x2x2xbf16>
    "tpu.trace_start"() <{level = 10 : i32, message = "nst,ntd->nsd"}> : () -> ()
    %cst_37 = arith.constant dense<0.000000e+00> : vector<8x2x64xf32>
    %144 = tpu.matmul %143, %131, %cst_37 {dimension_numbers = #tpu.dot_dimension_numbers<[2], [1], [1], [2], [0, 0, 0, 1, 1, 2], [0], [0]>} : vector<8x2x2xbf16>, vector<8x2x64xbf16>, vector<8x2x64xf32> -> vector<8x2x64xf32>
    "tpu.trace_stop"() : () -> ()
    %145 = tpu.concatenate %32, %48, %64, %80, %96, %112, %128, %144 in 2 : vector<8x2x64xf32>, vector<8x2x64xf32>, vector<8x2x64xf32>, vector<8x2x64xf32>, vector<8x2x64xf32>, vector<8x2x64xf32>, vector<8x2x64xf32>, vector<8x2x64xf32> -> vector<8x2x512xf32>
    %146 = vector.shape_cast %145 : vector<8x2x512xf32> to vector<16x512xf32>
    %147 = arith.truncf %146 : vector<16x512xf32> to vector<16x512xbf16>
    %c0_38 = arith.constant 0 : index
    %c0_39 = arith.constant 0 : index
    %148 = vector.load %arg4[%c0_38, %c0_39] : memref<512x512xbf16, #tpu.memory_space<vmem>>, vector<512x512xbf16>
    %cst_40 = arith.constant dense<0.000000e+00> : vector<16x512xf32>
    %149 = tpu.matmul %147, %148, %cst_40 {dimension_numbers = #tpu.dot_dimension_numbers<[1], [0], [0], [1], [0, 0, 1, 1], [], []>} : vector<16x512xbf16>, vector<512x512xbf16>, vector<16x512xf32> -> vector<16x512xf32>
    %c0_41 = arith.constant 0 : index
    %c0_42 = arith.constant 0 : index
    %150 = vector.load %arg5[%c0_41, %c0_42] : memref<1x512xf32, #tpu.memory_space<vmem>>, vector<1x512xf32>
    %151 = vector.broadcast %150 : vector<1x512xf32> to vector<16x512xf32>
    %152 = arith.addf %149, %151 : vector<16x512xf32>
    %153 = vector.shape_cast %152 : vector<16x512xf32> to vector<8x2x512xf32>
    %154 = tpu.transpose %153, [1, 0, 2] : vector<8x2x512xf32> -> vector<2x8x512xf32>
    %155 = arith.truncf %154 : vector<2x8x512xf32> to vector<2x8x512xbf16>
    %c0_43 = arith.constant 0 : index
    %c0_44 = arith.constant 0 : index
    %c0_45 = arith.constant 0 : index
    %156 = vector.load %arg6[%c0_43, %c0_44, %c0_45] : memref<2x8x512xbf16, #tpu.memory_space<vmem>>, vector<2x8x512xbf16>
    tpu.vector_store %arg6[%c0_43, %c0_44, %c0_45], %155 {strides = array<i32>} : memref<2x8x512xbf16, #tpu.memory_space<vmem>>, vector<2x8x512xbf16>,
    return
  }
  func.func @transform_0(%arg0: i32) -> (i32, i32, i32) {
    %c0_i32 = arith.constant 0 : i32
    %c0_i32_0 = arith.constant 0 : i32
    %c0_i32_1 = arith.constant 0 : i32
    return %c0_i32, %arg0, %c0_i32_0 : i32, i32, i32
  }
  func.func @transform_1(%arg0: i32) -> (i32, i32) {
    %c0_i32 = arith.constant 0 : i32
    %c0_i32_0 = arith.constant 0 : i32
    %c0_i32_1 = arith.constant 0 : i32
    return %c0_i32, %c0_i32_0 : i32, i32
  }
  func.func @transform_2(%arg0: i32) -> (i32, i32) {
    %c0_i32 = arith.constant 0 : i32
    %c0_i32_0 = arith.constant 0 : i32
    %c0_i32_1 = arith.constant 0 : i32
    return %c0_i32, %c0_i32_0 : i32, i32
  }
  func.func @transform_3(%arg0: i32) -> (i32, i32) {
    %c0_i32 = arith.constant 0 : i32
    %c0_i32_0 = arith.constant 0 : i32
    %c0_i32_1 = arith.constant 0 : i32
    return %c0_i32, %c0_i32_0 : i32, i32
  }
  func.func @transform_4(%arg0: i32) -> (i32, i32) {
    %c0_i32 = arith.constant 0 : i32
    %c0_i32_0 = arith.constant 0 : i32
    %c0_i32_1 = arith.constant 0 : i32
    return %c0_i32, %c0_i32_0 : i32, i32
  }
  func.func @transform_5(%arg0: i32) -> (i32, i32, i32) {
    %c0_i32 = arith.constant 0 : i32
    %c0_i32_0 = arith.constant 0 : i32
    %c0_i32_1 = arith.constant 0 : i32
    return %c0_i32, %arg0, %c0_i32_0 : i32, i32, i32
  }
}

module attributes {stable_mosaic.version = 11 : i64} {
  func.func @matmul_relu_stats_kernel(%arg0: i32, %arg1: memref<16x512xbf16, #tpu.memory_space<vmem>>, %arg2: memref<512x256xbf16, #tpu.memory_space<vmem>>, %arg3: memref<1x256xf32, #tpu.memory_space<vmem>>, %arg4: memref<16x256xbf16, #tpu.memory_space<vmem>>, %arg5: memref<1x8x256xf32, #tpu.memory_space<vmem>>, %arg6: memref<1x8x256xf32, #tpu.memory_space<vmem>>) attributes {dimension_semantics = [#tpu.dimension_semantics<parallel>], iteration_bounds = array<i64: 1>, scalar_prefetch = 0 : i64, scratch_operands = 0 : i64, tpu.core_type = #tpu.core_type<tc>, window_params = [{transform_indices = @transform_0, window_bounds = array<i64: 16, 512>}, {pipeline_mode = #tpu.pipeline_mode<synchronous>, transform_indices = @transform_1, window_bounds = array<i64: 512, 256>}, {pipeline_mode = #tpu.pipeline_mode<synchronous>, transform_indices = @transform_2, window_bounds = array<i64: 1, 256>}, {transform_indices = @transform_3, window_bounds = array<i64: 16, 256>}, {transform_indices = @transform_4, window_bounds = array<i64: 1, 8, 256>}, {transform_indices = @transform_5, window_bounds = array<i64: 1, 8, 256>}]} {
    %c0 = arith.constant 0 : index
    %c0_0 = arith.constant 0 : index
    %0 = vector.load %arg1[%c0, %c0_0] : memref<16x512xbf16, #tpu.memory_space<vmem>>, vector<16x512xbf16>
    %c0_1 = arith.constant 0 : index
    %c0_2 = arith.constant 0 : index
    %1 = vector.load %arg2[%c0_1, %c0_2] : memref<512x256xbf16, #tpu.memory_space<vmem>>, vector<512x256xbf16>
    %cst = arith.constant dense<0.000000e+00> : vector<16x256xf32>
    %2 = tpu.matmul %0, %1, %cst {dimension_numbers = #tpu.dot_dimension_numbers<[1], [0], [0], [1], [0, 0, 1, 1], [], []>} : vector<16x512xbf16>, vector<512x256xbf16>, vector<16x256xf32> -> vector<16x256xf32>
    %c0_3 = arith.constant 0 : index
    %c0_4 = arith.constant 0 : index
    %3 = vector.load %arg3[%c0_3, %c0_4] : memref<1x256xf32, #tpu.memory_space<vmem>>, vector<1x256xf32>
    %4 = vector.broadcast %3 : vector<1x256xf32> to vector<16x256xf32>
    %5 = arith.addf %2, %4 : vector<16x256xf32>
    %cst_5 = arith.constant 0.000000e+00 : f32
    %6 = vector.broadcast %cst_5 : f32 to vector<16x256xf32>
    %7 = arith.maximumf %5, %6 : vector<16x256xf32>
    %8 = arith.truncf %7 : vector<16x256xf32> to vector<16x256xbf16>
    %c0_6 = arith.constant 0 : index
    %c0_7 = arith.constant 0 : index
    %9 = vector.load %arg4[%c0_6, %c0_7] : memref<16x256xbf16, #tpu.memory_space<vmem>>, vector<16x256xbf16>
    tpu.vector_store %arg4[%c0_6, %c0_7], %8 {strides = array<i32>} : memref<16x256xbf16, #tpu.memory_space<vmem>>, vector<16x256xbf16>,
    %10 = arith.extf %8 : vector<16x256xbf16> to vector<16x256xf32>
    %11 = arith.mulf %10, %10 : vector<16x256xf32>
    %12 = vector.shape_cast %10 : vector<16x256xf32> to vector<2x8x256xf32>
    %cst_8 = arith.constant dense<0.000000e+00> : vector<8x256xf32>
    %13 = vector.multi_reduction <add>, %12, %cst_8 [0] : vector<2x8x256xf32> to vector<8x256xf32>
    %14 = vector.shape_cast %11 : vector<16x256xf32> to vector<2x8x256xf32>
    %cst_9 = arith.constant dense<0.000000e+00> : vector<8x256xf32>
    %15 = vector.multi_reduction <add>, %14, %cst_9 [0] : vector<2x8x256xf32> to vector<8x256xf32>
    %16 = vector.shape_cast %13 : vector<8x256xf32> to vector<1x8x256xf32>
    %c0_10 = arith.constant 0 : index
    %c0_11 = arith.constant 0 : index
    %c0_12 = arith.constant 0 : index
    %17 = vector.load %arg5[%c0_10, %c0_11, %c0_12] : memref<1x8x256xf32, #tpu.memory_space<vmem>>, vector<1x8x256xf32>
    tpu.vector_store %arg5[%c0_10, %c0_11, %c0_12], %16 {strides = array<i32>} : memref<1x8x256xf32, #tpu.memory_space<vmem>>, vector<1x8x256xf32>,
    %18 = vector.shape_cast %15 : vector<8x256xf32> to vector<1x8x256xf32>
    %c0_13 = arith.constant 0 : index
    %c0_14 = arith.constant 0 : index
    %c0_15 = arith.constant 0 : index
    %19 = vector.load %arg6[%c0_13, %c0_14, %c0_15] : memref<1x8x256xf32, #tpu.memory_space<vmem>>, vector<1x8x256xf32>
    tpu.vector_store %arg6[%c0_13, %c0_14, %c0_15], %18 {strides = array<i32>} : memref<1x8x256xf32, #tpu.memory_space<vmem>>, vector<1x8x256xf32>,
    return
  }
  func.func @transform_0(%arg0: i32) -> (i32, i32) {
    %c0_i32 = arith.constant 0 : i32
    %c0_i32_0 = arith.constant 0 : i32
    return %arg0, %c0_i32 : i32, i32
  }
  func.func @transform_1(%arg0: i32) -> (i32, i32) {
    %c0_i32 = arith.constant 0 : i32
    %c0_i32_0 = arith.constant 0 : i32
    %c0_i32_1 = arith.constant 0 : i32
    return %c0_i32, %c0_i32_0 : i32, i32
  }
  func.func @transform_2(%arg0: i32) -> (i32, i32) {
    %c0_i32 = arith.constant 0 : i32
    %c0_i32_0 = arith.constant 0 : i32
    %c0_i32_1 = arith.constant 0 : i32
    return %c0_i32, %c0_i32_0 : i32, i32
  }
  func.func @transform_3(%arg0: i32) -> (i32, i32) {
    %c0_i32 = arith.constant 0 : i32
    %c0_i32_0 = arith.constant 0 : i32
    return %arg0, %c0_i32 : i32, i32
  }
  func.func @transform_4(%arg0: i32) -> (i32, i32, i32) {
    %c0_i32 = arith.constant 0 : i32
    %c0_i32_0 = arith.constant 0 : i32
    %c0_i32_1 = arith.constant 0 : i32
    return %arg0, %c0_i32, %c0_i32_0 : i32, i32, i32
  }
  func.func @transform_5(%arg0: i32) -> (i32, i32, i32) {
    %c0_i32 = arith.constant 0 : i32
    %c0_i32_0 = arith.constant 0 : i32
    %c0_i32_1 = arith.constant 0 : i32
    return %arg0, %c0_i32, %c0_i32_0 : i32, i32, i32
  }
}

module attributes {stable_mosaic.version = 11 : i64} {
  func.func @head_max_kernel(%arg0: i32, %arg1: memref<2x8x256xbf16, #tpu.memory_space<vmem>>, %arg2: memref<1x256xf32, #tpu.memory_space<vmem>>, %arg3: memref<1x1xf32, #tpu.memory_space<smem>>, %arg4: memref<2x1xf32, #tpu.memory_space<vmem>>) attributes {dimension_semantics = [#tpu.dimension_semantics<parallel>], iteration_bounds = array<i64: 1>, scalar_prefetch = 0 : i64, scratch_operands = 0 : i64, tpu.core_type = #tpu.core_type<tc>, window_params = [{transform_indices = @transform_0, window_bounds = array<i64: 2, 8, 256>}, {pipeline_mode = #tpu.pipeline_mode<synchronous>, transform_indices = @transform_1, window_bounds = array<i64: 1, 256>}, {transform_indices = @transform_2, window_bounds = array<i64: 1, 1>}, {transform_indices = @transform_3, window_bounds = array<i64: 2, 1>}]} {
    %c0 = arith.constant 0 : index
    %c0_0 = arith.constant 0 : index
    %c0_1 = arith.constant 0 : index
    %0 = vector.load %arg1[%c0, %c0_0, %c0_1] : memref<2x8x256xbf16, #tpu.memory_space<vmem>>, vector<2x8x256xbf16>
    %1 = arith.extf %0 : vector<2x8x256xbf16> to vector<2x8x256xf32>
    %c0_2 = arith.constant 0 : index
    %c0_3 = arith.constant 0 : index
    %2 = vector.load %arg2[%c0_2, %c0_3] : memref<1x256xf32, #tpu.memory_space<vmem>>, vector<1x256xf32>
    %3 = vector.shape_cast %2 : vector<1x256xf32> to vector<1x1x256xf32>
    %4 = vector.broadcast %3 : vector<1x1x256xf32> to vector<2x8x256xf32>
    %5 = arith.mulf %1, %4 : vector<2x8x256xf32>
    %cst = arith.constant dense<0.000000e+00> : vector<2x8xf32>
    %6 = vector.multi_reduction <add>, %5, %cst [2] : vector<2x8x256xf32> to vector<2x8xf32>
    %c0_4 = arith.constant 0 : index
    %c0_5 = arith.constant 0 : index
    %7 = memref.load %arg3[%c0_4, %c0_5] : memref<1x1xf32, #tpu.memory_space<smem>>
    %8 = vector.broadcast %7 : f32 to vector<2x8xf32>
    %9 = arith.addf %6, %8 : vector<2x8xf32>
    %cst_6 = arith.constant 0.000000e+00 : f32
    %10 = vector.broadcast %cst_6 : f32 to vector<2x8xf32>
    %11 = arith.maximumf %9, %10 : vector<2x8xf32>
    %cst_7 = arith.constant dense<0xFF800000> : vector<2xf32>
    %12 = vector.multi_reduction <maximumf>, %11, %cst_7 [1] : vector<2x8xf32> to vector<2xf32>
    %13 = vector.shape_cast %12 : vector<2xf32> to vector<2x1xf32>
    %c0_8 = arith.constant 0 : index
    %c0_9 = arith.constant 0 : index
    %14 = vector.load %arg4[%c0_8, %c0_9] : memref<2x1xf32, #tpu.memory_space<vmem>>, vector<2x1xf32>
    tpu.vector_store %arg4[%c0_8, %c0_9], %13 {strides = array<i32>} : memref<2x1xf32, #tpu.memory_space<vmem>>, vector<2x1xf32>,
    return
  }
  func.func @transform_0(%arg0: i32) -> (i32, i32, i32) {
    %c0_i32 = arith.constant 0 : i32
    %c0_i32_0 = arith.constant 0 : i32
    %c0_i32_1 = arith.constant 0 : i32
    return %arg0, %c0_i32, %c0_i32_0 : i32, i32, i32
  }
  func.func @transform_1(%arg0: i32) -> (i32, i32) {
    %c0_i32 = arith.constant 0 : i32
    %c0_i32_0 = arith.constant 0 : i32
    %c0_i32_1 = arith.constant 0 : i32
    return %c0_i32, %c0_i32_0 : i32, i32
  }
  func.func @transform_2(%arg0: i32) -> (i32, i32) {
    %c0_i32 = arith.constant 0 : i32
    %c0_i32_0 = arith.constant 0 : i32
    %c0_i32_1 = arith.constant 0 : i32
    return %c0_i32, %c0_i32_0 : i32, i32
  }
  func.func @transform_3(%arg0: i32) -> (i32, i32) {
    %c0_i32 = arith.constant 0 : i32
    %c0_i32_0 = arith.constant 0 : i32
    return %arg0, %c0_i32 : i32, i32
  }
}

</mosaic_0001>

<bundles_post_ra>
// kernel: basic_transformer_forward.5
= control target key start
LH: loop header
LB: loop body
LE: loop exit
PB: predicated region body
PF: predicated region fallthrough
CT: control target
= control target key end

     0   :  { %11 = vsyncpa [#allocation3], 0  ;;  %s430_s0 = inlined_call_operand.vmem [shape: bf16[16,128], index: 0, kind: input, shape index: {}]   ;;  %s431_s1 = inlined_call_operand.hbm [shape: bf16[128,256], index: 1, kind: input, shape index: {}]   ;;  %s432_s2 = inlined_call_operand.hbm [shape: f32[1,256], index: 2, kind: input, shape index: {}]   ;;  %s433_s3 = inlined_call_operand.vmem [shape: bf16[16,256], index: 3, kind: output, shape index: {0}]   ;;  %s434_s4 = inlined_call_operand.vmem [shape: f32[1,8,256], index: 4, kind: output, shape index: {1}]   ;;  %s435_s5 = inlined_call_operand.vmem [shape: f32[1,8,256], index: 5, kind: output, shape index: {2}]  }
   0x1   :  { %12 = vsyncpa [#allocation5], 0  ;;  %s350_s18 = smov [#allocation2]   ;;  %s302_s22 = scalar_lea.hbm %s431_s1, 2048 }
   0x2   :  { %s20_s19 = sshll.u32 %s350_s18, 4  ;;  %p303_p0 = scmp.ne.s32.totalorder %s431_s1, %s302_s22  ;;  %s21_s19 = int_to_ptr.vmem [resolvable:$true] %s20_s19 }
   0x3   :  { %p306_p1 = scmp.lt.u32.totalorder %s302_s22, %s431_s1 }
   0x5   :  { %p308_p2 = pnand %p306_p1, %p303_p0 }
   0x7   :  { %311 = shalt.err (!%p308_p2)
}
   0x8   :  { %s312_s27 = scalar_lea.vmem %s21_s19, 2048  ;;  %p317_p4 = scmp.lt.s32.totalorder %s21_s19, %s21_s19 }
   0x9   :  { %p313_p3 = scmp.ne.s32.totalorder %s21_s19, %s312_s27  ;;  %p318_p5 = scmp.lt.s32.totalorder %s312_s27, %s312_s27 }
   0xb   :  { %p319_p6 = por %p318_p5, %p317_p4 }
   0xd   :  { %p320_p7 = pnand %p319_p6, %p313_p3 }
   0xf   :  { %323 = shalt.err (!%p320_p7)
}
  0x10   :  { %s351_s28 = smov 128   ;;  %s352_s29 = smov 8  }
  0x11   :  { %26 = dma.hbm_to_vmem [thread:$0]  %s431_s1, 2048, %s21_s19, [#allocation3], %s351_s28, %s351_s28, %s352_s29  }
  0x12   :  { %s353_s7 = smov [#allocation4]   ;;  %s324_s11 = scalar_lea.hbm %s432_s2, 32 }
  0x13   :  { %s33_s8 = sshll.u32 %s353_s7, 4  ;;  %p325_p8 = scmp.ne.s32.totalorder %s432_s2, %s324_s11  ;;  %s34_s8 = int_to_ptr.vmem [resolvable:$true] %s33_s8 }
  0x14   :  { %p328_p9 = scmp.lt.u32.totalorder %s324_s11, %s432_s2 }
  0x16   :  { %p330_p10 = pnand %p328_p9, %p325_p8 }
  0x18   :  { %333 = shalt.err (!%p330_p10)
}
  0x19   :  { %s334_s16 = scalar_lea.vmem %s34_s8, 32  ;;  %p339_p12 = scmp.lt.s32.totalorder %s34_s8, %s34_s8 }
  0x1a   :  { %p335_p11 = scmp.ne.s32.totalorder %s34_s8, %s334_s16  ;;  %p340_p13 = scmp.lt.s32.totalorder %s334_s16, %s334_s16 }
  0x1c   :  { %p341_p0 = por %p340_p13, %p339_p12 }
  0x1e   :  { %p342_p1 = pnand %p341_p0, %p335_p11 }
  0x20   :  { %345 = shalt.err (!%p342_p1)
}
  0x21   :  { %36 = dma.hbm_to_vmem [thread:$0]  %s432_s2, 32, %s34_s8, [#allocation5]  }
  0x22   :  { %346 = dma.done.wait [#allocation3], 2048  }
  0x23   :  { %347 = vsyncadd [#allocation3], 4294965248 }
  0x24   :  { %348 = dma.done.wait [#allocation5], 32  }
  0x25   :  { %349 = vsyncadd [#allocation5], 4294967264  ;;  %v354_v0 = vmov 0   ;;  %v277_v1 = vld [vmem:[#allocation2 + $0x4] ss:$8 sps:$4 sm:$0xff]   ;;  %v64_v18 = vlaneseq }
  0x26   :  { %192 = vmatprep.mubr.bf16.mxu0 %v354_v0  ;;  %v279_v2 = vld [vmem:[#allocation2] ss:$8 sps:$4 sm:$0xff]   ;;  %160 = vmatprep.subr.bf16.mxu0 %v277_v1  ;;  %v280_v3 = vld [vmem:[#allocation2 + $0x14] ss:$8 sps:$4 sm:$0xff]   ;;  %v282_v4 = vld [vmem:[#allocation2 + $0x10] ss:$8 sps:$4 sm:$0xff]  }
  0x27   :  { %161 = vmatpush1.bf16.msra.mxu0 %v279_v2  ;;  %v283_v5 = vld [vmem:[#allocation2 + $0x24] ss:$8 sps:$4 sm:$0xff]   ;;  %v285_v6 = vld [vmem:[#allocation2 + $0x20] ss:$8 sps:$4 sm:$0xff]   ;;  %v286_v7 = vld [vmem:[#allocation2 + $0x34] ss:$8 sps:$4 sm:$0xff]  }
  0x28   :  { %162 = vmatprep.subr.bf16.mxu0 %v280_v3  ;;  %v288_v8 = vld [vmem:[#allocation2 + $0x30] ss:$8 sps:$4 sm:$0xff]   ;;  %v289_v9 = vld [vmem:[#allocation2 + $0x44] ss:$8 sps:$4 sm:$0xff]   ;;  %v291_v10 = vld [vmem:[#allocation2 + $0x40] ss:$8 sps:$4 sm:$0xff]  }
  0x29   :  { %v292_v11 = vld [vmem:[#allocation2 + $0x54] ss:$8 sps:$4 sm:$0xff]   ;;  %v294_v12 = vld [vmem:[#allocation2 + $0x50] ss:$8 sps:$4 sm:$0xff]   ;;  %v295_v13 = vld [vmem:[#allocation2 + $0x64] ss:$8 sps:$4 sm:$0xff]  }
  0x2a   :  { %v297_v14 = vld [vmem:[#allocation2 + $0x60] ss:$8 sps:$4 sm:$0xff]   ;;  %v298_v15 = vld [vmem:[#allocation2 + $0x74] ss:$8 sps:$4 sm:$0xff]   ;;  %v300_v16 = vld [vmem:[#allocation2 + $0x70] ss:$8 sps:$4 sm:$0xff]  }
  0x2b   :  { %163 = vmatpush1.bf16.msra.mxu0 %v282_v4  ;;  %v301_v17 = vld [vmem:[%s430_s0] sm:$0xff]   ;;  %v65_v19 = vshrl.u32 %v64_v18, 7 }
  0x2c   :  { %164 = vmatprep.subr.bf16.mxu0 %v283_v5  ;;  %v62_v21 = vld [vmem:[#allocation4] sm:$0x3] }
  0x2d   :  { %v66_v20 = vsub.s32 0, %v65_v19  ;;  %v70_v22 = vsub.s32 1, %v65_v19 }
  0x2f   :  { %165 = vmatpush1.bf16.msra.mxu0 %v285_v6  ;;  %v67_v23 = vrot.slane %v62_v21, %v66_v20  ;;  %v71_v24 = vrot.slane %v62_v21, %v70_v22 }
  0x30   :  { %166 = vmatprep.subr.bf16.mxu0 %v286_v7 }
  0x33   :  { %167 = vmatpush1.bf16.msra.mxu0 %v288_v8 }
  0x34   :  { %168 = vmatprep.subr.bf16.mxu0 %v289_v9 }
  0x37   :  { %169 = vmatpush1.bf16.msra.mxu0 %v291_v10 }
  0x38   :  { %170 = vmatprep.subr.bf16.mxu0 %v292_v11 }
  0x3b   :  { %171 = vmatpush1.bf16.msra.mxu0 %v294_v12 }
  0x3c   :  { %172 = vmatprep.subr.bf16.mxu0 %v295_v13 }
  0x3f   :  { %173 = vmatpush1.bf16.msra.mxu0 %v297_v14 }
  0x40   :  { %174 = vmatprep.subr.bf16.mxu0 %v298_v15 }
  0x43   :  { %175 = vmatpush1.bf16.msra.mxu0 %v300_v16 }
  0x46   :  { %193 = vmatmul.mubr.bf16.vlgmr.msra.gmra.mrb[0].mxu0 %v301_v17 }
 0x119   :  { %v194_v25 = vpop.f32.mrb[0].mxu0 }
 0x11a   :  { %v195_v26 = vadd.f32 %v194_v25, %v67_v23  ;;  %v196_v27 = vpop.f32.mrb[1].mxu0 }
 0x11b   :  { %v197_v28 = vadd.f32 %v196_v27, %v71_v24  ;;  %v198_v29 = vpop.f32.mrb[2].mxu0 }
 0x11c   :  { %v203_v30 = vmax.f32 %v195_v26, 0.0  ;;  %v199_v31 = vadd.f32 %v198_v29, %v67_v23  ;;  %v200_v32 = vpop.f32.mrb[3].mxu0 }
 0x11d   :  { %v204_v33 = vmax.f32 %v197_v28, 0.0  ;;  %v201_v34 = vadd.f32 %v200_v32, %v71_v24 }
 0x11e   :  { %v205_v35 = vmax.f32 %v199_v31, 0.0 }
 0x11f   :  { %v270_v36 = vpack.c.bf16 %v204_v33, %v203_v30  ;;  %v206_v37 = vmax.f32 %v201_v34, 0.0 }
 0x120   :  { %v207_v38 = vpack.c.bf16 %v205_v35, %v203_v30 }
 0x121   :  { %219 = vst [vmem:[%s433_s3] sm:$0xff] %v270_v36  ;;  %v208_v39 = vpack.c.bf16 %v206_v37, %v204_v33  ;;  %v271_v40 = vpack.c.bf16 %v206_v37, %v205_v35 }
 0x122   :  { %v221_v41 = vunpack.c.l.bf16 %v207_v38  ;;  %v223_v42 = vunpack.c.h.bf16 %v207_v38 }
 0x123   :  { %220 = vst [vmem:[%s433_s3 + $0x8] sm:$0xff] %v271_v40  ;;  %v222_v43 = vunpack.c.l.bf16 %v208_v39  ;;  %v224_v44 = vunpack.c.h.bf16 %v208_v39 }
 0x124   :  { %v225_v45 = vmul.f32 %v221_v41, %v221_v41  ;;  %v227_v46 = vmul.f32 %v223_v42, %v223_v42  ;;  %v229_v47 = vadd.f32 %v223_v42, %v221_v41 }
 0x125   :  { %v226_v48 = vmul.f32 %v222_v43, %v222_v43  ;;  %v228_v49 = vmul.f32 %v224_v44, %v224_v44  ;;  %v230_v50 = vadd.f32 %v224_v44, %v222_v43 }
 0x126   :  { %v231_v51 = vadd.f32 %v227_v46, %v225_v45  ;;  %233 = vst [vmem:[%s434_s4] sm:$0xff] %v229_v47 }
 0x127   :  { %v232_v52 = vadd.f32 %v228_v49, %v226_v48  ;;  %234 = vst [vmem:[%s434_s4 + $0x8] sm:$0xff] %v230_v50 }
 0x128   :  { %235 = vst [vmem:[%s435_s5] sm:$0xff] %v231_v51 }
 0x129   :  { %236 = vst [vmem:[%s435_s5 + $0x8] sm:$0xff] %v232_v52 }
 0x12a   :  { %249 = vsyncpa [#allocation3], 1 }
 0x12b   :  { %250 = vsyncpa [#allocation5], 1 }

// kernel: basic_transformer_forward.6
= control target key start
LH: loop header
LB: loop body
LE: loop exit
PB: predicated region body
PF: predicated region fallthrough
CT: control target
= control target key end

     0   :  { %s1041_s1 = inlined_call_operand.vmem [shape: bf16[256,512], index: 1, kind: input, shape index: {}]   ;;  %s1042_s0 = inlined_call_operand.vmem [shape: bf16[16,256], index: 0, kind: input, shape index: {}]   ;;  %s1043_s2 = inlined_call_operand.vmem [shape: f32[1,512], index: 2, kind: input, shape index: {}]   ;;  %s1044_s3 = inlined_call_operand.vmem [shape: bf16[16,512], index: 3, kind: output, shape index: {0}]   ;;  %s1045_s4 = inlined_call_operand.vmem [shape: f32[1,8,512], index: 4, kind: output, shape index: {1}]   ;;  %s1046_s5 = inlined_call_operand.vmem [shape: f32[1,8,512], index: 5, kind: output, shape index: {2}]  }
   0x1   :  { %v675_v0 = vld [vmem:[%s1041_s1 + $0x4] ss:$16 sps:$4 sm:$0xff]   ;;  %v677_v1 = vld [vmem:[%s1041_s1 + $0xc] ss:$16 sps:$4 sm:$0xff]   ;;  %v679_v2 = vld [vmem:[%s1041_s1] ss:$16 sps:$4 sm:$0xff]  }
   0x2   :  { %435 = vmatprep.subr.bf16.mxu0 %v675_v0  ;;  %v680_v3 = vld [vmem:[%s1041_s1 + $0x8] ss:$16 sps:$4 sm:$0xff]   ;;  %478 = vmatprep.subr.bf16.mxu1 %v677_v1  ;;  %v681_v4 = vld [vmem:[%s1041_s1 + $0x24] ss:$16 sps:$4 sm:$0xff]   ;;  %v683_v5 = vld [vmem:[%s1041_s1 + $0x2c] ss:$16 sps:$4 sm:$0xff]  }
   0x3   :  { %436 = vmatpush1.bf16.msra.mxu0 %v679_v2  ;;  %479 = vmatpush1.bf16.msra.mxu1 %v680_v3  ;;  %v685_v6 = vld [vmem:[%s1041_s1 + $0x20] ss:$16 sps:$4 sm:$0xff]   ;;  %v686_v7 = vld [vmem:[%s1041_s1 + $0x28] ss:$16 sps:$4 sm:$0xff]   ;;  %v687_v8 = vld [vmem:[%s1041_s1 + $0x44] ss:$16 sps:$4 sm:$0xff]   ;;  %v85_v2 = vlaneseq }
   0x4   :  { %437 = vmatprep.subr.bf16.mxu0 %v681_v4  ;;  %480 = vmatprep.subr.bf16.mxu1 %v683_v5  ;;  %v689_v9 = vld [vmem:[%s1041_s1 + $0x4c] ss:$16 sps:$4 sm:$0xff]   ;;  %v691_v10 = vld [vmem:[%s1041_s1 + $0x40] ss:$16 sps:$4 sm:$0xff]   ;;  %v692_v11 = vld [vmem:[%s1041_s1 + $0x48] ss:$16 sps:$4 sm:$0xff]  }
   0x5   :  { %v693_v12 = vld [vmem:[%s1041_s1 + $0x64] ss:$16 sps:$4 sm:$0xff]   ;;  %v695_v13 = vld [vmem:[%s1041_s1 + $0x6c] ss:$16 sps:$4 sm:$0xff]   ;;  %v697_v14 = vld [vmem:[%s1041_s1 + $0x60] ss:$16 sps:$4 sm:$0xff]  }
   0x6   :  { %v698_v15 = vld [vmem:[%s1041_s1 + $0x68] ss:$16 sps:$4 sm:$0xff]   ;;  %v699_v16 = vld [vmem:[%s1041_s1 + $0x84] ss:$16 sps:$4 sm:$0xff]   ;;  %v701_v17 = vld [vmem:[%s1041_s1 + $0x8c] ss:$16 sps:$4 sm:$0xff]  }
   0x7   :  { %438 = vmatpush1.bf16.msra.mxu0 %v685_v6  ;;  %481 = vmatpush1.bf16.msra.mxu1 %v686_v7  ;;  %v703_v18 = vld [vmem:[%s1041_s1 + $0x80] ss:$16 sps:$4 sm:$0xff]   ;;  %v704_v19 = vld [vmem:[%s1041_s1 + $0x88] ss:$16 sps:$4 sm:$0xff]   ;;  %v705_v20 = vld [vmem:[%s1041_s1 + $0xa4] ss:$16 sps:$4 sm:$0xff]  }
   0x8   :  { %439 = vmatprep.subr.bf16.mxu0 %v687_v8  ;;  %482 = vmatprep.subr.bf16.mxu1 %v689_v9  ;;  %v707_v21 = vld [vmem:[%s1041_s1 + $0xac] ss:$16 sps:$4 sm:$0xff]   ;;  %v709_v22 = vld [vmem:[%s1041_s1 + $0xa0] ss:$16 sps:$4 sm:$0xff]   ;;  %v710_v23 = vld [vmem:[%s1041_s1 + $0xa8] ss:$16 sps:$4 sm:$0xff]  }
   0x9   :  { %v711_v24 = vld [vmem:[%s1041_s1 + $0xc4] ss:$16 sps:$4 sm:$0xff]   ;;  %v713_v25 = vld [vmem:[%s1041_s1 + $0xcc] ss:$16 sps:$4 sm:$0xff]   ;;  %v715_v26 = vld [vmem:[%s1041_s1 + $0xc0] ss:$16 sps:$4 sm:$0xff]  }
   0xa   :  { %v716_v27 = vld [vmem:[%s1041_s1 + $0xc8] ss:$16 sps:$4 sm:$0xff]   ;;  %v717_v28 = vld [vmem:[%s1041_s1 + $0xe4] ss:$16 sps:$4 sm:$0xff]   ;;  %v719_v29 = vld [vmem:[%s1041_s1 + $0xec] ss:$16 sps:$4 sm:$0xff]  }
   0xb   :  { %440 = vmatpush1.bf16.msra.mxu0 %v691_v10  ;;  %483 = vmatpush1.bf16.msra.mxu1 %v692_v11  ;;  %v721_v30 = vld [vmem:[%s1041_s1 + $0xe0] ss:$16 sps:$4 sm:$0xff]   ;;  %v722_v31 = vld [vmem:[%s1041_s1 + $0xe8] ss:$16 sps:$4 sm:$0xff]   ;;  %v723_v32 = vld [vmem:[%s1041_s1 + $0x104] ss:$16 sps:$4 sm:$0xff]  }
   0xc   :  { %441 = vmatprep.subr.bf16.mxu0 %v693_v12  ;;  %484 = vmatprep.subr.bf16.mxu1 %v695_v13  ;;  %v725_v33 = vld [vmem:[%s1041_s1 + $0x10c] ss:$16 sps:$4 sm:$0xff]   ;;  %v727_v34 = vld [vmem:[%s1041_s1 + $0x100] ss:$16 sps:$4 sm:$0xff]   ;;  %v728_v35 = vld [vmem:[%s1041_s1 + $0x108] ss:$16 sps:$4 sm:$0xff]  }
   0xd   :  { %v729_v36 = vld [vmem:[%s1041_s1 + $0x124] ss:$16 sps:$4 sm:$0xff]   ;;  %v731_v37 = vld [vmem:[%s1041_s1 + $0x12c] ss:$16 sps:$4 sm:$0xff]   ;;  %v733_v38 = vld [vmem:[%s1041_s1 + $0x120] ss:$16 sps:$4 sm:$0xff]  }
   0xe   :  { %v734_v39 = vld [vmem:[%s1041_s1 + $0x128] ss:$16 sps:$4 sm:$0xff]   ;;  %v735_v40 = vld [vmem:[%s1041_s1 + $0x144] ss:$16 sps:$4 sm:$0xff]   ;;  %v737_v41 = vld [vmem:[%s1041_s1 + $0x14c] ss:$16 sps:$4 sm:$0xff]  }
   0xf   :  { %442 = vmatpush1.bf16.msra.mxu0 %v697_v14  ;;  %485 = vmatpush1.bf16.msra.mxu1 %v698_v15  ;;  %v739_v42 = vld [vmem:[%s1041_s1 + $0x140] ss:$16 sps:$4 sm:$0xff]   ;;  %v740_v43 = vld [vmem:[%s1041_s1 + $0x148] ss:$16 sps:$4 sm:$0xff]   ;;  %v741_v44 = vld [vmem:[%s1041_s1 + $0x164] ss:$16 sps:$4 sm:$0xff]  }
  0x10   :  { %443 = vmatprep.subr.bf16.mxu0 %v699_v16  ;;  %486 = vmatprep.subr.bf16.mxu1 %v701_v17  ;;  %v743_v45 = vld [vmem:[%s1041_s1 + $0x16c] ss:$16 sps:$4 sm:$0xff]   ;;  %v745_v47 = vld [vmem:[%s1041_s1 + $0x160] ss:$16 sps:$4 sm:$0xff]   ;;  %v746_v48 = vld [vmem:[%s1041_s1 + $0x168] ss:$16 sps:$4 sm:$0xff]  }
  0x11   :  { %v773_v46 = vld [vmem:[%s1042_s0 + $0x4] ss:$8 sps:$4 sm:$0xff]   ;;  %v751_v51 = vld [vmem:[%s1041_s1 + $0x180] ss:$16 sps:$4 sm:$0xff]   ;;  %v752_v52 = vld [vmem:[%s1041_s1 + $0x188] ss:$16 sps:$4 sm:$0xff]  }
  0x12   :  { %v747_v49 = vld [vmem:[%s1041_s1 + $0x184] ss:$16 sps:$4 sm:$0xff]   ;;  %v749_v50 = vld [vmem:[%s1041_s1 + $0x18c] ss:$16 sps:$4 sm:$0xff]   ;;  %467 = vmatprep.mubr.bf16.mxu0 %v773_v46  ;;  %510 = vmatprep.mubr.bf16.mxu1 %v773_v46  ;;  %v757_v55 = vld [vmem:[%s1041_s1 + $0x1a0] ss:$16 sps:$4 sm:$0xff]  }
  0x13   :  { %444 = vmatpush1.bf16.msra.mxu0 %v703_v18  ;;  %487 = vmatpush1.bf16.msra.mxu1 %v704_v19  ;;  %v753_v53 = vld [vmem:[%s1041_s1 + $0x1a4] ss:$16 sps:$4 sm:$0xff]   ;;  %v755_v54 = vld [vmem:[%s1041_s1 + $0x1ac] ss:$16 sps:$4 sm:$0xff]   ;;  %v758_v56 = vld [vmem:[%s1041_s1 + $0x1a8] ss:$16 sps:$4 sm:$0xff]  }
  0x14   :  { %445 = vmatprep.subr.bf16.mxu0 %v705_v20  ;;  %488 = vmatprep.subr.bf16.mxu1 %v707_v21  ;;  %v759_v57 = vld [vmem:[%s1041_s1 + $0x1c4] ss:$16 sps:$4 sm:$0xff]   ;;  %v761_v58 = vld [vmem:[%s1041_s1 + $0x1cc] ss:$16 sps:$4 sm:$0xff]   ;;  %v763_v59 = vld [vmem:[%s1041_s1 + $0x1c0] ss:$16 sps:$4 sm:$0xff]  }
  0x15   :  { %v764_v60 = vld [vmem:[%s1041_s1 + $0x1c8] ss:$16 sps:$4 sm:$0xff]   ;;  %v765_v61 = vld [vmem:[%s1041_s1 + $0x1e4] ss:$16 sps:$4 sm:$0xff]   ;;  %v767_v62 = vld [vmem:[%s1041_s1 + $0x1ec] ss:$16 sps:$4 sm:$0xff]  }
  0x16   :  { %v769_v63 = vld [vmem:[%s1041_s1 + $0x1e0] ss:$16 sps:$4 sm:$0xff]   ;;  %v770_v0 = vld [vmem:[%s1041_s1 + $0x1e8] ss:$16 sps:$4 sm:$0xff]   ;;  %v86_v3 = vshrl.u32 %v85_v2, 7 }
  0x17   :  { %446 = vmatpush1.bf16.msra.mxu0 %v709_v22  ;;  %489 = vmatpush1.bf16.msra.mxu1 %v710_v23  ;;  %v771_v1 = vld [vmem:[%s1042_s0] ss:$8 sps:$4 sm:$0xff]  }
  0x18   :  { %447 = vmatprep.subr.bf16.mxu0 %v711_v24  ;;  %490 = vmatprep.subr.bf16.mxu1 %v713_v25  ;;  %v87_v4 = vsub.s32 0, %v86_v3  ;;  %v95_v5 = vsub.s32 2, %v86_v3  ;;  %v83_v6 = vld [vmem:[%s1043_s2] sm:$0xf]  ;;  %v91_v7 = vsub.s32 1, %v86_v3  ;;  %v99_v8 = vsub.s32 3, %v86_v3 }
  0x1a   :  { %v88_v9 = vrot.slane %v83_v6, %v87_v4  ;;  %v96_v10 = vrot.slane %v83_v6, %v95_v5  ;;  %v92_v11 = vrot.slane %v83_v6, %v91_v7  ;;  %v100_v12 = vrot.slane %v83_v6, %v99_v8 }
  0x1b   :  { %448 = vmatpush1.bf16.msra.mxu0 %v715_v26  ;;  %491 = vmatpush1.bf16.msra.mxu1 %v716_v27 }
  0x1c   :  { %449 = vmatprep.subr.bf16.mxu0 %v717_v28  ;;  %492 = vmatprep.subr.bf16.mxu1 %v719_v29 }
  0x1f   :  { %450 = vmatpush1.bf16.msra.mxu0 %v721_v30  ;;  %493 = vmatpush1.bf16.msra.mxu1 %v722_v31 }
  0x20   :  { %451 = vmatprep.subr.bf16.mxu0 %v723_v32  ;;  %494 = vmatprep.subr.bf16.mxu1 %v725_v33 }
  0x23   :  { %452 = vmatpush1.bf16.msra.mxu0 %v727_v34  ;;  %495 = vmatpush1.bf16.msra.mxu1 %v728_v35 }
  0x24   :  { %453 = vmatprep.subr.bf16.mxu0 %v729_v36  ;;  %496 = vmatprep.subr.bf16.mxu1 %v731_v37 }
  0x27   :  { %454 = vmatpush1.bf16.msra.mxu0 %v733_v38  ;;  %497 = vmatpush1.bf16.msra.mxu1 %v734_v39 }
  0x28   :  { %455 = vmatprep.subr.bf16.mxu0 %v735_v40  ;;  %498 = vmatprep.subr.bf16.mxu1 %v737_v41 }
  0x2b   :  { %456 = vmatpush1.bf16.msra.mxu0 %v739_v42  ;;  %499 = vmatpush1.bf16.msra.mxu1 %v740_v43 }
  0x2c   :  { %457 = vmatprep.subr.bf16.mxu0 %v741_v44  ;;  %500 = vmatprep.subr.bf16.mxu1 %v743_v45 }
  0x2f   :  { %458 = vmatpush1.bf16.msra.mxu0 %v745_v47  ;;  %501 = vmatpush1.bf16.msra.mxu1 %v746_v48 }
  0x30   :  { %459 = vmatprep.subr.bf16.mxu0 %v747_v49  ;;  %502 = vmatprep.subr.bf16.mxu1 %v749_v50 }
  0x33   :  { %460 = vmatpush1.bf16.msra.mxu0 %v751_v51  ;;  %503 = vmatpush1.bf16.msra.mxu1 %v752_v52 }
  0x34   :  { %461 = vmatprep.subr.bf16.mxu0 %v753_v53  ;;  %504 = vmatprep.subr.bf16.mxu1 %v755_v54 }
  0x37   :  { %462 = vmatpush1.bf16.msra.mxu0 %v757_v55  ;;  %505 = vmatpush1.bf16.msra.mxu1 %v758_v56 }
  0x38   :  { %463 = vmatprep.subr.bf16.mxu0 %v759_v57  ;;  %506 = vmatprep.subr.bf16.mxu1 %v761_v58 }
  0x3b   :  { %464 = vmatpush1.bf16.msra.mxu0 %v763_v59  ;;  %507 = vmatpush1.bf16.msra.mxu1 %v764_v60 }
  0x3c   :  { %465 = vmatprep.subr.bf16.mxu0 %v765_v61  ;;  %508 = vmatprep.subr.bf16.mxu1 %v767_v62 }
  0x3f   :  { %466 = vmatpush1.bf16.msra.mxu0 %v769_v63  ;;  %509 = vmatpush1.bf16.msra.mxu1 %v770_v0 }
  0x42   :  { %468 = vmatmul.mubr.bf16.vlgmr.msra.gmra.mrb[0].mxu0 %v771_v1  ;;  %511 = vmatmul.mubr.bf16.vlgmr.msra.gmra.mrb[0].mxu1 %v771_v1 }
 0x115   :  { %v469_v13 = vpop.f32.mrb[0].mxu0  ;;  %v512_v14 = vpop.f32.mrb[0].mxu1 }
 0x116   :  { %v470_v15 = vadd.f32 %v469_v13, %v88_v9  ;;  %v513_v16 = vadd.f32 %v512_v14, %v96_v10  ;;  %v471_v17 = vpop.f32.mrb[1].mxu0  ;;  %v514_v18 = vpop.f32.mrb[1].mxu1 }
 0x117   :  { %v472_v19 = vadd.f32 %v471_v17, %v92_v11  ;;  %v515_v20 = vadd.f32 %v514_v18, %v100_v12  ;;  %v473_v21 = vpop.f32.mrb[2].mxu0  ;;  %v516_v22 = vpop.f32.mrb[2].mxu1 }
 0x118   :  { %v521_v23 = vmax.f32 %v470_v15, 0.0  ;;  %v523_v24 = vmax.f32 %v513_v16, 0.0  ;;  %v474_v25 = vadd.f32 %v473_v21, %v88_v9  ;;  %v517_v26 = vadd.f32 %v516_v22, %v96_v10  ;;  %v475_v27 = vpop.f32.mrb[3].mxu0  ;;  %v518_v28 = vpop.f32.mrb[3].mxu1 }
 0x119   :  { %v522_v29 = vmax.f32 %v472_v19, 0.0  ;;  %v524_v30 = vmax.f32 %v515_v20, 0.0  ;;  %v476_v31 = vadd.f32 %v475_v27, %v92_v11  ;;  %v519_v32 = vadd.f32 %v518_v28, %v100_v12 }
 0x11a   :  { %v525_v33 = vmax.f32 %v474_v25, 0.0  ;;  %v527_v34 = vmax.f32 %v517_v26, 0.0 }
 0x11b   :  { %v671_v35 = vpack.c.bf16 %v522_v29, %v521_v23  ;;  %v672_v36 = vpack.c.bf16 %v524_v30, %v523_v24  ;;  %v526_v37 = vmax.f32 %v476_v31, 0.0  ;;  %v528_v38 = vmax.f32 %v519_v32, 0.0 }
 0x11c   :  { %v529_v39 = vpack.c.bf16 %v525_v33, %v521_v23  ;;  %v531_v40 = vpack.c.bf16 %v527_v34, %v523_v24 }
 0x11d   :  { %553 = vst [vmem:[%s1044_s3] sm:$0xff] %v671_v35  ;;  %554 = vst [vmem:[%s1044_s3 + $0x8] sm:$0xff] %v672_v36  ;;  %v530_v41 = vpack.c.bf16 %v526_v37, %v522_v29  ;;  %v673_v42 = vpack.c.bf16 %v526_v37, %v525_v33  ;;  %v532_v43 = vpack.c.bf16 %v528_v38, %v524_v30 }
 0x11e   :  { %v674_v44 = vpack.c.bf16 %v528_v38, %v527_v34  ;;  %v557_v45 = vunpack.c.l.bf16 %v529_v39  ;;  %v561_v46 = vunpack.c.h.bf16 %v529_v39  ;;  %v559_v47 = vunpack.c.l.bf16 %v531_v40 }
 0x11f   :  { %v563_v48 = vunpack.c.h.bf16 %v531_v40  ;;  %555 = vst [vmem:[%s1044_s3 + $0x10] sm:$0xff] %v673_v42  ;;  %v558_v49 = vunpack.c.l.bf16 %v530_v41  ;;  %v562_v50 = vunpack.c.h.bf16 %v530_v41  ;;  %v560_v51 = vunpack.c.l.bf16 %v532_v43 }
 0x120   :  { %556 = vst [vmem:[%s1044_s3 + $0x18] sm:$0xff] %v674_v44  ;;  %v564_v52 = vunpack.c.h.bf16 %v532_v43  ;;  %v565_v53 = vmul.f32 %v557_v45, %v557_v45  ;;  %v569_v54 = vmul.f32 %v561_v46, %v561_v46  ;;  %v573_v55 = vadd.f32 %v561_v46, %v557_v45 }
 0x121   :  { %v567_v56 = vmul.f32 %v559_v47, %v559_v47  ;;  %v571_v57 = vmul.f32 %v563_v48, %v563_v48  ;;  %v575_v58 = vadd.f32 %v563_v48, %v559_v47  ;;  %v566_v59 = vmul.f32 %v558_v49, %v558_v49 }
 0x122   :  { %v570_v60 = vmul.f32 %v562_v50, %v562_v50  ;;  %v577_v61 = vadd.f32 %v569_v54, %v565_v53  ;;  %581 = vst [vmem:[%s1045_s4] sm:$0xff] %v573_v55  ;;  %v574_v62 = vadd.f32 %v562_v50, %v558_v49  ;;  %v568_v63 = vmul.f32 %v560_v51, %v560_v51 }
 0x123   :  { %v572_v0 = vmul.f32 %v564_v52, %v564_v52  ;;  %v579_v1 = vadd.f32 %v571_v57, %v567_v56  ;;  %583 = vst [vmem:[%s1045_s4 + $0x10] sm:$0xff] %v575_v58  ;;  %v576_v3 = vadd.f32 %v564_v52, %v560_v51 }
 0x124   :  { %v578_v2 = vadd.f32 %v570_v60, %v566_v59  ;;  %585 = vst [vmem:[%s1046_s5] sm:$0xff] %v577_v61  ;;  %582 = vst [vmem:[%s1045_s4 + $0x8] sm:$0xff] %v574_v62 }
 0x125   :  { %v580_v4 = vadd.f32 %v572_v0, %v568_v63  ;;  %587 = vst [vmem:[%s1046_s5 + $0x10] sm:$0xff] %v579_v1  ;;  %584 = vst [vmem:[%s1045_s4 + $0x18] sm:$0xff] %v576_v3 }
 0x126   :  { %586 = vst [vmem:[%s1046_s5 + $0x8] sm:$0xff] %v578_v2 }
 0x127   :  { %588 = vst [vmem:[%s1046_s5 + $0x18] sm:$0xff] %v580_v4 }

// kernel: basic_transformer_forward.8
= control target key start
LH: loop header
LB: loop body
LE: loop exit
PB: predicated region body
PF: predicated region fallthrough
CT: control target
= control target key end

     0   :  { %s1006_s1 = inlined_call_operand.vmem [shape: bf16[512,256], index: 1, kind: input, shape index: {}]   ;;  %s1007_s0 = inlined_call_operand.vmem [shape: bf16[16,512], index: 0, kind: input, shape index: {}]   ;;  %s1008_s2 = inlined_call_operand.vmem [shape: f32[1,256], index: 2, kind: input, shape index: {}]   ;;  %s1009_s3 = inlined_call_operand.vmem [shape: bf16[16,256], index: 3, kind: output, shape index: {0}]   ;;  %s1010_s4 = inlined_call_operand.vmem [shape: f32[1,8,256], index: 4, kind: output, shape index: {1}]   ;;  %s1011_s5 = inlined_call_operand.vmem [shape: f32[1,8,256], index: 5, kind: output, shape index: {2}]  }
   0x1   :  { %v649_v0 = vld [vmem:[%s1006_s1 + $0x4] ss:$8 sps:$4 sm:$0xff]   ;;  %v653_v2 = vld [vmem:[%s1006_s1] ss:$8 sps:$4 sm:$0xff]   ;;  %v655_v4 = vld [vmem:[%s1006_s1 + $0x14] ss:$8 sps:$4 sm:$0xff]  }
   0x2   :  { %v651_v1 = vld [vmem:[%s1006_s1 + $0x104] ss:$8 sps:$4 sm:$0xff]   ;;  %437 = vmatprep.subr.bf16.mxu1 %v649_v0  ;;  %v654_v3 = vld [vmem:[%s1006_s1 + $0x100] ss:$8 sps:$4 sm:$0xff]   ;;  %v657_v5 = vld [vmem:[%s1006_s1 + $0x114] ss:$8 sps:$4 sm:$0xff]  }
   0x3   :  { %480 = vmatprep.subr.bf16.mxu0 %v651_v1  ;;  %438 = vmatpush1.bf16.msra.mxu1 %v653_v2  ;;  %v659_v6 = vld [vmem:[%s1006_s1 + $0x10] ss:$8 sps:$4 sm:$0xff]   ;;  %v661_v8 = vld [vmem:[%s1006_s1 + $0x24] ss:$8 sps:$4 sm:$0xff]   ;;  %v665_v10 = vld [vmem:[%s1006_s1 + $0x20] ss:$8 sps:$4 sm:$0xff]  }
   0x4   :  { %481 = vmatpush1.bf16.msra.mxu0 %v654_v3  ;;  %439 = vmatprep.subr.bf16.mxu1 %v655_v4  ;;  %v660_v7 = vld [vmem:[%s1006_s1 + $0x110] ss:$8 sps:$4 sm:$0xff]   ;;  %v663_v9 = vld [vmem:[%s1006_s1 + $0x124] ss:$8 sps:$4 sm:$0xff]   ;;  %v666_v11 = vld [vmem:[%s1006_s1 + $0x120] ss:$8 sps:$4 sm:$0xff]   ;;  %v87_v4 = vlaneseq }
   0x5   :  { %482 = vmatprep.subr.bf16.mxu0 %v657_v5  ;;  %v667_v12 = vld [vmem:[%s1006_s1 + $0x34] ss:$8 sps:$4 sm:$0xff]   ;;  %v671_v14 = vld [vmem:[%s1006_s1 + $0x30] ss:$8 sps:$4 sm:$0xff]   ;;  %v673_v16 = vld [vmem:[%s1006_s1 + $0x44] ss:$8 sps:$4 sm:$0xff]  }
   0x6   :  { %v669_v13 = vld [vmem:[%s1006_s1 + $0x134] ss:$8 sps:$4 sm:$0xff]   ;;  %v672_v15 = vld [vmem:[%s1006_s1 + $0x130] ss:$8 sps:$4 sm:$0xff]   ;;  %v675_v17 = vld [vmem:[%s1006_s1 + $0x144] ss:$8 sps:$4 sm:$0xff]  }
   0x7   :  { %440 = vmatpush1.bf16.msra.mxu1 %v659_v6  ;;  %v677_v18 = vld [vmem:[%s1006_s1 + $0x40] ss:$8 sps:$4 sm:$0xff]   ;;  %v679_v20 = vld [vmem:[%s1006_s1 + $0x54] ss:$8 sps:$4 sm:$0xff]   ;;  %v683_v22 = vld [vmem:[%s1006_s1 + $0x50] ss:$8 sps:$4 sm:$0xff]  }
   0x8   :  { %483 = vmatpush1.bf16.msra.mxu0 %v660_v7  ;;  %441 = vmatprep.subr.bf16.mxu1 %v661_v8  ;;  %v678_v19 = vld [vmem:[%s1006_s1 + $0x140] ss:$8 sps:$4 sm:$0xff]   ;;  %v681_v21 = vld [vmem:[%s1006_s1 + $0x154] ss:$8 sps:$4 sm:$0xff]   ;;  %v684_v23 = vld [vmem:[%s1006_s1 + $0x150] ss:$8 sps:$4 sm:$0xff]  }
   0x9   :  { %484 = vmatprep.subr.bf16.mxu0 %v663_v9  ;;  %v685_v24 = vld [vmem:[%s1006_s1 + $0x64] ss:$8 sps:$4 sm:$0xff]   ;;  %v689_v26 = vld [vmem:[%s1006_s1 + $0x60] ss:$8 sps:$4 sm:$0xff]   ;;  %v691_v28 = vld [vmem:[%s1006_s1 + $0x74] ss:$8 sps:$4 sm:$0xff]  }
   0xa   :  { %v687_v25 = vld [vmem:[%s1006_s1 + $0x164] ss:$8 sps:$4 sm:$0xff]   ;;  %v690_v27 = vld [vmem:[%s1006_s1 + $0x160] ss:$8 sps:$4 sm:$0xff]   ;;  %v693_v29 = vld [vmem:[%s1006_s1 + $0x174] ss:$8 sps:$4 sm:$0xff]  }
   0xb   :  { %442 = vmatpush1.bf16.msra.mxu1 %v665_v10  ;;  %v695_v30 = vld [vmem:[%s1006_s1 + $0x70] ss:$8 sps:$4 sm:$0xff]   ;;  %v697_v32 = vld [vmem:[%s1006_s1 + $0x84] ss:$8 sps:$4 sm:$0xff]   ;;  %v701_v34 = vld [vmem:[%s1006_s1 + $0x80] ss:$8 sps:$4 sm:$0xff]  }
   0xc   :  { %485 = vmatpush1.bf16.msra.mxu0 %v666_v11  ;;  %443 = vmatprep.subr.bf16.mxu1 %v667_v12  ;;  %v696_v31 = vld [vmem:[%s1006_s1 + $0x170] ss:$8 sps:$4 sm:$0xff]   ;;  %v699_v33 = vld [vmem:[%s1006_s1 + $0x184] ss:$8 sps:$4 sm:$0xff]   ;;  %v702_v35 = vld [vmem:[%s1006_s1 + $0x180] ss:$8 sps:$4 sm:$0xff]  }
   0xd   :  { %486 = vmatprep.subr.bf16.mxu0 %v669_v13  ;;  %v703_v36 = vld [vmem:[%s1006_s1 + $0x94] ss:$8 sps:$4 sm:$0xff]   ;;  %v707_v38 = vld [vmem:[%s1006_s1 + $0x90] ss:$8 sps:$4 sm:$0xff]   ;;  %v709_v40 = vld [vmem:[%s1006_s1 + $0xa4] ss:$8 sps:$4 sm:$0xff]  }
   0xe   :  { %v705_v37 = vld [vmem:[%s1006_s1 + $0x194] ss:$8 sps:$4 sm:$0xff]   ;;  %v708_v39 = vld [vmem:[%s1006_s1 + $0x190] ss:$8 sps:$4 sm:$0xff]   ;;  %v711_v41 = vld [vmem:[%s1006_s1 + $0x1a4] ss:$8 sps:$4 sm:$0xff]  }
   0xf   :  { %444 = vmatpush1.bf16.msra.mxu1 %v671_v14  ;;  %v713_v42 = vld [vmem:[%s1006_s1 + $0xa0] ss:$8 sps:$4 sm:$0xff]   ;;  %v715_v44 = vld [vmem:[%s1006_s1 + $0xb4] ss:$8 sps:$4 sm:$0xff]   ;;  %v719_v46 = vld [vmem:[%s1006_s1 + $0xb0] ss:$8 sps:$4 sm:$0xff]  }
  0x10   :  { %487 = vmatpush1.bf16.msra.mxu0 %v672_v15  ;;  %445 = vmatprep.subr.bf16.mxu1 %v673_v16  ;;  %v714_v43 = vld [vmem:[%s1006_s1 + $0x1a0] ss:$8 sps:$4 sm:$0xff]   ;;  %v717_v45 = vld [vmem:[%s1006_s1 + $0x1b4] ss:$8 sps:$4 sm:$0xff]   ;;  %v720_v48 = vld [vmem:[%s1006_s1 + $0x1b0] ss:$8 sps:$4 sm:$0xff]  }
  0x11   :  { %488 = vmatprep.subr.bf16.mxu0 %v675_v17  ;;  %v747_v47 = vld [vmem:[%s1007_s0 + $0x4] ss:$16 sps:$4 sm:$0xff]   ;;  %v750_v51 = vld [vmem:[%s1007_s0 + $0xc] ss:$16 sps:$4 sm:$0xff]   ;;  %v725_v52 = vld [vmem:[%s1006_s1 + $0xc0] ss:$8 sps:$4 sm:$0xff]  }
  0x12   :  { %v721_v49 = vld [vmem:[%s1006_s1 + $0xc4] ss:$8 sps:$4 sm:$0xff]   ;;  %469 = vmatprep.mubr.bf16.mxu1 %v747_v47  ;;  %512 = vmatprep.mubr.bf16.mxu0 %v750_v51  ;;  %v726_v53 = vld [vmem:[%s1006_s1 + $0x1c0] ss:$8 sps:$4 sm:$0xff]   ;;  %v727_v54 = vld [vmem:[%s1006_s1 + $0xd4] ss:$8 sps:$4 sm:$0xff]  }
  0x13   :  { %446 = vmatpush1.bf16.msra.mxu1 %v677_v18  ;;  %v723_v50 = vld [vmem:[%s1006_s1 + $0x1c4] ss:$8 sps:$4 sm:$0xff]   ;;  %v729_v55 = vld [vmem:[%s1006_s1 + $0x1d4] ss:$8 sps:$4 sm:$0xff]   ;;  %v731_v56 = vld [vmem:[%s1006_s1 + $0xd0] ss:$8 sps:$4 sm:$0xff]  }
  0x14   :  { %489 = vmatpush1.bf16.msra.mxu0 %v678_v19  ;;  %447 = vmatprep.subr.bf16.mxu1 %v679_v20  ;;  %v732_v57 = vld [vmem:[%s1006_s1 + $0x1d0] ss:$8 sps:$4 sm:$0xff]   ;;  %v733_v58 = vld [vmem:[%s1006_s1 + $0xe4] ss:$8 sps:$4 sm:$0xff]   ;;  %v737_v60 = vld [vmem:[%s1006_s1 + $0xe0] ss:$8 sps:$4 sm:$0xff]  }
  0x15   :  { %490 = vmatprep.subr.bf16.mxu0 %v681_v21  ;;  %v735_v59 = vld [vmem:[%s1006_s1 + $0x1e4] ss:$8 sps:$4 sm:$0xff]   ;;  %v738_v61 = vld [vmem:[%s1006_s1 + $0x1e0] ss:$8 sps:$4 sm:$0xff]   ;;  %v739_v62 = vld [vmem:[%s1006_s1 + $0xf4] ss:$8 sps:$4 sm:$0xff]  }
  0x16   :  { %v741_v63 = vld [vmem:[%s1006_s1 + $0x1f4] ss:$8 sps:$4 sm:$0xff]   ;;  %v743_v0 = vld [vmem:[%s1006_s1 + $0xf0] ss:$8 sps:$4 sm:$0xff]   ;;  %v88_v5 = vshrl.u32 %v87_v4, 7 }
  0x17   :  { %448 = vmatpush1.bf16.msra.mxu1 %v683_v22  ;;  %v744_v1 = vld [vmem:[%s1006_s1 + $0x1f0] ss:$8 sps:$4 sm:$0xff]   ;;  %v85_v7 = vld [vmem:[%s1008_s2] sm:$0x3] }
  0x18   :  { %491 = vmatpush1.bf16.msra.mxu0 %v684_v23  ;;  %449 = vmatprep.subr.bf16.mxu1 %v685_v24  ;;  %v745_v2 = vld [vmem:[%s1007_s0] ss:$16 sps:$4 sm:$0xff]   ;;  %v748_v3 = vld [vmem:[%s1007_s0 + $0x8] ss:$16 sps:$4 sm:$0xff]   ;;  %v89_v6 = vsub.s32 0, %v88_v5  ;;  %v93_v8 = vsub.s32 1, %v88_v5 }
  0x19   :  { %492 = vmatprep.subr.bf16.mxu0 %v687_v25 }
  0x1a   :  { %v90_v9 = vrot.slane %v85_v7, %v89_v6  ;;  %v94_v10 = vrot.slane %v85_v7, %v93_v8 }
  0x1b   :  { %450 = vmatpush1.bf16.msra.mxu1 %v689_v26 }
  0x1c   :  { %493 = vmatpush1.bf16.msra.mxu0 %v690_v27  ;;  %451 = vmatprep.subr.bf16.mxu1 %v691_v28 }
  0x1d   :  { %494 = vmatprep.subr.bf16.mxu0 %v693_v29 }
  0x1f   :  { %452 = vmatpush1.bf16.msra.mxu1 %v695_v30 }
  0x20   :  { %495 = vmatpush1.bf16.msra.mxu0 %v696_v31  ;;  %453 = vmatprep.subr.bf16.mxu1 %v697_v32 }
  0x21   :  { %496 = vmatprep.subr.bf16.mxu0 %v699_v33 }
  0x23   :  { %454 = vmatpush1.bf16.msra.mxu1 %v701_v34 }
  0x24   :  { %497 = vmatpush1.bf16.msra.mxu0 %v702_v35  ;;  %455 = vmatprep.subr.bf16.mxu1 %v703_v36 }
  0x25   :  { %498 = vmatprep.subr.bf16.mxu0 %v705_v37 }
  0x27   :  { %456 = vmatpush1.bf16.msra.mxu1 %v707_v38 }
  0x28   :  { %499 = vmatpush1.bf16.msra.mxu0 %v708_v39  ;;  %457 = vmatprep.subr.bf16.mxu1 %v709_v40 }
  0x29   :  { %500 = vmatprep.subr.bf16.mxu0 %v711_v41 }
  0x2b   :  { %458 = vmatpush1.bf16.msra.mxu1 %v713_v42 }
  0x2c   :  { %501 = vmatpush1.bf16.msra.mxu0 %v714_v43  ;;  %459 = vmatprep.subr.bf16.mxu1 %v715_v44 }
  0x2d   :  { %502 = vmatprep.subr.bf16.mxu0 %v717_v45 }
  0x2f   :  { %460 = vmatpush1.bf16.msra.mxu1 %v719_v46 }
  0x30   :  { %503 = vmatpush1.bf16.msra.mxu0 %v720_v48  ;;  %461 = vmatprep.subr.bf16.mxu1 %v721_v49 }
  0x31   :  { %504 = vmatprep.subr.bf16.mxu0 %v723_v50 }
  0x33   :  { %462 = vmatpush1.bf16.msra.mxu1 %v725_v52 }
  0x34   :  { %505 = vmatpush1.bf16.msra.mxu0 %v726_v53  ;;  %463 = vmatprep.subr.bf16.mxu1 %v727_v54 }
  0x35   :  { %506 = vmatprep.subr.bf16.mxu0 %v729_v55 }
  0x37   :  { %464 = vmatpush1.bf16.msra.mxu1 %v731_v56 }
  0x38   :  { %507 = vmatpush1.bf16.msra.mxu0 %v732_v57  ;;  %465 = vmatprep.subr.bf16.mxu1 %v733_v58 }
  0x39   :  { %508 = vmatprep.subr.bf16.mxu0 %v735_v59 }
  0x3b   :  { %466 = vmatpush1.bf16.msra.mxu1 %v737_v60 }
  0x3c   :  { %509 = vmatpush1.bf16.msra.mxu0 %v738_v61  ;;  %467 = vmatprep.subr.bf16.mxu1 %v739_v62 }
  0x3d   :  { %510 = vmatprep.subr.bf16.mxu0 %v741_v63 }
  0x3f   :  { %468 = vmatpush1.bf16.msra.mxu1 %v743_v0 }
  0x40   :  { %511 = vmatpush1.bf16.msra.mxu0 %v744_v1 }
  0x42   :  { %470 = vmatmul.mubr.bf16.vlgmr.msra.gmra.mrb[0].mxu1 %v745_v2 }
  0x43   :  { %513 = vmatmul.mubr.bf16.vlgmr.msra.gmra.mrb[0].mxu0 %v748_v3 }
 0x115   :  { %v471_v11 = vpop.f32.mrb[0].mxu1 }
 0x116   :  { %v514_v12 = vpop.f32.mrb[0].mxu0  ;;  %v472_v13 = vadd.f32 %v471_v11, %v90_v9  ;;  %v473_v14 = vpop.f32.mrb[1].mxu1 }
 0x117   :  { %v516_v15 = vpop.f32.mrb[1].mxu0  ;;  %v474_v16 = vadd.f32 %v473_v14, %v94_v10  ;;  %v475_v17 = vpop.f32.mrb[2].mxu1 }
 0x118   :  { %v518_v18 = vpop.f32.mrb[2].mxu0  ;;  %v515_v19 = vadd.f32 %v514_v12, %v472_v13  ;;  %v476_v20 = vadd.f32 %v475_v17, %v90_v9  ;;  %v477_v21 = vpop.f32.mrb[3].mxu1 }
 0x119   :  { %v520_v22 = vpop.f32.mrb[3].mxu0  ;;  %v517_v23 = vadd.f32 %v516_v15, %v474_v16  ;;  %v478_v24 = vadd.f32 %v477_v21, %v94_v10 }
 0x11a   :  { %v523_v25 = vmax.f32 %v515_v19, 0.0  ;;  %v519_v26 = vadd.f32 %v518_v18, %v476_v20 }
 0x11b   :  { %v524_v27 = vmax.f32 %v517_v23, 0.0  ;;  %v521_v28 = vadd.f32 %v520_v22, %v478_v24 }
 0x11c   :  { %v525_v29 = vmax.f32 %v519_v26, 0.0 }
 0x11d   :  { %v639_v30 = vpack.c.bf16 %v524_v27, %v523_v25  ;;  %v526_v31 = vmax.f32 %v521_v28, 0.0 }
 0x11e   :  { %v527_v32 = vpack.c.bf16 %v525_v29, %v523_v25 }
 0x11f   :  { %539 = vst [vmem:[%s1009_s3] sm:$0xff] %v639_v30  ;;  %v528_v33 = vpack.c.bf16 %v526_v31, %v524_v27  ;;  %v640_v34 = vpack.c.bf16 %v526_v31, %v525_v29 }
 0x120   :  { %v541_v35 = vunpack.c.l.bf16 %v527_v32  ;;  %v543_v36 = vunpack.c.h.bf16 %v527_v32 }
 0x121   :  { %540 = vst [vmem:[%s1009_s3 + $0x8] sm:$0xff] %v640_v34  ;;  %v542_v37 = vunpack.c.l.bf16 %v528_v33  ;;  %v544_v38 = vunpack.c.h.bf16 %v528_v33 }
 0x122   :  { %v545_v39 = vmul.f32 %v541_v35, %v541_v35  ;;  %v547_v40 = vmul.f32 %v543_v36, %v543_v36  ;;  %v549_v41 = vadd.f32 %v543_v36, %v541_v35 }
 0x123   :  { %v546_v42 = vmul.f32 %v542_v37, %v542_v37  ;;  %v548_v43 = vmul.f32 %v544_v38, %v544_v38  ;;  %v550_v44 = vadd.f32 %v544_v38, %v542_v37 }
 0x124   :  { %v551_v45 = vadd.f32 %v547_v40, %v545_v39  ;;  %553 = vst [vmem:[%s1010_s4] sm:$0xff] %v549_v41 }
 0x125   :  { %v552_v46 = vadd.f32 %v548_v43, %v546_v42  ;;  %554 = vst [vmem:[%s1010_s4 + $0x8] sm:$0xff] %v550_v44 }
 0x126   :  { %555 = vst [vmem:[%s1011_s5] sm:$0xff] %v551_v45 }
 0x127   :  { %556 = vst [vmem:[%s1011_s5 + $0x8] sm:$0xff] %v552_v46 }

// kernel: basic_transformer_forward.9
= control target key start
LH: loop header
LB: loop body
LE: loop exit
PB: predicated region body
PF: predicated region fallthrough
CT: control target
= control target key end

     0   :  { %v23_v0 = vlaneseq  ;;  %vm61_vm0 = vcmask 1041409   ;;  %vm64_vm1 = vcmask 58368   ;;  %vm68_vm2 = vcmask 1024   ;;  %s109_s0 = inlined_call_operand.vmem [shape: bf16[2,8,256], index: 0, kind: input, shape index: {}]   ;;  %s110_s1 = inlined_call_operand.vmem [shape: f32[1,256], index: 1, kind: input, shape index: {}]   ;;  %s111_s2 = inlined_call_operand.<no memory space> [shape: f32[1,1], index: 2, kind: input, shape index: {}]   ;;  %s112_s3 = inlined_call_operand.vmem [shape: f32[2,1], index: 3, kind: output, shape index: {}]  }
   0x1   :  { %v15_v1 = vld [vmem:[%s109_s0] sm:$0xff]  ;;  %v16_v2 = vld [vmem:[%s109_s0 + $0x8] sm:$0xff]  ;;  %v44_v21 = vstv %s111_s2 }
   0x2   :  { %v24_v3 = vshrl.u32 %v23_v0, 7  ;;  %v17_v4 = vunpack.c.l.bf16 %v15_v1  ;;  %v18_v5 = vunpack.c.h.bf16 %v15_v1  ;;  %v21_v6 = vld [vmem:[%s110_s1] sm:$0x3]  ;;  %v52_v7 = vand.u32 127, %v23_v0 }
   0x3   :  { %v19_v10 = vunpack.c.l.bf16 %v16_v2  ;;  %v20_v11 = vunpack.c.h.bf16 %v16_v2 }
   0x4   :  { %v25_v8 = vsub.s32 0, %v24_v3  ;;  %v29_v9 = vsub.s32 1, %v24_v3  ;;  %v55_v12 = vsub.s32 %v52_v7, %v24_v3 }
   0x6   :  { %v26_v13 = vrot.slane %v21_v6, %v25_v8  ;;  %v30_v14 = vrot.slane %v21_v6, %v29_v9 }
   0x8   :  { %v33_v15 = vmul.f32 %v26_v13, %v17_v4  ;;  %v34_v16 = vmul.f32 %v30_v14, %v18_v5  ;;  %v35_v17 = vmul.f32 %v26_v13, %v19_v10  ;;  %v36_v18 = vmul.f32 %v30_v14, %v20_v11 }
   0xa   :  { %v37_v19 = vadd.f32 %v34_v16, %v33_v15  ;;  %v40_v20 = vadd.f32 %v36_v18, %v35_v17 }
   0xc   :  { %38 = vadd.xlane.f32.xlu0 %v37_v19 }
  0x10   :  { %41 = vadd.xlane.f32.xlu0 %v40_v20 }
  0x99   :  { %v39_v22 = vpop.xlane.xlu0 %38 }
  0x9a   :  { %v45_v23 = vadd.f32 %v44_v21, %v39_v22 }
  0x9c   :  { %v47_v25 = vmax.f32 %v45_v23, 0.0 }
  0x9d   :  { %v42_v24 = vpop.xlane.xlu0 %41 }
  0x9e   :  { %v46_v26 = vadd.f32 %v44_v21, %v42_v24  ;;  %v56_v28 = vrot.slane %v47_v25, %v55_v12 }
  0xa0   :  { %v48_v27 = vmax.f32 %v46_v26, 0.0 }
  0xa2   :  { %v60_v29 = vrot.slane %v48_v27, %v55_v12 }
  0xa4   :  { %v62_v30 = vsel %vm61_vm0, %v60_v29, %v56_v28 }
  0xa5   :  { %v65_v31 = vsel %vm64_vm1, %v62_v30, -inf }
  0xa6   :  { %66 = vmax.xlane.f32.xlu1 %v65_v31 }
 0x133   :  { %v67_v32 = vpop.xlane.xlu1 %66 }
 0x134   :  { %69 = vst.msk [vmem:[%s112_s3] sm:$0x3] %vm68_vm2, %v67_v32 }

// kernel: basic_transformer_forward.7
= control target key start
LH: loop header
LB: loop body
LE: loop exit
PB: predicated region body
PF: predicated region fallthrough
CT: control target
= control target key end

     0   :  { %v15312_v38 = vmov 1983009808   ;;  %v51_v40 = vlaneseq  ;;  %v15313_v42 = vmov 1934713408   ;;  %v15314_v52 = vmov 1966171168   ;;  %s18910_s1 = inlined_call_operand.vmem [shape: bf16[512,1536], index: 1, kind: input, shape index: {}]   ;;  %s18911_s0 = inlined_call_operand.vmem [shape: bf16[2,8,512], index: 0, kind: input, shape index: {}]   ;;  %s18912_s2 = inlined_call_operand.vmem [shape: f32[1,1536], index: 2, kind: input, shape index: {}]   ;;  %s18913_s3 = inlined_call_operand.vmem [shape: bf16[512,512], index: 3, kind: input, shape index: {}]   ;;  %s18914_s4 = inlined_call_operand.vmem [shape: f32[1,512], index: 4, kind: input, shape index: {}]   ;;  %s18915_s5 = inlined_call_operand.vmem [shape: bf16[2,8,512], index: 5, kind: output, shape index: {}]  }
   0x1   :  { %v14288_v0 = vld [vmem:[%s18910_s1 + $0x4] ss:$48 sps:$4 sm:$0xff]   ;;  %v14290_v1 = vld [vmem:[%s18910_s1 + $0xc] ss:$48 sps:$4 sm:$0xff]   ;;  %v14292_v2 = vld [vmem:[%s18910_s1] ss:$48 sps:$4 sm:$0xff]   ;;  %v49_v39 = vunpack.c.l.s4 %v15312_v38  ;;  %v64_v43 = vunpack.c.l.s4 %v15313_v42  ;;  %v260_v53 = vunpack.c.l.s4 %v15314_v52 }
   0x2   :  { %2875 = vmatprep.subr.bf16.mxu0 %v14288_v0  ;;  %v14293_v3 = vld [vmem:[%s18910_s1 + $0x8] ss:$48 sps:$4 sm:$0xff]   ;;  %2961 = vmatprep.subr.bf16.mxu1 %v14290_v1  ;;  %v14294_v4 = vld [vmem:[%s18910_s1 + $0x64] ss:$48 sps:$4 sm:$0xff]   ;;  %v14296_v5 = vld [vmem:[%s18910_s1 + $0x6c] ss:$48 sps:$4 sm:$0xff]  }
   0x3   :  { %2876 = vmatpush1.bf16.msra.mxu0 %v14292_v2  ;;  %2962 = vmatpush1.bf16.msra.mxu1 %v14293_v3  ;;  %v14298_v6 = vld [vmem:[%s18910_s1 + $0x60] ss:$48 sps:$4 sm:$0xff]   ;;  %v14299_v7 = vld [vmem:[%s18910_s1 + $0x68] ss:$48 sps:$4 sm:$0xff]   ;;  %v14300_v8 = vld [vmem:[%s18910_s1 + $0xc4] ss:$48 sps:$4 sm:$0xff]   ;;  %v50_v47 = vunpack.c.0.s8 %v49_v39  ;;  %v65_v51 = vunpack.c.0.s8 %v64_v43  ;;  %v261_v3 = vunpack.c.0.s8 %v260_v53 }
   0x4   :  { %2877 = vmatprep.subr.bf16.mxu0 %v14294_v4  ;;  %2963 = vmatprep.subr.bf16.mxu1 %v14296_v5  ;;  %v14302_v9 = vld [vmem:[%s18910_s1 + $0xcc] ss:$48 sps:$4 sm:$0xff]   ;;  %v14304_v10 = vld [vmem:[%s18910_s1 + $0xc0] ss:$48 sps:$4 sm:$0xff]   ;;  %v14305_v11 = vld [vmem:[%s18910_s1 + $0xc8] ss:$48 sps:$4 sm:$0xff]  }
   0x5   :  { %v14306_v12 = vld [vmem:[%s18910_s1 + $0x124] ss:$48 sps:$4 sm:$0xff]   ;;  %v14308_v13 = vld [vmem:[%s18910_s1 + $0x12c] ss:$48 sps:$4 sm:$0xff]   ;;  %v14310_v14 = vld [vmem:[%s18910_s1 + $0x120] ss:$48 sps:$4 sm:$0xff]  }
   0x6   :  { %v14311_v15 = vld [vmem:[%s18910_s1 + $0x128] ss:$48 sps:$4 sm:$0xff]   ;;  %v14312_v16 = vld [vmem:[%s18910_s1 + $0x184] ss:$48 sps:$4 sm:$0xff]   ;;  %v14314_v17 = vld [vmem:[%s18910_s1 + $0x18c] ss:$48 sps:$4 sm:$0xff]  }
   0x7   :  { %2878 = vmatpush1.bf16.msra.mxu0 %v14298_v6  ;;  %2964 = vmatpush1.bf16.msra.mxu1 %v14299_v7  ;;  %v14316_v18 = vld [vmem:[%s18910_s1 + $0x180] ss:$48 sps:$4 sm:$0xff]   ;;  %v14317_v19 = vld [vmem:[%s18910_s1 + $0x188] ss:$48 sps:$4 sm:$0xff]   ;;  %v14318_v20 = vld [vmem:[%s18910_s1 + $0x1e4] ss:$48 sps:$4 sm:$0xff]  }
   0x8   :  { %2879 = vmatprep.subr.bf16.mxu0 %v14300_v8  ;;  %2965 = vmatprep.subr.bf16.mxu1 %v14302_v9  ;;  %v14320_v21 = vld [vmem:[%s18910_s1 + $0x1ec] ss:$48 sps:$4 sm:$0xff]   ;;  %v14322_v22 = vld [vmem:[%s18910_s1 + $0x1e0] ss:$48 sps:$4 sm:$0xff]   ;;  %v14323_v23 = vld [vmem:[%s18910_s1 + $0x1e8] ss:$48 sps:$4 sm:$0xff]  }
   0x9   :  { %v14324_v24 = vld [vmem:[%s18910_s1 + $0x244] ss:$48 sps:$4 sm:$0xff]   ;;  %v14326_v25 = vld [vmem:[%s18910_s1 + $0x24c] ss:$48 sps:$4 sm:$0xff]   ;;  %v14328_v26 = vld [vmem:[%s18910_s1 + $0x240] ss:$48 sps:$4 sm:$0xff]  }
   0xa   :  { %v14329_v27 = vld [vmem:[%s18910_s1 + $0x248] ss:$48 sps:$4 sm:$0xff]   ;;  %v14330_v28 = vld [vmem:[%s18910_s1 + $0x2a4] ss:$48 sps:$4 sm:$0xff]   ;;  %v14332_v29 = vld [vmem:[%s18910_s1 + $0x2ac] ss:$48 sps:$4 sm:$0xff]  }
   0xb   :  { %2880 = vmatpush1.bf16.msra.mxu0 %v14304_v10  ;;  %2966 = vmatpush1.bf16.msra.mxu1 %v14305_v11  ;;  %v14334_v30 = vld [vmem:[%s18910_s1 + $0x2a0] ss:$48 sps:$4 sm:$0xff]   ;;  %v14335_v31 = vld [vmem:[%s18910_s1 + $0x2a8] ss:$48 sps:$4 sm:$0xff]   ;;  %v14336_v32 = vld [vmem:[%s18910_s1 + $0x304] ss:$48 sps:$4 sm:$0xff]  }
   0xc   :  { %2881 = vmatprep.subr.bf16.mxu0 %v14306_v12  ;;  %2967 = vmatprep.subr.bf16.mxu1 %v14308_v13  ;;  %v14338_v33 = vld [vmem:[%s18910_s1 + $0x30c] ss:$48 sps:$4 sm:$0xff]   ;;  %v14340_v34 = vld [vmem:[%s18910_s1 + $0x300] ss:$48 sps:$4 sm:$0xff]   ;;  %v14341_v35 = vld [vmem:[%s18910_s1 + $0x308] ss:$48 sps:$4 sm:$0xff]  }
   0xd   :  { %v14342_v36 = vld [vmem:[%s18910_s1 + $0x364] ss:$48 sps:$4 sm:$0xff]   ;;  %v14344_v37 = vld [vmem:[%s18910_s1 + $0x36c] ss:$48 sps:$4 sm:$0xff]   ;;  %v14346_v41 = vld [vmem:[%s18910_s1 + $0x360] ss:$48 sps:$4 sm:$0xff]  }
   0xe   :  { %v14347_v44 = vld [vmem:[%s18910_s1 + $0x368] ss:$48 sps:$4 sm:$0xff]   ;;  %v14348_v45 = vld [vmem:[%s18910_s1 + $0x3c4] ss:$48 sps:$4 sm:$0xff]   ;;  %v14350_v46 = vld [vmem:[%s18910_s1 + $0x3cc] ss:$48 sps:$4 sm:$0xff]  }
   0xf   :  { %2882 = vmatpush1.bf16.msra.mxu0 %v14310_v14  ;;  %2968 = vmatpush1.bf16.msra.mxu1 %v14311_v15  ;;  %v15475_v48 = vshrl.u32 %v51_v40, 7  ;;  %v14352_v49 = vld [vmem:[%s18910_s1 + $0x3c0] ss:$48 sps:$4 sm:$0xff]   ;;  %v14353_v50 = vld [vmem:[%s18910_s1 + $0x3c8] ss:$48 sps:$4 sm:$0xff]   ;;  %v15315_v59 = vmov 0  }
  0x10   :  { %2883 = vmatprep.subr.bf16.mxu0 %v14312_v16  ;;  %2969 = vmatprep.subr.bf16.mxu1 %v14314_v17  ;;  %v14354_v54 = vld [vmem:[%s18910_s1 + $0x424] ss:$48 sps:$4 sm:$0xff]   ;;  %v14356_v55 = vld [vmem:[%s18910_s1 + $0x42c] ss:$48 sps:$4 sm:$0xff]   ;;  %v14358_v56 = vld [vmem:[%s18910_s1 + $0x420] ss:$48 sps:$4 sm:$0xff]   ;;  %v15500_v60 = vpack.i.b16 %v15315_v59, %v15315_v59 }
  0x11   :  { %v14359_v57 = vld [vmem:[%s18910_s1 + $0x428] ss:$48 sps:$4 sm:$0xff]   ;;  %v21_v58 = vld [vmem:[%s18911_s0] sm:$0xff]  ;;  %v15503_v61 = vsub.s32 %v50_v47, %v15475_v48  ;;  %v23_v63 = vld [vmem:[%s18911_s0 + $0x10] sm:$0xff]  ;;  %v15515_v2 = vsub.s32 %v65_v51, %v15475_v48  ;;  %vm15317_vm0 = vmmov 0   ;;  %vm3619_vm1 = vcmask 523264  }
  0x12   :  { %v22_v62 = vld [vmem:[%s18911_s0 + $0x8] sm:$0xff]  ;;  %v24_v0 = vld [vmem:[%s18911_s0 + $0x18] sm:$0xff]  ;;  %v29_v1 = vshrl.u32 %v21_v58, 16  ;;  %v14360_v4 = vld [vmem:[%s18910_s1 + $0x484] ss:$48 sps:$4 sm:$0xff]   ;;  %v27_v5 = vpack.i.b16 %v23_v63, %v21_v58  ;;  %v30_v6 = vshrl.u32 %v23_v63, 16 }
  0x13   :  { %2884 = vmatpush1.bf16.msra.mxu0 %v14316_v18  ;;  %2970 = vmatpush1.bf16.msra.mxu1 %v14317_v19  ;;  %18936 = vst [vmem:[#allocation2_spill] sm:$0xff] %v15503_v61  ;;  %18937 = vst [vmem:[#allocation3_spill] sm:$0xff] %v15515_v2  ;;  %v41_v7 = vpack.i.b16 %v24_v0, %v22_v62  ;;  %v43_v8 = vshrl.u32 %v22_v62, 16  ;;  %v14362_v9 = vld [vmem:[%s18910_s1 + $0x48c] ss:$48 sps:$4 sm:$0xff]   ;;  %v44_v10 = vshrl.u32 %v24_v0, 16 }
  0x14   :  { %2885 = vmatprep.subr.bf16.mxu0 %v14318_v20  ;;  %2971 = vmatprep.subr.bf16.mxu1 %v14320_v21  ;;  %v31_v11 = vpack.i.b16 %v30_v6, %v29_v1  ;;  %v47_v12 = vcombine.high %v27_v5, %v15500_v60  ;;  %v54_v13 = vrot.slane %v27_v5, %v15503_v61  ;;  %v14364_v15 = vld [vmem:[%s18910_s1 + $0x480] ss:$48 sps:$4 sm:$0xff]   ;;  %v14365_v16 = vld [vmem:[%s18910_s1 + $0x488] ss:$48 sps:$4 sm:$0xff]   ;;  %v14366_v20 = vld [vmem:[%s18910_s1 + $0x4e4] ss:$48 sps:$4 sm:$0xff]  }
  0x15   :  { %v145_v14 = vcombine.high %v41_v7, %v15500_v60  ;;  %v15532_v17 = vpack.i.b16 %v44_v10, %v43_v8  ;;  %v152_v18 = vrot.slane %v41_v7, %v15503_v61  ;;  %v15536_v19 = vsub.s32 %v261_v3, %v15475_v48  ;;  %v14372_v38 = vld [vmem:[%s18910_s1 + $0x544] ss:$48 sps:$4 sm:$0xff]   ;;  %v14374_v42 = vld [vmem:[%s18910_s1 + $0x54c] ss:$48 sps:$4 sm:$0xff]   ;;  %v14376_v51 = vld [vmem:[%s18910_s1 + $0x540] ss:$48 sps:$4 sm:$0xff]  }
  0x16   :  { %v61_v21 = vrot.slane %v47_v12, %v15503_v61  ;;  %v14377_v52 = vld [vmem:[%s18910_s1 + $0x548] ss:$48 sps:$4 sm:$0xff]   ;;  %v14380_v0 = vld [vmem:[%s18910_s1 + $0x5ac] ss:$48 sps:$4 sm:$0xff]   ;;  %v14382_v8 = vld [vmem:[%s18910_s1 + $0x5a0] ss:$48 sps:$4 sm:$0xff]  }
  0x17   :  { %2886 = vmatpush1.bf16.msra.mxu0 %v14322_v22  ;;  %2972 = vmatpush1.bf16.msra.mxu1 %v14323_v23  ;;  %v62_v22 = vcombine.high %v54_v13, %v15315_v59  ;;  %v15544_v23 = vrot.slane %v54_v13, %v15515_v2  ;;  %v194_v62 = vcombine.high %v15532_v17, %v15500_v60  ;;  %v14383_v13 = vld [vmem:[%s18910_s1 + $0x5a8] ss:$48 sps:$4 sm:$0xff]   ;;  %vm4089_vm2 = vcmask 1040384  }
  0x18   :  { %2887 = vmatprep.subr.bf16.mxu0 %v14324_v24  ;;  %2973 = vmatprep.subr.bf16.mxu1 %v14326_v25  ;;  %v14368_v24 = vld [vmem:[%s18910_s1 + $0x4ec] ss:$48 sps:$4 sm:$0xff]   ;;  %v96_v25 = vcombine.high %v31_v11, %v15500_v60  ;;  %v201_v63 = vrot.slane %v15532_v17, %v15503_v61  ;;  %vm3988_vm3 = vcmask 9216   ;;  %vm4085_vm4 = vcmask 15360  }
  0x19   :  { %v208_v7 = vrot.slane %v194_v62, %v15503_v61 }
  0x1a   :  { %v216_v10 = vrot.slane %v201_v63, %v15515_v2 }
  0x1b   :  { %2888 = vmatpush1.bf16.msra.mxu0 %v14328_v26  ;;  %2974 = vmatpush1.bf16.msra.mxu1 %v14329_v27  ;;  %v103_v26 = vrot.slane %v31_v11, %v15503_v61  ;;  %v159_v27 = vrot.slane %v145_v14, %v15503_v61  ;;  %v224_v14 = vcombine.high %v208_v7, %v15315_v59 }
  0x1c   :  { %2889 = vmatprep.subr.bf16.mxu0 %v14330_v28  ;;  %2975 = vmatprep.subr.bf16.mxu1 %v14332_v29  ;;  %v15553_v28 = vrot.slane %v62_v22, %v15515_v2  ;;  %v77_v29 = vcombine.high %v61_v21, %v15315_v59 }
  0x1d   :  { %v238_v22 = vrot.slane %v224_v14, %v15515_v2 }
  0x1e   :  { %v15574_v39 = vrot.slane %v77_v29, %v15515_v2 }
  0x1f   :  { %2890 = vmatpush1.bf16.msra.mxu0 %v14334_v30  ;;  %2976 = vmatpush1.bf16.msra.mxu1 %v14335_v31  ;;  %v84_v30 = vrot.slane %v61_v21, %v15515_v2  ;;  %v160_v31 = vcombine.high %v152_v18, %v15315_v59  ;;  %v14386_v21 = vld [vmem:[%s18910_s1 + $0x604] ss:$48 sps:$4 sm:$0xff]  }
  0x20   :  { %2891 = vmatprep.subr.bf16.mxu0 %v14336_v32  ;;  %2977 = vmatprep.subr.bf16.mxu1 %v14338_v33  ;;  %v14370_v32 = vld [vmem:[%s18910_s1 + $0x4e0] ss:$48 sps:$4 sm:$0xff]   ;;  %v14371_v33 = vld [vmem:[%s18910_s1 + $0x4e8] ss:$48 sps:$4 sm:$0xff]   ;;  %v95_v47 = vcombine.high %v15553_v28, %v15574_v39 }
  0x21   :  { %v92_v40 = vcombine.low %v15544_v23, %v84_v30 }
  0x23   :  { %2892 = vmatpush1.bf16.msra.mxu0 %v14340_v34  ;;  %2978 = vmatpush1.bf16.msra.mxu1 %v14341_v35  ;;  %v110_v34 = vrot.slane %v96_v25, %v15503_v61  ;;  %v111_v35 = vcombine.high %v103_v26, %v15315_v59  ;;  %v265_v11 = vrot.slane %v92_v40, %v15536_v19  ;;  %v14389_v25 = vld [vmem:[%s18910_s1 + $0x60c] ss:$48 sps:$4 sm:$0xff]  }
  0x24   :  { %2893 = vmatprep.subr.bf16.mxu0 %v14342_v36  ;;  %2979 = vmatprep.subr.bf16.mxu1 %v14344_v37  ;;  %v15567_v36 = vrot.slane %v103_v26, %v15515_v2  ;;  %v167_v37 = vrot.slane %v152_v18, %v15515_v2 }
  0x25   :  { %v15582_v43 = vrot.slane %v111_v35, %v15515_v2 }
  0x27   :  { %2894 = vmatpush1.bf16.msra.mxu0 %v14346_v41  ;;  %2980 = vmatpush1.bf16.msra.mxu1 %v14347_v44  ;;  %v93_v41 = vcombine.high %v15544_v23, %v84_v30  ;;  %v126_v44 = vcombine.high %v110_v34, %v15315_v59 }
  0x28   :  { %2895 = vmatprep.subr.bf16.mxu0 %v14348_v45  ;;  %2981 = vmatprep.subr.bf16.mxu1 %v14350_v46  ;;  %v133_v45 = vrot.slane %v110_v34, %v15515_v2  ;;  %v94_v46 = vcombine.low %v15553_v28, %v15574_v39 }
  0x29   :  { %v15601_v53 = vrot.slane %v126_v44, %v15515_v2 }
  0x2a   :  { %v353_v29 = vrot.slane %v94_v46, %v15536_v19 }
  0x2b   :  { %2896 = vmatpush1.bf16.msra.mxu0 %v14352_v49  ;;  %2982 = vmatpush1.bf16.msra.mxu1 %v14353_v50  ;;  %v15591_v49 = vrot.slane %v160_v31, %v15515_v2  ;;  %v175_v50 = vcombine.high %v159_v27, %v15315_v59  ;;  %v143_v1 = vcombine.low %v15582_v43, %v15601_v53 }
  0x2c   :  { %2897 = vmatprep.subr.bf16.mxu0 %v14354_v54  ;;  %2983 = vmatprep.subr.bf16.mxu1 %v14356_v55  ;;  %v141_v54 = vcombine.low %v15567_v36, %v133_v45  ;;  %v142_v55 = vcombine.high %v15567_v36, %v133_v45  ;;  %v144_v3 = vcombine.high %v15582_v43, %v15601_v53 }
  0x2d   :  { %v189_v58 = vrot.slane %v175_v50, %v15515_v2 }
  0x2e   :  { %v419_v46 = vrot.slane %v144_v3, %v15536_v19 }
  0x2f   :  { %2898 = vmatpush1.bf16.msra.mxu0 %v14358_v56  ;;  %2984 = vmatpush1.bf16.msra.mxu1 %v14359_v57  ;;  %v182_v56 = vrot.slane %v159_v27, %v15515_v2  ;;  %v14378_v57 = vld [vmem:[%s18910_s1 + $0x5a4] ss:$48 sps:$4 sm:$0xff]   ;;  %v192_v6 = vcombine.low %v15591_v49, %v189_v58  ;;  %v193_v60 = vcombine.high %v15591_v49, %v189_v58 }
  0x30   :  { %2899 = vmatprep.subr.bf16.mxu0 %v14360_v4  ;;  %2985 = vmatprep.subr.bf16.mxu1 %v14362_v9  ;;  %v209_v9 = vcombine.high %v201_v63, %v15315_v59  ;;  %v331_v27 = vrot.slane %v142_v55, %v15536_v19 }
  0x31   :  { %v190_v4 = vcombine.low %v167_v37, %v182_v56  ;;  %v191_v5 = vcombine.high %v167_v37, %v182_v56  ;;  %v360_v30 = vrot.slane %v192_v6, %v15536_v19  ;;  %v375_v37 = vrot.slane %v143_v1, %v15536_v19 }
  0x32   :  { %v223_v17 = vrot.slane %v209_v9, %v15515_v2 }
  0x33   :  { %2900 = vmatpush1.bf16.msra.mxu0 %v14364_v15  ;;  %2986 = vmatpush1.bf16.msra.mxu1 %v14365_v16  ;;  %v272_v12 = vrot.slane %v190_v4, %v15536_v19  ;;  %v231_v15 = vrot.slane %v208_v7, %v15515_v2  ;;  %v287_v16 = vrot.slane %v141_v54, %v15536_v19 }
  0x34   :  { %2901 = vmatprep.subr.bf16.mxu0 %v14366_v20  ;;  %2987 = vmatprep.subr.bf16.mxu1 %v14368_v24  ;;  %v309_v20 = vrot.slane %v93_v41, %v15536_v19  ;;  %v316_v59 = vrot.slane %v191_v5, %v15536_v19  ;;  %v241_v31 = vcombine.low %v223_v17, %v238_v22 }
  0x35   :  { %v273_v18 = vcombine.low %v265_v11, %v272_v12  ;;  %v239_v23 = vcombine.low %v216_v10, %v231_v15  ;;  %v240_v24 = vcombine.high %v216_v10, %v231_v15  ;;  %v361_v36 = vcombine.low %v353_v29, %v360_v30  ;;  %v14384_v11 = vld [vmem:[%s18910_s1 + $0x600] ss:$48 sps:$4 sm:$0xff]   ;;  %v14387_v12 = vld [vmem:[%s18910_s1 + $0x608] ss:$48 sps:$4 sm:$0xff]   ;;  %v14392_v15 = vld [vmem:[%s18910_s1 + $0x664] ss:$48 sps:$4 sm:$0xff]  }
  0x36   :  { %v317_v34 = vcombine.low %v309_v20, %v316_v59  ;;  %v382_v40 = vrot.slane %v241_v31, %v15536_v19  ;;  %v397_v41 = vrot.slane %v95_v47, %v15536_v19  ;;  %v14393_v20 = vld [vmem:[%s18910_s1 + $0x668] ss:$48 sps:$4 sm:$0xff]   ;;  %v14404_v59 = vld [vmem:[%s18910_s1 + $0x724] ss:$48 sps:$4 sm:$0xff]   ;;  %v14413_v30 = vld [vmem:[%s18910_s1 + $0x78c] ss:$48 sps:$4 sm:$0xff]  }
  0x37   :  { %2902 = vmatpush1.bf16.msra.mxu0 %v14370_v32  ;;  %2988 = vmatpush1.bf16.msra.mxu1 %v14371_v33  ;;  %v280_v26 = vrot.slane %v273_v18, %v15536_v19  ;;  %v242_v32 = vcombine.high %v223_v17, %v238_v22  ;;  %v294_v33 = vrot.slane %v239_v23, %v15536_v19  ;;  %v14390_v18 = vld [vmem:[%s18910_s1 + $0x660] ss:$48 sps:$4 sm:$0xff]   ;;  %v14401_v22 = vld [vmem:[%s18910_s1 + $0x6cc] ss:$48 sps:$4 sm:$0xff]   ;;  %v14410_v29 = vld [vmem:[%s18910_s1 + $0x784] ss:$48 sps:$4 sm:$0xff]  }
  0x38   :  { %2903 = vmatprep.subr.bf16.mxu0 %v14372_v38  ;;  %2989 = vmatprep.subr.bf16.mxu1 %v14374_v42  ;;  %v338_v35 = vrot.slane %v240_v24, %v15536_v19  ;;  %v404_v42 = vrot.slane %v193_v60, %v15536_v19  ;;  %v324_v43 = vrot.slane %v317_v34, %v15536_v19  ;;  %v14396_v23 = vld [vmem:[%s18910_s1 + $0x6c0] ss:$48 sps:$4 sm:$0xff]   ;;  %v14399_v24 = vld [vmem:[%s18910_s1 + $0x6c8] ss:$48 sps:$4 sm:$0xff]   ;;  %v14419_v34 = vld [vmem:[%s18910_s1 + $0x7ec] ss:$48 sps:$4 sm:$0xff]  }
  0x39   :  { %v295_v38 = vcombine.low %v287_v16, %v294_v33  ;;  %v368_v45 = vrot.slane %v361_v36, %v15536_v19  ;;  %v383_v50 = vcombine.low %v375_v37, %v382_v40  ;;  %v14395_v16 = vld [vmem:[%s18910_s1 + $0x66c] ss:$48 sps:$4 sm:$0xff]   ;;  %v14408_v31 = vld [vmem:[%s18910_s1 + $0x780] ss:$48 sps:$4 sm:$0xff]   ;;  %v14416_v33 = vld [vmem:[%s18910_s1 + $0x7e4] ss:$48 sps:$4 sm:$0xff]  }
  0x3a   :  { %v339_v44 = vcombine.low %v331_v27, %v338_v35  ;;  %v14405_v27 = vld [vmem:[%s18910_s1 + $0x728] ss:$48 sps:$4 sm:$0xff]   ;;  %v14414_v35 = vld [vmem:[%s18910_s1 + $0x7e0] ss:$48 sps:$4 sm:$0xff]   ;;  %v14422_v37 = vld [vmem:[%s18910_s1 + $0x844] ss:$48 sps:$4 sm:$0xff]  }
  0x3b   :  { %2904 = vmatpush1.bf16.msra.mxu0 %v14376_v51  ;;  %2990 = vmatpush1.bf16.msra.mxu1 %v14377_v52  ;;  %v302_v49 = vrot.slane %v295_v38, %v15536_v19  ;;  %v405_v51 = vcombine.low %v397_v41, %v404_v42  ;;  %v426_v52 = vrot.slane %v242_v32, %v15536_v19  ;;  %v14411_v32 = vld [vmem:[%s18910_s1 + $0x788] ss:$48 sps:$4 sm:$0xff]   ;;  %v14425_v38 = vld [vmem:[%s18910_s1 + $0x84c] ss:$48 sps:$4 sm:$0xff]   ;;  %v14420_v40 = vld [vmem:[%s18910_s1 + $0x840] ss:$48 sps:$4 sm:$0xff]  }
  0x3c   :  { %2905 = vmatprep.subr.bf16.mxu0 %v14378_v57  ;;  %2991 = vmatprep.subr.bf16.mxu1 %v14380_v0  ;;  %v346_v53 = vrot.slane %v339_v44, %v15536_v19  ;;  %v390_v28 = vrot.slane %v383_v50, %v15536_v19  ;;  %v14417_v36 = vld [vmem:[%s18910_s1 + $0x7e8] ss:$48 sps:$4 sm:$0xff]   ;;  %v14428_v42 = vld [vmem:[%s18910_s1 + $0x8a4] ss:$48 sps:$4 sm:$0xff]   ;;  %v14426_v44 = vld [vmem:[%s18910_s1 + $0x8a0] ss:$48 sps:$4 sm:$0xff]  }
  0x3d   :  { %v412_v39 = vrot.slane %v405_v51, %v15536_v19  ;;  %v427_v47 = vcombine.low %v419_v46, %v426_v52  ;;  %v883_v54 = vcombine.low %v280_v26, %v302_v49  ;;  %v14402_v26 = vld [vmem:[%s18910_s1 + $0x720] ss:$48 sps:$4 sm:$0xff]   ;;  %v14423_v41 = vld [vmem:[%s18910_s1 + $0x848] ss:$48 sps:$4 sm:$0xff]   ;;  %v14434_v46 = vld [vmem:[%s18910_s1 + $0x904] ss:$48 sps:$4 sm:$0xff]  }
  0x3e   :  { %v884_v55 = vcombine.low %v324_v43, %v346_v53  ;;  %v885_v57 = vcombine.low %v368_v45, %v390_v28  ;;  %v14431_v43 = vld [vmem:[%s18910_s1 + $0x8ac] ss:$48 sps:$4 sm:$0xff]   ;;  %v14429_v45 = vld [vmem:[%s18910_s1 + $0x8a8] ss:$48 sps:$4 sm:$0xff]   ;;  %v14432_v50 = vld [vmem:[%s18910_s1 + $0x900] ss:$48 sps:$4 sm:$0xff]  }
  0x3f   :  { %2906 = vmatpush1.bf16.msra.mxu0 %v14382_v8  ;;  %2992 = vmatpush1.bf16.msra.mxu1 %v14383_v13  ;;  %v434_v56 = vrot.slane %v427_v47, %v15536_v19  ;;  %v893_v58 = vrot.slane %v883_v54, %v15536_v19  ;;  %v14437_v49 = vld [vmem:[%s18910_s1 + $0x90c] ss:$48 sps:$4 sm:$0xff]   ;;  %v14435_v51 = vld [vmem:[%s18910_s1 + $0x908] ss:$48 sps:$4 sm:$0xff]   ;;  %v14440_v52 = vld [vmem:[%s18910_s1 + $0x964] ss:$48 sps:$4 sm:$0xff]  }
  0x40   :  { %2918 = vmatprep.subr.bf16.mxu0 %v14386_v21  ;;  %3004 = vmatprep.subr.bf16.mxu1 %v14389_v25  ;;  %v900_v62 = vrot.slane %v884_v55, %v15536_v19  ;;  %v907_v0 = vrot.slane %v885_v57, %v15536_v19  ;;  %v14398_v21 = vld [vmem:[%s18910_s1 + $0x6c4] ss:$48 sps:$4 sm:$0xff]   ;;  %v14407_v25 = vld [vmem:[%s18910_s1 + $0x72c] ss:$48 sps:$4 sm:$0xff]   ;;  %v14438_v28 = vld [vmem:[%s18910_s1 + $0x960] ss:$48 sps:$4 sm:$0xff]  }
  0x41   :  { %v886_v63 = vcombine.low %v412_v39, %v434_v56  ;;  %v14443_v53 = vld [vmem:[%s18910_s1 + $0x96c] ss:$48 sps:$4 sm:$0xff]   ;;  %v14441_v39 = vld [vmem:[%s18910_s1 + $0x968] ss:$48 sps:$4 sm:$0xff]   ;;  %v14446_v47 = vld [vmem:[%s18910_s1 + $0x9c4] ss:$48 sps:$4 sm:$0xff]  }
  0x42   :  { %v916_v1 = vcombine.high %v893_v58, %v900_v62  ;;  %v915_v3 = vcombine.low %v893_v58, %v900_v62  ;;  %v14449_v54 = vld [vmem:[%s18910_s1 + $0x9cc] ss:$48 sps:$4 sm:$0xff]   ;;  %v14444_v55 = vld [vmem:[%s18910_s1 + $0x9c0] ss:$48 sps:$4 sm:$0xff]   ;;  %v14447_v56 = vld [vmem:[%s18910_s1 + $0x9c8] ss:$48 sps:$4 sm:$0xff]  }
  0x43   :  { %v914_v4 = vrot.slane %v886_v63, %v15536_v19  ;;  %v14452_v57 = vld [vmem:[%s18910_s1 + $0xa24] ss:$48 sps:$4 sm:$0xff]   ;;  %v14455_v58 = vld [vmem:[%s18910_s1 + $0xa2c] ss:$48 sps:$4 sm:$0xff]   ;;  %v14450_v62 = vld [vmem:[%s18910_s1 + $0xa20] ss:$48 sps:$4 sm:$0xff]  }
  0x44   :  { %v932_v6 = vrot.slane %v916_v1, %v15536_v19  ;;  %v925_v7 = vrot.slane %v915_v3, %v15536_v19  ;;  %v14453_v63 = vld [vmem:[%s18910_s1 + $0xa28] ss:$48 sps:$4 sm:$0xff]   ;;  %v14461_v1 = vld [vmem:[%s18910_s1 + $0xa8c] ss:$48 sps:$4 sm:$0xff]   ;;  %v14456_v3 = vld [vmem:[%s18910_s1 + $0xa80] ss:$48 sps:$4 sm:$0xff]  }
  0x45   :  { %v918_v5 = vcombine.high %v907_v0, %v914_v4  ;;  %v917_v60 = vcombine.low %v907_v0, %v914_v4  ;;  %v14458_v0 = vld [vmem:[%s18910_s1 + $0xa84] ss:$48 sps:$4 sm:$0xff]   ;;  %v14459_v4 = vld [vmem:[%s18910_s1 + $0xa88] ss:$48 sps:$4 sm:$0xff]  }
  0x47   :  { %v946_v8 = vrot.slane %v918_v5, %v15536_v19  ;;  %v939_v9 = vrot.slane %v917_v60, %v15536_v19  ;;  %v14464_v5 = vld [vmem:[%s18910_s1 + $0xae4] ss:$48 sps:$4 sm:$0xff]   ;;  %v14462_v60 = vld [vmem:[%s18910_s1 + $0xae0] ss:$48 sps:$4 sm:$0xff]  }
  0x49   :  { %v15677_v10 = vcombine.low %v932_v6, %v946_v8  ;;  %v15685_v13 = vcombine.low %v925_v7, %v939_v9  ;;  %v15687_v14 = vcombine.high %v925_v7, %v939_v9  ;;  %v15697_v17 = vcombine.high %v932_v6, %v946_v8  ;;  %v14467_v6 = vld [vmem:[%s18910_s1 + $0xaec] ss:$48 sps:$4 sm:$0xff]   ;;  %v14465_v7 = vld [vmem:[%s18910_s1 + $0xae8] ss:$48 sps:$4 sm:$0xff]   ;;  %v14470_v8 = vld [vmem:[%s18910_s1 + $0xb44] ss:$48 sps:$4 sm:$0xff]  }
  0x4a   :  { %v14473_v9 = vld [vmem:[%s18910_s1 + $0xb4c] ss:$48 sps:$4 sm:$0xff]  }
  0x4b   :  { %2907 = vmatprep.mubr.bf16.mxu0 %v15677_v10  ;;  %2993 = vmatprep.mubr.bf16.mxu1 %v15677_v10 }
  0x4c   :  { %2908 = vmatmul.mubr.bf16.vlgmr.msra.gmra.mrb[0].mxu0 %v15685_v13  ;;  %2994 = vmatmul.mubr.bf16.vlgmr.msra.gmra.mrb[0].mxu1 %v15685_v13 }
  0x4d   :  { %2919 = vmatpush1.bf16.msra.mxu0 %v14384_v11  ;;  %3005 = vmatpush1.bf16.msra.mxu1 %v14387_v12  ;;  %v14468_v11 = vld [vmem:[%s18910_s1 + $0xb40] ss:$48 sps:$4 sm:$0xff]   ;;  %v14471_v12 = vld [vmem:[%s18910_s1 + $0xb48] ss:$48 sps:$4 sm:$0xff]  }
  0x4e   :  { %2920 = vmatprep.subr.bf16.mxu0 %v14392_v15  ;;  %3006 = vmatprep.subr.bf16.mxu1 %v14395_v16  ;;  %v14476_v15 = vld [vmem:[%s18910_s1 + $0xba4] ss:$48 sps:$4 sm:$0xff]   ;;  %v14479_v16 = vld [vmem:[%s18910_s1 + $0xbac] ss:$48 sps:$4 sm:$0xff]  }
  0x4f   :  { %2950 = vmatprep.mubr.bf16.mxu0 %v15697_v17  ;;  %3036 = vmatprep.mubr.bf16.mxu1 %v15697_v17 }
  0x51   :  { %2921 = vmatpush1.bf16.msra.mxu0 %v14390_v18  ;;  %3007 = vmatpush1.bf16.msra.mxu1 %v14393_v20  ;;  %v14474_v18 = vld [vmem:[%s18910_s1 + $0xba0] ss:$48 sps:$4 sm:$0xff]   ;;  %v14477_v20 = vld [vmem:[%s18910_s1 + $0xba8] ss:$48 sps:$4 sm:$0xff]  }
  0x52   :  { %2922 = vmatprep.subr.bf16.mxu0 %v14398_v21  ;;  %3008 = vmatprep.subr.bf16.mxu1 %v14401_v22  ;;  %v14482_v21 = vld [vmem:[%s18910_s1 + $0x14] ss:$48 sps:$4 sm:$0xff]   ;;  %v14485_v22 = vld [vmem:[%s18910_s1 + $0x1c] ss:$48 sps:$4 sm:$0xff]  }
  0x55   :  { %2923 = vmatpush1.bf16.msra.mxu0 %v14396_v23  ;;  %3009 = vmatpush1.bf16.msra.mxu1 %v14399_v24  ;;  %v14480_v23 = vld [vmem:[%s18910_s1 + $0x10] ss:$48 sps:$4 sm:$0xff]   ;;  %v14483_v24 = vld [vmem:[%s18910_s1 + $0x18] ss:$48 sps:$4 sm:$0xff]  }
  0x56   :  { %2924 = vmatprep.subr.bf16.mxu0 %v14404_v59  ;;  %3010 = vmatprep.subr.bf16.mxu1 %v14407_v25  ;;  %v14488_v59 = vld [vmem:[%s18910_s1 + $0x74] ss:$48 sps:$4 sm:$0xff]   ;;  %v14491_v25 = vld [vmem:[%s18910_s1 + $0x7c] ss:$48 sps:$4 sm:$0xff]  }
  0x59   :  { %2925 = vmatpush1.bf16.msra.mxu0 %v14402_v26  ;;  %3011 = vmatpush1.bf16.msra.mxu1 %v14405_v27  ;;  %v14486_v26 = vld [vmem:[%s18910_s1 + $0x70] ss:$48 sps:$4 sm:$0xff]   ;;  %v14489_v27 = vld [vmem:[%s18910_s1 + $0x78] ss:$48 sps:$4 sm:$0xff]  }
  0x5a   :  { %2926 = vmatprep.subr.bf16.mxu0 %v14410_v29  ;;  %3012 = vmatprep.subr.bf16.mxu1 %v14413_v30  ;;  %v14494_v29 = vld [vmem:[%s18910_s1 + $0xd4] ss:$48 sps:$4 sm:$0xff]   ;;  %v14497_v30 = vld [vmem:[%s18910_s1 + $0xdc] ss:$48 sps:$4 sm:$0xff]  }
  0x5d   :  { %2927 = vmatpush1.bf16.msra.mxu0 %v14408_v31  ;;  %3013 = vmatpush1.bf16.msra.mxu1 %v14411_v32  ;;  %v14492_v31 = vld [vmem:[%s18910_s1 + $0xd0] ss:$48 sps:$4 sm:$0xff]   ;;  %v14495_v32 = vld [vmem:[%s18910_s1 + $0xd8] ss:$48 sps:$4 sm:$0xff]  }
  0x5e   :  { %2928 = vmatprep.subr.bf16.mxu0 %v14416_v33  ;;  %3014 = vmatprep.subr.bf16.mxu1 %v14419_v34  ;;  %v14500_v33 = vld [vmem:[%s18910_s1 + $0x134] ss:$48 sps:$4 sm:$0xff]   ;;  %v14503_v34 = vld [vmem:[%s18910_s1 + $0x13c] ss:$48 sps:$4 sm:$0xff]  }
  0x61   :  { %2929 = vmatpush1.bf16.msra.mxu0 %v14414_v35  ;;  %3015 = vmatpush1.bf16.msra.mxu1 %v14417_v36  ;;  %v14498_v35 = vld [vmem:[%s18910_s1 + $0x130] ss:$48 sps:$4 sm:$0xff]   ;;  %v14501_v36 = vld [vmem:[%s18910_s1 + $0x138] ss:$48 sps:$4 sm:$0xff]  }
  0x62   :  { %2930 = vmatprep.subr.bf16.mxu0 %v14422_v37  ;;  %3016 = vmatprep.subr.bf16.mxu1 %v14425_v38  ;;  %v14506_v37 = vld [vmem:[%s18910_s1 + $0x194] ss:$48 sps:$4 sm:$0xff]   ;;  %v14509_v38 = vld [vmem:[%s18910_s1 + $0x19c] ss:$48 sps:$4 sm:$0xff]  }
  0x65   :  { %2931 = vmatpush1.bf16.msra.mxu0 %v14420_v40  ;;  %3017 = vmatpush1.bf16.msra.mxu1 %v14423_v41  ;;  %v14504_v40 = vld [vmem:[%s18910_s1 + $0x190] ss:$48 sps:$4 sm:$0xff]   ;;  %v14507_v41 = vld [vmem:[%s18910_s1 + $0x198] ss:$48 sps:$4 sm:$0xff]  }
  0x66   :  { %2932 = vmatprep.subr.bf16.mxu0 %v14428_v42  ;;  %3018 = vmatprep.subr.bf16.mxu1 %v14431_v43  ;;  %v14512_v42 = vld [vmem:[%s18910_s1 + $0x1f4] ss:$48 sps:$4 sm:$0xff]   ;;  %v14515_v43 = vld [vmem:[%s18910_s1 + $0x1fc] ss:$48 sps:$4 sm:$0xff]  }
  0x69   :  { %2933 = vmatpush1.bf16.msra.mxu0 %v14426_v44  ;;  %3019 = vmatpush1.bf16.msra.mxu1 %v14429_v45  ;;  %v14510_v44 = vld [vmem:[%s18910_s1 + $0x1f0] ss:$48 sps:$4 sm:$0xff]   ;;  %v14513_v45 = vld [vmem:[%s18910_s1 + $0x1f8] ss:$48 sps:$4 sm:$0xff]  }
  0x6a   :  { %2934 = vmatprep.subr.bf16.mxu0 %v14434_v46  ;;  %3020 = vmatprep.subr.bf16.mxu1 %v14437_v49  ;;  %v14518_v46 = vld [vmem:[%s18910_s1 + $0x254] ss:$48 sps:$4 sm:$0xff]   ;;  %v14521_v49 = vld [vmem:[%s18910_s1 + $0x25c] ss:$48 sps:$4 sm:$0xff]  }
  0x6d   :  { %2935 = vmatpush1.bf16.msra.mxu0 %v14432_v50  ;;  %3021 = vmatpush1.bf16.msra.mxu1 %v14435_v51  ;;  %v14516_v50 = vld [vmem:[%s18910_s1 + $0x250] ss:$48 sps:$4 sm:$0xff]   ;;  %v14519_v51 = vld [vmem:[%s18910_s1 + $0x258] ss:$48 sps:$4 sm:$0xff]  }
  0x6e   :  { %2936 = vmatprep.subr.bf16.mxu0 %v14440_v52  ;;  %3022 = vmatprep.subr.bf16.mxu1 %v14443_v53  ;;  %v14524_v52 = vld [vmem:[%s18910_s1 + $0x2b4] ss:$48 sps:$4 sm:$0xff]   ;;  %v14527_v53 = vld [vmem:[%s18910_s1 + $0x2bc] ss:$48 sps:$4 sm:$0xff]  }
  0x71   :  { %2937 = vmatpush1.bf16.msra.mxu0 %v14438_v28  ;;  %3023 = vmatpush1.bf16.msra.mxu1 %v14441_v39  ;;  %v14522_v28 = vld [vmem:[%s18910_s1 + $0x2b0] ss:$48 sps:$4 sm:$0xff]   ;;  %v14525_v39 = vld [vmem:[%s18910_s1 + $0x2b8] ss:$48 sps:$4 sm:$0xff]  }
  0x72   :  { %2938 = vmatprep.subr.bf16.mxu0 %v14446_v47  ;;  %3024 = vmatprep.subr.bf16.mxu1 %v14449_v54  ;;  %v14530_v47 = vld [vmem:[%s18910_s1 + $0x314] ss:$48 sps:$4 sm:$0xff]   ;;  %v14533_v54 = vld [vmem:[%s18910_s1 + $0x31c] ss:$48 sps:$4 sm:$0xff]  }
  0x75   :  { %2939 = vmatpush1.bf16.msra.mxu0 %v14444_v55  ;;  %3025 = vmatpush1.bf16.msra.mxu1 %v14447_v56  ;;  %v14528_v55 = vld [vmem:[%s18910_s1 + $0x310] ss:$48 sps:$4 sm:$0xff]   ;;  %v14531_v56 = vld [vmem:[%s18910_s1 + $0x318] ss:$48 sps:$4 sm:$0xff]  }
  0x76   :  { %2940 = vmatprep.subr.bf16.mxu0 %v14452_v57  ;;  %3026 = vmatprep.subr.bf16.mxu1 %v14455_v58  ;;  %v14536_v57 = vld [vmem:[%s18910_s1 + $0x374] ss:$48 sps:$4 sm:$0xff]   ;;  %v14539_v58 = vld [vmem:[%s18910_s1 + $0x37c] ss:$48 sps:$4 sm:$0xff]  }
  0x79   :  { %2941 = vmatpush1.bf16.msra.mxu0 %v14450_v62  ;;  %3027 = vmatpush1.bf16.msra.mxu1 %v14453_v63  ;;  %v14534_v62 = vld [vmem:[%s18910_s1 + $0x370] ss:$48 sps:$4 sm:$0xff]   ;;  %v14537_v63 = vld [vmem:[%s18910_s1 + $0x378] ss:$48 sps:$4 sm:$0xff]  }
  0x7a   :  { %2942 = vmatprep.subr.bf16.mxu0 %v14458_v0  ;;  %3028 = vmatprep.subr.bf16.mxu1 %v14461_v1  ;;  %v14542_v0 = vld [vmem:[%s18910_s1 + $0x3d4] ss:$48 sps:$4 sm:$0xff]   ;;  %v14545_v1 = vld [vmem:[%s18910_s1 + $0x3dc] ss:$48 sps:$4 sm:$0xff]  }
  0x7d   :  { %2943 = vmatpush1.bf16.msra.mxu0 %v14456_v3  ;;  %3029 = vmatpush1.bf16.msra.mxu1 %v14459_v4  ;;  %v14540_v3 = vld [vmem:[%s18910_s1 + $0x3d0] ss:$48 sps:$4 sm:$0xff]   ;;  %v14543_v4 = vld [vmem:[%s18910_s1 + $0x3d8] ss:$48 sps:$4 sm:$0xff]  }
  0x7e   :  { %2944 = vmatprep.subr.bf16.mxu0 %v14464_v5  ;;  %3030 = vmatprep.subr.bf16.mxu1 %v14467_v6  ;;  %v14548_v5 = vld [vmem:[%s18910_s1 + $0x434] ss:$48 sps:$4 sm:$0xff]   ;;  %v14551_v6 = vld [vmem:[%s18910_s1 + $0x43c] ss:$48 sps:$4 sm:$0xff]  }
  0x81   :  { %2945 = vmatpush1.bf16.msra.mxu0 %v14462_v60  ;;  %3031 = vmatpush1.bf16.msra.mxu1 %v14465_v7  ;;  %v14546_v60 = vld [vmem:[%s18910_s1 + $0x430] ss:$48 sps:$4 sm:$0xff]   ;;  %v14549_v7 = vld [vmem:[%s18910_s1 + $0x438] ss:$48 sps:$4 sm:$0xff]  }
  0x82   :  { %2946 = vmatprep.subr.bf16.mxu0 %v14470_v8  ;;  %3032 = vmatprep.subr.bf16.mxu1 %v14473_v9  ;;  %v14554_v8 = vld [vmem:[%s18910_s1 + $0x494] ss:$48 sps:$4 sm:$0xff]   ;;  %v14557_v9 = vld [vmem:[%s18910_s1 + $0x49c] ss:$48 sps:$4 sm:$0xff]  }
  0x85   :  { %2947 = vmatpush1.bf16.msra.mxu0 %v14468_v11  ;;  %3033 = vmatpush1.bf16.msra.mxu1 %v14471_v12  ;;  %v14552_v11 = vld [vmem:[%s18910_s1 + $0x490] ss:$48 sps:$4 sm:$0xff]   ;;  %v14555_v12 = vld [vmem:[%s18910_s1 + $0x498] ss:$48 sps:$4 sm:$0xff]  }
  0x86   :  { %2948 = vmatprep.subr.bf16.mxu0 %v14476_v15  ;;  %3034 = vmatprep.subr.bf16.mxu1 %v14479_v16  ;;  %v14560_v15 = vld [vmem:[%s18910_s1 + $0x4f4] ss:$48 sps:$4 sm:$0xff]   ;;  %v14563_v16 = vld [vmem:[%s18910_s1 + $0x4fc] ss:$48 sps:$4 sm:$0xff]  }
  0x89   :  { %2949 = vmatpush1.bf16.msra.mxu0 %v14474_v18  ;;  %3035 = vmatpush1.bf16.msra.mxu1 %v14477_v20  ;;  %v14558_v18 = vld [vmem:[%s18910_s1 + $0x4f0] ss:$48 sps:$4 sm:$0xff]   ;;  %v14561_v20 = vld [vmem:[%s18910_s1 + $0x4f8] ss:$48 sps:$4 sm:$0xff]  }
  0x8a   :  { %3047 = vmatprep.subr.bf16.mxu0 %v14482_v21  ;;  %3133 = vmatprep.subr.bf16.mxu1 %v14485_v22  ;;  %v14566_v21 = vld [vmem:[%s18910_s1 + $0x554] ss:$48 sps:$4 sm:$0xff]   ;;  %v14569_v22 = vld [vmem:[%s18910_s1 + $0x55c] ss:$48 sps:$4 sm:$0xff]  }
  0x8c   :  { %2951 = vmatmul.mubr.bf16.vlgmr.msra.gmra.mrb[0].mxu0 %v15687_v14  ;;  %3037 = vmatmul.mubr.bf16.vlgmr.msra.gmra.mrb[0].mxu1 %v15687_v14 }
  0x8d   :  { %3048 = vmatpush1.bf16.msra.mxu0 %v14480_v23  ;;  %3134 = vmatpush1.bf16.msra.mxu1 %v14483_v24  ;;  %v14564_v23 = vld [vmem:[%s18910_s1 + $0x550] ss:$48 sps:$4 sm:$0xff]   ;;  %v14567_v24 = vld [vmem:[%s18910_s1 + $0x558] ss:$48 sps:$4 sm:$0xff]  }
  0x8e   :  { %3049 = vmatprep.subr.bf16.mxu0 %v14488_v59  ;;  %3135 = vmatprep.subr.bf16.mxu1 %v14491_v25  ;;  %v14572_v59 = vld [vmem:[%s18910_s1 + $0x5b4] ss:$48 sps:$4 sm:$0xff]   ;;  %v14575_v25 = vld [vmem:[%s18910_s1 + $0x5bc] ss:$48 sps:$4 sm:$0xff]  }
  0x8f   :  { %3079 = vmatprep.mubr.bf16.mxu0 %v15677_v10  ;;  %3165 = vmatprep.mubr.bf16.mxu1 %v15677_v10 }
  0x91   :  { %3050 = vmatpush1.bf16.msra.mxu0 %v14486_v26  ;;  %3136 = vmatpush1.bf16.msra.mxu1 %v14489_v27  ;;  %v14570_v26 = vld [vmem:[%s18910_s1 + $0x5b0] ss:$48 sps:$4 sm:$0xff]   ;;  %v14573_v27 = vld [vmem:[%s18910_s1 + $0x5b8] ss:$48 sps:$4 sm:$0xff]  }
  0x92   :  { %3051 = vmatprep.subr.bf16.mxu0 %v14494_v29  ;;  %3137 = vmatprep.subr.bf16.mxu1 %v14497_v30  ;;  %v14578_v29 = vld [vmem:[%s18910_s1 + $0x614] ss:$48 sps:$4 sm:$0xff]   ;;  %v14581_v30 = vld [vmem:[%s18910_s1 + $0x61c] ss:$48 sps:$4 sm:$0xff]  }
  0x95   :  { %3052 = vmatpush1.bf16.msra.mxu0 %v14492_v31  ;;  %3138 = vmatpush1.bf16.msra.mxu1 %v14495_v32  ;;  %v14576_v31 = vld [vmem:[%s18910_s1 + $0x610] ss:$48 sps:$4 sm:$0xff]   ;;  %v14579_v32 = vld [vmem:[%s18910_s1 + $0x618] ss:$48 sps:$4 sm:$0xff]  }
  0x96   :  { %3053 = vmatprep.subr.bf16.mxu0 %v14500_v33  ;;  %3139 = vmatprep.subr.bf16.mxu1 %v14503_v34  ;;  %v14584_v33 = vld [vmem:[%s18910_s1 + $0x674] ss:$48 sps:$4 sm:$0xff]   ;;  %v14587_v34 = vld [vmem:[%s18910_s1 + $0x67c] ss:$48 sps:$4 sm:$0xff]  }
  0x99   :  { %3054 = vmatpush1.bf16.msra.mxu0 %v14498_v35  ;;  %3140 = vmatpush1.bf16.msra.mxu1 %v14501_v36  ;;  %v14582_v35 = vld [vmem:[%s18910_s1 + $0x670] ss:$48 sps:$4 sm:$0xff]   ;;  %v14585_v36 = vld [vmem:[%s18910_s1 + $0x678] ss:$48 sps:$4 sm:$0xff]  }
  0x9a   :  { %3055 = vmatprep.subr.bf16.mxu0 %v14506_v37  ;;  %3141 = vmatprep.subr.bf16.mxu1 %v14509_v38  ;;  %v14590_v37 = vld [vmem:[%s18910_s1 + $0x6d4] ss:$48 sps:$4 sm:$0xff]   ;;  %v14593_v38 = vld [vmem:[%s18910_s1 + $0x6dc] ss:$48 sps:$4 sm:$0xff]  }
  0x9d   :  { %3056 = vmatpush1.bf16.msra.mxu0 %v14504_v40  ;;  %3142 = vmatpush1.bf16.msra.mxu1 %v14507_v41  ;;  %v14588_v40 = vld [vmem:[%s18910_s1 + $0x6d0] ss:$48 sps:$4 sm:$0xff]   ;;  %v14591_v41 = vld [vmem:[%s18910_s1 + $0x6d8] ss:$48 sps:$4 sm:$0xff]  }
  0x9e   :  { %3057 = vmatprep.subr.bf16.mxu0 %v14512_v42  ;;  %3143 = vmatprep.subr.bf16.mxu1 %v14515_v43  ;;  %v14596_v42 = vld [vmem:[%s18910_s1 + $0x734] ss:$48 sps:$4 sm:$0xff]   ;;  %v14599_v43 = vld [vmem:[%s18910_s1 + $0x73c] ss:$48 sps:$4 sm:$0xff]  }
  0xa1   :  { %3058 = vmatpush1.bf16.msra.mxu0 %v14510_v44  ;;  %3144 = vmatpush1.bf16.msra.mxu1 %v14513_v45  ;;  %v14594_v44 = vld [vmem:[%s18910_s1 + $0x730] ss:$48 sps:$4 sm:$0xff]   ;;  %v14597_v45 = vld [vmem:[%s18910_s1 + $0x738] ss:$48 sps:$4 sm:$0xff]  }
  0xa2   :  { %3059 = vmatprep.subr.bf16.mxu0 %v14518_v46  ;;  %3145 = vmatprep.subr.bf16.mxu1 %v14521_v49  ;;  %v14602_v46 = vld [vmem:[%s18910_s1 + $0x794] ss:$48 sps:$4 sm:$0xff]   ;;  %v14605_v49 = vld [vmem:[%s18910_s1 + $0x79c] ss:$48 sps:$4 sm:$0xff]  }
  0xa5   :  { %3060 = vmatpush1.bf16.msra.mxu0 %v14516_v50  ;;  %3146 = vmatpush1.bf16.msra.mxu1 %v14519_v51  ;;  %v14600_v50 = vld [vmem:[%s18910_s1 + $0x790] ss:$48 sps:$4 sm:$0xff]   ;;  %v14603_v51 = vld [vmem:[%s18910_s1 + $0x798] ss:$48 sps:$4 sm:$0xff]  }
  0xa6   :  { %3061 = vmatprep.subr.bf16.mxu0 %v14524_v52  ;;  %3147 = vmatprep.subr.bf16.mxu1 %v14527_v53  ;;  %v14608_v52 = vld [vmem:[%s18910_s1 + $0x7f4] ss:$48 sps:$4 sm:$0xff]   ;;  %v14611_v53 = vld [vmem:[%s18910_s1 + $0x7fc] ss:$48 sps:$4 sm:$0xff]  }
  0xa9   :  { %3062 = vmatpush1.bf16.msra.mxu0 %v14522_v28  ;;  %3148 = vmatpush1.bf16.msra.mxu1 %v14525_v39  ;;  %v14606_v28 = vld [vmem:[%s18910_s1 + $0x7f0] ss:$48 sps:$4 sm:$0xff]   ;;  %v14609_v39 = vld [vmem:[%s18910_s1 + $0x7f8] ss:$48 sps:$4 sm:$0xff]  }
  0xaa   :  { %3063 = vmatprep.subr.bf16.mxu0 %v14530_v47  ;;  %3149 = vmatprep.subr.bf16.mxu1 %v14533_v54  ;;  %v14614_v47 = vld [vmem:[%s18910_s1 + $0x854] ss:$48 sps:$4 sm:$0xff]   ;;  %v14617_v54 = vld [vmem:[%s18910_s1 + $0x85c] ss:$48 sps:$4 sm:$0xff]  }
  0xad   :  { %3064 = vmatpush1.bf16.msra.mxu0 %v14528_v55  ;;  %3150 = vmatpush1.bf16.msra.mxu1 %v14531_v56  ;;  %v14612_v55 = vld [vmem:[%s18910_s1 + $0x850] ss:$48 sps:$4 sm:$0xff]   ;;  %v14615_v56 = vld [vmem:[%s18910_s1 + $0x858] ss:$48 sps:$4 sm:$0xff]  }
  0xae   :  { %3065 = vmatprep.subr.bf16.mxu0 %v14536_v57  ;;  %3151 = vmatprep.subr.bf16.mxu1 %v14539_v58  ;;  %v14620_v57 = vld [vmem:[%s18910_s1 + $0x8b4] ss:$48 sps:$4 sm:$0xff]   ;;  %v14623_v58 = vld [vmem:[%s18910_s1 + $0x8bc] ss:$48 sps:$4 sm:$0xff]  }
  0xb1   :  { %3066 = vmatpush1.bf16.msra.mxu0 %v14534_v62  ;;  %3152 = vmatpush1.bf16.msra.mxu1 %v14537_v63  ;;  %v14618_v62 = vld [vmem:[%s18910_s1 + $0x8b0] ss:$48 sps:$4 sm:$0xff]   ;;  %v14621_v63 = vld [vmem:[%s18910_s1 + $0x8b8] ss:$48 sps:$4 sm:$0xff]  }
  0xb2   :  { %3067 = vmatprep.subr.bf16.mxu0 %v14542_v0  ;;  %3153 = vmatprep.subr.bf16.mxu1 %v14545_v1  ;;  %v14626_v0 = vld [vmem:[%s18910_s1 + $0x914] ss:$48 sps:$4 sm:$0xff]   ;;  %v14629_v1 = vld [vmem:[%s18910_s1 + $0x91c] ss:$48 sps:$4 sm:$0xff]  }
  0xb5   :  { %3068 = vmatpush1.bf16.msra.mxu0 %v14540_v3  ;;  %3154 = vmatpush1.bf16.msra.mxu1 %v14543_v4  ;;  %v14624_v3 = vld [vmem:[%s18910_s1 + $0x910] ss:$48 sps:$4 sm:$0xff]   ;;  %v14627_v4 = vld [vmem:[%s18910_s1 + $0x918] ss:$48 sps:$4 sm:$0xff]  }
  0xb6   :  { %3069 = vmatprep.subr.bf16.mxu0 %v14548_v5  ;;  %3155 = vmatprep.subr.bf16.mxu1 %v14551_v6  ;;  %v14632_v5 = vld [vmem:[%s18910_s1 + $0x974] ss:$48 sps:$4 sm:$0xff]   ;;  %v14635_v6 = vld [vmem:[%s18910_s1 + $0x97c] ss:$48 sps:$4 sm:$0xff]  }
  0xb9   :  { %3070 = vmatpush1.bf16.msra.mxu0 %v14546_v60  ;;  %3156 = vmatpush1.bf16.msra.mxu1 %v14549_v7  ;;  %v14630_v60 = vld [vmem:[%s18910_s1 + $0x970] ss:$48 sps:$4 sm:$0xff]   ;;  %v14633_v7 = vld [vmem:[%s18910_s1 + $0x978] ss:$48 sps:$4 sm:$0xff]  }
  0xba   :  { %3071 = vmatprep.subr.bf16.mxu0 %v14554_v8  ;;  %3157 = vmatprep.subr.bf16.mxu1 %v14557_v9  ;;  %v14638_v8 = vld [vmem:[%s18910_s1 + $0x9d4] ss:$48 sps:$4 sm:$0xff]   ;;  %v14641_v9 = vld [vmem:[%s18910_s1 + $0x9dc] ss:$48 sps:$4 sm:$0xff]  }
  0xbd   :  { %3072 = vmatpush1.bf16.msra.mxu0 %v14552_v11  ;;  %3158 = vmatpush1.bf16.msra.mxu1 %v14555_v12  ;;  %v14636_v11 = vld [vmem:[%s18910_s1 + $0x9d0] ss:$48 sps:$4 sm:$0xff]   ;;  %v14639_v12 = vld [vmem:[%s18910_s1 + $0x9d8] ss:$48 sps:$4 sm:$0xff]  }
  0xbe   :  { %3073 = vmatprep.subr.bf16.mxu0 %v14560_v15  ;;  %3159 = vmatprep.subr.bf16.mxu1 %v14563_v16  ;;  %v14644_v15 = vld [vmem:[%s18910_s1 + $0xa34] ss:$48 sps:$4 sm:$0xff]   ;;  %v14647_v16 = vld [vmem:[%s18910_s1 + $0xa3c] ss:$48 sps:$4 sm:$0xff]  }
  0xc1   :  { %3074 = vmatpush1.bf16.msra.mxu0 %v14558_v18  ;;  %3160 = vmatpush1.bf16.msra.mxu1 %v14561_v20  ;;  %v14642_v18 = vld [vmem:[%s18910_s1 + $0xa30] ss:$48 sps:$4 sm:$0xff]   ;;  %v14645_v20 = vld [vmem:[%s18910_s1 + $0xa38] ss:$48 sps:$4 sm:$0xff]  }
  0xc2   :  { %3075 = vmatprep.subr.bf16.mxu0 %v14566_v21  ;;  %3161 = vmatprep.subr.bf16.mxu1 %v14569_v22  ;;  %v14650_v21 = vld [vmem:[%s18910_s1 + $0xa94] ss:$48 sps:$4 sm:$0xff]   ;;  %v14653_v22 = vld [vmem:[%s18910_s1 + $0xa9c] ss:$48 sps:$4 sm:$0xff]  }
  0xc5   :  { %3076 = vmatpush1.bf16.msra.mxu0 %v14564_v23  ;;  %3162 = vmatpush1.bf16.msra.mxu1 %v14567_v24  ;;  %v14648_v23 = vld [vmem:[%s18910_s1 + $0xa90] ss:$48 sps:$4 sm:$0xff]   ;;  %v14651_v24 = vld [vmem:[%s18910_s1 + $0xa98] ss:$48 sps:$4 sm:$0xff]  }
  0xc6   :  { %3077 = vmatprep.subr.bf16.mxu0 %v14572_v59  ;;  %3163 = vmatprep.subr.bf16.mxu1 %v14575_v25  ;;  %v14656_v59 = vld [vmem:[%s18910_s1 + $0xaf4] ss:$48 sps:$4 sm:$0xff]   ;;  %v14659_v25 = vld [vmem:[%s18910_s1 + $0xafc] ss:$48 sps:$4 sm:$0xff]  }
  0xc9   :  { %3078 = vmatpush1.bf16.msra.mxu0 %v14570_v26  ;;  %3164 = vmatpush1.bf16.msra.mxu1 %v14573_v27  ;;  %v14654_v26 = vld [vmem:[%s18910_s1 + $0xaf0] ss:$48 sps:$4 sm:$0xff]   ;;  %v14657_v27 = vld [vmem:[%s18910_s1 + $0xaf8] ss:$48 sps:$4 sm:$0xff]  }
  0xca   :  { %3090 = vmatprep.subr.bf16.mxu0 %v14578_v29  ;;  %3176 = vmatprep.subr.bf16.mxu1 %v14581_v30  ;;  %v14662_v29 = vld [vmem:[%s18910_s1 + $0xb54] ss:$48 sps:$4 sm:$0xff]   ;;  %v14665_v30 = vld [vmem:[%s18910_s1 + $0xb5c] ss:$48 sps:$4 sm:$0xff]  }
  0xcc   :  { %3080 = vmatmul.mubr.bf16.vlgmr.msra.gmra.mrb[4].mxu0 %v15685_v13  ;;  %3166 = vmatmul.mubr.bf16.vlgmr.msra.gmra.mrb[4].mxu1 %v15685_v13 }
  0xcd   :  { %3091 = vmatpush1.bf16.msra.mxu0 %v14576_v31  ;;  %3177 = vmatpush1.bf16.msra.mxu1 %v14579_v32  ;;  %v14660_v31 = vld [vmem:[%s18910_s1 + $0xb50] ss:$48 sps:$4 sm:$0xff]   ;;  %v14663_v32 = vld [vmem:[%s18910_s1 + $0xb58] ss:$48 sps:$4 sm:$0xff]  }
  0xce   :  { %3092 = vmatprep.subr.bf16.mxu0 %v14584_v33  ;;  %3178 = vmatprep.subr.bf16.mxu1 %v14587_v34  ;;  %v14668_v33 = vld [vmem:[%s18910_s1 + $0xbb4] ss:$48 sps:$4 sm:$0xff]   ;;  %v14671_v34 = vld [vmem:[%s18910_s1 + $0xbbc] ss:$48 sps:$4 sm:$0xff]  }
  0xcf   :  { %3122 = vmatprep.mubr.bf16.mxu0 %v15697_v17  ;;  %3208 = vmatprep.mubr.bf16.mxu1 %v15697_v17 }
  0xd1   :  { %3093 = vmatpush1.bf16.msra.mxu0 %v14582_v35  ;;  %3179 = vmatpush1.bf16.msra.mxu1 %v14585_v36  ;;  %v14666_v35 = vld [vmem:[%s18910_s1 + $0xbb0] ss:$48 sps:$4 sm:$0xff]   ;;  %v14669_v36 = vld [vmem:[%s18910_s1 + $0xbb8] ss:$48 sps:$4 sm:$0xff]  }
  0xd2   :  { %3094 = vmatprep.subr.bf16.mxu0 %v14590_v37  ;;  %3180 = vmatprep.subr.bf16.mxu1 %v14593_v38  ;;  %v14674_v37 = vld [vmem:[%s18910_s1 + $0x24] ss:$48 sps:$4 sm:$0xff]   ;;  %v14677_v38 = vld [vmem:[%s18910_s1 + $0x2c] ss:$48 sps:$4 sm:$0xff]  }
  0xd5   :  { %3095 = vmatpush1.bf16.msra.mxu0 %v14588_v40  ;;  %3181 = vmatpush1.bf16.msra.mxu1 %v14591_v41  ;;  %v14672_v40 = vld [vmem:[%s18910_s1 + $0x20] ss:$48 sps:$4 sm:$0xff]   ;;  %v14675_v41 = vld [vmem:[%s18910_s1 + $0x28] ss:$48 sps:$4 sm:$0xff]  }
  0xd6   :  { %3096 = vmatprep.subr.bf16.mxu0 %v14596_v42  ;;  %3182 = vmatprep.subr.bf16.mxu1 %v14599_v43  ;;  %v14680_v42 = vld [vmem:[%s18910_s1 + $0x84] ss:$48 sps:$4 sm:$0xff]   ;;  %v14683_v43 = vld [vmem:[%s18910_s1 + $0x8c] ss:$48 sps:$4 sm:$0xff]  }
  0xd9   :  { %3097 = vmatpush1.bf16.msra.mxu0 %v14594_v44  ;;  %3183 = vmatpush1.bf16.msra.mxu1 %v14597_v45  ;;  %v14678_v44 = vld [vmem:[%s18910_s1 + $0x80] ss:$48 sps:$4 sm:$0xff]   ;;  %v14681_v45 = vld [vmem:[%s18910_s1 + $0x88] ss:$48 sps:$4 sm:$0xff]  }
  0xda   :  { %3098 = vmatprep.subr.bf16.mxu0 %v14602_v46  ;;  %3184 = vmatprep.subr.bf16.mxu1 %v14605_v49  ;;  %v14686_v46 = vld [vmem:[%s18910_s1 + $0xe4] ss:$48 sps:$4 sm:$0xff]   ;;  %v14689_v49 = vld [vmem:[%s18910_s1 + $0xec] ss:$48 sps:$4 sm:$0xff]  }
  0xdd   :  { %3099 = vmatpush1.bf16.msra.mxu0 %v14600_v50  ;;  %3185 = vmatpush1.bf16.msra.mxu1 %v14603_v51  ;;  %v14684_v50 = vld [vmem:[%s18910_s1 + $0xe0] ss:$48 sps:$4 sm:$0xff]   ;;  %v14687_v51 = vld [vmem:[%s18910_s1 + $0xe8] ss:$48 sps:$4 sm:$0xff]  }
  0xde   :  { %3100 = vmatprep.subr.bf16.mxu0 %v14608_v52  ;;  %3186 = vmatprep.subr.bf16.mxu1 %v14611_v53  ;;  %v14692_v52 = vld [vmem:[%s18910_s1 + $0x144] ss:$48 sps:$4 sm:$0xff]   ;;  %v14690_v53 = vld [vmem:[%s18910_s1 + $0x140] ss:$48 sps:$4 sm:$0xff]  }
  0xe1   :  { %3101 = vmatpush1.bf16.msra.mxu0 %v14606_v28  ;;  %3187 = vmatpush1.bf16.msra.mxu1 %v14609_v39  ;;  %v14693_v28 = vld [vmem:[%s18910_s1 + $0x148] ss:$48 sps:$4 sm:$0xff]   ;;  %v14698_v39 = vld [vmem:[%s18910_s1 + $0x1a4] ss:$48 sps:$4 sm:$0xff]  }
  0xe2   :  { %3102 = vmatprep.subr.bf16.mxu0 %v14614_v47  ;;  %3188 = vmatprep.subr.bf16.mxu1 %v14617_v54  ;;  %v14701_v47 = vld [vmem:[%s18910_s1 + $0x1ac] ss:$48 sps:$4 sm:$0xff]   ;;  %v14696_v54 = vld [vmem:[%s18910_s1 + $0x1a0] ss:$48 sps:$4 sm:$0xff]  }
  0xe5   :  { %3103 = vmatpush1.bf16.msra.mxu0 %v14612_v55  ;;  %3189 = vmatpush1.bf16.msra.mxu1 %v14615_v56  ;;  %v14699_v55 = vld [vmem:[%s18910_s1 + $0x1a8] ss:$48 sps:$4 sm:$0xff]   ;;  %v14704_v56 = vld [vmem:[%s18910_s1 + $0x204] ss:$48 sps:$4 sm:$0xff]  }
  0xe6   :  { %3104 = vmatprep.subr.bf16.mxu0 %v14620_v57  ;;  %3190 = vmatprep.subr.bf16.mxu1 %v14623_v58  ;;  %v14707_v57 = vld [vmem:[%s18910_s1 + $0x20c] ss:$48 sps:$4 sm:$0xff]   ;;  %v14702_v58 = vld [vmem:[%s18910_s1 + $0x200] ss:$48 sps:$4 sm:$0xff]  }
  0xe9   :  { %3105 = vmatpush1.bf16.msra.mxu0 %v14618_v62  ;;  %3191 = vmatpush1.bf16.msra.mxu1 %v14621_v63  ;;  %v14705_v62 = vld [vmem:[%s18910_s1 + $0x208] ss:$48 sps:$4 sm:$0xff]   ;;  %v14710_v63 = vld [vmem:[%s18910_s1 + $0x264] ss:$48 sps:$4 sm:$0xff]  }
  0xea   :  { %3106 = vmatprep.subr.bf16.mxu0 %v14626_v0  ;;  %3192 = vmatprep.subr.bf16.mxu1 %v14629_v1  ;;  %v14713_v0 = vld [vmem:[%s18910_s1 + $0x26c] ss:$48 sps:$4 sm:$0xff]   ;;  %v14708_v1 = vld [vmem:[%s18910_s1 + $0x260] ss:$48 sps:$4 sm:$0xff]  }
  0xed   :  { %3107 = vmatpush1.bf16.msra.mxu0 %v14624_v3  ;;  %3193 = vmatpush1.bf16.msra.mxu1 %v14627_v4  ;;  %v14711_v3 = vld [vmem:[%s18910_s1 + $0x268] ss:$48 sps:$4 sm:$0xff]   ;;  %v14716_v4 = vld [vmem:[%s18910_s1 + $0x2c4] ss:$48 sps:$4 sm:$0xff]  }
  0xee   :  { %3108 = vmatprep.subr.bf16.mxu0 %v14632_v5  ;;  %3194 = vmatprep.subr.bf16.mxu1 %v14635_v6  ;;  %v14719_v5 = vld [vmem:[%s18910_s1 + $0x2cc] ss:$48 sps:$4 sm:$0xff]   ;;  %v14714_v6 = vld [vmem:[%s18910_s1 + $0x2c0] ss:$48 sps:$4 sm:$0xff]  }
  0xf1   :  { %3109 = vmatpush1.bf16.msra.mxu0 %v14630_v60  ;;  %3195 = vmatpush1.bf16.msra.mxu1 %v14633_v7  ;;  %v14717_v60 = vld [vmem:[%s18910_s1 + $0x2c8] ss:$48 sps:$4 sm:$0xff]   ;;  %v14722_v7 = vld [vmem:[%s18910_s1 + $0x324] ss:$48 sps:$4 sm:$0xff]  }
  0xf2   :  { %3110 = vmatprep.subr.bf16.mxu0 %v14638_v8  ;;  %3196 = vmatprep.subr.bf16.mxu1 %v14641_v9  ;;  %v14725_v8 = vld [vmem:[%s18910_s1 + $0x32c] ss:$48 sps:$4 sm:$0xff]   ;;  %v14720_v9 = vld [vmem:[%s18910_s1 + $0x320] ss:$48 sps:$4 sm:$0xff]  }
  0xf5   :  { %3111 = vmatpush1.bf16.msra.mxu0 %v14636_v11  ;;  %3197 = vmatpush1.bf16.msra.mxu1 %v14639_v12  ;;  %v14723_v11 = vld [vmem:[%s18910_s1 + $0x328] ss:$48 sps:$4 sm:$0xff]   ;;  %v14728_v12 = vld [vmem:[%s18910_s1 + $0x384] ss:$48 sps:$4 sm:$0xff]  }
  0xf6   :  { %3112 = vmatprep.subr.bf16.mxu0 %v14644_v15  ;;  %3198 = vmatprep.subr.bf16.mxu1 %v14647_v16  ;;  %v14731_v15 = vld [vmem:[%s18910_s1 + $0x38c] ss:$48 sps:$4 sm:$0xff]   ;;  %v14726_v16 = vld [vmem:[%s18910_s1 + $0x380] ss:$48 sps:$4 sm:$0xff]  }
  0xf9   :  { %3113 = vmatpush1.bf16.msra.mxu0 %v14642_v18  ;;  %3199 = vmatpush1.bf16.msra.mxu1 %v14645_v20  ;;  %v14729_v18 = vld [vmem:[%s18910_s1 + $0x388] ss:$48 sps:$4 sm:$0xff]   ;;  %v14734_v20 = vld [vmem:[%s18910_s1 + $0x3e4] ss:$48 sps:$4 sm:$0xff]  }
  0xfa   :  { %3114 = vmatprep.subr.bf16.mxu0 %v14650_v21  ;;  %3200 = vmatprep.subr.bf16.mxu1 %v14653_v22  ;;  %v14737_v21 = vld [vmem:[%s18910_s1 + $0x3ec] ss:$48 sps:$4 sm:$0xff]   ;;  %v14732_v22 = vld [vmem:[%s18910_s1 + $0x3e0] ss:$48 sps:$4 sm:$0xff]  }
  0xfd   :  { %3115 = vmatpush1.bf16.msra.mxu0 %v14648_v23  ;;  %3201 = vmatpush1.bf16.msra.mxu1 %v14651_v24  ;;  %v14735_v23 = vld [vmem:[%s18910_s1 + $0x3e8] ss:$48 sps:$4 sm:$0xff]   ;;  %v14740_v24 = vld [vmem:[%s18910_s1 + $0x444] ss:$48 sps:$4 sm:$0xff]  }
  0xfe   :  { %3116 = vmatprep.subr.bf16.mxu0 %v14656_v59  ;;  %3202 = vmatprep.subr.bf16.mxu1 %v14659_v25  ;;  %v14743_v59 = vld [vmem:[%s18910_s1 + $0x44c] ss:$48 sps:$4 sm:$0xff]   ;;  %v14738_v25 = vld [vmem:[%s18910_s1 + $0x440] ss:$48 sps:$4 sm:$0xff]  }
 0x101   :  { %3117 = vmatpush1.bf16.msra.mxu0 %v14654_v26  ;;  %3203 = vmatpush1.bf16.msra.mxu1 %v14657_v27  ;;  %v14741_v26 = vld [vmem:[%s18910_s1 + $0x448] ss:$48 sps:$4 sm:$0xff]   ;;  %v14746_v27 = vld [vmem:[%s18910_s1 + $0x4a4] ss:$48 sps:$4 sm:$0xff]  }
 0x102   :  { %3118 = vmatprep.subr.bf16.mxu0 %v14662_v29  ;;  %3204 = vmatprep.subr.bf16.mxu1 %v14665_v30  ;;  %v14749_v29 = vld [vmem:[%s18910_s1 + $0x4ac] ss:$48 sps:$4 sm:$0xff]   ;;  %v14744_v30 = vld [vmem:[%s18910_s1 + $0x4a0] ss:$48 sps:$4 sm:$0xff]  }
 0x105   :  { %3119 = vmatpush1.bf16.msra.mxu0 %v14660_v31  ;;  %3205 = vmatpush1.bf16.msra.mxu1 %v14663_v32  ;;  %v14747_v31 = vld [vmem:[%s18910_s1 + $0x4a8] ss:$48 sps:$4 sm:$0xff]   ;;  %v14752_v32 = vld [vmem:[%s18910_s1 + $0x504] ss:$48 sps:$4 sm:$0xff]  }
 0x106   :  { %3120 = vmatprep.subr.bf16.mxu0 %v14668_v33  ;;  %3206 = vmatprep.subr.bf16.mxu1 %v14671_v34  ;;  %v14755_v33 = vld [vmem:[%s18910_s1 + $0x50c] ss:$48 sps:$4 sm:$0xff]   ;;  %v14750_v34 = vld [vmem:[%s18910_s1 + $0x500] ss:$48 sps:$4 sm:$0xff]  }
 0x109   :  { %3121 = vmatpush1.bf16.msra.mxu0 %v14666_v35  ;;  %3207 = vmatpush1.bf16.msra.mxu1 %v14669_v36  ;;  %v14753_v35 = vld [vmem:[%s18910_s1 + $0x508] ss:$48 sps:$4 sm:$0xff]   ;;  %v14758_v36 = vld [vmem:[%s18910_s1 + $0x564] ss:$48 sps:$4 sm:$0xff]  }
 0x10a   :  { %3219 = vmatprep.subr.bf16.mxu0 %v14674_v37  ;;  %3305 = vmatprep.subr.bf16.mxu1 %v14677_v38  ;;  %v14761_v37 = vld [vmem:[%s18910_s1 + $0x56c] ss:$48 sps:$4 sm:$0xff]   ;;  %v14756_v38 = vld [vmem:[%s18910_s1 + $0x560] ss:$48 sps:$4 sm:$0xff]  }
 0x10c   :  { %3123 = vmatmul.mubr.bf16.vlgmr.msra.gmra.mrb[4].mxu0 %v15687_v14  ;;  %3209 = vmatmul.mubr.bf16.vlgmr.msra.gmra.mrb[4].mxu1 %v15687_v14 }
 0x10d   :  { %3220 = vmatpush1.bf16.msra.mxu0 %v14672_v40  ;;  %3306 = vmatpush1.bf16.msra.mxu1 %v14675_v41  ;;  %v14759_v40 = vld [vmem:[%s18910_s1 + $0x568] ss:$48 sps:$4 sm:$0xff]   ;;  %v14764_v41 = vld [vmem:[%s18910_s1 + $0x5c4] ss:$48 sps:$4 sm:$0xff]  }
 0x10e   :  { %3221 = vmatprep.subr.bf16.mxu0 %v14680_v42  ;;  %3307 = vmatprep.subr.bf16.mxu1 %v14683_v43  ;;  %v14767_v42 = vld [vmem:[%s18910_s1 + $0x5cc] ss:$48 sps:$4 sm:$0xff]   ;;  %v14762_v43 = vld [vmem:[%s18910_s1 + $0x5c0] ss:$48 sps:$4 sm:$0xff]  }
 0x10f   :  { %3251 = vmatprep.mubr.bf16.mxu0 %v15677_v10  ;;  %3337 = vmatprep.mubr.bf16.mxu1 %v15677_v10  ;;  %v14695_v10 = vld [vmem:[%s18910_s1 + $0x14c] ss:$48 sps:$4 sm:$0xff]  }
 0x111   :  { %3222 = vmatpush1.bf16.msra.mxu0 %v14678_v44  ;;  %3308 = vmatpush1.bf16.msra.mxu1 %v14681_v45  ;;  %v14765_v44 = vld [vmem:[%s18910_s1 + $0x5c8] ss:$48 sps:$4 sm:$0xff]   ;;  %v14770_v45 = vld [vmem:[%s18910_s1 + $0x624] ss:$48 sps:$4 sm:$0xff]  }
 0x112   :  { %3223 = vmatprep.subr.bf16.mxu0 %v14686_v46  ;;  %3309 = vmatprep.subr.bf16.mxu1 %v14689_v49  ;;  %v14773_v46 = vld [vmem:[%s18910_s1 + $0x62c] ss:$48 sps:$4 sm:$0xff]   ;;  %v14768_v49 = vld [vmem:[%s18910_s1 + $0x620] ss:$48 sps:$4 sm:$0xff]  }
 0x115   :  { %3224 = vmatpush1.bf16.msra.mxu0 %v14684_v50  ;;  %3310 = vmatpush1.bf16.msra.mxu1 %v14687_v51  ;;  %v14771_v50 = vld [vmem:[%s18910_s1 + $0x628] ss:$48 sps:$4 sm:$0xff]   ;;  %v14776_v51 = vld [vmem:[%s18910_s1 + $0x684] ss:$48 sps:$4 sm:$0xff]  }
 0x116   :  { %3225 = vmatprep.subr.bf16.mxu0 %v14692_v52  ;;  %3311 = vmatprep.subr.bf16.mxu1 %v14695_v10  ;;  %v14779_v52 = vld [vmem:[%s18910_s1 + $0x68c] ss:$48 sps:$4 sm:$0xff]   ;;  %v14774_v10 = vld [vmem:[%s18910_s1 + $0x680] ss:$48 sps:$4 sm:$0xff]  }
 0x119   :  { %3226 = vmatpush1.bf16.msra.mxu0 %v14690_v53  ;;  %3312 = vmatpush1.bf16.msra.mxu1 %v14693_v28  ;;  %v14777_v53 = vld [vmem:[%s18910_s1 + $0x688] ss:$48 sps:$4 sm:$0xff]   ;;  %v14782_v28 = vld [vmem:[%s18910_s1 + $0x6e4] ss:$48 sps:$4 sm:$0xff]  }
 0x11a   :  { %3227 = vmatprep.subr.bf16.mxu0 %v14698_v39  ;;  %3313 = vmatprep.subr.bf16.mxu1 %v14701_v47  ;;  %v14780_v39 = vld [vmem:[%s18910_s1 + $0x6e0] ss:$48 sps:$4 sm:$0xff]   ;;  %v14783_v47 = vld [vmem:[%s18910_s1 + $0x6e8] ss:$48 sps:$4 sm:$0xff]  }
 0x11d   :  { %3228 = vmatpush1.bf16.msra.mxu0 %v14696_v54  ;;  %3314 = vmatpush1.bf16.msra.mxu1 %v14699_v55  ;;  %v14788_v54 = vld [vmem:[%s18910_s1 + $0x744] ss:$48 sps:$4 sm:$0xff]   ;;  %v14786_v55 = vld [vmem:[%s18910_s1 + $0x740] ss:$48 sps:$4 sm:$0xff]  }
 0x11e   :  { %3229 = vmatprep.subr.bf16.mxu0 %v14704_v56  ;;  %3315 = vmatprep.subr.bf16.mxu1 %v14707_v57  ;;  %v14789_v56 = vld [vmem:[%s18910_s1 + $0x748] ss:$48 sps:$4 sm:$0xff]   ;;  %v14794_v57 = vld [vmem:[%s18910_s1 + $0x7a4] ss:$48 sps:$4 sm:$0xff]  }
 0x121   :  { %3230 = vmatpush1.bf16.msra.mxu0 %v14702_v58  ;;  %3316 = vmatpush1.bf16.msra.mxu1 %v14705_v62  ;;  %v14797_v58 = vld [vmem:[%s18910_s1 + $0x7ac] ss:$48 sps:$4 sm:$0xff]   ;;  %v16526_v62 = vld [vmem:[%s18912_s2] sm:$0xff] }
 0x122   :  { %3231 = vmatprep.subr.bf16.mxu0 %v14710_v63  ;;  %3317 = vmatprep.subr.bf16.mxu1 %v14713_v0  ;;  %v16529_v63 = vsub.s32 0, %v15475_v48  ;;  %v16532_v0 = vsub.s32 2, %v15475_v48 }
 0x124   :  { %18938 = vst [vmem:[#allocation4_spill] sm:$0xff] %v16529_v63  ;;  %18939 = vst [vmem:[#allocation5_spill] sm:$0xff] %v16532_v0 }
 0x125   :  { %3232 = vmatpush1.bf16.msra.mxu0 %v14708_v1  ;;  %3318 = vmatpush1.bf16.msra.mxu1 %v14711_v3  ;;  %v16535_v1 = vsub.s32 1, %v15475_v48  ;;  %v16538_v3 = vsub.s32 3, %v15475_v48 }
 0x126   :  { %3233 = vmatprep.subr.bf16.mxu0 %v14716_v4  ;;  %3319 = vmatprep.subr.bf16.mxu1 %v14719_v5  ;;  %v14792_v4 = vld [vmem:[%s18910_s1 + $0x7a0] ss:$48 sps:$4 sm:$0xff]   ;;  %v14795_v5 = vld [vmem:[%s18910_s1 + $0x7a8] ss:$48 sps:$4 sm:$0xff]  }
 0x127   :  { %18940 = vst [vmem:[#allocation6_spill] sm:$0xff] %v16535_v1  ;;  %18941 = vst [vmem:[#allocation7_spill] sm:$0xff] %v16538_v3 }
 0x129   :  { %3234 = vmatpush1.bf16.msra.mxu0 %v14714_v6  ;;  %3320 = vmatpush1.bf16.msra.mxu1 %v14717_v60  ;;  %v14800_v6 = vld [vmem:[%s18910_s1 + $0x804] ss:$48 sps:$4 sm:$0xff]   ;;  %v14803_v60 = vld [vmem:[%s18910_s1 + $0x80c] ss:$48 sps:$4 sm:$0xff]  }
 0x12a   :  { %3235 = vmatprep.subr.bf16.mxu0 %v14722_v7  ;;  %3321 = vmatprep.subr.bf16.mxu1 %v14725_v8  ;;  %v826_v7 = vrot.slane %v16526_v62, %v16529_v63  ;;  %v834_v8 = vrot.slane %v16526_v62, %v16532_v0 }
 0x12d   :  { %3236 = vmatpush1.bf16.msra.mxu0 %v14720_v9  ;;  %3322 = vmatpush1.bf16.msra.mxu1 %v14723_v11  ;;  %v830_v9 = vrot.slane %v16526_v62, %v16535_v1  ;;  %v838_v11 = vrot.slane %v16526_v62, %v16538_v3 }
 0x12e   :  { %3237 = vmatprep.subr.bf16.mxu0 %v14728_v12  ;;  %3323 = vmatprep.subr.bf16.mxu1 %v14731_v15  ;;  %v14798_v12 = vld [vmem:[%s18910_s1 + $0x800] ss:$48 sps:$4 sm:$0xff]   ;;  %v14801_v15 = vld [vmem:[%s18910_s1 + $0x808] ss:$48 sps:$4 sm:$0xff]  }
 0x131   :  { %3238 = vmatpush1.bf16.msra.mxu0 %v14726_v16  ;;  %3324 = vmatpush1.bf16.msra.mxu1 %v14729_v18  ;;  %v14806_v16 = vld [vmem:[%s18910_s1 + $0x864] ss:$48 sps:$4 sm:$0xff]   ;;  %v14809_v18 = vld [vmem:[%s18910_s1 + $0x86c] ss:$48 sps:$4 sm:$0xff]  }
 0x132   :  { %3239 = vmatprep.subr.bf16.mxu0 %v14734_v20  ;;  %3325 = vmatprep.subr.bf16.mxu1 %v14737_v21 }
 0x135   :  { %3240 = vmatpush1.bf16.msra.mxu0 %v14732_v22  ;;  %3326 = vmatpush1.bf16.msra.mxu1 %v14735_v23 }
 0x136   :  { %3241 = vmatprep.subr.bf16.mxu0 %v14740_v24  ;;  %3327 = vmatprep.subr.bf16.mxu1 %v14743_v59 }
 0x139   :  { %3242 = vmatpush1.bf16.msra.mxu0 %v14738_v25  ;;  %3328 = vmatpush1.bf16.msra.mxu1 %v14741_v26 }
 0x13a   :  { %3243 = vmatprep.subr.bf16.mxu0 %v14746_v27  ;;  %3329 = vmatprep.subr.bf16.mxu1 %v14749_v29 }
 0x13d   :  { %3244 = vmatpush1.bf16.msra.mxu0 %v14744_v30  ;;  %3330 = vmatpush1.bf16.msra.mxu1 %v14747_v31  ;;  %v14804_v30 = vld [vmem:[%s18910_s1 + $0x860] ss:$48 sps:$4 sm:$0xff]  }
 0x13e   :  { %3245 = vmatprep.subr.bf16.mxu0 %v14752_v32  ;;  %3331 = vmatprep.subr.bf16.mxu1 %v14755_v33 }
 0x141   :  { %3246 = vmatpush1.bf16.msra.mxu0 %v14750_v34  ;;  %3332 = vmatpush1.bf16.msra.mxu1 %v14753_v35  ;;  %v14807_v35 = vld [vmem:[%s18910_s1 + $0x868] ss:$48 sps:$4 sm:$0xff]  }
 0x142   :  { %3247 = vmatprep.subr.bf16.mxu0 %v14758_v36  ;;  %3333 = vmatprep.subr.bf16.mxu1 %v14761_v37  ;;  %v14812_v36 = vld [vmem:[%s18910_s1 + $0x8c4] ss:$48 sps:$4 sm:$0xff]  }
 0x145   :  { %3248 = vmatpush1.bf16.msra.mxu0 %v14756_v38  ;;  %3334 = vmatpush1.bf16.msra.mxu1 %v14759_v40 }
 0x146   :  { %3249 = vmatprep.subr.bf16.mxu0 %v14764_v41  ;;  %3335 = vmatprep.subr.bf16.mxu1 %v14767_v42  ;;  %v14815_v42 = vld [vmem:[%s18910_s1 + $0x8cc] ss:$48 sps:$4 sm:$0xff]  }
 0x149   :  { %3250 = vmatpush1.bf16.msra.mxu0 %v14762_v43  ;;  %3336 = vmatpush1.bf16.msra.mxu1 %v14765_v44 }
 0x14a   :  { %3262 = vmatprep.subr.bf16.mxu0 %v14770_v45  ;;  %3348 = vmatprep.subr.bf16.mxu1 %v14773_v46 }
 0x14c   :  { %3252 = vmatmul.mubr.bf16.vlgmr.msra.gmra.mrb[8].mxu0 %v15685_v13  ;;  %3338 = vmatmul.mubr.bf16.vlgmr.msra.gmra.mrb[8].mxu1 %v15685_v13  ;;  %v14785_v13 = vld [vmem:[%s18910_s1 + $0x6ec] ss:$48 sps:$4 sm:$0xff]  }
 0x14d   :  { %3263 = vmatpush1.bf16.msra.mxu0 %v14768_v49  ;;  %3349 = vmatpush1.bf16.msra.mxu1 %v14771_v50  ;;  %v14810_v49 = vld [vmem:[%s18910_s1 + $0x8c0] ss:$48 sps:$4 sm:$0xff]   ;;  %v14813_v50 = vld [vmem:[%s18910_s1 + $0x8c8] ss:$48 sps:$4 sm:$0xff]  }
 0x14e   :  { %3264 = vmatprep.subr.bf16.mxu0 %v14776_v51  ;;  %3350 = vmatprep.subr.bf16.mxu1 %v14779_v52  ;;  %v14818_v51 = vld [vmem:[%s18910_s1 + $0x924] ss:$48 sps:$4 sm:$0xff]  }
 0x14f   :  { %3294 = vmatprep.mubr.bf16.mxu0 %v15697_v17  ;;  %3380 = vmatprep.mubr.bf16.mxu1 %v15697_v17  ;;  %v14791_v17 = vld [vmem:[%s18910_s1 + $0x74c] ss:$48 sps:$4 sm:$0xff]  }
 0x151   :  { %3265 = vmatpush1.bf16.msra.mxu0 %v14774_v10  ;;  %3351 = vmatpush1.bf16.msra.mxu1 %v14777_v53 }
 0x152   :  { %3266 = vmatprep.subr.bf16.mxu0 %v14782_v28  ;;  %3352 = vmatprep.subr.bf16.mxu1 %v14785_v13  ;;  %v14821_v13 = vld [vmem:[%s18910_s1 + $0x92c] ss:$48 sps:$4 sm:$0xff]  }
 0x155   :  { %3267 = vmatpush1.bf16.msra.mxu0 %v14780_v39  ;;  %3353 = vmatpush1.bf16.msra.mxu1 %v14783_v47 }
 0x156   :  { %3268 = vmatprep.subr.bf16.mxu0 %v14788_v54  ;;  %3354 = vmatprep.subr.bf16.mxu1 %v14791_v17  ;;  %v14816_v54 = vld [vmem:[%s18910_s1 + $0x920] ss:$48 sps:$4 sm:$0xff]   ;;  %v14819_v17 = vld [vmem:[%s18910_s1 + $0x928] ss:$48 sps:$4 sm:$0xff]  }
 0x159   :  { %3269 = vmatpush1.bf16.msra.mxu0 %v14786_v55  ;;  %3355 = vmatpush1.bf16.msra.mxu1 %v14789_v56  ;;  %v14824_v55 = vld [vmem:[%s18910_s1 + $0x984] ss:$48 sps:$4 sm:$0xff]   ;;  %v14827_v56 = vld [vmem:[%s18910_s1 + $0x98c] ss:$48 sps:$4 sm:$0xff]  }
 0x15a   :  { %3270 = vmatprep.subr.bf16.mxu0 %v14794_v57  ;;  %3356 = vmatprep.subr.bf16.mxu1 %v14797_v58  ;;  %v14822_v57 = vld [vmem:[%s18910_s1 + $0x980] ss:$48 sps:$4 sm:$0xff]   ;;  %v14825_v58 = vld [vmem:[%s18910_s1 + $0x988] ss:$48 sps:$4 sm:$0xff]  }
 0x15d   :  { %3271 = vmatpush1.bf16.msra.mxu0 %v14792_v4  ;;  %3357 = vmatpush1.bf16.msra.mxu1 %v14795_v5  ;;  %v14830_v4 = vld [vmem:[%s18910_s1 + $0x9e4] ss:$48 sps:$4 sm:$0xff]   ;;  %v14833_v5 = vld [vmem:[%s18910_s1 + $0x9ec] ss:$48 sps:$4 sm:$0xff]  }
 0x15e   :  { %3272 = vmatprep.subr.bf16.mxu0 %v14800_v6  ;;  %3358 = vmatprep.subr.bf16.mxu1 %v14803_v60  ;;  %v14828_v6 = vld [vmem:[%s18910_s1 + $0x9e0] ss:$48 sps:$4 sm:$0xff]   ;;  %v14831_v60 = vld [vmem:[%s18910_s1 + $0x9e8] ss:$48 sps:$4 sm:$0xff]  }
 0x15f   :  { %v2952_v20 = vpop.f32.mrb[0].mxu0  ;;  %v3038_v21 = vpop.f32.mrb[0].mxu1 }
 0x160   :  { %v14217_v22 = vadd.f32 %v2952_v20, %v826_v7  ;;  %v14221_v23 = vadd.f32 %v3038_v21, %v834_v8  ;;  %v2954_v24 = vpop.f32.mrb[1].mxu0  ;;  %v3040_v59 = vpop.f32.mrb[1].mxu1  ;;  %v14848_v20 = vld [vmem:[%s18910_s1 + $0xb04] ss:$48 sps:$4 sm:$0xff]   ;;  %v14851_v21 = vld [vmem:[%s18910_s1 + $0xb0c] ss:$48 sps:$4 sm:$0xff]  }
 0x161   :  { %v14218_v25 = vadd.f32 %v2954_v24, %v830_v9  ;;  %v14222_v26 = vadd.f32 %v3040_v59, %v838_v11  ;;  %v2956_v27 = vpop.f32.mrb[2].mxu0  ;;  %v3042_v29 = vpop.f32.mrb[2].mxu1  ;;  %3273 = vmatpush1.bf16.msra.mxu0 %v14798_v12  ;;  %3359 = vmatpush1.bf16.msra.mxu1 %v14801_v15  ;;  %v14842_v12 = vld [vmem:[%s18910_s1 + $0xaa4] ss:$48 sps:$4 sm:$0xff]   ;;  %v14845_v15 = vld [vmem:[%s18910_s1 + $0xaac] ss:$48 sps:$4 sm:$0xff]  }
 0x162   :  { %v14219_v31 = vadd.f32 %v2956_v27, %v826_v7  ;;  %v14223_v32 = vadd.f32 %v3042_v29, %v834_v8  ;;  %v2958_v33 = vpop.f32.mrb[3].mxu0  ;;  %v3044_v34 = vpop.f32.mrb[3].mxu1  ;;  %3274 = vmatprep.subr.bf16.mxu0 %v14806_v16  ;;  %3360 = vmatprep.subr.bf16.mxu1 %v14809_v18  ;;  %v14836_v7 = vld [vmem:[%s18910_s1 + $0xa44] ss:$48 sps:$4 sm:$0xff]   ;;  %v14839_v8 = vld [vmem:[%s18910_s1 + $0xa4c] ss:$48 sps:$4 sm:$0xff]  }
 0x163   :  { %v12901_v37 = vpack.c.bf16 %v14218_v25, %v14217_v22  ;;  %v12903_v38 = vpack.c.bf16 %v14222_v26, %v14221_v23  ;;  %v14220_v40 = vadd.f32 %v2958_v33, %v830_v9  ;;  %v14224_v41 = vadd.f32 %v3044_v34, %v838_v11  ;;  %v14834_v9 = vld [vmem:[%s18910_s1 + $0xa40] ss:$48 sps:$4 sm:$0xff]   ;;  %v14837_v11 = vld [vmem:[%s18910_s1 + $0xa48] ss:$48 sps:$4 sm:$0xff]   ;;  %v14854_v24 = vld [vmem:[%s18910_s1 + $0xb64] ss:$48 sps:$4 sm:$0xff]  }
 0x164   :  { %v14840_v16 = vld [vmem:[%s18910_s1 + $0xaa0] ss:$48 sps:$4 sm:$0xff]   ;;  %v14843_v18 = vld [vmem:[%s18910_s1 + $0xaa8] ss:$48 sps:$4 sm:$0xff]   ;;  %v14857_v59 = vld [vmem:[%s18910_s1 + $0xb6c] ss:$48 sps:$4 sm:$0xff]  }
 0x165   :  { %v16585_v43 = vrot.slane %v12901_v37, %v15536_v19  ;;  %v16588_v44 = vrot.slane %v12903_v38, %v15536_v19  ;;  %v12902_v45 = vpack.c.bf16 %v14220_v40, %v14219_v31  ;;  %v12904_v46 = vpack.c.bf16 %v14224_v41, %v14223_v32  ;;  %3275 = vmatpush1.bf16.msra.mxu0 %v14804_v30  ;;  %v14846_v22 = vld [vmem:[%s18910_s1 + $0xb00] ss:$48 sps:$4 sm:$0xff]   ;;  %v14849_v23 = vld [vmem:[%s18910_s1 + $0xb08] ss:$48 sps:$4 sm:$0xff]   ;;  %v14860_v27 = vld [vmem:[%s18910_s1 + $0xbc4] ss:$48 sps:$4 sm:$0xff]  }
 0x166   :  { %3361 = vmatpush1.bf16.msra.mxu1 %v14807_v35  ;;  %3276 = vmatprep.subr.bf16.mxu0 %v14812_v36  ;;  %v14852_v25 = vld [vmem:[%s18910_s1 + $0xb60] ss:$48 sps:$4 sm:$0xff]   ;;  %v14855_v26 = vld [vmem:[%s18910_s1 + $0xb68] ss:$48 sps:$4 sm:$0xff]   ;;  %v14863_v29 = vld [vmem:[%s18910_s1 + $0xbcc] ss:$48 sps:$4 sm:$0xff]  }
 0x167   :  { %v3431_v52 = vcombine.low %v16585_v43, %v16588_v44  ;;  %v3432_v10 = vcombine.high %v16585_v43, %v16588_v44  ;;  %v16604_v53 = vrot.slane %v12902_v45, %v15536_v19  ;;  %v16607_v28 = vrot.slane %v12904_v46, %v15536_v19  ;;  %3362 = vmatprep.subr.bf16.mxu1 %v14815_v42  ;;  %v14858_v30 = vld [vmem:[%s18910_s1 + $0xbc0] ss:$48 sps:$4 sm:$0xff]   ;;  %v14861_v31 = vld [vmem:[%s18910_s1 + $0xbc8] ss:$48 sps:$4 sm:$0xff]  }
 0x168   :  { %v18916_v32 = vmov 0.0   ;;  %v841_v33 = vsub.s32 4, %v15475_v48  ;;  %v849_v34 = vsub.s32 6, %v15475_v48  ;;  %v845_v35 = vsub.s32 5, %v15475_v48 }
 0x169   :  { %v3433_v39 = vcombine.low %v16604_v53, %v16607_v28  ;;  %v3434_v47 = vcombine.high %v16604_v53, %v16607_v28  ;;  %3277 = vmatpush1.bf16.msra.mxu0 %v14810_v49  ;;  %v853_v36 = vsub.s32 7, %v15475_v48 }
 0x16a   :  { %3363 = vmatpush1.bf16.msra.mxu1 %v14813_v50  ;;  %3278 = vmatprep.subr.bf16.mxu0 %v14818_v51  ;;  %v842_v37 = vrot.slane %v16526_v62, %v841_v33  ;;  %v850_v38 = vrot.slane %v16526_v62, %v849_v34 }
 0x16b   :  { %3364 = vmatprep.subr.bf16.mxu1 %v14821_v13  ;;  %v854_v40 = vrot.slane %v16526_v62, %v853_v36  ;;  %v16818_v36 = vrot.slane %v3434_v47, %v15536_v19 }
 0x16d   :  { %3279 = vmatpush1.bf16.msra.mxu0 %v14816_v54  ;;  %18947 = vst [vmem:[#allocation13_spill] sm:$0xff] %v16818_v36  ;;  %v16840_v28 = vcombine.high %v16818_v36, %v16818_v36 }
 0x16e   :  { %3365 = vmatpush1.bf16.msra.mxu1 %v14819_v17  ;;  %3280 = vmatprep.subr.bf16.mxu0 %v14824_v55 }
 0x16f   :  { %3366 = vmatprep.subr.bf16.mxu1 %v14827_v56  ;;  %18949 = vst [vmem:[#allocation15_spill] sm:$0xff] %v16840_v28 }
 0x171   :  { %3281 = vmatpush1.bf16.msra.mxu0 %v14822_v57 }
 0x172   :  { %3367 = vmatpush1.bf16.msra.mxu1 %v14825_v58  ;;  %3282 = vmatprep.subr.bf16.mxu0 %v14830_v4 }
 0x173   :  { %3368 = vmatprep.subr.bf16.mxu1 %v14833_v5 }
 0x175   :  { %3283 = vmatpush1.bf16.msra.mxu0 %v14828_v6 }
 0x176   :  { %3369 = vmatpush1.bf16.msra.mxu1 %v14831_v60  ;;  %3284 = vmatprep.subr.bf16.mxu0 %v14836_v7 }
 0x177   :  { %3370 = vmatprep.subr.bf16.mxu1 %v14839_v8 }
 0x179   :  { %3285 = vmatpush1.bf16.msra.mxu0 %v14834_v9 }
 0x17a   :  { %3371 = vmatpush1.bf16.msra.mxu1 %v14837_v11  ;;  %3286 = vmatprep.subr.bf16.mxu0 %v14842_v12 }
 0x17b   :  { %3372 = vmatprep.subr.bf16.mxu1 %v14845_v15 }
 0x17d   :  { %3287 = vmatpush1.bf16.msra.mxu0 %v14840_v16 }
 0x17e   :  { %3373 = vmatpush1.bf16.msra.mxu1 %v14843_v18  ;;  %3288 = vmatprep.subr.bf16.mxu0 %v14848_v20 }
 0x17f   :  { %3374 = vmatprep.subr.bf16.mxu1 %v14851_v21 }
 0x181   :  { %3289 = vmatpush1.bf16.msra.mxu0 %v14846_v22 }
 0x182   :  { %3375 = vmatpush1.bf16.msra.mxu1 %v14849_v23  ;;  %3290 = vmatprep.subr.bf16.mxu0 %v14854_v24 }
 0x183   :  { %3376 = vmatprep.subr.bf16.mxu1 %v14857_v59 }
 0x185   :  { %3291 = vmatpush1.bf16.msra.mxu0 %v14852_v25  ;;  %v16750_v25 = vrot.slane %v3431_v52, %v15536_v19 }
 0x186   :  { %3377 = vmatpush1.bf16.msra.mxu1 %v14855_v26  ;;  %3292 = vmatprep.subr.bf16.mxu0 %v14860_v27  ;;  %v16756_v26 = vrot.slane %v3432_v10, %v15536_v19 }
 0x187   :  { %3378 = vmatprep.subr.bf16.mxu1 %v14863_v29  ;;  %v16780_v52 = vcombine.high %v16750_v25, %v16750_v25 }
 0x188   :  { %v16784_v10 = vcombine.high %v16756_v26, %v16756_v26 }
 0x189   :  { %3293 = vmatpush1.bf16.msra.mxu0 %v14858_v30 }
 0x18a   :  { %3379 = vmatpush1.bf16.msra.mxu1 %v14861_v31  ;;  %13449 = vmatprep.subr.bf16.mxu0 %v18916_v32  ;;  %18943 = vst [vmem:[#allocation9_spill] sm:$0xff] %v16784_v10 }
 0x18b   :  { %13455 = vmatprep.subr.bf16.mxu1 %v18916_v32 }
 0x18c   :  { %3295 = vmatmul.mubr.bf16.vlgmr.msra.gmra.mrb[8].mxu0 %v15687_v14 }
 0x18d   :  { %3381 = vmatmul.mubr.bf16.vlgmr.msra.gmra.mrb[8].mxu1 %v15687_v14  ;;  %13451 = vmatprep.mubr.msk.bf16.mxu0 %vm15317_vm0, %v18916_v32  ;;  %v846_v14 = vrot.slane %v16526_v62, %v845_v35  ;;  %v16812_v35 = vrot.slane %v3433_v39, %v15536_v19  ;;  %v820_v39 = vld [vmem:[%s18912_s2 + $0x8] sm:$0xf]  ;;  %s15318_s2 = smov 64  }
 0x18e   :  { %13457 = vmatprep.mubr.msk.bf16.mxu1 %vm15317_vm0, %v18916_v32  ;;  %v858_v47 = vrot.slane %v820_v39, %v16529_v63 }
 0x18f   :  { %18946 = vst [vmem:[#allocation12_spill] sm:$0xff] %v16812_v35  ;;  %v16836_v53 = vcombine.high %v16812_v35, %v16812_v35 }
 0x191   :  { %18948 = vst [vmem:[#allocation14_spill] sm:$0xff] %v16836_v53 }
 0x1df   :  { %v3124_v41 = vpop.f32.mrb[4].mxu0  ;;  %v3210_v42 = vpop.f32.mrb[4].mxu1 }
 0x1e0   :  { %v14225_v45 = vadd.f32 %v3124_v41, %v842_v37  ;;  %v14229_v46 = vadd.f32 %v3210_v42, %v850_v38  ;;  %v3126_v49 = vpop.f32.mrb[5].mxu0  ;;  %v3212_v50 = vpop.f32.mrb[5].mxu1  ;;  %v870_v41 = vrot.slane %v820_v39, %v16538_v3 }
 0x1e1   :  { %v14226_v51 = vadd.f32 %v3126_v49, %v846_v14  ;;  %v14230_v13 = vadd.f32 %v3212_v50, %v854_v40  ;;  %v3128_v54 = vpop.f32.mrb[6].mxu0  ;;  %v3214_v17 = vpop.f32.mrb[6].mxu1 }
 0x1e2   :  { %v14227_v55 = vadd.f32 %v3128_v54, %v842_v37  ;;  %v14231_v48 = vadd.f32 %v3214_v17, %v850_v38  ;;  %v3130_v56 = vpop.f32.mrb[7].mxu0  ;;  %v3216_v57 = vpop.f32.mrb[7].mxu1 }
 0x1e3   :  { %v12905_v58 = vpack.c.bf16 %v14226_v51, %v14225_v45  ;;  %v12907_v4 = vpack.c.bf16 %v14230_v13, %v14229_v46  ;;  %v14228_v5 = vadd.f32 %v3130_v56, %v846_v14  ;;  %v14232_v6 = vadd.f32 %v3216_v57, %v854_v40 }
 0x1e4   :  { %v866_v14 = vrot.slane %v820_v39, %v16532_v0  ;;  %v862_v40 = vrot.slane %v820_v39, %v16535_v1 }
 0x1e5   :  { %v3485_v62 = vrot.slane %v12905_v58, %v15536_v19  ;;  %v3499_v60 = vrot.slane %v12907_v4, %v15536_v19  ;;  %v12906_v7 = vpack.c.bf16 %v14228_v5, %v14227_v55  ;;  %v12908_v8 = vpack.c.bf16 %v14232_v6, %v14231_v48 }
 0x1e7   :  { %v3507_v9 = vcombine.low %v3485_v62, %v3499_v60  ;;  %v3508_v11 = vcombine.high %v3485_v62, %v3499_v60  ;;  %v3492_v12 = vrot.slane %v12906_v7, %v15536_v19  ;;  %v3506_v15 = vrot.slane %v12908_v8, %v15536_v19 }
 0x1e9   :  { %v16727_v16 = vrot.slane %v3507_v9, %v15536_v19  ;;  %v16730_v18 = vrot.slane %v3508_v11, %v15536_v19  ;;  %v3509_v20 = vcombine.low %v3492_v12, %v3506_v15  ;;  %v3510_v21 = vcombine.high %v3492_v12, %v3506_v15 }
 0x1eb   :  { %v3624_v22 = vsel %vm3619_vm1, %v16727_v16, 0  ;;  %v3670_v23 = vsel %vm3619_vm1, %v16730_v18, 0  ;;  %v16740_v24 = vcombine.high %v16727_v16, %v16727_v16  ;;  %v16744_v59 = vcombine.high %v16730_v18, %v16730_v18 }
 0x1ec   :  { %13450 = vmatpush3.bf16.xpose.msra.mxu0 %v3624_v22  ;;  %13456 = vmatpush3.bf16.xpose.msra.mxu1 %v3670_v23  ;;  %v16773_v43 = vrot.slane %v3509_v20, %v15536_v19  ;;  %v16776_v44 = vrot.slane %v3510_v21, %v15536_v19 }
 0x1ed   :  { %13461 = vmatprep.subr.bf16.mxu0 %v18916_v32  ;;  %13467 = vmatprep.subr.bf16.mxu1 %v18916_v32  ;;  %v3716_v27 = vsel %vm3619_vm1, %v16740_v24, 0  ;;  %v3762_v29 = vsel %vm3619_vm1, %v16744_v59, 0 }
 0x1ee   :  { %18942 = vst [vmem:[#allocation8_spill] sm:$0xff] %v16776_v44  ;;  %v3808_v30 = vsel %vm3619_vm1, %v16773_v43, 0  ;;  %v3854_v31 = vsel %vm3619_vm1, %v16776_v44, 0  ;;  %v16802_v33 = vcombine.high %v16773_v43, %v16773_v43  ;;  %v16806_v34 = vcombine.high %v16776_v44, %v16776_v44 }
 0x1f0   :  { %18944 = vst [vmem:[#allocation10_spill] sm:$0xff] %v16802_v33  ;;  %18945 = vst [vmem:[#allocation11_spill] sm:$0xff] %v16806_v34  ;;  %v3900_v37 = vsel %vm3619_vm1, %v16802_v33, 0  ;;  %v3946_v38 = vsel %vm3619_vm1, %v16806_v34, 0 }
 0x1f3   :  { %13452 = vmatmul.mubr.msk.bf16.vlgmr.msra.gmra.mrb[12].mxu0 %vm3619_vm1, %v16750_v25  ;;  %13458 = vmatmul.mubr.msk.bf16.vlgmr.msra.gmra.mrb[12].mxu1 %vm3619_vm1, %v16756_v26 }
 0x1f4   :  { %13462 = vmatpush3.bf16.xpose.msra.mxu0 %v3716_v27  ;;  %13468 = vmatpush3.bf16.xpose.msra.mxu1 %v3762_v29 }
 0x1f5   :  { %13463 = vmatprep.mubr.msk.bf16.mxu0 %vm15317_vm0, %v18916_v32  ;;  %13469 = vmatprep.mubr.msk.bf16.mxu1 %vm15317_vm0, %v18916_v32 }
 0x1f6   :  { %13473 = vmatprep.subr.bf16.mxu0 %v18916_v32  ;;  %13479 = vmatprep.subr.bf16.mxu1 %v18916_v32 }
 0x1fb   :  { %13464 = vmatmul.mubr.msk.bf16.vlgmr.msra.gmra.mrb[16].mxu0 %vm3619_vm1, %v16780_v52  ;;  %13470 = vmatmul.mubr.msk.bf16.vlgmr.msra.gmra.mrb[16].mxu1 %vm3619_vm1, %v16784_v10 }
 0x1fc   :  { %13474 = vmatpush3.bf16.xpose.msra.mxu0 %v3808_v30  ;;  %13480 = vmatpush3.bf16.xpose.msra.mxu1 %v3854_v31 }
 0x1fd   :  { %13475 = vmatprep.mubr.msk.bf16.mxu0 %vm15317_vm0, %v18916_v32  ;;  %13481 = vmatprep.mubr.msk.bf16.mxu1 %vm15317_vm0, %v18916_v32 }
 0x1fe   :  { %13485 = vmatprep.subr.bf16.mxu0 %v18916_v32  ;;  %13491 = vmatprep.subr.bf16.mxu1 %v18916_v32 }
 0x203   :  { %13476 = vmatmul.mubr.msk.bf16.vlgmr.msra.gmra.mrb[20].mxu0 %vm3619_vm1, %v16812_v35  ;;  %13482 = vmatmul.mubr.msk.bf16.vlgmr.msra.gmra.mrb[20].mxu1 %vm3619_vm1, %v16818_v36 }
 0x204   :  { %13486 = vmatpush3.bf16.xpose.msra.mxu0 %v3900_v37  ;;  %13492 = vmatpush3.bf16.xpose.msra.mxu1 %v3946_v38 }
 0x205   :  { %13487 = vmatprep.mubr.msk.bf16.mxu0 %vm15317_vm0, %v18916_v32  ;;  %13493 = vmatprep.mubr.msk.bf16.mxu1 %vm15317_vm0, %v18916_v32 }
 0x206   :  { %13497 = vmatprep.subr.bf16.mxu0 %v18916_v32  ;;  %13503 = vmatprep.subr.bf16.mxu1 %v18916_v32 }
 0x20b   :  { %13488 = vmatmul.mubr.msk.bf16.vlgmr.msra.gmra.mrb[24].mxu0 %vm3619_vm1, %v16836_v53  ;;  %13494 = vmatmul.mubr.msk.bf16.vlgmr.msra.gmra.mrb[24].mxu1 %vm3619_vm1, %v16840_v28 }
 0x20c   :  { %13499 = vmatprep.mubr.msk.bf16.mxu0 %vm15317_vm0, %v18916_v32  ;;  %13505 = vmatprep.mubr.msk.bf16.mxu1 %vm15317_vm0, %v18916_v32 }
 0x25f   :  { %v3296_v42 = vpop.f32.mrb[8].mxu0 }
 0x260   :  { %v14233_v45 = vadd.f32 %v3296_v42, %v858_v47  ;;  %v3382_v46 = vpop.f32.mrb[8].mxu1  ;;  %v3298_v49 = vpop.f32.mrb[9].mxu0 }
 0x261   :  { %v14237_v50 = vadd.f32 %v3382_v46, %v866_v14  ;;  %v14234_v51 = vadd.f32 %v3298_v49, %v862_v40  ;;  %v3384_v13 = vpop.f32.mrb[9].mxu1  ;;  %v3300_v54 = vpop.f32.mrb[10].mxu0 }
 0x262   :  { %v14238_v17 = vadd.f32 %v3384_v13, %v870_v41  ;;  %v14235_v55 = vadd.f32 %v3300_v54, %v858_v47  ;;  %v3386_v48 = vpop.f32.mrb[10].mxu1  ;;  %v3302_v56 = vpop.f32.mrb[11].mxu0 }
 0x263   :  { %v12909_v57 = vpack.c.bf16 %v14234_v51, %v14233_v45  ;;  %v14239_v58 = vadd.f32 %v3386_v48, %v866_v14  ;;  %v14236_v4 = vadd.f32 %v3302_v56, %v862_v40  ;;  %v3388_v5 = vpop.f32.mrb[11].mxu1 }
 0x264   :  { %v12911_v6 = vpack.c.bf16 %v14238_v17, %v14237_v50  ;;  %v14240_v62 = vadd.f32 %v3388_v5, %v870_v41 }
 0x265   :  { %v3561_v60 = vrot.slane %v12909_v57, %v15536_v19  ;;  %v12910_v7 = vpack.c.bf16 %v14236_v4, %v14235_v55 }
 0x266   :  { %v3575_v8 = vrot.slane %v12911_v6, %v15536_v19  ;;  %v12912_v9 = vpack.c.bf16 %v14240_v62, %v14239_v58 }
 0x267   :  { %v16860_v11 = vrot.slane %v12910_v7, %v15536_v19 }
 0x268   :  { %v3583_v12 = vcombine.low %v3561_v60, %v3575_v8  ;;  %v3584_v15 = vcombine.high %v3561_v60, %v3575_v8  ;;  %v16863_v20 = vrot.slane %v12912_v9, %v15536_v19 }
 0x26a   :  { %v16866_v21 = vrot.slane %v3583_v12, %v15536_v19  ;;  %v16869_v22 = vrot.slane %v3584_v15, %v15536_v19  ;;  %v3585_v23 = vcombine.low %v16860_v11, %v16863_v20  ;;  %v3586_v27 = vcombine.high %v16860_v11, %v16863_v20 }
 0x26c   :  { %18950 = vst [vmem:[#allocation16_spill] sm:$0xff] %v16866_v21  ;;  %18951 = vst [vmem:[#allocation17_spill] sm:$0xff] %v16869_v22  ;;  %v4091_v29 = vsel %vm4089_vm2, %v16866_v21, 0  ;;  %v4137_v30 = vsel %vm4089_vm2, %v16869_v22, 0 }
 0x26d   :  { %13498 = vmatpush3.bf16.msra.mxu0 %v4091_v29  ;;  %13504 = vmatpush3.bf16.msra.mxu1 %v4137_v30 }
 0x26e   :  { %13509 = vmatprep.subr.bf16.mxu0 %v18916_v32  ;;  %13515 = vmatprep.subr.bf16.mxu1 %v18916_v32 }
 0x2c6   :  { %v3660_v31 = vpop.f32.mrb[12].mxu0  ;;  %v3706_v37 = vpop.f32.mrb[12].mxu1 }
 0x2c7   :  { %v13453_v38 = vpop.f32.mrb[13].mxu0  ;;  %v13459_v39 = vpop.f32.mrb[13].mxu1  ;;  %v3989_v47 = vsel %vm3988_vm3, %v3660_v31, -inf  ;;  %v3992_v45 = vsel %vm3988_vm3, %v3706_v37, -inf }
 0x2c8   :  { %v3709_v14 = vpop.f32.mrb[14].mxu1  ;;  %3990 = vmax.xlane.f32.xlu0 %v3989_v47  ;;  %v3663_v40 = vpop.f32.mrb[14].mxu0 }
 0x2c9   :  { %v13454_v41 = vpop.f32.mrb[15].mxu0  ;;  %v13460_v42 = vpop.f32.mrb[15].mxu1 }
 0x2cc   :  { %3993 = vmax.xlane.f32.xlu0 %v3992_v45 }
 0x2ce   :  { %v3752_v46 = vpop.f32.mrb[16].mxu0  ;;  %v3798_v49 = vpop.f32.mrb[16].mxu1 }
 0x2cf   :  { %v13465_v50 = vpop.f32.mrb[17].mxu0  ;;  %v13471_v51 = vpop.f32.mrb[17].mxu1  ;;  %v3995_v13 = vsel %vm3988_vm3, %v3752_v46, -inf  ;;  %v3998_v56 = vsel %vm3988_vm3, %v3798_v49, -inf }
 0x2d0   :  { %v3801_v54 = vpop.f32.mrb[18].mxu1  ;;  %3996 = vmax.xlane.f32.xlu1 %v3995_v13  ;;  %v3755_v17 = vpop.f32.mrb[18].mxu0 }
 0x2d1   :  { %v13466_v55 = vpop.f32.mrb[19].mxu0  ;;  %v13472_v48 = vpop.f32.mrb[19].mxu1 }
 0x2d4   :  { %3999 = vmax.xlane.f32.xlu1 %v3998_v56 }
 0x2d6   :  { %v3844_v57 = vpop.f32.mrb[20].mxu0  ;;  %v3890_v58 = vpop.f32.mrb[20].mxu1 }
 0x2d7   :  { %v13477_v4 = vpop.f32.mrb[21].mxu0  ;;  %v13483_v5 = vpop.f32.mrb[21].mxu1  ;;  %v4004_v6 = vsel %vm3988_vm3, %v3890_v58, -inf  ;;  %v4001_v62 = vsel %vm3988_vm3, %v3844_v57, -inf }
 0x2d8   :  { %v3893_v60 = vpop.f32.mrb[22].mxu1  ;;  %4005 = vmax.xlane.f32.xlu1 %v4004_v6  ;;  %4002 = vmax.xlane.f32.xlu0 %v4001_v62  ;;  %v3847_v7 = vpop.f32.mrb[22].mxu0 }
 0x2d9   :  { %v13478_v8 = vpop.f32.mrb[23].mxu0  ;;  %v13484_v9 = vpop.f32.mrb[23].mxu1 }
 0x2de   :  { %v3936_v12 = vpop.f32.mrb[24].mxu0  ;;  %v16887_v15 = vpop.f32.mrb[24].mxu1 }
 0x2df   :  { %v13489_v29 = vpop.f32.mrb[25].mxu0  ;;  %v13495_v30 = vpop.f32.mrb[25].mxu1  ;;  %v4010_v38 = vsel %vm3988_vm3, %v16887_v15, -inf  ;;  %v4007_v39 = vsel %vm3988_vm3, %v3936_v12, -inf }
 0x2e0   :  { %v3985_v47 = vpop.f32.mrb[26].mxu1  ;;  %4011 = vmax.xlane.f32.xlu1 %v4010_v38  ;;  %4008 = vmax.xlane.f32.xlu0 %v4007_v39  ;;  %v3939_v14 = vpop.f32.mrb[26].mxu0 }
 0x2e1   :  { %v13490_v40 = vpop.f32.mrb[27].mxu0  ;;  %v13496_v41 = vpop.f32.mrb[27].mxu1 }
 0x355   :  { %v3991_v42 = vpop.xlane.xlu0 %3990 }
 0x356   :  { %v4013_v45 = vsub.f32 %v3660_v31, %v3991_v42 }
 0x358   :  { %v4021_v50 = vmul.f32 1.442695, %v4013_v45 }
 0x359   :  { %v3994_v51 = vpop.xlane.xlu0 %3993 }
 0x35a   :  { %15056 = vpow2.f32 %v4021_v50  ;;  %v4014_v13 = vsub.f32 %v3706_v37, %v3994_v51  ;;  %v4555_v50 = vrot.slane %v16730_v18, %v15536_v19 }
 0x35c   :  { %v4023_v54 = vmul.f32 1.442695, %v4014_v13  ;;  %v4562_v51 = vrot.slane %v4555_v50, %v15536_v19  ;;  %v4461_v13 = vrot.slane %v16750_v25, %v15536_v19  ;;  %v4695_v50 = vrot.slane %v16784_v10, %v15536_v19 }
 0x35d   :  { %v3997_v17 = vpop.xlane.xlu1 %3996 }
 0x35e   :  { %15058 = vpow2.f32 %v4023_v54  ;;  %v4015_v55 = vsub.f32 %v3752_v46, %v3997_v17  ;;  %v4468_v54 = vrot.slane %v4461_v13, %v15536_v19  ;;  %v4477_v17 = vrot.slane %v16727_v16, %v15536_v19 }
 0x35f   :  { %v4867_v13 = vrot.slane %v16776_v44, %v15536_v19 }
 0x360   :  { %v4025_v48 = vmul.f32 1.442695, %v4015_v55  ;;  %v4484_v55 = vrot.slane %v4477_v17, %v15536_v19  ;;  %v4851_v17 = vrot.slane %v16818_v36, %v15536_v19 }
 0x361   :  { %v4000_v56 = vpop.xlane.xlu1 %3999 }
 0x362   :  { %15060 = vpow2.f32 %v4025_v48  ;;  %v4016_v4 = vsub.f32 %v3798_v49, %v4000_v56  ;;  %v4633_v48 = vrot.slane %v16740_v24, %v15536_v19 }
 0x364   :  { %v16892_v5 = vpop.eup %15056  ;;  %v4027_v6 = vmul.f32 1.442695, %v4016_v4  ;;  %v4640_v4 = vrot.slane %v4633_v48, %v15536_v19  ;;  %v5023_v48 = vrot.slane %v16806_v34, %v15536_v19 }
 0x365   :  { %v4006_v62 = vpop.xlane.xlu1 %4005  ;;  %v4003_v60 = vpop.xlane.xlu0 %4002  ;;  %v4037_v31 = vsel %vm3988_vm3, %v16892_v5, 0.0 }
 0x366   :  { %15062 = vpow2.f32 %v4027_v6  ;;  %v4018_v7 = vsub.f32 %v3890_v58, %v4006_v62  ;;  %v4017_v8 = vsub.f32 %v3844_v57, %v4003_v60  ;;  %4038 = vadd.xlane.f32.xlu0 %v4037_v31  ;;  %v4617_v6 = vrot.slane %v16780_v52, %v15536_v19 }
 0x367   :  { %v4789_v31 = vrot.slane %v16773_v43, %v15536_v19 }
 0x368   :  { %v16896_v37 = vpop.eup %15058  ;;  %v4031_v9 = vmul.f32 1.442695, %v4018_v7  ;;  %v4029_v46 = vmul.f32 1.442695, %v4017_v8  ;;  %v4624_v60 = vrot.slane %v4617_v6, %v15536_v19 }
 0x369   :  { %v4040_v29 = vsel %vm3988_vm3, %v16896_v37, 0.0  ;;  %v4796_v8 = vrot.slane %v4789_v31, %v15536_v19 }
 0x36a   :  { %15064 = vpow2.f32 %v4031_v9  ;;  %4041 = vadd.xlane.f32.xlu1 %v4040_v29  ;;  %v4773_v9 = vrot.slane %v16812_v35, %v15536_v19 }
 0x36b   :  { %15066 = vpow2.f32 %v4029_v46  ;;  %v4945_v46 = vrot.slane %v16802_v33, %v15536_v19 }
 0x36c   :  { %v16900_v49 = vpop.eup %15060 }
 0x36d   :  { %v4009_v30 = vpop.xlane.xlu0 %4008  ;;  %v4043_v38 = vsel %vm3988_vm3, %v16900_v49, 0.0  ;;  %v4012_v56 = vpop.xlane.xlu1 %4011  ;;  %v4952_v29 = vrot.slane %v4945_v46, %v15536_v19 }
 0x36e   :  { %v4019_v39 = vsub.f32 %v3936_v12, %v4009_v30  ;;  %4044 = vadd.xlane.f32.xlu0 %v4043_v38  ;;  %v4020_v62 = vsub.f32 %v16887_v15, %v4012_v56  ;;  %v4780_v15 = vrot.slane %v4773_v9, %v15536_v19  ;;  %v4929_v30 = vrot.slane %v16836_v53, %v15536_v19 }
 0x36f   :  { %v5030_v56 = vrot.slane %v5023_v48, %v15536_v19 }
 0x370   :  { %v16904_v57 = vpop.eup %15062  ;;  %v4033_v58 = vmul.f32 1.442695, %v4019_v39  ;;  %v4035_v7 = vmul.f32 1.442695, %v4020_v62  ;;  %v4936_v39 = vrot.slane %v4929_v30, %v15536_v19 }
 0x371   :  { %v4046_v47 = vsel %vm3988_vm3, %v16904_v57, 0.0 }
 0x372   :  { %4047 = vadd.xlane.f32.xlu1 %v4046_v47  ;;  %15068 = vpow2.f32 %v4033_v58  ;;  %v4539_v47 = vrot.slane %v16756_v26, %v15536_v19 }
 0x373   :  { %15070 = vpow2.f32 %v4035_v7 }
 0x374   :  { %v16908_v14 = vpop.eup %15064 }
 0x375   :  { %v16910_v40 = vpop.eup %15066  ;;  %v4052_v41 = vsel %vm3988_vm3, %v16908_v14, 0.0 }
 0x376   :  { %4053 = vadd.xlane.f32.xlu1 %v4052_v41  ;;  %v4049_v12 = vsel %vm3988_vm3, %v16910_v40, 0.0  ;;  %v4546_v41 = vrot.slane %v4539_v47, %v15536_v19  ;;  %v17000_v47 = vcombine.high %v16869_v22, %v16869_v22 }
 0x377   :  { %4050 = vadd.xlane.f32.xlu0 %v4049_v12  ;;  %v4711_v12 = vrot.slane %v16744_v59, %v15536_v19 }
 0x37c   :  { %v16916_v42 = vpop.eup %15068 }
 0x37d   :  { %v4055_v45 = vsel %vm3988_vm3, %v16916_v42, 0.0  ;;  %v16955_v38 = vpop.eup %15070 }
 0x37e   :  { %4056 = vadd.xlane.f32.xlu0 %v4055_v45  ;;  %v4058_v58 = vsel %vm3988_vm3, %v16955_v38, 0.0  ;;  %v4718_v45 = vrot.slane %v4711_v12, %v15536_v19 }
 0x387   :  { %4563 = vrot.lane.b32.xlu1 %v4562_v51, %s15318_s2  ;;  %v4702_v51 = vrot.slane %v4695_v50, %v15536_v19 }
 0x38b   :  { %4469 = vrot.lane.b32.xlu1 %v4468_v54, %s15318_s2  ;;  %v4874_v54 = vrot.slane %v4867_v13, %v15536_v19 }
 0x394   :  { %4485 = vrot.lane.b32.xlu0 %v4484_v55, %s15318_s2  ;;  %v4858_v55 = vrot.slane %v4851_v17, %v15536_v19 }
 0x398   :  { %4641 = vrot.lane.b32.xlu0 %v4640_v4, %s15318_s2  ;;  %v5007_v4 = vrot.slane %v16840_v28, %v15536_v19 }
 0x39a   :  { %v5014_v6 = vrot.slane %v5007_v4, %v15536_v19 }
 0x39c   :  { %4625 = vrot.lane.b32.xlu0 %v4624_v60, %s15318_s2 }
 0x3a0   :  { %4797 = vrot.lane.b32.xlu0 %v4796_v8, %s15318_s2 }
 0x3a4   :  { %4781 = vrot.lane.b32.xlu0 %v4780_v15, %s15318_s2  ;;  %v16992_v15 = vcombine.high %v16866_v21, %v16866_v21 }
 0x3a8   :  { %4953 = vrot.lane.b32.xlu0 %v4952_v29, %s15318_s2 }
 0x3ac   :  { %4937 = vrot.lane.b32.xlu0 %v4936_v39, %s15318_s2  ;;  %v4183_v39 = vsel %vm4089_vm2, %v16992_v15, 0 }
 0x3af   :  { %4059 = vadd.xlane.f32.xlu1 %v4058_v58 }
 0x3c0   :  { %4547 = vrot.lane.b32.xlu1 %v4546_v41, %s15318_s2 }
 0x3c4   :  { %4719 = vrot.lane.b32.xlu1 %v4718_v45, %s15318_s2  ;;  %v4229_v45 = vsel %vm4089_vm2, %v17000_v47, 0 }
 0x3c8   :  { %4703 = vrot.lane.b32.xlu1 %v4702_v51, %s15318_s2 }
 0x3cc   :  { %4875 = vrot.lane.b32.xlu1 %v4874_v54, %s15318_s2 }
 0x3d0   :  { %4859 = vrot.lane.b32.xlu1 %v4858_v55, %s15318_s2 }
 0x3d4   :  { %5031 = vrot.lane.b32.xlu1 %v5030_v56, %s15318_s2 }
 0x3d8   :  { %5015 = vrot.lane.b32.xlu1 %v5014_v6, %s15318_s2 }
 0x3f3   :  { %v4039_v62 = vpop.xlane.xlu0 %4038 }
 0x3f4   :  { %15072 = vrcp.f32 %v4039_v62 }
 0x3f7   :  { %v4042_v60 = vpop.xlane.xlu1 %4041 }
 0x3f8   :  { %15074 = vrcp.f32 %v4042_v60 }
 0x3fb   :  { %v4045_v31 = vpop.xlane.xlu0 %4044 }
 0x3fc   :  { %15076 = vrcp.f32 %v4045_v31 }
 0x3fe   :  { %v15073_v7 = vpop.eup %15072 }
 0x3ff   :  { %v4048_v8 = vpop.xlane.xlu1 %4047  ;;  %v4069_v9 = vmul.f32 %v15073_v7, %v16892_v5 }
 0x400   :  { %15078 = vrcp.f32 %v4048_v8 }
 0x401   :  { %v4077_v46 = vpack.c.bf16 %v4069_v9, %v4069_v9 }
 0x402   :  { %v15075_v29 = vpop.eup %15074 }
 0x403   :  { %v4054_v30 = vpop.xlane.xlu1 %4053  ;;  %13500 = vmatmul.mubr.msk.bf16.vlgmr.msra.gmra.mrb[28].mxu0 %vm4085_vm4, %v4077_v46  ;;  %v4070_v58 = vmul.f32 %v15075_v29, %v16896_v37  ;;  %v17009_v37 = vrot.slane %v3585_v23, %v15536_v19  ;;  %v17022_v23 = vrot.slane %v3586_v27, %v15536_v19 }
 0x404   :  { %15080 = vrcp.f32 %v4054_v30  ;;  %13510 = vmatpush3.bf16.msra.mxu0 %v4183_v39  ;;  %v4051_v5 = vpop.xlane.xlu0 %4050  ;;  %13511 = vmatprep.mubr.msk.bf16.mxu0 %vm15317_vm0, %v18916_v32 }
 0x405   :  { %15082 = vrcp.f32 %v4051_v5  ;;  %v4078_v41 = vpack.c.bf16 %v4070_v58, %v4070_v58  ;;  %13521 = vmatprep.subr.bf16.mxu0 %v18916_v32  ;;  %v4275_v54 = vsel %vm4089_vm2, %v17009_v37, 0  ;;  %v4321_v20 = vsel %vm4089_vm2, %v17022_v23, 0 }
 0x406   :  { %v15077_v12 = vpop.eup %15076  ;;  %v17045_v6 = vcombine.high %v17022_v23, %v17022_v23 }
 0x407   :  { %13506 = vmatmul.mubr.msk.bf16.vlgmr.msra.gmra.mrb[28].mxu1 %vm4085_vm4, %v4078_v41  ;;  %v4071_v50 = vmul.f32 %v15077_v12, %v16900_v49  ;;  %v4564_v29 = vpop.permute.xlu1 %4563 }
 0x408   :  { %13516 = vmatpush3.bf16.msra.mxu1 %v4229_v45  ;;  %13517 = vmatprep.mubr.msk.bf16.mxu1 %vm15317_vm0, %v18916_v32 }
 0x409   :  { %v4079_v51 = vpack.c.bf16 %v4071_v50, %v4071_v50  ;;  %13527 = vmatprep.subr.bf16.mxu1 %v18916_v32 }
 0x40a   :  { %v15079_v13 = vpop.eup %15078 }
 0x40b   :  { %13512 = vmatmul.mubr.msk.bf16.vlgmr.msra.gmra.mrb[32].mxu0 %vm4085_vm4, %v4079_v51  ;;  %v4072_v49 = vmul.f32 %v15079_v13, %v16904_v57  ;;  %v4057_v17 = vpop.xlane.xlu0 %4056  ;;  %v17037_v57 = vcombine.high %v17009_v37, %v17009_v37 }
 0x40c   :  { %13522 = vmatpush3.bf16.msra.mxu0 %v4275_v54  ;;  %13523 = vmatprep.mubr.msk.bf16.mxu0 %vm15317_vm0, %v18916_v32  ;;  %15084 = vrcp.f32 %v4057_v17 }
 0x40d   :  { %v4080_v55 = vpack.c.bf16 %v4072_v49, %v4072_v49  ;;  %13533 = vmatprep.subr.bf16.mxu0 %v18916_v32 }
 0x40e   :  { %v15081_v48 = vpop.eup %15080 }
 0x40f   :  { %v15083_v11 = vpop.eup %15082  ;;  %13518 = vmatmul.mubr.msk.bf16.vlgmr.msra.gmra.mrb[32].mxu1 %vm4085_vm4, %v4080_v55  ;;  %v4074_v56 = vmul.f32 %v15081_v48, %v16908_v14  ;;  %v4486_v62 = vpop.permute.xlu0 %4485  ;;  %v4413_v14 = vsel %vm4089_vm2, %v17045_v6, 0  ;;  %v4569_v48 = vsel %vm3619_vm1, %v4564_v29, 0 }
 0x410   :  { %13528 = vmatpush3.bf16.msra.mxu1 %v4321_v20  ;;  %v4073_v27 = vmul.f32 %v15083_v11, %v16910_v40  ;;  %13529 = vmatprep.mubr.msk.bf16.mxu1 %vm15317_vm0, %v18916_v32  ;;  %v4367_v40 = vsel %vm4089_vm2, %v17037_v57, 0  ;;  %v4491_v46 = vsel %vm3619_vm1, %v4486_v62, 0 }
 0x411   :  { %13539 = vmatprep.subr.bf16.mxu1 %v18916_v32  ;;  %v4082_v60 = vpack.c.bf16 %v4074_v56, %v4074_v56 }
 0x412   :  { %v4081_v4 = vpack.c.bf16 %v4073_v27, %v4073_v27 }
 0x413   :  { %v4642_v8 = vpop.permute.xlu0 %4641 }
 0x414   :  { %13524 = vmatmul.mubr.msk.bf16.vlgmr.msra.gmra.mrb[36].mxu0 %vm4085_vm4, %v4081_v4  ;;  %v4647_v39 = vsel %vm3619_vm1, %v4642_v8, 0 }
 0x415   :  { %13534 = vmatpush3.bf16.msra.mxu0 %v4367_v40  ;;  %13535 = vmatprep.mubr.msk.bf16.mxu0 %vm15317_vm0, %v18916_v32 }
 0x416   :  { %13545 = vmatprep.subr.bf16.mxu0 %v18916_v32  ;;  %v15085_v31 = vpop.eup %15084 }
 0x417   :  { %13530 = vmatmul.mubr.msk.bf16.vlgmr.msra.gmra.mrb[36].mxu1 %vm4085_vm4, %v4082_v60  ;;  %v4075_v7 = vmul.f32 %v15085_v31, %v16916_v42  ;;  %v4626_v30 = vpop.permute.xlu0 %4625  ;;  %v4470_v42 = vpop.permute.xlu1 %4469 }
 0x418   :  { %13540 = vmatpush3.bf16.msra.mxu1 %v4413_v14  ;;  %13541 = vmatprep.mubr.msk.bf16.mxu1 %vm15317_vm0, %v18916_v32 }
 0x419   :  { %13551 = vmatprep.subr.bf16.mxu1 %v18916_v32  ;;  %v4083_v9 = vpack.c.bf16 %v4075_v7, %v4075_v7 }
 0x41b   :  { %v4798_v58 = vpop.permute.xlu0 %4797 }
 0x41c   :  { %13536 = vmatmul.mubr.msk.bf16.vlgmr.msra.gmra.mrb[40].mxu0 %vm4085_vm4, %v4083_v9  ;;  %v4803_v41 = vsel %vm3619_vm1, %v4798_v58, 0 }
 0x41d   :  { %13547 = vmatprep.mubr.msk.bf16.mxu0 %vm15317_vm0, %v18916_v32 }
 0x41e   :  { %13546 = vmatpush3.bf16.xpose.msra.mxu0 %v4491_v46 }
 0x41f   :  { %13557 = vmatprep.subr.bf16.mxu0 %v18916_v32  ;;  %v4782_v5 = vpop.permute.xlu0 %4781 }
 0x423   :  { %v4954_v12 = vpop.permute.xlu0 %4953 }
 0x424   :  { %v4959_v45 = vsel %vm3619_vm1, %v4954_v12, 0 }
 0x425   :  { %13548 = vmatmul.mubr.msk.bf16.vlgmr.msra.gmra.mrb[44].mxu0 %vm3619_vm1, %v4470_v42 }
 0x426   :  { %13558 = vmatpush3.bf16.xpose.msra.mxu0 %v4647_v39  ;;  %13559 = vmatprep.mubr.msk.bf16.mxu0 %vm15317_vm0, %v18916_v32 }
 0x427   :  { %13569 = vmatprep.subr.bf16.mxu0 %v18916_v32  ;;  %v4938_v50 = vpop.permute.xlu0 %4937 }
 0x42d   :  { %13560 = vmatmul.mubr.msk.bf16.vlgmr.msra.gmra.mrb[48].mxu0 %vm3619_vm1, %v4626_v30 }
 0x42e   :  { %13570 = vmatpush3.bf16.xpose.msra.mxu0 %v4803_v41  ;;  %13571 = vmatprep.mubr.msk.bf16.mxu0 %vm15317_vm0, %v18916_v32 }
 0x42f   :  { %13581 = vmatprep.subr.bf16.mxu0 %v18916_v32 }
 0x435   :  { %13572 = vmatmul.mubr.msk.bf16.vlgmr.msra.gmra.mrb[52].mxu0 %vm3619_vm1, %v4782_v5 }
 0x436   :  { %13582 = vmatpush3.bf16.xpose.msra.mxu0 %v4959_v45  ;;  %13583 = vmatprep.mubr.msk.bf16.mxu0 %vm15317_vm0, %v18916_v32 }
 0x437   :  { %13593 = vmatprep.subr.bf16.mxu0 %v18916_v32 }
 0x43c   :  { %v4060_v51 = vpop.xlane.xlu1 %4059 }
 0x43d   :  { %13584 = vmatmul.mubr.msk.bf16.vlgmr.msra.gmra.mrb[56].mxu0 %vm3619_vm1, %v4938_v50  ;;  %15086 = vrcp.f32 %v4060_v51 }
 0x43e   :  { %13595 = vmatprep.mubr.msk.bf16.mxu0 %vm15317_vm0, %v18916_v32 }
 0x440   :  { %v4548_v13 = vpop.permute.xlu1 %4547 }
 0x444   :  { %v4720_v17 = vpop.permute.xlu1 %4719 }
 0x445   :  { %v4725_v20 = vsel %vm3619_vm1, %v4720_v17, 0 }
 0x447   :  { %v15087_v54 = vpop.eup %15086 }
 0x448   :  { %v4076_v49 = vmul.f32 %v15087_v54, %v16955_v38  ;;  %v4704_v11 = vpop.permute.xlu1 %4703 }
 0x44a   :  { %v4084_v55 = vpack.c.bf16 %v4076_v49, %v4076_v49 }
 0x44c   :  { %13542 = vmatmul.mubr.msk.bf16.vlgmr.msra.gmra.mrb[40].mxu1 %vm4085_vm4, %v4084_v55  ;;  %v4876_v27 = vpop.permute.xlu1 %4875 }
 0x44d   :  { %13552 = vmatpush3.bf16.xpose.msra.mxu1 %v4569_v48  ;;  %13553 = vmatprep.mubr.msk.bf16.mxu1 %vm15317_vm0, %v18916_v32  ;;  %v4881_v56 = vsel %vm3619_vm1, %v4876_v27, 0 }
 0x44e   :  { %13563 = vmatprep.subr.bf16.mxu1 %v18916_v32 }
 0x450   :  { %v4860_v38 = vpop.permute.xlu1 %4859 }
 0x454   :  { %13554 = vmatmul.mubr.msk.bf16.vlgmr.msra.gmra.mrb[44].mxu1 %vm3619_vm1, %v4548_v13  ;;  %v5032_v4 = vpop.permute.xlu1 %5031 }
 0x455   :  { %13564 = vmatpush3.bf16.xpose.msra.mxu1 %v4725_v20  ;;  %13565 = vmatprep.mubr.msk.bf16.mxu1 %vm15317_vm0, %v18916_v32  ;;  %v5037_v62 = vsel %vm3619_vm1, %v5032_v4, 0 }
 0x456   :  { %13575 = vmatprep.subr.bf16.mxu1 %v18916_v32 }
 0x458   :  { %v5016_v40 = vpop.permute.xlu1 %5015 }
 0x45c   :  { %13566 = vmatmul.mubr.msk.bf16.vlgmr.msra.gmra.mrb[48].mxu1 %vm3619_vm1, %v4704_v11 }
 0x45d   :  { %13576 = vmatpush3.bf16.xpose.msra.mxu1 %v4881_v56  ;;  %13577 = vmatprep.mubr.msk.bf16.mxu1 %vm15317_vm0, %v18916_v32 }
 0x45e   :  { %13587 = vmatprep.subr.bf16.mxu1 %v18916_v32 }
 0x464   :  { %13578 = vmatmul.mubr.msk.bf16.vlgmr.msra.gmra.mrb[52].mxu1 %vm3619_vm1, %v4860_v38 }
 0x465   :  { %13588 = vmatpush3.bf16.xpose.msra.mxu1 %v5037_v62  ;;  %13589 = vmatprep.mubr.msk.bf16.mxu1 %vm15317_vm0, %v18916_v32 }
 0x466   :  { %13599 = vmatprep.subr.bf16.mxu1 %v18916_v32 }
 0x46c   :  { %13590 = vmatmul.mubr.msk.bf16.vlgmr.msra.gmra.mrb[56].mxu1 %vm3619_vm1, %v5016_v40 }
 0x46d   :  { %13601 = vmatprep.mubr.msk.bf16.mxu1 %vm15317_vm0, %v18916_v32 }
 0x4d6   :  { %v17107_v60 = vpop.f32.mrb[28].mxu0 }
 0x4d7   :  { %18952 = vst [vmem:[#allocation18_spill] sm:$0xff] %v17107_v60  ;;  %v13501_v31 = vpop.f32.mrb[29].mxu0 }
 0x4d8   :  { %v4130_v14 = vpop.f32.mrb[30].mxu0 }
 0x4d9   :  { %v13502_v7 = vpop.f32.mrb[31].mxu0 }
 0x4da   :  { %v17109_v8 = vpop.f32.mrb[28].mxu1 }
 0x4db   :  { %18953 = vst [vmem:[#allocation19_spill] sm:$0xff] %v17109_v8  ;;  %v13507_v9 = vpop.f32.mrb[29].mxu1 }
 0x4dc   :  { %v4176_v46 = vpop.f32.mrb[30].mxu1 }
 0x4dd   :  { %v13508_v29 = vpop.f32.mrb[31].mxu1 }
 0x4de   :  { %v17111_v30 = vpop.f32.mrb[32].mxu0 }
 0x4df   :  { %18954 = vst [vmem:[#allocation20_spill] sm:$0xff] %v17111_v30  ;;  %v13513_v42 = vpop.f32.mrb[33].mxu0 }
 0x4e0   :  { %v4222_v39 = vpop.f32.mrb[34].mxu0 }
 0x4e1   :  { %v13514_v58 = vpop.f32.mrb[35].mxu0 }
 0x4e2   :  { %v17113_v5 = vpop.f32.mrb[32].mxu1 }
 0x4e3   :  { %18955 = vst [vmem:[#allocation21_spill] sm:$0xff] %v17113_v5  ;;  %v13519_v41 = vpop.f32.mrb[33].mxu1 }
 0x4e4   :  { %v4268_v12 = vpop.f32.mrb[34].mxu1 }
 0x4e5   :  { %v13520_v45 = vpop.f32.mrb[35].mxu1 }
 0x4e7   :  { %v17115_v50 = vpop.f32.mrb[36].mxu0 }
 0x4e8   :  { %18956 = vst [vmem:[#allocation22_spill] sm:$0xff] %v17115_v50  ;;  %v13525_v51 = vpop.f32.mrb[37].mxu0 }
 0x4e9   :  { %v4314_v13 = vpop.f32.mrb[38].mxu0 }
 0x4ea   :  { %v13526_v54 = vpop.f32.mrb[39].mxu0  ;;  %v17117_v49 = vpop.f32.mrb[36].mxu1 }
 0x4eb   :  { %18957 = vst [vmem:[#allocation23_spill] sm:$0xff] %v17117_v49  ;;  %v13531_v17 = vpop.f32.mrb[37].mxu1 }
 0x4ec   :  { %v4360_v55 = vpop.f32.mrb[38].mxu1 }
 0x4ed   :  { %v13532_v48 = vpop.f32.mrb[39].mxu1 }
 0x4ef   :  { %v17119_v11 = vpop.f32.mrb[40].mxu0 }
 0x4f0   :  { %18958 = vst [vmem:[#allocation24_spill] sm:$0xff] %v17119_v11  ;;  %v13537_v20 = vpop.f32.mrb[41].mxu0 }
 0x4f1   :  { %v4406_v27 = vpop.f32.mrb[42].mxu0 }
 0x4f2   :  { %v13538_v38 = vpop.f32.mrb[43].mxu0 }
 0x4f8   :  { %v17121_v56 = vpop.f32.mrb[44].mxu0 }
 0x4f9   :  { %v13549_v4 = vpop.f32.mrb[45].mxu0  ;;  %v5079_v62 = vsel %vm3988_vm3, %v17121_v56, -inf }
 0x4fa   :  { %5080 = vmax.xlane.f32.xlu0 %v5079_v62  ;;  %v4530_v40 = vpop.f32.mrb[46].mxu0 }
 0x4fb   :  { %v13550_v31 = vpop.f32.mrb[47].mxu0 }
 0x500   :  { %v17125_v14 = vpop.f32.mrb[48].mxu0 }
 0x501   :  { %v13561_v7 = vpop.f32.mrb[49].mxu0  ;;  %v5085_v9 = vsel %vm3988_vm3, %v17125_v14, -inf }
 0x502   :  { %5086 = vmax.xlane.f32.xlu0 %v5085_v9  ;;  %v4686_v46 = vpop.f32.mrb[50].mxu0 }
 0x503   :  { %v13562_v29 = vpop.f32.mrb[51].mxu0 }
 0x508   :  { %v17129_v42 = vpop.f32.mrb[52].mxu0 }
 0x509   :  { %v13573_v39 = vpop.f32.mrb[53].mxu0  ;;  %v5091_v29 = vsel %vm3988_vm3, %v17129_v42, -inf }
 0x50a   :  { %v4842_v58 = vpop.f32.mrb[54].mxu0 }
 0x50b   :  { %v13574_v41 = vpop.f32.mrb[55].mxu0 }
 0x510   :  { %v17131_v12 = vpop.f32.mrb[56].mxu0 }
 0x511   :  { %v13585_v45 = vpop.f32.mrb[57].mxu0 }
 0x512   :  { %v4998_v51 = vpop.f32.mrb[58].mxu0  ;;  %v5097_v45 = vsel %vm3988_vm3, %v17131_v12, -inf }
 0x513   :  { %v13586_v13 = vpop.f32.mrb[59].mxu0 }
 0x51f   :  { %v17133_v54 = vpop.f32.mrb[40].mxu1 }
 0x520   :  { %18959 = vst [vmem:[#allocation25_spill] sm:$0xff] %v17133_v54  ;;  %v13543_v17 = vpop.f32.mrb[41].mxu1 }
 0x521   :  { %v4452_v55 = vpop.f32.mrb[42].mxu1 }
 0x522   :  { %v13544_v48 = vpop.f32.mrb[43].mxu1 }
 0x527   :  { %v4605_v20 = vpop.f32.mrb[44].mxu1 }
 0x528   :  { %v13555_v27 = vpop.f32.mrb[45].mxu1  ;;  %v5082_v38 = vsel %vm3988_vm3, %v4605_v20, -inf }
 0x529   :  { %5083 = vmax.xlane.f32.xlu1 %v5082_v38  ;;  %v4608_v4 = vpop.f32.mrb[46].mxu1  ;;  %v5243_v38 = vrot.slane %v16869_v22, %v15536_v19 }
 0x52a   :  { %v13556_v62 = vpop.f32.mrb[47].mxu1 }
 0x52b   :  { %v5250_v4 = vrot.slane %v5243_v38, %v15536_v19  ;;  %v5181_v62 = vrot.slane %v16866_v21, %v15536_v19  ;;  %v5429_v38 = vrot.slane %v17009_v37, %v15536_v19 }
 0x52f   :  { %v4761_v40 = vpop.f32.mrb[48].mxu1 }
 0x530   :  { %v13567_v31 = vpop.f32.mrb[49].mxu1  ;;  %v5088_v7 = vsel %vm3988_vm3, %v4761_v40, -inf }
 0x531   :  { %v4764_v9 = vpop.f32.mrb[50].mxu1  ;;  %5089 = vmax.xlane.f32.xlu0 %v5088_v7  ;;  %v5188_v31 = vrot.slane %v5181_v62, %v15536_v19 }
 0x532   :  { %v13568_v46 = vpop.f32.mrb[51].mxu1  ;;  %v5305_v9 = vrot.slane %v16992_v15, %v15536_v19 }
 0x534   :  { %v5312_v46 = vrot.slane %v5305_v9, %v15536_v19 }
 0x535   :  { %5092 = vmax.xlane.f32.xlu0 %v5091_v29  ;;  %v5367_v29 = vrot.slane %v17000_v47, %v15536_v19 }
 0x537   :  { %v17139_v39 = vpop.f32.mrb[52].mxu1 }
 0x538   :  { %v13579_v58 = vpop.f32.mrb[53].mxu1  ;;  %v5094_v41 = vsel %vm3988_vm3, %v17139_v39, -inf }
 0x539   :  { %5095 = vmax.xlane.f32.xlu1 %v5094_v41  ;;  %v4920_v51 = vpop.f32.mrb[54].mxu1  ;;  %5098 = vmax.xlane.f32.xlu0 %v5097_v45  ;;  %v5374_v58 = vrot.slane %v5367_v29, %v15536_v19  ;;  %v5491_v41 = vrot.slane %v17022_v23, %v15536_v19 }
 0x53a   :  { %v13580_v13 = vpop.f32.mrb[55].mxu1 }
 0x53b   :  { %v5498_v45 = vrot.slane %v5491_v41, %v15536_v19 }
 0x53f   :  { %v17145_v17 = vpop.f32.mrb[56].mxu1 }
 0x540   :  { %v13591_v55 = vpop.f32.mrb[57].mxu1  ;;  %v5100_v7 = vsel %vm3988_vm3, %v17145_v17, -inf }
 0x541   :  { %v5076_v48 = vpop.f32.mrb[58].mxu1 }
 0x542   :  { %v13592_v27 = vpop.f32.mrb[59].mxu1 }
 0x54a   :  { %5251 = vrot.lane.b32.xlu1 %v5250_v4, %s15318_s2  ;;  %v5436_v4 = vrot.slane %v5429_v38, %v15536_v19 }
 0x54f   :  { %5189 = vrot.lane.b32.xlu0 %v5188_v31, %s15318_s2 }
 0x56e   :  { %5101 = vmax.xlane.f32.xlu1 %v5100_v7 }
 0x57f   :  { %5313 = vrot.lane.b32.xlu1 %v5312_v46, %s15318_s2 }
 0x583   :  { %5375 = vrot.lane.b32.xlu1 %v5374_v58, %s15318_s2 }
 0x587   :  { %v5081_v51 = vpop.xlane.xlu0 %5080  ;;  %5499 = vrot.lane.b32.xlu1 %v5498_v45, %s15318_s2 }
 0x588   :  { %v5103_v13 = vsub.f32 %v17121_v56, %v5081_v51 }
 0x58a   :  { %v5111_v55 = vmul.f32 1.442695, %v5103_v13 }
 0x58c   :  { %15088 = vpow2.f32 %v5111_v55 }
 0x58f   :  { %v5087_v62 = vpop.xlane.xlu0 %5086 }
 0x590   :  { %v5105_v7 = vsub.f32 %v17125_v14, %v5087_v62 }
 0x592   :  { %v5115_v46 = vmul.f32 1.442695, %v5105_v7 }
 0x596   :  { %v17170_v48 = vpop.eup %15088 }
 0x597   :  { %v5127_v27 = vsel %vm3988_vm3, %v17170_v48, 0.0 }
 0x598   :  { %5128 = vadd.xlane.f32.xlu0 %v5127_v27 }
 0x5ae   :  { %5437 = vrot.lane.b32.xlu0 %v5436_v4, %s15318_s2 }
 0x5b6   :  { %v5084_v31 = vpop.xlane.xlu1 %5083 }
 0x5b7   :  { %v5104_v56 = vsub.f32 %v4605_v20, %v5084_v31 }
 0x5b9   :  { %v5113_v9 = vmul.f32 1.442695, %v5104_v56 }
 0x5bb   :  { %15090 = vpow2.f32 %v5113_v9 }
 0x5bc   :  { %15092 = vpow2.f32 %v5115_v46 }
 0x5be   :  { %v5090_v29 = vpop.xlane.xlu0 %5089 }
 0x5bf   :  { %v5106_v58 = vsub.f32 %v4761_v40, %v5090_v29 }
 0x5c1   :  { %v5117_v41 = vmul.f32 1.442695, %v5106_v58 }
 0x5c2   :  { %v5093_v45 = vpop.xlane.xlu0 %5092 }
 0x5c3   :  { %15094 = vpow2.f32 %v5117_v41  ;;  %v5107_v51 = vsub.f32 %v17129_v42, %v5093_v45 }
 0x5c5   :  { %v17180_v13 = vpop.eup %15090  ;;  %v5119_v55 = vmul.f32 1.442695, %v5107_v51 }
 0x5c6   :  { %v5096_v27 = vpop.xlane.xlu1 %5095  ;;  %v5099_v38 = vpop.xlane.xlu0 %5098  ;;  %v5130_v14 = vsel %vm3988_vm3, %v17180_v13, 0.0 }
 0x5c7   :  { %15096 = vpow2.f32 %v5119_v55  ;;  %v5108_v20 = vsub.f32 %v17139_v39, %v5096_v27  ;;  %v5109_v4 = vsub.f32 %v17131_v12, %v5099_v38  ;;  %5131 = vadd.xlane.f32.xlu1 %v5130_v14  ;;  %v17186_v40 = vpop.eup %15092  ;;  %v5553_v27 = vrot.slane %v17037_v57, %v15536_v19 }
 0x5c8   :  { %v5133_v46 = vsel %vm3988_vm3, %v17186_v40, 0.0 }
 0x5c9   :  { %v5121_v62 = vmul.f32 1.442695, %v5108_v20  ;;  %v5123_v31 = vmul.f32 1.442695, %v5109_v4  ;;  %v5560_v38 = vrot.slane %v5553_v27, %v15536_v19 }
 0x5ca   :  { %v5252_v7 = vpop.permute.xlu1 %5251  ;;  %v5190_v42 = vpop.permute.xlu0 %5189 }
 0x5cb   :  { %15098 = vpow2.f32 %v5121_v62  ;;  %v5257_v56 = vsel %vm4089_vm2, %v5252_v7, 0  ;;  %v5195_v9 = vsel %vm4089_vm2, %v5190_v42, 0  ;;  %v5615_v7 = vrot.slane %v17045_v6, %v15536_v19 }
 0x5cc   :  { %15100 = vpow2.f32 %v5123_v31  ;;  %13594 = vmatpush3.bf16.msra.mxu0 %v5195_v9  ;;  %13600 = vmatpush3.bf16.msra.mxu1 %v5257_v56 }
 0x5cd   :  { %v17192_v39 = vpop.eup %15094  ;;  %5134 = vadd.xlane.f32.xlu0 %v5133_v46  ;;  %13605 = vmatprep.subr.bf16.mxu0 %v18916_v32  ;;  %v5622_v42 = vrot.slane %v5615_v7, %v15536_v19 }
 0x5ce   :  { %v5136_v12 = vsel %vm3988_vm3, %v17192_v39, 0.0  ;;  %13611 = vmatprep.subr.bf16.mxu1 %v18916_v32 }
 0x5cf   :  { %5137 = vadd.xlane.f32.xlu1 %v5136_v12 }
 0x5d1   :  { %v17198_v29 = vpop.eup %15096 }
 0x5d2   :  { %v5139_v58 = vsel %vm3988_vm3, %v17198_v29, 0.0 }
 0x5d3   :  { %5140 = vadd.xlane.f32.xlu0 %v5139_v58 }
 0x5d5   :  { %v17202_v41 = vpop.eup %15098 }
 0x5d6   :  { %v17204_v45 = vpop.eup %15100  ;;  %v5142_v51 = vsel %vm3988_vm3, %v17202_v41, 0.0 }
 0x5d7   :  { %5143 = vadd.xlane.f32.xlu1 %v5142_v51  ;;  %v5145_v55 = vsel %vm3988_vm3, %v17204_v45, 0.0 }
 0x5d8   :  { %5146 = vadd.xlane.f32.xlu0 %v5145_v55 }
 0x5ee   :  { %5561 = vrot.lane.b32.xlu0 %v5560_v38, %s15318_s2 }
 0x5fb   :  { %v5102_v14 = vpop.xlane.xlu1 %5101 }
 0x5fc   :  { %v5110_v20 = vsub.f32 %v17145_v17, %v5102_v14 }
 0x5fe   :  { %v5125_v4 = vmul.f32 1.442695, %v5110_v20 }
 0x5ff   :  { %v5314_v46 = vpop.permute.xlu1 %5313 }
 0x600   :  { %15102 = vpow2.f32 %v5125_v4  ;;  %v5319_v58 = vsel %vm4089_vm2, %v5314_v46, 0 }
 0x603   :  { %v5376_v19 = vpop.permute.xlu1 %5375 }
 0x604   :  { %v5381_v7 = vsel %vm4089_vm2, %v5376_v19, 0 }
 0x607   :  { %v5500_v51 = vpop.permute.xlu1 %5499 }
 0x60a   :  { %v17215_v62 = vpop.eup %15102 }
 0x60b   :  { %v5148_v31 = vsel %vm3988_vm3, %v17215_v62, 0.0 }
 0x60c   :  { %5149 = vadd.xlane.f32.xlu1 %v5148_v31 }
 0x61d   :  { %5623 = vrot.lane.b32.xlu1 %v5622_v42, %s15318_s2 }
 0x625   :  { %v5129_v56 = vpop.xlane.xlu0 %5128 }
 0x626   :  { %15104 = vrcp.f32 %v5129_v56 }
 0x629   :  { %v5438_v27 = vpop.permute.xlu0 %5437 }
 0x630   :  { %v15105_v9 = vpop.eup %15104 }
 0x631   :  { %v5159_v17 = vmul.f32 %v15105_v9, %v17170_v48 }
 0x633   :  { %v5167_v12 = vpack.c.bf16 %v5159_v17, %v5159_v17 }
 0x635   :  { %13596 = vmatmul.mubr.msk.bf16.vlgmr.msra.gmra.mrb[60].mxu0 %vm4085_vm4, %v5167_v12 }
 0x636   :  { %13606 = vmatpush3.bf16.msra.mxu0 %v5319_v58  ;;  %13607 = vmatprep.mubr.msk.bf16.mxu0 %vm15317_vm0, %v18916_v32  ;;  %v5443_v58 = vsel %vm4089_vm2, %v5438_v27, 0 }
 0x637   :  { %13617 = vmatprep.subr.bf16.mxu0 %v18916_v32 }
 0x654   :  { %v5132_v55 = vpop.xlane.xlu1 %5131 }
 0x655   :  { %15106 = vrcp.f32 %v5132_v55 }
 0x65a   :  { %v5135_v38 = vpop.xlane.xlu0 %5134 }
 0x65b   :  { %15108 = vrcp.f32 %v5135_v38  ;;  %v5505_v38 = vsel %vm4089_vm2, %v5500_v51, 0 }
 0x65c   :  { %v5138_v48 = vpop.xlane.xlu1 %5137 }
 0x65d   :  { %15110 = vrcp.f32 %v5138_v48 }
 0x65f   :  { %v15107_v14 = vpop.eup %15106 }
 0x660   :  { %v5141_v20 = vpop.xlane.xlu0 %5140  ;;  %v5160_v4 = vmul.f32 %v15107_v14, %v17180_v13 }
 0x661   :  { %15112 = vrcp.f32 %v5141_v20 }
 0x662   :  { %v5168_v31 = vpack.c.bf16 %v5160_v4, %v5160_v4 }
 0x664   :  { %13602 = vmatmul.mubr.msk.bf16.vlgmr.msra.gmra.mrb[60].mxu1 %vm4085_vm4, %v5168_v31  ;;  %v5144_v42 = vpop.xlane.xlu1 %5143 }
 0x665   :  { %v15109_v56 = vpop.eup %15108  ;;  %13612 = vmatpush3.bf16.msra.mxu1 %v5381_v7  ;;  %15114 = vrcp.f32 %v5144_v42  ;;  %v5147_v9 = vpop.xlane.xlu0 %5146  ;;  %13613 = vmatprep.mubr.msk.bf16.mxu1 %vm15317_vm0, %v18916_v32  ;;  %v5671_v42 = vrot.slane %v16750_v25, 1 }
 0x666   :  { %v5161_v17 = vmul.f32 %v15109_v56, %v17186_v40  ;;  %13623 = vmatprep.subr.bf16.mxu1 %v18916_v32  ;;  %15116 = vrcp.f32 %v5147_v9  ;;  %v5864_v9 = vrot.slane %v16773_v43, 1 }
 0x667   :  { %v15111_v46 = vpop.eup %15110 }
 0x668   :  { %v5169_v13 = vpack.c.bf16 %v5161_v17, %v5161_v17  ;;  %v5162_v12 = vmul.f32 %v15111_v46, %v17192_v39  ;;  %v5767_v17 = vrot.slane %v16780_v52, 1  ;;  %v5869_v46 = vsel %vm3619_vm1, %v5864_v9, 0 }
 0x669   :  { %v5562_v48 = vpop.permute.xlu0 %5561 }
 0x66a   :  { %13608 = vmatmul.mubr.msk.bf16.vlgmr.msra.gmra.mrb[64].mxu0 %vm4085_vm4, %v5169_v13  ;;  %v5170_v19 = vpack.c.bf16 %v5162_v12, %v5162_v12  ;;  %v5567_v51 = vsel %vm4089_vm2, %v5562_v48, 0  ;;  %v5960_v13 = vrot.slane %v16802_v33, 1  ;;  %v5863_v12 = vrot.slane %v16812_v35, 1 }
 0x66b   :  { %v15113_v55 = vpop.eup %15112  ;;  %13618 = vmatpush3.bf16.msra.mxu0 %v5443_v58  ;;  %13619 = vmatprep.mubr.msk.bf16.mxu0 %vm15317_vm0, %v18916_v32 }
 0x66c   :  { %13614 = vmatmul.mubr.msk.bf16.vlgmr.msra.gmra.mrb[64].mxu1 %vm4085_vm4, %v5170_v19  ;;  %13629 = vmatprep.subr.bf16.mxu0 %v18916_v32  ;;  %v5163_v40 = vmul.f32 %v15113_v55, %v17198_v29  ;;  %v5965_v58 = vsel %vm3619_vm1, %v5960_v13, 0  ;;  %v6151_v19 = vrot.slane %v16866_v21, 1  ;;  %v5959_v55 = vrot.slane %v16836_v53, 1 }
 0x66d   :  { %13624 = vmatpush3.bf16.msra.mxu1 %v5505_v38  ;;  %13625 = vmatprep.mubr.msk.bf16.mxu1 %vm15317_vm0, %v18916_v32 }
 0x66e   :  { %v5171_v39 = vpack.c.bf16 %v5163_v40, %v5163_v40  ;;  %13635 = vmatprep.subr.bf16.mxu1 %v18916_v32  ;;  %v6156_v40 = vsel %vm4089_vm2, %v6151_v19, 0 }
 0x66f   :  { %v15115_v27 = vpop.eup %15114 }
 0x670   :  { %v5164_v14 = vmul.f32 %v15115_v27, %v17202_v41  ;;  %v15117_v20 = vpop.eup %15116  ;;  %v5672_v41 = vrot.slane %v16727_v16, 1 }
 0x671   :  { %v5165_v29 = vmul.f32 %v15117_v20, %v17204_v45  ;;  %v5768_v45 = vrot.slane %v16740_v24, 1  ;;  %v5720_v20 = vrot.slane %v16730_v18, 1 }
 0x672   :  { %13620 = vmatmul.mubr.msk.bf16.vlgmr.msra.gmra.mrb[68].mxu0 %vm4085_vm4, %v5171_v39  ;;  %v5172_v4 = vpack.c.bf16 %v5164_v14, %v5164_v14  ;;  %v5677_v7 = vsel %vm3619_vm1, %v5672_v41, 0  ;;  %v5719_v41 = vrot.slane %v16756_v26, 1 }
 0x673   :  { %13630 = vmatpush3.bf16.msra.mxu0 %v5567_v51  ;;  %13631 = vmatprep.mubr.msk.bf16.mxu0 %vm15317_vm0, %v18916_v32  ;;  %v5173_v31 = vpack.c.bf16 %v5165_v29, %v5165_v29  ;;  %v5773_v56 = vsel %vm3619_vm1, %v5768_v45, 0  ;;  %v5816_v29 = vrot.slane %v16744_v59, 1 }
 0x674   :  { %13626 = vmatmul.mubr.msk.bf16.vlgmr.msra.gmra.mrb[68].mxu1 %vm4085_vm4, %v5172_v4  ;;  %13641 = vmatprep.subr.bf16.mxu0 %v18916_v32  ;;  %v5725_v4 = vsel %vm3619_vm1, %v5720_v20, 0 }
 0x675   :  { %13637 = vmatprep.mubr.msk.bf16.mxu1 %vm15317_vm0, %v18916_v32 }
 0x67a   :  { %13632 = vmatmul.mubr.msk.bf16.vlgmr.msra.gmra.mrb[72].mxu0 %vm4085_vm4, %v5173_v31  ;;  %v5912_v31 = vrot.slane %v16776_v44, 1 }
 0x67b   :  { %13643 = vmatprep.mubr.msk.bf16.mxu0 %vm15317_vm0, %v18916_v32 }
 0x67c   :  { %13642 = vmatpush3.bf16.xpose.msra.mxu0 %v5677_v7  ;;  %v5815_v7 = vrot.slane %v16784_v10, 1  ;;  %v5917_v45 = vsel %vm3619_vm1, %v5912_v31, 0 }
 0x67d   :  { %13653 = vmatprep.subr.bf16.mxu0 %v18916_v32 }
 0x683   :  { %13644 = vmatmul.mubr.msk.bf16.vlgmr.msra.gmra.mrb[76].mxu0 %vm3619_vm1, %v5671_v42  ;;  %v6008_v42 = vrot.slane %v16806_v34, 1 }
 0x684   :  { %13654 = vmatpush3.bf16.xpose.msra.mxu0 %v5773_v56  ;;  %13655 = vmatprep.mubr.msk.bf16.mxu0 %vm15317_vm0, %v18916_v32  ;;  %v5911_v56 = vrot.slane %v16818_v36, 1 }
 0x685   :  { %13665 = vmatprep.subr.bf16.mxu0 %v18916_v32  ;;  %v6013_v9 = vsel %vm3619_vm1, %v6008_v42, 0 }
 0x68b   :  { %13656 = vmatmul.mubr.msk.bf16.vlgmr.msra.gmra.mrb[80].mxu0 %vm3619_vm1, %v5767_v17  ;;  %v6198_v17 = vrot.slane %v16869_v22, 1 }
 0x68c   :  { %13666 = vmatpush3.bf16.xpose.msra.mxu0 %v5869_v46  ;;  %13667 = vmatprep.mubr.msk.bf16.mxu0 %vm15317_vm0, %v18916_v32  ;;  %v6007_v46 = vrot.slane %v16840_v28, 1 }
 0x68d   :  { %13677 = vmatprep.subr.bf16.mxu0 %v18916_v32  ;;  %v6203_v13 = vsel %vm4089_vm2, %v6198_v17, 0 }
 0x693   :  { %13668 = vmatmul.mubr.msk.bf16.vlgmr.msra.gmra.mrb[84].mxu0 %vm3619_vm1, %v5863_v12 }
 0x694   :  { %13678 = vmatpush3.bf16.xpose.msra.mxu0 %v5965_v58  ;;  %13679 = vmatprep.mubr.msk.bf16.mxu0 %vm15317_vm0, %v18916_v32 }
 0x695   :  { %13689 = vmatprep.subr.bf16.mxu0 %v18916_v32 }
 0x699   :  { %v5150_v38 = vpop.xlane.xlu1 %5149 }
 0x69a   :  { %15118 = vrcp.f32 %v5150_v38 }
 0x69b   :  { %13680 = vmatmul.mubr.msk.bf16.vlgmr.msra.gmra.mrb[88].mxu0 %vm3619_vm1, %v5959_v55 }
 0x69c   :  { %13690 = vmatpush3.bf16.msra.mxu0 %v6156_v40  ;;  %13691 = vmatprep.mubr.msk.bf16.mxu0 %vm15317_vm0, %v18916_v32 }
 0x69d   :  { %v5624_v39 = vpop.permute.xlu1 %5623  ;;  %13701 = vmatprep.subr.bf16.mxu0 %v18916_v32 }
 0x69e   :  { %v5629_v27 = vsel %vm4089_vm2, %v5624_v39, 0 }
 0x69f   :  { %13636 = vmatpush3.bf16.msra.mxu1 %v5629_v27 }
 0x6a0   :  { %13647 = vmatprep.subr.bf16.mxu1 %v18916_v32 }
 0x6a4   :  { %v15119_v48 = vpop.eup %15118 }
 0x6a5   :  { %v5166_v14 = vmul.f32 %v15119_v48, %v17215_v62  ;;  %v5821_v62 = vsel %vm3619_vm1, %v5816_v29, 0 }
 0x6a7   :  { %v5174_v51 = vpack.c.bf16 %v5166_v14, %v5166_v14 }
 0x6a9   :  { %13638 = vmatmul.mubr.msk.bf16.vlgmr.msra.gmra.mrb[72].mxu1 %vm4085_vm4, %v5174_v51 }
 0x6aa   :  { %13648 = vmatpush3.bf16.xpose.msra.mxu1 %v5725_v4  ;;  %13649 = vmatprep.mubr.msk.bf16.mxu1 %vm15317_vm0, %v18916_v32 }
 0x6ab   :  { %13659 = vmatprep.subr.bf16.mxu1 %v18916_v32 }
 0x6b1   :  { %13650 = vmatmul.mubr.msk.bf16.vlgmr.msra.gmra.mrb[76].mxu1 %vm3619_vm1, %v5719_v41 }
 0x6b2   :  { %13660 = vmatpush3.bf16.xpose.msra.mxu1 %v5821_v62  ;;  %13661 = vmatprep.mubr.msk.bf16.mxu1 %vm15317_vm0, %v18916_v32 }
 0x6b3   :  { %13671 = vmatprep.subr.bf16.mxu1 %v18916_v32 }
 0x6b9   :  { %13662 = vmatmul.mubr.msk.bf16.vlgmr.msra.gmra.mrb[80].mxu1 %vm3619_vm1, %v5815_v7 }
 0x6ba   :  { %13672 = vmatpush3.bf16.xpose.msra.mxu1 %v5917_v45  ;;  %13673 = vmatprep.mubr.msk.bf16.mxu1 %vm15317_vm0, %v18916_v32 }
 0x6bb   :  { %13683 = vmatprep.subr.bf16.mxu1 %v18916_v32 }
 0x6c1   :  { %13674 = vmatmul.mubr.msk.bf16.vlgmr.msra.gmra.mrb[84].mxu1 %vm3619_vm1, %v5911_v56 }
 0x6c2   :  { %13684 = vmatpush3.bf16.xpose.msra.mxu1 %v6013_v9  ;;  %13685 = vmatprep.mubr.msk.bf16.mxu1 %vm15317_vm0, %v18916_v32 }
 0x6c3   :  { %13695 = vmatprep.subr.bf16.mxu1 %v18916_v32 }
 0x6c9   :  { %13686 = vmatmul.mubr.msk.bf16.vlgmr.msra.gmra.mrb[88].mxu1 %vm3619_vm1, %v6007_v46 }
 0x6ca   :  { %13696 = vmatpush3.bf16.msra.mxu1 %v6203_v13  ;;  %13697 = vmatprep.mubr.msk.bf16.mxu1 %vm15317_vm0, %v18916_v32 }
 0x6cb   :  { %13707 = vmatprep.subr.bf16.mxu1 %v18916_v32 }
 0x708   :  { %v17329_v12 = vpop.f32.mrb[60].mxu0 }
 0x709   :  { %18960 = vst [vmem:[#allocation26_spill] sm:$0xff] %v17329_v12  ;;  %v13597_v58 = vpop.f32.mrb[61].mxu0 }
 0x70a   :  { %v5234_v19 = vpop.f32.mrb[62].mxu0 }
 0x70b   :  { %v13598_v55 = vpop.f32.mrb[63].mxu0 }
 0x737   :  { %v17331_v38 = vpop.f32.mrb[60].mxu1 }
 0x738   :  { %18961 = vst [vmem:[#allocation27_spill] sm:$0xff] %v17331_v38  ;;  %v13603_v40 = vpop.f32.mrb[61].mxu1 }
 0x739   :  { %v5296_v39 = vpop.f32.mrb[62].mxu1 }
 0x73a   :  { %v13604_v27 = vpop.f32.mrb[63].mxu1 }
 0x73d   :  { %v17333_v48 = vpop.f32.mrb[64].mxu0 }
 0x73e   :  { %18962 = vst [vmem:[#allocation28_spill] sm:$0xff] %v17333_v48  ;;  %v13609_v14 = vpop.f32.mrb[65].mxu0 }
 0x73f   :  { %v5358_v20 = vpop.f32.mrb[66].mxu0  ;;  %v17335_v51 = vpop.f32.mrb[64].mxu1 }
 0x740   :  { %18963 = vst [vmem:[#allocation29_spill] sm:$0xff] %v17335_v51  ;;  %v13610_v4 = vpop.f32.mrb[67].mxu0  ;;  %v13615_v29 = vpop.f32.mrb[65].mxu1 }
 0x741   :  { %v5420_v41 = vpop.f32.mrb[66].mxu1 }
 0x742   :  { %v13616_v62 = vpop.f32.mrb[67].mxu1 }
 0x745   :  { %v17337_v31 = vpop.f32.mrb[68].mxu0 }
 0x746   :  { %18964 = vst [vmem:[#allocation30_spill] sm:$0xff] %v17337_v31  ;;  %v13621_v7 = vpop.f32.mrb[69].mxu0 }
 0x747   :  { %v5482_v45 = vpop.f32.mrb[70].mxu0  ;;  %v17339_v42 = vpop.f32.mrb[68].mxu1 }
 0x748   :  { %18965 = vst [vmem:[#allocation31_spill] sm:$0xff] %v17339_v42  ;;  %v13622_v56 = vpop.f32.mrb[71].mxu0  ;;  %v13627_v9 = vpop.f32.mrb[69].mxu1 }
 0x749   :  { %v5544_v17 = vpop.f32.mrb[70].mxu1 }
 0x74a   :  { %v13628_v46 = vpop.f32.mrb[71].mxu1 }
 0x74d   :  { %v17341_v13 = vpop.f32.mrb[72].mxu0 }
 0x74e   :  { %18966 = vst [vmem:[#allocation32_spill] sm:$0xff] %v17341_v13  ;;  %v13633_v58 = vpop.f32.mrb[73].mxu0 }
 0x74f   :  { %v5606_v19 = vpop.f32.mrb[74].mxu0 }
 0x750   :  { %v13634_v55 = vpop.f32.mrb[75].mxu0 }
 0x756   :  { %v5713_v40 = vpop.f32.mrb[76].mxu0 }
 0x757   :  { %v13645_v39 = vpop.f32.mrb[77].mxu0  ;;  %v6055_v27 = vsel %vm3988_vm3, %v5713_v40, -inf }
 0x758   :  { %6056 = vmax.xlane.f32.xlu0 %v6055_v27  ;;  %v5716_v14 = vpop.f32.mrb[78].mxu0 }
 0x759   :  { %v13646_v20 = vpop.f32.mrb[79].mxu0 }
 0x75e   :  { %v5809_v4 = vpop.f32.mrb[80].mxu0 }
 0x75f   :  { %v13657_v29 = vpop.f32.mrb[81].mxu0  ;;  %v6061_v41 = vsel %vm3988_vm3, %v5809_v4, -inf }
 0x760   :  { %6062 = vmax.xlane.f32.xlu0 %v6061_v41  ;;  %v5812_v62 = vpop.f32.mrb[82].mxu0 }
 0x761   :  { %v13658_v7 = vpop.f32.mrb[83].mxu0 }
 0x766   :  { %v17345_v45 = vpop.f32.mrb[84].mxu0 }
 0x767   :  { %v13669_v56 = vpop.f32.mrb[85].mxu0 }
 0x768   :  { %v5908_v9 = vpop.f32.mrb[86].mxu0 }
 0x769   :  { %v13670_v17 = vpop.f32.mrb[87].mxu0 }
 0x76e   :  { %v17347_v46 = vpop.f32.mrb[88].mxu0 }
 0x76f   :  { %v13681_v58 = vpop.f32.mrb[89].mxu0 }
 0x770   :  { %v6004_v19 = vpop.f32.mrb[90].mxu0 }
 0x771   :  { %v13682_v55 = vpop.f32.mrb[91].mxu0  ;;  %v6067_v19 = vsel %vm3988_vm3, %v17345_v45, -inf }
 0x77c   :  { %v17349_v39 = vpop.f32.mrb[72].mxu1 }
 0x77d   :  { %18967 = vst [vmem:[#allocation33_spill] sm:$0xff] %v17349_v39  ;;  %v13639_v27 = vpop.f32.mrb[73].mxu1 }
 0x77e   :  { %v5668_v14 = vpop.f32.mrb[74].mxu1 }
 0x77f   :  { %v13640_v20 = vpop.f32.mrb[75].mxu1  ;;  %v6073_v14 = vsel %vm3988_vm3, %v17347_v46, -inf }
 0x784   :  { %v5761_v29 = vpop.f32.mrb[76].mxu1 }
 0x785   :  { %v13651_v32 = vpop.f32.mrb[77].mxu1  ;;  %v6058_v41 = vsel %vm3988_vm3, %v5761_v29, -inf }
 0x786   :  { %6059 = vmax.xlane.f32.xlu1 %v6058_v41  ;;  %v5764_v62 = vpop.f32.mrb[78].mxu1 }
 0x787   :  { %v13652_v7 = vpop.f32.mrb[79].mxu1 }
 0x78c   :  { %v5857_v56 = vpop.f32.mrb[80].mxu1 }
 0x78d   :  { %v13663_v9 = vpop.f32.mrb[81].mxu1  ;;  %v6064_v17 = vsel %vm3988_vm3, %v5857_v56, -inf }
 0x78e   :  { %v5860_v2 = vpop.f32.mrb[82].mxu1  ;;  %6065 = vmax.xlane.f32.xlu0 %v6064_v17 }
 0x78f   :  { %v13664_v58 = vpop.f32.mrb[83].mxu1 }
 0x792   :  { %6068 = vmax.xlane.f32.xlu0 %v6067_v19 }
 0x794   :  { %v5953_v55 = vpop.f32.mrb[84].mxu1 }
 0x795   :  { %v13675_v27 = vpop.f32.mrb[85].mxu1  ;;  %v6070_v32 = vsel %vm3988_vm3, %v5953_v55, -inf }
 0x796   :  { %6071 = vmax.xlane.f32.xlu1 %v6070_v32  ;;  %v5956_v20 = vpop.f32.mrb[86].mxu1  ;;  %6074 = vmax.xlane.f32.xlu0 %v6073_v14 }
 0x797   :  { %v13676_v41 = vpop.f32.mrb[87].mxu1 }
 0x79c   :  { %v17358_v62 = vpop.f32.mrb[88].mxu1 }
 0x79d   :  { %v13687_v2 = vpop.f32.mrb[89].mxu1  ;;  %v6076_v7 = vsel %vm3988_vm3, %v17358_v62, -inf }
 0x79e   :  { %6077 = vmax.xlane.f32.xlu1 %v6076_v7  ;;  %v6052_v9 = vpop.f32.mrb[90].mxu1 }
 0x79f   :  { %v13688_v17 = vpop.f32.mrb[91].mxu1 }
 0x7e5   :  { %v6057_v58 = vpop.xlane.xlu0 %6056 }
 0x7e6   :  { %v6079_v19 = vsub.f32 %v5713_v40, %v6057_v58 }
 0x7e8   :  { %v6087_v27 = vmul.f32 1.442695, %v6079_v19 }
 0x7ea   :  { %15120 = vpow2.f32 %v6087_v27 }
 0x7ed   :  { %v6063_v3 = vpop.xlane.xlu0 %6062 }
 0x7ee   :  { %v6081_v1 = vsub.f32 %v5809_v4, %v6063_v3 }
 0x7f0   :  { %v6091_v0 = vmul.f32 1.442695, %v6081_v1 }
 0x7f2   :  { %15122 = vpow2.f32 %v6091_v0 }
 0x7f4   :  { %v17362_v32 = vpop.eup %15120 }
 0x7f5   :  { %v6103_v14 = vsel %vm3988_vm3, %v17362_v32, 0.0 }
 0x7f6   :  { %6104 = vadd.xlane.f32.xlu0 %v6103_v14 }
 0x7fc   :  { %v17366_v20 = vpop.eup %15122 }
 0x7fd   :  { %v6109_v41 = vsel %vm3988_vm3, %v17366_v20, 0.0 }
 0x7fe   :  { %6110 = vadd.xlane.f32.xlu0 %v6109_v41 }
 0x813   :  { %v6060_v2 = vpop.xlane.xlu1 %6059 }
 0x814   :  { %v6080_v40 = vsub.f32 %v5761_v29, %v6060_v2 }
 0x816   :  { %v6089_v7 = vmul.f32 1.442695, %v6080_v40 }
 0x818   :  { %15124 = vpow2.f32 %v6089_v7 }
 0x81b   :  { %v6066_v9 = vpop.xlane.xlu0 %6065 }
 0x81c   :  { %v6082_v3 = vsub.f32 %v5857_v56, %v6066_v9 }
 0x81e   :  { %v6093_v1 = vmul.f32 1.442695, %v6082_v3 }
 0x81f   :  { %v6069_v0 = vpop.xlane.xlu0 %6068 }
 0x820   :  { %15126 = vpow2.f32 %v6093_v1  ;;  %v6083_v4 = vsub.f32 %v17345_v45, %v6069_v0 }
 0x822   :  { %v17371_v17 = vpop.eup %15124  ;;  %v6095_v58 = vmul.f32 1.442695, %v6083_v4 }
 0x823   :  { %v6072_v19 = vpop.xlane.xlu1 %6071  ;;  %v6075_v27 = vpop.xlane.xlu0 %6074  ;;  %v6106_v14 = vsel %vm3988_vm3, %v17371_v17, 0.0 }
 0x824   :  { %15128 = vpow2.f32 %v6095_v58  ;;  %v6084_v41 = vsub.f32 %v5953_v55, %v6072_v19  ;;  %v6085_v29 = vsub.f32 %v17347_v46, %v6075_v27  ;;  %6107 = vadd.xlane.f32.xlu1 %v6106_v14 }
 0x826   :  { %v6097_v2 = vmul.f32 1.442695, %v6084_v41  ;;  %v6099_v56 = vmul.f32 1.442695, %v6085_v29 }
 0x828   :  { %15130 = vpow2.f32 %v6097_v2  ;;  %v6245_v2 = vrot.slane %v16992_v15, 1 }
 0x829   :  { %15132 = vpow2.f32 %v6099_v56 }
 0x82a   :  { %v17376_v40 = vpop.eup %15126 }
 0x82b   :  { %v6112_v45 = vsel %vm3988_vm3, %v17376_v40, 0.0  ;;  %v6078_v0 = vpop.xlane.xlu1 %6077 }
 0x82c   :  { %6113 = vadd.xlane.f32.xlu1 %v6112_v45  ;;  %v6086_v4 = vsub.f32 %v17358_v62, %v6078_v0  ;;  %v6250_v45 = vsel %vm4089_vm2, %v6245_v2, 0 }
 0x82e   :  { %v17380_v7 = vpop.eup %15128  ;;  %v6101_v58 = vmul.f32 1.442695, %v6086_v4 }
 0x82f   :  { %v6115_v9 = vsel %vm3988_vm3, %v17380_v7, 0.0 }
 0x830   :  { %6116 = vadd.xlane.f32.xlu0 %v6115_v9  ;;  %15134 = vpow2.f32 %v6101_v58  ;;  %v18968_v9 = vmov 0.0  }
 0x832   :  { %v17384_v55 = vpop.eup %15130 }
 0x833   :  { %v17386_v46 = vpop.eup %15132  ;;  %v6118_v3 = vsel %vm3988_vm3, %v17384_v55, 0.0 }
 0x834   :  { %6119 = vadd.xlane.f32.xlu1 %v6118_v3  ;;  %v6121_v1 = vsel %vm3988_vm3, %v17386_v46, 0.0 }
 0x835   :  { %6122 = vadd.xlane.f32.xlu0 %v6121_v1  ;;  %v6339_v1 = vrot.slane %v17009_v37, 1 }
 0x837   :  { %v6344_v4 = vsel %vm4089_vm2, %v6339_v1, 0 }
 0x83a   :  { %v17413_v19 = vpop.eup %15134 }
 0x83b   :  { %v6124_v27 = vsel %vm3988_vm3, %v17413_v19, 0.0 }
 0x845   :  { %6582 = vrot.lane.b32.xlu1 %v16730_v18, %s15318_s2 }
 0x849   :  { %6527 = vrot.lane.b32.xlu1 %v16750_v25, %s15318_s2 }
 0x84b   :  { %6530 = vrot.lane.b32.xlu0 %v16727_v16, %s15318_s2 }
 0x84d   :  { %6579 = vrot.lane.b32.xlu1 %v16756_v26, %s15318_s2 }
 0x84f   :  { %6634 = vrot.lane.b32.xlu0 %v16740_v24, %s15318_s2 }
 0x853   :  { %6631 = vrot.lane.b32.xlu0 %v16780_v52, %s15318_s2 }
 0x857   :  { %6738 = vrot.lane.b32.xlu0 %v16773_v43, %s15318_s2 }
 0x85b   :  { %6735 = vrot.lane.b32.xlu0 %v16812_v35, %s15318_s2 }
 0x85f   :  { %6842 = vrot.lane.b32.xlu0 %v16802_v33, %s15318_s2 }
 0x863   :  { %6839 = vrot.lane.b32.xlu0 %v16836_v53, %s15318_s2 }
 0x871   :  { %6125 = vadd.xlane.f32.xlu1 %v6124_v27 }
 0x882   :  { %6686 = vrot.lane.b32.xlu1 %v16744_v59, %s15318_s2 }
 0x883   :  { %v6105_v62 = vpop.xlane.xlu0 %6104 }
 0x884   :  { %15136 = vrcp.f32 %v6105_v62 }
 0x886   :  { %6683 = vrot.lane.b32.xlu1 %v16784_v10, %s15318_s2 }
 0x88a   :  { %6790 = vrot.lane.b32.xlu1 %v16776_v44, %s15318_s2 }
 0x88b   :  { %v6111_v14 = vpop.xlane.xlu0 %6110 }
 0x88c   :  { %15138 = vrcp.f32 %v6111_v14 }
 0x88e   :  { %v15137_v41 = vpop.eup %15136  ;;  %6787 = vrot.lane.b32.xlu1 %v16818_v36, %s15318_s2 }
 0x88f   :  { %v6135_v29 = vmul.f32 %v15137_v41, %v17362_v32  ;;  %v6292_v41 = vrot.slane %v17000_v47, 1 }
 0x891   :  { %v6143_v56 = vpack.c.bf16 %v6135_v29, %v6135_v29  ;;  %v6297_v2 = vsel %vm4089_vm2, %v6292_v41, 0 }
 0x892   :  { %6894 = vrot.lane.b32.xlu1 %v16806_v34, %s15318_s2 }
 0x893   :  { %13692 = vmatmul.mubr.msk.bf16.vlgmr.msra.gmra.mrb[92].mxu0 %vm4085_vm4, %v6143_v56 }
 0x894   :  { %13702 = vmatpush3.bf16.msra.mxu0 %v6250_v45  ;;  %13703 = vmatprep.mubr.msk.bf16.mxu0 %vm15317_vm0, %v18968_v9 }
 0x895   :  { %13713 = vmatprep.subr.bf16.mxu0 %v18968_v9 }
 0x896   :  { %v15139_v3 = vpop.eup %15138  ;;  %6891 = vrot.lane.b32.xlu1 %v16840_v28, %s15318_s2 }
 0x897   :  { %v6137_v32 = vmul.f32 %v15139_v3, %v17366_v20 }
 0x899   :  { %v6145_v0 = vpack.c.bf16 %v6137_v32, %v6137_v32  ;;  %v6386_v32 = vrot.slane %v17022_v23, 1 }
 0x89b   :  { %13704 = vmatmul.mubr.msk.bf16.vlgmr.msra.gmra.mrb[96].mxu0 %vm4085_vm4, %v6145_v0 }
 0x89c   :  { %13714 = vmatpush3.bf16.msra.mxu0 %v6344_v4  ;;  %13715 = vmatprep.mubr.msk.bf16.mxu0 %vm15317_vm0, %v18968_v9 }
 0x89d   :  { %13725 = vmatprep.subr.bf16.mxu0 %v18968_v9 }
 0x8b1   :  { %v6108_v58 = vpop.xlane.xlu1 %6107 }
 0x8b2   :  { %15140 = vrcp.f32 %v6108_v58  ;;  %v6391_v58 = vsel %vm4089_vm2, %v6386_v32, 0 }
 0x8b9   :  { %v6114_v27 = vpop.xlane.xlu1 %6113 }
 0x8ba   :  { %15142 = vrcp.f32 %v6114_v27 }
 0x8bc   :  { %v15141_v62 = vpop.eup %15140 }
 0x8bd   :  { %v6117_v14 = vpop.xlane.xlu0 %6116  ;;  %v6136_v20 = vmul.f32 %v15141_v62, %v17371_v17  ;;  %v6433_v62 = vrot.slane %v17037_v57, 1 }
 0x8be   :  { %15144 = vrcp.f32 %v6117_v14 }
 0x8bf   :  { %v6144_v29 = vpack.c.bf16 %v6136_v20, %v6136_v20  ;;  %v6438_v41 = vsel %vm4089_vm2, %v6433_v62, 0 }
 0x8c1   :  { %13698 = vmatmul.mubr.msk.bf16.vlgmr.msra.gmra.mrb[92].mxu1 %vm4085_vm4, %v6144_v29  ;;  %v6120_v56 = vpop.xlane.xlu1 %6119 }
 0x8c2   :  { %13708 = vmatpush3.bf16.msra.mxu1 %v6297_v2  ;;  %15146 = vrcp.f32 %v6120_v56  ;;  %v6123_v45 = vpop.xlane.xlu0 %6122  ;;  %13709 = vmatprep.mubr.msk.bf16.mxu1 %vm15317_vm0, %v18968_v9  ;;  %v6480_v2 = vrot.slane %v17045_v6, 1 }
 0x8c3   :  { %15148 = vrcp.f32 %v6123_v45  ;;  %13719 = vmatprep.subr.bf16.mxu1 %v18968_v9 }
 0x8c4   :  { %v15143_v3 = vpop.eup %15142 }
 0x8c5   :  { %v6138_v17 = vmul.f32 %v15143_v3, %v17376_v40  ;;  %v6485_v3 = vsel %vm4089_vm2, %v6480_v2, 0 }
 0x8c6   :  { %v17452_v4 = vpop.permute.xlu0 %6530 }
 0x8c7   :  { %v6146_v1 = vpack.c.bf16 %v6138_v17, %v6138_v17  ;;  %v17476_v17 = vpop.permute.xlu1 %6582 }
 0x8c8   :  { %v15145_v0 = vpop.eup %15144 }
 0x8c9   :  { %13710 = vmatmul.mubr.msk.bf16.vlgmr.msra.gmra.mrb[96].mxu1 %vm4085_vm4, %v6146_v1  ;;  %v6139_v27 = vmul.f32 %v15145_v0, %v17380_v7 }
 0x8ca   :  { %13720 = vmatpush3.bf16.msra.mxu1 %v6391_v58  ;;  %13721 = vmatprep.mubr.msk.bf16.mxu1 %vm15317_vm0, %v18968_v9  ;;  %v17467_v7 = vpop.permute.xlu0 %6634 }
 0x8cb   :  { %v6147_v14 = vpack.c.bf16 %v6139_v27, %v6139_v27  ;;  %13731 = vmatprep.subr.bf16.mxu1 %v18968_v9  ;;  %v17486_v0 = vpop.permute.xlu1 %6527  ;;  %v6636_v58 = vrot.slane %v17467_v7, 1 }
 0x8cc   :  { %v15147_v40 = vpop.eup %15146  ;;  %v6529_v62 = vrot.slane %v17486_v0, 1 }
 0x8cd   :  { %v15149_v20 = vpop.eup %15148  ;;  %13716 = vmatmul.mubr.msk.bf16.vlgmr.msra.gmra.mrb[100].mxu0 %vm4085_vm4, %v6147_v14  ;;  %v6140_v29 = vmul.f32 %v15147_v40, %v17384_v55  ;;  %v6532_v55 = vrot.slane %v17452_v4, 1  ;;  %v6641_v14 = vsel %vm3619_vm1, %v6636_v58, 0 }
 0x8ce   :  { %13726 = vmatpush3.bf16.msra.mxu0 %v6438_v41  ;;  %13727 = vmatprep.mubr.msk.bf16.mxu0 %vm15317_vm0, %v18968_v9  ;;  %v6141_v45 = vmul.f32 %v15149_v20, %v17386_v46  ;;  %v17479_v1 = vpop.permute.xlu0 %6631 }
 0x8cf   :  { %v6148_v56 = vpack.c.bf16 %v6140_v29, %v6140_v29  ;;  %13737 = vmatprep.subr.bf16.mxu0 %v18968_v9  ;;  %v6537_v46 = vsel %vm3619_vm1, %v6532_v55, 0  ;;  %v6633_v41 = vrot.slane %v17479_v1, 1 }
 0x8d0   :  { %v6149_v32 = vpack.c.bf16 %v6141_v45, %v6141_v45 }
 0x8d1   :  { %13722 = vmatmul.mubr.msk.bf16.vlgmr.msra.gmra.mrb[100].mxu1 %vm4085_vm4, %v6148_v56 }
 0x8d2   :  { %13732 = vmatpush3.bf16.msra.mxu1 %v6485_v3  ;;  %13733 = vmatprep.mubr.msk.bf16.mxu1 %vm15317_vm0, %v18968_v9  ;;  %v17489_v27 = vpop.permute.xlu0 %6738 }
 0x8d3   :  { %13743 = vmatprep.subr.bf16.mxu1 %v18968_v9  ;;  %v6740_v20 = vrot.slane %v17489_v27, 1 }
 0x8d5   :  { %13728 = vmatmul.mubr.msk.bf16.vlgmr.msra.gmra.mrb[104].mxu0 %vm4085_vm4, %v6149_v32  ;;  %v6745_v29 = vsel %vm3619_vm1, %v6740_v20, 0 }
 0x8d6   :  { %13739 = vmatprep.mubr.msk.bf16.mxu0 %vm15317_vm0, %v18968_v9  ;;  %v17497_v40 = vpop.permute.xlu0 %6735 }
 0x8d7   :  { %13738 = vmatpush3.bf16.xpose.msra.mxu0 %v6537_v46  ;;  %v6737_v45 = vrot.slane %v17497_v40, 1  ;;  %v17521_v46 = vpop.permute.xlu1 %6579 }
 0x8d8   :  { %13749 = vmatprep.subr.bf16.mxu0 %v18968_v9 }
 0x8da   :  { %v17503_v2 = vpop.permute.xlu0 %6842 }
 0x8db   :  { %v6844_v56 = vrot.slane %v17503_v2, 1 }
 0x8dd   :  { %v6849_v3 = vsel %vm3619_vm1, %v6844_v56, 0 }
 0x8de   :  { %13740 = vmatmul.mubr.msk.bf16.vlgmr.msra.gmra.mrb[108].mxu0 %vm3619_vm1, %v6529_v62  ;;  %v17515_v55 = vpop.permute.xlu0 %6839 }
 0x8df   :  { %13750 = vmatpush3.bf16.xpose.msra.mxu0 %v6641_v14  ;;  %13751 = vmatprep.mubr.msk.bf16.mxu0 %vm15317_vm0, %v18968_v9  ;;  %v6841_v32 = vrot.slane %v17515_v55, 1 }
 0x8e0   :  { %13761 = vmatprep.subr.bf16.mxu0 %v18968_v9 }
 0x8e6   :  { %13752 = vmatmul.mubr.msk.bf16.vlgmr.msra.gmra.mrb[112].mxu0 %vm3619_vm1, %v6633_v41  ;;  %v6584_v41 = vrot.slane %v17476_v17, 1 }
 0x8e7   :  { %13762 = vmatpush3.bf16.xpose.msra.mxu0 %v6745_v29  ;;  %13763 = vmatprep.mubr.msk.bf16.mxu0 %vm15317_vm0, %v18968_v9 }
 0x8e8   :  { %13773 = vmatprep.subr.bf16.mxu0 %v18968_v9 }
 0x8ee   :  { %13764 = vmatmul.mubr.msk.bf16.vlgmr.msra.gmra.mrb[116].mxu0 %vm3619_vm1, %v6737_v45  ;;  %v6589_v45 = vsel %vm3619_vm1, %v6584_v41, 0 }
 0x8ef   :  { %13774 = vmatpush3.bf16.xpose.msra.mxu0 %v6849_v3  ;;  %13775 = vmatprep.mubr.msk.bf16.mxu0 %vm15317_vm0, %v18968_v9 }
 0x8f0   :  { %13785 = vmatprep.subr.bf16.mxu0 %v18968_v9 }
 0x8f6   :  { %13776 = vmatmul.mubr.msk.bf16.vlgmr.msra.gmra.mrb[120].mxu0 %vm3619_vm1, %v6841_v32 }
 0x8f7   :  { %13787 = vmatprep.mubr.msk.bf16.mxu0 %vm15317_vm0, %v18968_v9 }
 0x8fe   :  { %v6126_v58 = vpop.xlane.xlu1 %6125 }
 0x8ff   :  { %15150 = vrcp.f32 %v6126_v58 }
 0x902   :  { %v17523_v62 = vpop.permute.xlu1 %6686 }
 0x903   :  { %v6688_v3 = vrot.slane %v17523_v62, 1 }
 0x905   :  { %v6693_v58 = vsel %vm3619_vm1, %v6688_v3, 0 }
 0x906   :  { %v17527_v56 = vpop.permute.xlu1 %6683 }
 0x907   :  { %v6685_v41 = vrot.slane %v17527_v56, 1 }
 0x909   :  { %v15151_v14 = vpop.eup %15150 }
 0x90a   :  { %v6142_v20 = vmul.f32 %v15151_v14, %v17413_v19  ;;  %v17535_v32 = vpop.permute.xlu1 %6790  ;;  %v6581_v19 = vrot.slane %v17521_v46, 1 }
 0x90c   :  { %v6150_v29 = vpack.c.bf16 %v6142_v20, %v6142_v20  ;;  %v6792_v20 = vrot.slane %v17535_v32, 1 }
 0x90e   :  { %13734 = vmatmul.mubr.msk.bf16.vlgmr.msra.gmra.mrb[104].mxu1 %vm4085_vm4, %v6150_v29  ;;  %v17543_v14 = vpop.permute.xlu1 %6787  ;;  %v6797_v29 = vsel %vm3619_vm1, %v6792_v20, 0 }
 0x90f   :  { %13744 = vmatpush3.bf16.xpose.msra.mxu1 %v6589_v45  ;;  %13745 = vmatprep.mubr.msk.bf16.mxu1 %vm15317_vm0, %v18968_v9 }
 0x910   :  { %13755 = vmatprep.subr.bf16.mxu1 %v18968_v9 }
 0x912   :  { %v17549_v45 = vpop.permute.xlu1 %6894 }
 0x913   :  { %v6896_v3 = vrot.slane %v17549_v45, 1 }
 0x916   :  { %13746 = vmatmul.mubr.msk.bf16.vlgmr.msra.gmra.mrb[108].mxu1 %vm3619_vm1, %v6581_v19  ;;  %v6789_v19 = vrot.slane %v17543_v14, 1  ;;  %v17561_v20 = vpop.permute.xlu1 %6891 }
 0x917   :  { %13756 = vmatpush3.bf16.xpose.msra.mxu1 %v6693_v58  ;;  %13757 = vmatprep.mubr.msk.bf16.mxu1 %vm15317_vm0, %v18968_v9  ;;  %v6901_v58 = vsel %vm3619_vm1, %v6896_v3, 0 }
 0x918   :  { %13767 = vmatprep.subr.bf16.mxu1 %v18968_v9 }
 0x91e   :  { %13758 = vmatmul.mubr.msk.bf16.vlgmr.msra.gmra.mrb[112].mxu1 %vm3619_vm1, %v6685_v41  ;;  %v6893_v41 = vrot.slane %v17561_v20, 1 }
 0x91f   :  { %13768 = vmatpush3.bf16.xpose.msra.mxu1 %v6797_v29  ;;  %13769 = vmatprep.mubr.msk.bf16.mxu1 %vm15317_vm0, %v18968_v9 }
 0x920   :  { %13779 = vmatprep.subr.bf16.mxu1 %v18968_v9 }
 0x926   :  { %13770 = vmatmul.mubr.msk.bf16.vlgmr.msra.gmra.mrb[116].mxu1 %vm3619_vm1, %v6789_v19 }
 0x927   :  { %13780 = vmatpush3.bf16.xpose.msra.mxu1 %v6901_v58  ;;  %13781 = vmatprep.mubr.msk.bf16.mxu1 %vm15317_vm0, %v18968_v9 }
 0x928   :  { %13791 = vmatprep.subr.bf16.mxu1 %v18968_v9 }
 0x92e   :  { %13782 = vmatmul.mubr.msk.bf16.vlgmr.msra.gmra.mrb[120].mxu1 %vm3619_vm1, %v6893_v41 }
 0x92f   :  { %13793 = vmatprep.mubr.msk.bf16.mxu1 %vm15317_vm0, %v18968_v9 }
 0x966   :  { %v17567_v29 = vpop.f32.mrb[92].mxu0 }
 0x967   :  { %18969 = vst [vmem:[#allocation34_spill] sm:$0xff] %v17567_v29  ;;  %v13693_v19 = vpop.f32.mrb[93].mxu0 }
 0x968   :  { %v6195_v63 = vpop.f32.mrb[94].mxu0 }
 0x969   :  { %v13694_v3 = vpop.f32.mrb[95].mxu0 }
 0x96e   :  { %v17569_v58 = vpop.f32.mrb[96].mxu0 }
 0x96f   :  { %18970 = vst [vmem:[#allocation35_spill] sm:$0xff] %v17569_v58  ;;  %v13705_v54 = vpop.f32.mrb[97].mxu0 }
 0x970   :  { %v6289_v49 = vpop.f32.mrb[98].mxu0 }
 0x971   :  { %v13706_v5 = vpop.f32.mrb[99].mxu0 }
 0x994   :  { %v17571_v61 = vpop.f32.mrb[92].mxu1 }
 0x995   :  { %18971 = vst [vmem:[#allocation36_spill] sm:$0xff] %v17571_v61  ;;  %v13699_v11 = vpop.f32.mrb[93].mxu1 }
 0x996   :  { %v6242_v8 = vpop.f32.mrb[94].mxu1 }
 0x997   :  { %v13700_v50 = vpop.f32.mrb[95].mxu1 }
 0x99c   :  { %v17573_v30 = vpop.f32.mrb[96].mxu1 }
 0x99d   :  { %18972 = vst [vmem:[#allocation37_spill] sm:$0xff] %v17573_v30  ;;  %v13711_v41 = vpop.f32.mrb[97].mxu1 }
 0x99e   :  { %v6336_v60 = vpop.f32.mrb[98].mxu1 }
 0x99f   :  { %v13712_v39 = vpop.f32.mrb[99].mxu1 }
 0x9a0   :  { %v17575_v42 = vpop.f32.mrb[100].mxu0 }
 0x9a1   :  { %18973 = vst [vmem:[#allocation38_spill] sm:$0xff] %v17575_v42  ;;  %v13717_v19 = vpop.f32.mrb[101].mxu0 }
 0x9a2   :  { %v6383_v63 = vpop.f32.mrb[102].mxu0 }
 0x9a3   :  { %v13718_v3 = vpop.f32.mrb[103].mxu0 }
 0x9a4   :  { %v17577_v29 = vpop.f32.mrb[100].mxu1 }
 0x9a5   :  { %18974 = vst [vmem:[#allocation39_spill] sm:$0xff] %v17577_v29  ;;  %v13723_v54 = vpop.f32.mrb[101].mxu1 }
 0x9a6   :  { %v6430_v49 = vpop.f32.mrb[102].mxu1 }
 0x9a7   :  { %v13724_v5 = vpop.f32.mrb[103].mxu1 }
 0x9a8   :  { %v17579_v58 = vpop.f32.mrb[104].mxu0 }
 0x9a9   :  { %18975 = vst [vmem:[#allocation40_spill] sm:$0xff] %v17579_v58  ;;  %v13729_v11 = vpop.f32.mrb[105].mxu0 }
 0x9aa   :  { %v6477_v8 = vpop.f32.mrb[106].mxu0 }
 0x9ab   :  { %v13730_v50 = vpop.f32.mrb[107].mxu0 }
 0x9b1   :  { %v6573_v61 = vpop.f32.mrb[108].mxu0 }
 0x9b2   :  { %v13741_v30 = vpop.f32.mrb[109].mxu0  ;;  %v6943_v60 = vsel %vm3988_vm3, %v6573_v61, -inf }
 0x9b3   :  { %6944 = vmax.xlane.f32.xlu0 %v6943_v60  ;;  %v6576_v39 = vpop.f32.mrb[110].mxu0 }
 0x9b4   :  { %v13742_v41 = vpop.f32.mrb[111].mxu0 }
 0x9b9   :  { %v6677_v19 = vpop.f32.mrb[112].mxu0 }
 0x9ba   :  { %v13753_v63 = vpop.f32.mrb[113].mxu0  ;;  %v6949_v3 = vsel %vm3988_vm3, %v6677_v19, -inf }
 0x9bb   :  { %6950 = vmax.xlane.f32.xlu0 %v6949_v3  ;;  %v6680_v54 = vpop.f32.mrb[114].mxu0 }
 0x9bc   :  { %v13754_v49 = vpop.f32.mrb[115].mxu0 }
 0x9c1   :  { %v17583_v5 = vpop.f32.mrb[116].mxu0 }
 0x9c2   :  { %v13765_v29 = vpop.f32.mrb[117].mxu0 }
 0x9c3   :  { %v6784_v11 = vpop.f32.mrb[118].mxu0 }
 0x9c4   :  { %v13766_v8 = vpop.f32.mrb[119].mxu0 }
 0x9c9   :  { %v17585_v50 = vpop.f32.mrb[120].mxu0 }
 0x9ca   :  { %v13777_v30 = vpop.f32.mrb[121].mxu0 }
 0x9cb   :  { %v6888_v58 = vpop.f32.mrb[122].mxu0 }
 0x9cc   :  { %v13778_v42 = vpop.f32.mrb[123].mxu0 }
 0x9cd   :  { %v6955_v42 = vsel %vm3988_vm3, %v17583_v5, -inf }
 0x9e1   :  { %v17587_v60 = vpop.f32.mrb[104].mxu1 }
 0x9e2   :  { %18976 = vst [vmem:[#allocation41_spill] sm:$0xff] %v17587_v60  ;;  %v13735_v39 = vpop.f32.mrb[105].mxu1 }
 0x9e3   :  { %v6524_v41 = vpop.f32.mrb[106].mxu1 }
 0x9e4   :  { %v13736_v63 = vpop.f32.mrb[107].mxu1  ;;  %v6961_v41 = vsel %vm3988_vm3, %v17585_v50, -inf }
 0x9e9   :  { %v6625_v13 = vpop.f32.mrb[108].mxu1 }
 0x9ea   :  { %v13747_v51 = vpop.f32.mrb[109].mxu1  ;;  %v6946_v3 = vsel %vm3988_vm3, %v6625_v13, -inf }
 0x9eb   :  { %6947 = vmax.xlane.f32.xlu1 %v6946_v3  ;;  %v6628_v54 = vpop.f32.mrb[110].mxu1 }
 0x9ec   :  { %v13748_v49 = vpop.f32.mrb[111].mxu1 }
 0x9f1   :  { %v6729_v29 = vpop.f32.mrb[112].mxu1 }
 0x9f2   :  { %v13759_v11 = vpop.f32.mrb[113].mxu1  ;;  %v6952_v8 = vsel %vm3988_vm3, %v6729_v29, -inf }
 0x9f3   :  { %v6732_v31 = vpop.f32.mrb[114].mxu1  ;;  %6953 = vmax.xlane.f32.xlu0 %v6952_v8 }
 0x9f4   :  { %v13760_v58 = vpop.f32.mrb[115].mxu1 }
 0x9f7   :  { %6956 = vmax.xlane.f32.xlu0 %v6955_v42 }
 0x9f9   :  { %v6833_v30 = vpop.f32.mrb[116].mxu1 }
 0x9fa   :  { %v13771_v39 = vpop.f32.mrb[117].mxu1  ;;  %v6958_v51 = vsel %vm3988_vm3, %v6833_v30, -inf }
 0x9fb   :  { %6959 = vmax.xlane.f32.xlu1 %v6958_v51  ;;  %v6836_v63 = vpop.f32.mrb[118].mxu1  ;;  %6962 = vmax.xlane.f32.xlu0 %v6961_v41 }
 0x9fc   :  { %v13772_v3 = vpop.f32.mrb[119].mxu1 }
 0xa01   :  { %v17596_v54 = vpop.f32.mrb[120].mxu1 }
 0xa02   :  { %v13783_v31 = vpop.f32.mrb[121].mxu1  ;;  %v6964_v8 = vsel %vm3988_vm3, %v17596_v54, -inf }
 0xa03   :  { %v6940_v49 = vpop.f32.mrb[122].mxu1 }
 0xa04   :  { %v13784_v11 = vpop.f32.mrb[123].mxu1 }
 0xa0c   :  { %7088 = vrot.lane.b32.xlu1 %v16869_v22, %s15318_s2 }
 0xa11   :  { %7039 = vrot.lane.b32.xlu0 %v16866_v21, %s15318_s2 }
 0xa15   :  { %7137 = vrot.lane.b32.xlu0 %v16992_v15, %s15318_s2 }
 0xa30   :  { %6965 = vmax.xlane.f32.xlu1 %v6964_v8 }
 0xa40   :  { %v6945_v58 = vpop.xlane.xlu0 %6944 }
 0xa41   :  { %v6967_v42 = vsub.f32 %v6573_v61, %v6945_v58  ;;  %7186 = vrot.lane.b32.xlu1 %v17000_v47, %s15318_s2 }
 0xa43   :  { %v6975_v39 = vmul.f32 1.442695, %v6967_v42 }
 0xa45   :  { %15152 = vpow2.f32 %v6975_v39  ;;  %7235 = vrot.lane.b32.xlu1 %v17009_v37, %s15318_s2 }
 0xa48   :  { %v6951_v51 = vpop.xlane.xlu0 %6950 }
 0xa49   :  { %v6969_v41 = vsub.f32 %v6677_v19, %v6951_v51  ;;  %7284 = vrot.lane.b32.xlu1 %v17022_v23, %s15318_s2 }
 0xa4b   :  { %v6979_v63 = vmul.f32 1.442695, %v6969_v41 }
 0xa4d   :  { %15154 = vpow2.f32 %v6979_v63 }
 0xa4f   :  { %v17612_v3 = vpop.eup %15152 }
 0xa50   :  { %v6991_v61 = vsel %vm3988_vm3, %v17612_v3, 0.0 }
 0xa51   :  { %6992 = vadd.xlane.f32.xlu0 %v6991_v61 }
 0xa57   :  { %v17616_v31 = vpop.eup %15154 }
 0xa58   :  { %v6997_v49 = vsel %vm3988_vm3, %v17616_v31, 0.0 }
 0xa59   :  { %6998 = vadd.xlane.f32.xlu0 %v6997_v49 }
 0xa78   :  { %v6948_v11 = vpop.xlane.xlu1 %6947 }
 0xa79   :  { %v6968_v8 = vsub.f32 %v6625_v13, %v6948_v11 }
 0xa7b   :  { %v6977_v19 = vmul.f32 1.442695, %v6968_v8 }
 0xa7d   :  { %15156 = vpow2.f32 %v6977_v19 }
 0xa80   :  { %v6954_v58 = vpop.xlane.xlu0 %6953 }
 0xa81   :  { %v6970_v42 = vsub.f32 %v6729_v29, %v6954_v58 }
 0xa83   :  { %v6981_v39 = vmul.f32 1.442695, %v6970_v42 }
 0xa84   :  { %v6957_v51 = vpop.xlane.xlu0 %6956 }
 0xa85   :  { %15158 = vpow2.f32 %v6981_v39  ;;  %v6971_v41 = vsub.f32 %v17583_v5, %v6957_v51 }
 0xa87   :  { %v17621_v63 = vpop.eup %15156  ;;  %v6983_v61 = vmul.f32 1.442695, %v6971_v41 }
 0xa88   :  { %v6960_v60 = vpop.xlane.xlu1 %6959  ;;  %v6963_v48 = vpop.xlane.xlu0 %6962  ;;  %v6994_v12 = vsel %vm3988_vm3, %v17621_v63, 0.0 }
 0xa89   :  { %15160 = vpow2.f32 %v6983_v61  ;;  %v6972_v49 = vsub.f32 %v6833_v30, %v6960_v60  ;;  %v6973_v13 = vsub.f32 %v17585_v50, %v6963_v48  ;;  %6995 = vadd.xlane.f32.xlu1 %v6994_v12 }
 0xa8b   :  { %v6985_v11 = vmul.f32 1.442695, %v6972_v49  ;;  %v6987_v29 = vmul.f32 1.442695, %v6973_v13 }
 0xa8c   :  { %v17626_v8 = vpop.permute.xlu1 %7088  ;;  %v17628_v19 = vpop.permute.xlu0 %7039 }
 0xa8d   :  { %15162 = vpow2.f32 %v6985_v11  ;;  %v7041_v5 = vrot.slane %v17628_v19, 1  ;;  %v7090_v58 = vrot.slane %v17626_v8, 1 }
 0xa8e   :  { %15164 = vpow2.f32 %v6987_v29 }
 0xa8f   :  { %v17632_v42 = vpop.eup %15158  ;;  %v7046_v39 = vsel %vm4089_vm2, %v7041_v5, 0  ;;  %v7095_v60 = vsel %vm4089_vm2, %v7090_v58, 0 }
 0xa90   :  { %13786 = vmatpush3.bf16.msra.mxu0 %v7046_v39  ;;  %13792 = vmatpush3.bf16.msra.mxu1 %v7095_v60  ;;  %v7000_v12 = vsel %vm3988_vm3, %v17632_v42, 0.0  ;;  %v17659_v58 = vpop.permute.xlu0 %7137 }
 0xa91   :  { %7001 = vadd.xlane.f32.xlu1 %v7000_v12  ;;  %13797 = vmatprep.subr.bf16.mxu0 %v18968_v9 }
 0xa92   :  { %13803 = vmatprep.subr.bf16.mxu1 %v18968_v9 }
 0xa93   :  { %v17640_v48 = vpop.eup %15160 }
 0xa94   :  { %v7003_v50 = vsel %vm3988_vm3, %v17640_v48, 0.0 }
 0xa95   :  { %7004 = vadd.xlane.f32.xlu0 %v7003_v50 }
 0xa97   :  { %v17644_v30 = vpop.eup %15162 }
 0xa98   :  { %v7006_v51 = vsel %vm3988_vm3, %v17644_v30, 0.0  ;;  %v17648_v41 = vpop.eup %15164 }
 0xa99   :  { %7007 = vadd.xlane.f32.xlu1 %v7006_v51  ;;  %v7009_v61 = vsel %vm3988_vm3, %v17648_v41, 0.0  ;;  %v7139_v51 = vrot.slane %v17659_v58, 1 }
 0xa9d   :  { %7010 = vadd.xlane.f32.xlu1 %v7009_v61 }
 0xaae   :  { %7382 = vrot.lane.b32.xlu1 %v17045_v6, %s15318_s2 }
 0xabd   :  { %v6966_v49 = vpop.xlane.xlu1 %6965 }
 0xabe   :  { %v6974_v13 = vsub.f32 %v17596_v54, %v6966_v49  ;;  %v7144_v49 = vsel %vm4089_vm2, %v7139_v51, 0 }
 0xac0   :  { %v6989_v11 = vmul.f32 1.442695, %v6974_v13 }
 0xac1   :  { %v17663_v50 = vpop.permute.xlu1 %7186 }
 0xac2   :  { %15166 = vpow2.f32 %v6989_v11 }
 0xac5   :  { %v17669_v13 = vpop.permute.xlu1 %7235 }
 0xacc   :  { %v17655_v29 = vpop.eup %15166 }
 0xacd   :  { %v7012_v5 = vsel %vm3988_vm3, %v17655_v29, 0.0 }
 0xace   :  { %7013 = vadd.xlane.f32.xlu0 %v7012_v5 }
 0xade   :  { %v6993_v39 = vpop.xlane.xlu0 %6992 }
 0xadf   :  { %15168 = vrcp.f32 %v6993_v39 }
 0xae4   :  { %7333 = vrot.lane.b32.xlu0 %v17037_v57, %s15318_s2 }
 0xae6   :  { %v6999_v60 = vpop.xlane.xlu0 %6998 }
 0xae7   :  { %15170 = vrcp.f32 %v6999_v60 }
 0xae9   :  { %v15169_v12 = vpop.eup %15168 }
 0xaea   :  { %v7023_v54 = vmul.f32 %v15169_v12, %v17612_v3  ;;  %v7237_v3 = vrot.slane %v17669_v13, 1  ;;  %v17681_v12 = vpop.permute.xlu1 %7284 }
 0xaec   :  { %v7031_v61 = vpack.c.bf16 %v7023_v54, %v7023_v54  ;;  %v7242_v60 = vsel %vm4089_vm2, %v7237_v3, 0 }
 0xaee   :  { %13788 = vmatmul.mubr.msk.bf16.vlgmr.msra.gmra.mrb[124].mxu0 %vm4085_vm4, %v7031_v61 }
 0xaef   :  { %13798 = vmatpush3.bf16.msra.mxu0 %v7144_v49  ;;  %13799 = vmatprep.mubr.msk.bf16.mxu0 %vm15317_vm0, %v18968_v9 }
 0xaf0   :  { %13809 = vmatprep.subr.bf16.mxu0 %v18968_v9 }
 0xaf1   :  { %v15171_v11 = vpop.eup %15170 }
 0xaf2   :  { %v7025_v5 = vmul.f32 %v15171_v11, %v17616_v31  ;;  %v7188_v11 = vrot.slane %v17663_v50, 1 }
 0xaf4   :  { %v7033_v39 = vpack.c.bf16 %v7025_v5, %v7025_v5  ;;  %v7193_v3 = vsel %vm4089_vm2, %v7188_v11, 0 }
 0xaf6   :  { %13800 = vmatmul.mubr.msk.bf16.vlgmr.msra.gmra.mrb[128].mxu0 %vm4085_vm4, %v7033_v39 }
 0xaf7   :  { %13810 = vmatpush3.bf16.msra.mxu0 %v7242_v60  ;;  %13811 = vmatprep.mubr.msk.bf16.mxu0 %vm15317_vm0, %v18968_v9 }
 0xaf8   :  { %13821 = vmatprep.subr.bf16.mxu0 %v18968_v9 }
 0xb16   :  { %v6996_v54 = vpop.xlane.xlu1 %6995 }
 0xb17   :  { %15172 = vrcp.f32 %v6996_v54 }
 0xb1e   :  { %v7002_v51 = vpop.xlane.xlu1 %7001 }
 0xb1f   :  { %15174 = vrcp.f32 %v7002_v51  ;;  %v7286_v51 = vrot.slane %v17681_v12, 1 }
 0xb21   :  { %v15173_v31 = vpop.eup %15172 }
 0xb22   :  { %v7005_v61 = vpop.xlane.xlu0 %7004  ;;  %v7024_v49 = vmul.f32 %v15173_v31, %v17621_v63 }
 0xb23   :  { %15176 = vrcp.f32 %v7005_v61 }
 0xb24   :  { %v7032_v5 = vpack.c.bf16 %v7024_v49, %v7024_v49  ;;  %v7291_v49 = vsel %vm4089_vm2, %v7286_v51, 0 }
 0xb26   :  { %13794 = vmatmul.mubr.msk.bf16.vlgmr.msra.gmra.mrb[124].mxu1 %vm4085_vm4, %v7032_v5  ;;  %v7008_v39 = vpop.xlane.xlu1 %7007 }
 0xb27   :  { %13804 = vmatpush3.bf16.msra.mxu1 %v7193_v3  ;;  %15178 = vrcp.f32 %v7008_v39  ;;  %13805 = vmatprep.mubr.msk.bf16.mxu1 %vm15317_vm0, %v18968_v9 }
 0xb28   :  { %13815 = vmatprep.subr.bf16.mxu1 %v18968_v9 }
 0xb29   :  { %v15175_v60 = vpop.eup %15174 }
 0xb2a   :  { %v7011_v54 = vpop.xlane.xlu1 %7010  ;;  %v7026_v63 = vmul.f32 %v15175_v60, %v17632_v42 }
 0xb2b   :  { %15180 = vrcp.f32 %v7011_v54 }
 0xb2c   :  { %v7034_v31 = vpack.c.bf16 %v7026_v63, %v7026_v63 }
 0xb2d   :  { %v15177_v61 = vpop.eup %15176 }
 0xb2e   :  { %13806 = vmatmul.mubr.msk.bf16.vlgmr.msra.gmra.mrb[128].mxu1 %vm4085_vm4, %v7034_v31  ;;  %v7027_v11 = vmul.f32 %v15177_v61, %v17640_v48  ;;  %v17695_v5 = vpop.permute.xlu1 %7382 }
 0xb2f   :  { %13816 = vmatpush3.bf16.msra.mxu1 %v7291_v49  ;;  %13817 = vmatprep.mubr.msk.bf16.mxu1 %vm15317_vm0, %v18968_v9  ;;  %v7384_v39 = vrot.slane %v17695_v5, 1 }
 0xb30   :  { %v7035_v3 = vpack.c.bf16 %v7027_v11, %v7027_v11  ;;  %13827 = vmatprep.subr.bf16.mxu1 %v18968_v9 }
 0xb31   :  { %v15179_v42 = vpop.eup %15178  ;;  %v7389_v63 = vsel %vm4089_vm2, %v7384_v39, 0  ;;  %v7480_v39 = vrot.slane %v16730_v18, 2 }
 0xb32   :  { %13812 = vmatmul.mubr.msk.bf16.vlgmr.msra.gmra.mrb[132].mxu0 %vm4085_vm4, %v7035_v3  ;;  %v7028_v60 = vmul.f32 %v15179_v42, %v17644_v30 }
 0xb33   :  { %13823 = vmatprep.mubr.msk.bf16.mxu0 %vm15317_vm0, %v18968_v9 }
 0xb34   :  { %v7036_v48 = vpack.c.bf16 %v7028_v60, %v7028_v60  ;;  %v7432_v60 = vrot.slane %v16727_v16, 2 }
 0xb35   :  { %v15181_v31 = vpop.eup %15180 }
 0xb36   :  { %13818 = vmatmul.mubr.msk.bf16.vlgmr.msra.gmra.mrb[132].mxu1 %vm4085_vm4, %v7036_v48  ;;  %v7029_v49 = vmul.f32 %v15181_v31, %v17648_v41  ;;  %v7485_v41 = vsel %vm3619_vm1, %v7480_v39, 0  ;;  %v7431_v31 = vrot.slane %v16750_v25, 2  ;;  %v7575_v39 = vrot.slane %v16784_v10, 2 }
 0xb37   :  { %13828 = vmatpush3.bf16.msra.mxu1 %v7389_v63  ;;  %13829 = vmatprep.mubr.msk.bf16.mxu1 %vm15317_vm0, %v18968_v9  ;;  %v7437_v63 = vsel %vm3619_vm1, %v7432_v60, 0 }
 0xb38   :  { %13839 = vmatprep.subr.bf16.mxu1 %v18968_v9  ;;  %v7037_v3 = vpack.c.bf16 %v7029_v49, %v7029_v49 }
 0xb5b   :  { %v7014_v51 = vpop.xlane.xlu0 %7013 }
 0xb5c   :  { %15182 = vrcp.f32 %v7014_v51  ;;  %v7528_v51 = vrot.slane %v16740_v24, 2 }
 0xb5f   :  { %v17710_v61 = vpop.permute.xlu0 %7333 }
 0xb60   :  { %v7335_v30 = vrot.slane %v17710_v61, 1 }
 0xb62   :  { %v7340_v11 = vsel %vm4089_vm2, %v7335_v30, 0  ;;  %v7479_v30 = vrot.slane %v16756_v26, 2 }
 0xb63   :  { %13822 = vmatpush3.bf16.msra.mxu0 %v7340_v11  ;;  %v7533_v11 = vsel %vm3619_vm1, %v7528_v51, 0  ;;  %v7671_v51 = vrot.slane %v16818_v36, 2 }
 0xb64   :  { %13833 = vmatprep.subr.bf16.mxu0 %v18968_v9 }
 0xb66   :  { %v15183_v42 = vpop.eup %15182  ;;  %13824 = vmatmul.mubr.msk.bf16.vlgmr.msra.gmra.mrb[136].mxu0 %vm4085_vm4, %v7037_v3  ;;  %v7672_v3 = vrot.slane %v16776_v44, 2 }
 0xb67   :  { %v7030_v54 = vmul.f32 %v15183_v42, %v17655_v29  ;;  %13835 = vmatprep.mubr.msk.bf16.mxu0 %vm15317_vm0, %v18968_v9  ;;  %v7576_v29 = vrot.slane %v16744_v59, 2  ;;  %v7624_v42 = vrot.slane %v16773_v43, 2 }
 0xb68   :  { %v7677_v60 = vsel %vm3619_vm1, %v7672_v3, 0  ;;  %v7719_v3 = vrot.slane %v16836_v53, 2 }
 0xb69   :  { %v7038_v48 = vpack.c.bf16 %v7030_v54, %v7030_v54  ;;  %v7581_v49 = vsel %vm3619_vm1, %v7576_v29, 0  ;;  %v7527_v54 = vrot.slane %v16780_v52, 2  ;;  %v7623_v29 = vrot.slane %v16812_v35, 2 }
 0xb6b   :  { %13830 = vmatmul.mubr.msk.bf16.vlgmr.msra.gmra.mrb[136].mxu1 %vm4085_vm4, %v7038_v48  ;;  %v7629_v48 = vsel %vm3619_vm1, %v7624_v42, 0  ;;  %v7767_v42 = vrot.slane %v16840_v28, 2 }
 0xb6c   :  { %13840 = vmatpush3.bf16.xpose.msra.mxu1 %v7485_v41  ;;  %13834 = vmatpush3.bf16.xpose.msra.mxu0 %v7437_v63  ;;  %v7768_v41 = vrot.slane %v16806_v34, 2  ;;  %v7720_v63 = vrot.slane %v16802_v33, 2 }
 0xb6d   :  { %13841 = vmatprep.mubr.msk.bf16.mxu1 %vm15317_vm0, %v18968_v9  ;;  %13851 = vmatprep.subr.bf16.mxu1 %v18968_v9 }
 0xb6e   :  { %13845 = vmatprep.subr.bf16.mxu0 %v18968_v9 }
 0xb73   :  { %13836 = vmatmul.mubr.msk.bf16.vlgmr.msra.gmra.mrb[140].mxu0 %vm3619_vm1, %v7431_v31  ;;  %13842 = vmatmul.mubr.msk.bf16.vlgmr.msra.gmra.mrb[140].mxu1 %vm3619_vm1, %v7479_v30  ;;  %v7773_v31 = vsel %vm3619_vm1, %v7768_v41, 0  ;;  %v7725_v30 = vsel %vm3619_vm1, %v7720_v63, 0 }
 0xb74   :  { %13852 = vmatpush3.bf16.xpose.msra.mxu1 %v7581_v49  ;;  %13846 = vmatpush3.bf16.xpose.msra.mxu0 %v7533_v11  ;;  %v7958_v49 = vrot.slane %v16869_v22, 2  ;;  %v7911_v11 = vrot.slane %v16866_v21, 2 }
 0xb75   :  { %13847 = vmatprep.mubr.msk.bf16.mxu0 %vm15317_vm0, %v18968_v9  ;;  %13853 = vmatprep.mubr.msk.bf16.mxu1 %vm15317_vm0, %v18968_v9 }
 0xb76   :  { %13863 = vmatprep.subr.bf16.mxu1 %v18968_v9  ;;  %13857 = vmatprep.subr.bf16.mxu0 %v18968_v9 }
 0xb7b   :  { %13848 = vmatmul.mubr.msk.bf16.vlgmr.msra.gmra.mrb[144].mxu0 %vm3619_vm1, %v7527_v54  ;;  %13854 = vmatmul.mubr.msk.bf16.vlgmr.msra.gmra.mrb[144].mxu1 %vm3619_vm1, %v7575_v39  ;;  %v7963_v54 = vsel %vm4089_vm2, %v7958_v49, 0  ;;  %v7916_v39 = vsel %vm4089_vm2, %v7911_v11, 0 }
 0xb7c   :  { %13864 = vmatpush3.bf16.xpose.msra.mxu1 %v7677_v60  ;;  %13858 = vmatpush3.bf16.xpose.msra.mxu0 %v7629_v48 }
 0xb7d   :  { %13859 = vmatprep.mubr.msk.bf16.mxu0 %vm15317_vm0, %v18968_v9  ;;  %13865 = vmatprep.mubr.msk.bf16.mxu1 %vm15317_vm0, %v18968_v9 }
 0xb7e   :  { %13875 = vmatprep.subr.bf16.mxu1 %v18968_v9  ;;  %13869 = vmatprep.subr.bf16.mxu0 %v18968_v9 }
 0xb83   :  { %13860 = vmatmul.mubr.msk.bf16.vlgmr.msra.gmra.mrb[148].mxu0 %vm3619_vm1, %v7623_v29  ;;  %13866 = vmatmul.mubr.msk.bf16.vlgmr.msra.gmra.mrb[148].mxu1 %vm3619_vm1, %v7671_v51 }
 0xb84   :  { %13876 = vmatpush3.bf16.xpose.msra.mxu1 %v7773_v31  ;;  %13870 = vmatpush3.bf16.xpose.msra.mxu0 %v7725_v30 }
 0xb85   :  { %13871 = vmatprep.mubr.msk.bf16.mxu0 %vm15317_vm0, %v18968_v9  ;;  %13877 = vmatprep.mubr.msk.bf16.mxu1 %vm15317_vm0, %v18968_v9 }
 0xb86   :  { %13887 = vmatprep.subr.bf16.mxu1 %v18968_v9  ;;  %13881 = vmatprep.subr.bf16.mxu0 %v18968_v9 }
 0xb8b   :  { %13872 = vmatmul.mubr.msk.bf16.vlgmr.msra.gmra.mrb[152].mxu0 %vm3619_vm1, %v7719_v3  ;;  %13878 = vmatmul.mubr.msk.bf16.vlgmr.msra.gmra.mrb[152].mxu1 %vm3619_vm1, %v7767_v42 }
 0xb8c   :  { %13888 = vmatpush3.bf16.msra.mxu1 %v7963_v54  ;;  %13882 = vmatpush3.bf16.msra.mxu0 %v7916_v39 }
 0xb8d   :  { %13883 = vmatprep.mubr.msk.bf16.mxu0 %vm15317_vm0, %v18968_v9  ;;  %13889 = vmatprep.mubr.msk.bf16.mxu1 %vm15317_vm0, %v18968_v9 }
 0xb8e   :  { %13893 = vmatprep.subr.bf16.mxu0 %v18968_v9  ;;  %13899 = vmatprep.subr.bf16.mxu1 %v18968_v9 }
 0xbc1   :  { %v17785_v60 = vpop.f32.mrb[124].mxu0 }
 0xbc2   :  { %18977 = vst [vmem:[#allocation42_spill] sm:$0xff] %v17785_v60  ;;  %v13789_v48 = vpop.f32.mrb[125].mxu0 }
 0xbc3   :  { %v7085_v41 = vpop.f32.mrb[126].mxu0 }
 0xbc4   :  { %v13790_v63 = vpop.f32.mrb[127].mxu0 }
 0xbc9   :  { %v17787_v29 = vpop.f32.mrb[128].mxu0 }
 0xbca   :  { %18978 = vst [vmem:[#allocation43_spill] sm:$0xff] %v17787_v29  ;;  %v13801_v51 = vpop.f32.mrb[129].mxu0 }
 0xbcb   :  { %v7183_v31 = vpop.f32.mrb[130].mxu0 }
 0xbcc   :  { %v13802_v30 = vpop.f32.mrb[131].mxu0 }
 0xbf9   :  { %v17789_v49 = vpop.f32.mrb[124].mxu1 }
 0xbfa   :  { %18979 = vst [vmem:[#allocation44_spill] sm:$0xff] %v17789_v49  ;;  %v13795_v11 = vpop.f32.mrb[125].mxu1 }
 0xbfb   :  { %v7134_v3 = vpop.f32.mrb[126].mxu1 }
 0xbfc   :  { %v13796_v42 = vpop.f32.mrb[127].mxu1 }
 0xc01   :  { %v17791_v54 = vpop.f32.mrb[128].mxu1 }
 0xc02   :  { %18980 = vst [vmem:[#allocation45_spill] sm:$0xff] %v17791_v54  ;;  %v13807_v39 = vpop.f32.mrb[129].mxu1 }
 0xc03   :  { %v7232_v38 = vpop.f32.mrb[130].mxu1 }
 0xc04   :  { %v13808_v28 = vpop.f32.mrb[131].mxu1 }
 0xc05   :  { %v17793_v22 = vpop.f32.mrb[132].mxu0 }
 0xc06   :  { %18981 = vst [vmem:[#allocation46_spill] sm:$0xff] %v17793_v22  ;;  %v13813_v48 = vpop.f32.mrb[133].mxu0 }
 0xc07   :  { %v7281_v41 = vpop.f32.mrb[134].mxu0 }
 0xc08   :  { %v13814_v63 = vpop.f32.mrb[135].mxu0 }
 0xc09   :  { %v17795_v60 = vpop.f32.mrb[132].mxu1 }
 0xc0a   :  { %18982 = vst [vmem:[#allocation47_spill] sm:$0xff] %v17795_v60  ;;  %v13819_v51 = vpop.f32.mrb[133].mxu1 }
 0xc0b   :  { %v7330_v31 = vpop.f32.mrb[134].mxu1 }
 0xc0c   :  { %v13820_v30 = vpop.f32.mrb[135].mxu1 }
 0xc39   :  { %v17797_v29 = vpop.f32.mrb[136].mxu0 }
 0xc3a   :  { %18983 = vst [vmem:[#allocation48_spill] sm:$0xff] %v17797_v29  ;;  %v13825_v11 = vpop.f32.mrb[137].mxu0 }
 0xc3b   :  { %v7379_v3 = vpop.f32.mrb[138].mxu0 }
 0xc3c   :  { %v13826_v42 = vpop.f32.mrb[139].mxu0 }
 0xc3e   :  { %v17799_v49 = vpop.f32.mrb[136].mxu1 }
 0xc3f   :  { %18984 = vst [vmem:[#allocation49_spill] sm:$0xff] %v17799_v49  ;;  %v13831_v39 = vpop.f32.mrb[137].mxu1 }
 0xc40   :  { %v7428_v38 = vpop.f32.mrb[138].mxu1 }
 0xc41   :  { %v13832_v28 = vpop.f32.mrb[139].mxu1 }
 0xc46   :  { %v7473_v54 = vpop.f32.mrb[140].mxu0  ;;  %v7521_v22 = vpop.f32.mrb[140].mxu1 }
 0xc47   :  { %v13837_v48 = vpop.f32.mrb[141].mxu0  ;;  %v13843_v41 = vpop.f32.mrb[141].mxu1  ;;  %v7818_v63 = vsel %vm3988_vm3, %v7521_v22, -inf  ;;  %v7815_v51 = vsel %vm3988_vm3, %v7473_v54, -inf }
 0xc48   :  { %7819 = vmax.xlane.f32.xlu1 %v7818_v63  ;;  %v7524_v31 = vpop.f32.mrb[142].mxu1  ;;  %7816 = vmax.xlane.f32.xlu0 %v7815_v51  ;;  %v7476_v30 = vpop.f32.mrb[142].mxu0 }
 0xc49   :  { %v13838_v11 = vpop.f32.mrb[143].mxu0  ;;  %v13844_v3 = vpop.f32.mrb[143].mxu1 }
 0xc4e   :  { %v7569_v42 = vpop.f32.mrb[144].mxu0  ;;  %v7617_v60 = vpop.f32.mrb[144].mxu1 }
 0xc4f   :  { %v13849_v49 = vpop.f32.mrb[145].mxu0  ;;  %v13855_v39 = vpop.f32.mrb[145].mxu1  ;;  %v7821_v38 = vsel %vm3988_vm3, %v7569_v42, -inf  ;;  %v7824_v53 = vsel %vm3988_vm3, %v7617_v60, -inf }
 0xc50   :  { %v7620_v28 = vpop.f32.mrb[146].mxu1  ;;  %7822 = vmax.xlane.f32.xlu0 %v7821_v38  ;;  %v7572_v48 = vpop.f32.mrb[146].mxu0 }
 0xc51   :  { %v13850_v41 = vpop.f32.mrb[147].mxu0  ;;  %v13856_v29 = vpop.f32.mrb[147].mxu1 }
 0xc54   :  { %7825 = vmax.xlane.f32.xlu0 %v7824_v53 }
 0xc56   :  { %v7665_v63 = vpop.f32.mrb[148].mxu0  ;;  %v7713_v31 = vpop.f32.mrb[148].mxu1 }
 0xc57   :  { %v13861_v51 = vpop.f32.mrb[149].mxu0  ;;  %v13867_v30 = vpop.f32.mrb[149].mxu1  ;;  %v7830_v11 = vsel %vm3988_vm3, %v7713_v31, -inf  ;;  %v7827_v3 = vsel %vm3988_vm3, %v7665_v63, -inf }
 0xc58   :  { %7831 = vmax.xlane.f32.xlu1 %v7830_v11  ;;  %v7716_v49 = vpop.f32.mrb[150].mxu1  ;;  %7828 = vmax.xlane.f32.xlu0 %v7827_v3  ;;  %v7668_v39 = vpop.f32.mrb[150].mxu0 }
 0xc59   :  { %v13862_v28 = vpop.f32.mrb[151].mxu0  ;;  %v13868_v38 = vpop.f32.mrb[151].mxu1 }
 0xc5e   :  { %v7761_v48 = vpop.f32.mrb[152].mxu0  ;;  %v7809_v41 = vpop.f32.mrb[152].mxu1 }
 0xc5f   :  { %v13873_v29 = vpop.f32.mrb[153].mxu0  ;;  %v13879_v21 = vpop.f32.mrb[153].mxu1  ;;  %v7836_v53 = vsel %vm3988_vm3, %v7809_v41, -inf  ;;  %v7833_v36 = vsel %vm3988_vm3, %v7761_v48, -inf }
 0xc60   :  { %7837 = vmax.xlane.f32.xlu1 %v7836_v53  ;;  %v7812_v51 = vpop.f32.mrb[154].mxu1  ;;  %7834 = vmax.xlane.f32.xlu0 %v7833_v36  ;;  %v7764_v30 = vpop.f32.mrb[154].mxu0 }
 0xc61   :  { %v13874_v34 = vpop.f32.mrb[155].mxu0  ;;  %v13880_v35 = vpop.f32.mrb[155].mxu1 }
 0xcd5   :  { %v7820_v11 = vpop.xlane.xlu1 %7819  ;;  %v7817_v49 = vpop.xlane.xlu0 %7816 }
 0xcd6   :  { %v7840_v3 = vsub.f32 %v7521_v22, %v7820_v11  ;;  %v7839_v39 = vsub.f32 %v7473_v54, %v7817_v49 }
 0xcd8   :  { %v7849_v28 = vmul.f32 1.442695, %v7840_v3  ;;  %v7847_v38 = vmul.f32 1.442695, %v7839_v39 }
 0xcda   :  { %15184 = vpow2.f32 %v7849_v28 }
 0xcdb   :  { %15186 = vpow2.f32 %v7847_v38 }
 0xcdd   :  { %v7823_v29 = vpop.xlane.xlu0 %7822 }
 0xcde   :  { %v7841_v21 = vsub.f32 %v7569_v42, %v7823_v29 }
 0xce0   :  { %v7851_v33 = vmul.f32 1.442695, %v7841_v21 }
 0xce1   :  { %v7826_v10 = vpop.xlane.xlu0 %7825 }
 0xce2   :  { %15188 = vpow2.f32 %v7851_v33  ;;  %v7842_v44 = vsub.f32 %v7617_v60, %v7826_v10 }
 0xce4   :  { %v15185_v53 = vpop.eup %15184  ;;  %v7853_v51 = vmul.f32 1.442695, %v7842_v44 }
 0xce5   :  { %v15187_v36 = vpop.eup %15186  ;;  %v7832_v30 = vpop.xlane.xlu1 %7831  ;;  %v7866_v35 = vsel %vm3988_vm3, %v15185_v53, 0.0 }
 0xce6   :  { %v7829_v34 = vpop.xlane.xlu0 %7828  ;;  %15190 = vpow2.f32 %v7853_v51  ;;  %v7844_v22 = vsub.f32 %v7713_v31, %v7832_v30  ;;  %7867 = vadd.xlane.f32.xlu1 %v7866_v35  ;;  %v7863_v11 = vsel %vm3988_vm3, %v15187_v36, 0.0 }
 0xce7   :  { %v7843_v54 = vsub.f32 %v7665_v63, %v7829_v34  ;;  %7864 = vadd.xlane.f32.xlu0 %v7863_v11 }
 0xce8   :  { %v7857_v49 = vmul.f32 1.442695, %v7844_v22 }
 0xce9   :  { %v7855_v42 = vmul.f32 1.442695, %v7843_v54 }
 0xcea   :  { %15192 = vpow2.f32 %v7857_v49 }
 0xceb   :  { %15194 = vpow2.f32 %v7855_v42 }
 0xcec   :  { %v15189_v33 = vpop.eup %15188 }
 0xced   :  { %v7838_v10 = vpop.xlane.xlu1 %7837  ;;  %v7835_v60 = vpop.xlane.xlu0 %7834  ;;  %v7869_v44 = vsel %vm3988_vm3, %v15189_v33, 0.0 }
 0xcee   :  { %v7846_v3 = vsub.f32 %v7809_v41, %v7838_v10  ;;  %v7845_v39 = vsub.f32 %v7761_v48, %v7835_v60  ;;  %7870 = vadd.xlane.f32.xlu0 %v7869_v44  ;;  %v8052_v44 = vrot.slane %v17000_v47, 2 }
 0xcf0   :  { %v15191_v28 = vpop.eup %15190  ;;  %v7861_v38 = vmul.f32 1.442695, %v7846_v3  ;;  %v7859_v31 = vmul.f32 1.442695, %v7845_v39  ;;  %v8005_v39 = vrot.slane %v16992_v15, 2 }
 0xcf1   :  { %v7872_v63 = vsel %vm3988_vm3, %v15191_v28, 0.0 }
 0xcf2   :  { %15196 = vpow2.f32 %v7861_v38  ;;  %7873 = vadd.xlane.f32.xlu1 %v7872_v63  ;;  %v8057_v63 = vsel %vm4089_vm2, %v8052_v44, 0 }
 0xcf3   :  { %15198 = vpow2.f32 %v7859_v31 }
 0xcf4   :  { %v17813_v29 = vpop.eup %15192 }
 0xcf5   :  { %v15195_v21 = vpop.eup %15194  ;;  %v7878_v51 = vsel %vm3988_vm3, %v17813_v29, 0.0 }
 0xcf6   :  { %7879 = vadd.xlane.f32.xlu1 %v7878_v51  ;;  %v7875_v30 = vsel %vm3988_vm3, %v15195_v21, 0.0 }
 0xcf7   :  { %7876 = vadd.xlane.f32.xlu0 %v7875_v30 }
 0xcfc   :  { %v17818_v48 = vpop.eup %15196 }
 0xcfd   :  { %v17820_v41 = vpop.eup %15198  ;;  %v7884_v34 = vsel %vm3988_vm3, %v17818_v48, 0.0 }
 0xcfe   :  { %7885 = vadd.xlane.f32.xlu1 %v7884_v34  ;;  %v7881_v35 = vsel %vm3988_vm3, %v17820_v41, 0.0 }
 0xcff   :  { %7882 = vadd.xlane.f32.xlu0 %v7881_v35  ;;  %v8099_v35 = vrot.slane %v17009_v37, 2 }
 0xd73   :  { %v7868_v22 = vpop.xlane.xlu1 %7867 }
 0xd74   :  { %15200 = vrcp.f32 %v7868_v22  ;;  %v7865_v54 = vpop.xlane.xlu0 %7864 }
 0xd75   :  { %15202 = vrcp.f32 %v7865_v54 }
 0xd7b   :  { %v7871_v11 = vpop.xlane.xlu0 %7870 }
 0xd7c   :  { %15204 = vrcp.f32 %v7871_v11 }
 0xd7e   :  { %v15201_v49 = vpop.eup %15200 }
 0xd7f   :  { %v15203_v42 = vpop.eup %15202  ;;  %v7896_v10 = vmul.f32 %v15201_v49, %v15185_v53  ;;  %v7874_v60 = vpop.xlane.xlu1 %7873  ;;  %v8010_v53 = vsel %vm4089_vm2, %v8005_v39, 0 }
 0xd80   :  { %v7895_v3 = vmul.f32 %v15203_v42, %v15187_v36  ;;  %15206 = vrcp.f32 %v7874_v60  ;;  %v8146_v42 = vrot.slane %v17022_v23, 2 }
 0xd81   :  { %v7904_v38 = vpack.c.bf16 %v7896_v10, %v7896_v10  ;;  %v8104_v10 = vsel %vm4089_vm2, %v8099_v35, 0 }
 0xd82   :  { %v7903_v31 = vpack.c.bf16 %v7895_v3, %v7895_v3 }
 0xd83   :  { %13890 = vmatmul.mubr.msk.bf16.vlgmr.msra.gmra.mrb[156].mxu1 %vm4085_vm4, %v7904_v38  ;;  %v7880_v51 = vpop.xlane.xlu1 %7879  ;;  %v8193_v38 = vrot.slane %v17037_v57, 2 }
 0xd84   :  { %13900 = vmatpush3.bf16.msra.mxu1 %v8057_v63  ;;  %15208 = vrcp.f32 %v7880_v51  ;;  %13884 = vmatmul.mubr.msk.bf16.vlgmr.msra.gmra.mrb[156].mxu0 %vm4085_vm4, %v7903_v31  ;;  %v7877_v30 = vpop.xlane.xlu0 %7876  ;;  %v8240_v51 = vrot.slane %v17045_v6, 2 }
 0xd85   :  { %13894 = vmatpush3.bf16.msra.mxu0 %v8010_v53  ;;  %15210 = vrcp.f32 %v7877_v30  ;;  %13895 = vmatprep.mubr.msk.bf16.mxu0 %vm15317_vm0, %v18968_v9  ;;  %v8198_v53 = vsel %vm4089_vm2, %v8193_v38, 0  ;;  %v8528_v38 = vrot.slane %v17535_v32, 2 }
 0xd86   :  { %v15205_v36 = vpop.eup %15204  ;;  %13905 = vmatprep.subr.bf16.mxu0 %v18968_v9  ;;  %13901 = vmatprep.mubr.msk.bf16.mxu1 %vm15317_vm0, %v18968_v9 }
 0xd87   :  { %v7897_v34 = vmul.f32 %v15205_v36, %v15189_v33  ;;  %13911 = vmatprep.subr.bf16.mxu1 %v18968_v9 }
 0xd89   :  { %v7905_v22 = vpack.c.bf16 %v7897_v34, %v7897_v34 }
 0xd8a   :  { %v15207_v54 = vpop.eup %15206 }
 0xd8b   :  { %v7898_v11 = vmul.f32 %v15207_v54, %v15191_v28  ;;  %v7886_v49 = vpop.xlane.xlu1 %7885  ;;  %v8151_v28 = vsel %vm4089_vm2, %v8146_v42, 0 }
 0xd8c   :  { %15212 = vrcp.f32 %v7886_v49  ;;  %13896 = vmatmul.mubr.msk.bf16.vlgmr.msra.gmra.mrb[160].mxu0 %vm4085_vm4, %v7905_v22  ;;  %v7883_v60 = vpop.xlane.xlu0 %7882  ;;  %v8288_v22 = vrot.slane %v17452_v4, 2 }
 0xd8d   :  { %13906 = vmatpush3.bf16.msra.mxu0 %v8104_v10  ;;  %15214 = vrcp.f32 %v7883_v60  ;;  %v7906_v44 = vpack.c.bf16 %v7898_v11, %v7898_v11  ;;  %13907 = vmatprep.mubr.msk.bf16.mxu0 %vm15317_vm0, %v18968_v9  ;;  %v8336_v11 = vrot.slane %v17476_v17, 2  ;;  %v8287_v10 = vrot.slane %v17486_v0, 2 }
 0xd8e   :  { %v15209_v33 = vpop.eup %15208  ;;  %13917 = vmatprep.subr.bf16.mxu0 %v18968_v9  ;;  %v8293_v49 = vsel %vm3619_vm1, %v8288_v22, 0  ;;  %v8432_v60 = vrot.slane %v17523_v62, 2  ;;  %v8575_v22 = vrot.slane %v17515_v55, 2 }
 0xd8f   :  { %v15211_v3 = vpop.eup %15210  ;;  %13902 = vmatmul.mubr.msk.bf16.vlgmr.msra.gmra.mrb[160].mxu1 %vm4085_vm4, %v7906_v44  ;;  %v7900_v31 = vmul.f32 %v15209_v33, %v17813_v29  ;;  %v8245_v29 = vsel %vm4089_vm2, %v8240_v51, 0  ;;  %v8335_v33 = vrot.slane %v17521_v46, 2  ;;  %v8533_v51 = vsel %vm3619_vm1, %v8528_v38, 0 }
 0xd90   :  { %v7899_v39 = vmul.f32 %v15211_v3, %v15195_v21  ;;  %13912 = vmatpush3.bf16.msra.mxu1 %v8151_v28  ;;  %13913 = vmatprep.mubr.msk.bf16.mxu1 %vm15317_vm0, %v18968_v9  ;;  %v8437_v3 = vsel %vm3619_vm1, %v8432_v60, 0  ;;  %v8480_v28 = vrot.slane %v17489_v27, 2 }
 0xd91   :  { %13923 = vmatprep.subr.bf16.mxu1 %v18968_v9  ;;  %v7908_v30 = vpack.c.bf16 %v7900_v31, %v7900_v31 }
 0xd92   :  { %v7907_v63 = vpack.c.bf16 %v7899_v39, %v7899_v39  ;;  %v8383_v39 = vrot.slane %v17479_v1, 2  ;;  %v8485_v31 = vsel %vm3619_vm1, %v8480_v28, 0 }
 0xd94   :  { %13908 = vmatmul.mubr.msk.bf16.vlgmr.msra.gmra.mrb[164].mxu0 %vm4085_vm4, %v7907_v63  ;;  %v8431_v63 = vrot.slane %v17527_v56, 2 }
 0xd95   :  { %13918 = vmatpush3.bf16.msra.mxu0 %v8198_v53  ;;  %13919 = vmatprep.mubr.msk.bf16.mxu0 %vm15317_vm0, %v18968_v9  ;;  %v8576_v53 = vrot.slane %v17503_v2, 2 }
 0xd96   :  { %v15213_v21 = vpop.eup %15212  ;;  %13929 = vmatprep.subr.bf16.mxu0 %v18968_v9 }
 0xd97   :  { %v15215_v36 = vpop.eup %15214  ;;  %13914 = vmatmul.mubr.msk.bf16.vlgmr.msra.gmra.mrb[164].mxu1 %vm4085_vm4, %v7908_v30  ;;  %v7902_v35 = vmul.f32 %v15213_v21, %v17818_v48  ;;  %v8341_v48 = vsel %vm3619_vm1, %v8336_v11, 0  ;;  %v8479_v30 = vrot.slane %v17497_v40, 2  ;;  %v8624_v21 = vrot.slane %v17549_v45, 2 }
 0xd98   :  { %v7901_v34 = vmul.f32 %v15215_v36, %v17820_v41  ;;  %13924 = vmatpush3.bf16.msra.mxu1 %v8245_v29  ;;  %13925 = vmatprep.mubr.msk.bf16.mxu1 %vm15317_vm0, %v18968_v9  ;;  %v8384_v41 = vrot.slane %v17467_v7, 2  ;;  %v8581_v36 = vsel %vm3619_vm1, %v8576_v53, 0  ;;  %v8527_v29 = vrot.slane %v17543_v14, 2 }
 0xd99   :  { %13935 = vmatprep.subr.bf16.mxu1 %v18968_v9  ;;  %v7910_v42 = vpack.c.bf16 %v7902_v35, %v7902_v35  ;;  %v8767_v35 = vrot.slane %v17628_v19, 2 }
 0xd9a   :  { %v7909_v54 = vpack.c.bf16 %v7901_v34, %v7901_v34  ;;  %v8389_v44 = vsel %vm3619_vm1, %v8384_v41, 0  ;;  %v8629_v34 = vsel %vm3619_vm1, %v8624_v21, 0 }
 0xd9b   :  { %v8772_v11 = vsel %vm4089_vm2, %v8767_v35, 0 }
 0xd9c   :  { %13920 = vmatmul.mubr.msk.bf16.vlgmr.msra.gmra.mrb[168].mxu0 %vm4085_vm4, %v7909_v54  ;;  %v8814_v54 = vrot.slane %v17626_v8, 2 }
 0xd9d   :  { %13931 = vmatprep.mubr.msk.bf16.mxu0 %vm15317_vm0, %v18968_v9 }
 0xd9e   :  { %13930 = vmatpush3.bf16.xpose.msra.mxu0 %v8293_v49  ;;  %v8623_v49 = vrot.slane %v17561_v20, 2 }
 0xd9f   :  { %13926 = vmatmul.mubr.msk.bf16.vlgmr.msra.gmra.mrb[168].mxu1 %vm4085_vm4, %v7910_v42  ;;  %13941 = vmatprep.subr.bf16.mxu0 %v18968_v9  ;;  %v8819_v42 = vsel %vm4089_vm2, %v8814_v54, 0 }
 0xda0   :  { %13937 = vmatprep.mubr.msk.bf16.mxu1 %vm15317_vm0, %v18968_v9 }
 0xda1   :  { %13936 = vmatpush3.bf16.xpose.msra.mxu1 %v8341_v48 }
 0xda2   :  { %13947 = vmatprep.subr.bf16.mxu1 %v18968_v9 }
 0xda5   :  { %13932 = vmatmul.mubr.msk.bf16.vlgmr.msra.gmra.mrb[172].mxu0 %vm3619_vm1, %v8287_v10 }
 0xda6   :  { %13942 = vmatpush3.bf16.xpose.msra.mxu0 %v8389_v44  ;;  %13943 = vmatprep.mubr.msk.bf16.mxu0 %vm15317_vm0, %v18968_v9 }
 0xda7   :  { %13953 = vmatprep.subr.bf16.mxu0 %v18968_v9 }
 0xda8   :  { %13938 = vmatmul.mubr.msk.bf16.vlgmr.msra.gmra.mrb[172].mxu1 %vm3619_vm1, %v8335_v33 }
 0xda9   :  { %13948 = vmatpush3.bf16.xpose.msra.mxu1 %v8437_v3  ;;  %13949 = vmatprep.mubr.msk.bf16.mxu1 %vm15317_vm0, %v18968_v9 }
 0xdaa   :  { %13959 = vmatprep.subr.bf16.mxu1 %v18968_v9 }
 0xdad   :  { %13944 = vmatmul.mubr.msk.bf16.vlgmr.msra.gmra.mrb[176].mxu0 %vm3619_vm1, %v8383_v39 }
 0xdae   :  { %13954 = vmatpush3.bf16.xpose.msra.mxu0 %v8485_v31  ;;  %13955 = vmatprep.mubr.msk.bf16.mxu0 %vm15317_vm0, %v18968_v9 }
 0xdaf   :  { %13965 = vmatprep.subr.bf16.mxu0 %v18968_v9 }
 0xdb0   :  { %13950 = vmatmul.mubr.msk.bf16.vlgmr.msra.gmra.mrb[176].mxu1 %vm3619_vm1, %v8431_v63 }
 0xdb1   :  { %13960 = vmatpush3.bf16.xpose.msra.mxu1 %v8533_v51  ;;  %13961 = vmatprep.mubr.msk.bf16.mxu1 %vm15317_vm0, %v18968_v9 }
 0xdb2   :  { %13971 = vmatprep.subr.bf16.mxu1 %v18968_v9 }
 0xdb5   :  { %13956 = vmatmul.mubr.msk.bf16.vlgmr.msra.gmra.mrb[180].mxu0 %vm3619_vm1, %v8479_v30 }
 0xdb6   :  { %13966 = vmatpush3.bf16.xpose.msra.mxu0 %v8581_v36  ;;  %13967 = vmatprep.mubr.msk.bf16.mxu0 %vm15317_vm0, %v18968_v9 }
 0xdb7   :  { %13977 = vmatprep.subr.bf16.mxu0 %v18968_v9 }
 0xdb8   :  { %13962 = vmatmul.mubr.msk.bf16.vlgmr.msra.gmra.mrb[180].mxu1 %vm3619_vm1, %v8527_v29 }
 0xdb9   :  { %13972 = vmatpush3.bf16.xpose.msra.mxu1 %v8629_v34  ;;  %13973 = vmatprep.mubr.msk.bf16.mxu1 %vm15317_vm0, %v18968_v9 }
 0xdba   :  { %13983 = vmatprep.subr.bf16.mxu1 %v18968_v9 }
 0xdbd   :  { %13968 = vmatmul.mubr.msk.bf16.vlgmr.msra.gmra.mrb[184].mxu0 %vm3619_vm1, %v8575_v22 }
 0xdbe   :  { %13978 = vmatpush3.bf16.msra.mxu0 %v8772_v11  ;;  %13979 = vmatprep.mubr.msk.bf16.mxu0 %vm15317_vm0, %v18968_v9 }
 0xdbf   :  { %13989 = vmatprep.subr.bf16.mxu0 %v18968_v9 }
 0xdc0   :  { %13974 = vmatmul.mubr.msk.bf16.vlgmr.msra.gmra.mrb[184].mxu1 %vm3619_vm1, %v8623_v49 }
 0xdc1   :  { %13984 = vmatpush3.bf16.msra.mxu1 %v8819_v42  ;;  %13985 = vmatprep.mubr.msk.bf16.mxu1 %vm15317_vm0, %v18968_v9 }
 0xdc2   :  { %13995 = vmatprep.subr.bf16.mxu1 %v18968_v9 }
 0xe56   :  { %v17933_v48 = vpop.f32.mrb[156].mxu1 }
 0xe57   :  { %18985 = vst [vmem:[#allocation50_spill] sm:$0xff] %v17933_v48  ;;  %v17935_v41 = vpop.f32.mrb[156].mxu0  ;;  %v13891_v10 = vpop.f32.mrb[157].mxu1 }
 0xe58   :  { %v13885_v60 = vpop.f32.mrb[157].mxu0  ;;  %v8002_v44 = vpop.f32.mrb[158].mxu1 }
 0xe59   :  { %v7955_v33 = vpop.f32.mrb[158].mxu0  ;;  %v13892_v3 = vpop.f32.mrb[159].mxu1 }
 0xe5a   :  { %v13886_v28 = vpop.f32.mrb[159].mxu0 }
 0xe5f   :  { %v17937_v39 = vpop.f32.mrb[160].mxu0 }
 0xe60   :  { %18986 = vst [vmem:[#allocation51_spill] sm:$0xff] %v17937_v39  ;;  %v13897_v38 = vpop.f32.mrb[161].mxu0 }
 0xe61   :  { %v8049_v31 = vpop.f32.mrb[162].mxu0 }
 0xe62   :  { %v13898_v63 = vpop.f32.mrb[163].mxu0  ;;  %v17939_v51 = vpop.f32.mrb[160].mxu1 }
 0xe63   :  { %18987 = vst [vmem:[#allocation52_spill] sm:$0xff] %v17939_v51  ;;  %v13903_v53 = vpop.f32.mrb[161].mxu1 }
 0xe64   :  { %v8096_v30 = vpop.f32.mrb[162].mxu1 }
 0xe65   :  { %v13904_v21 = vpop.f32.mrb[163].mxu1 }
 0xe67   :  { %v17941_v36 = vpop.f32.mrb[164].mxu0 }
 0xe68   :  { %18988 = vst [vmem:[#allocation53_spill] sm:$0xff] %v17941_v36  ;;  %v13909_v29 = vpop.f32.mrb[165].mxu0 }
 0xe69   :  { %v8143_v34 = vpop.f32.mrb[166].mxu0 }
 0xe6a   :  { %v13910_v35 = vpop.f32.mrb[167].mxu0  ;;  %v17943_v22 = vpop.f32.mrb[164].mxu1 }
 0xe6b   :  { %18989 = vst [vmem:[#allocation54_spill] sm:$0xff] %v17943_v22  ;;  %v13915_v54 = vpop.f32.mrb[165].mxu1 }
 0xe6c   :  { %v8190_v11 = vpop.f32.mrb[166].mxu1 }
 0xe6d   :  { %v13916_v49 = vpop.f32.mrb[167].mxu1 }
 0xe6f   :  { %v17945_v42 = vpop.f32.mrb[168].mxu0 }
 0xe70   :  { %18990 = vst [vmem:[#allocation55_spill] sm:$0xff] %v17945_v42  ;;  %v13921_v10 = vpop.f32.mrb[169].mxu0 }
 0xe71   :  { %v8237_v60 = vpop.f32.mrb[170].mxu0 }
 0xe72   :  { %v13922_v44 = vpop.f32.mrb[171].mxu0  ;;  %v17947_v33 = vpop.f32.mrb[168].mxu1 }
 0xe73   :  { %18991 = vst [vmem:[#allocation56_spill] sm:$0xff] %v17947_v33  ;;  %v13927_v3 = vpop.f32.mrb[169].mxu1 }
 0xe74   :  { %v8284_v28 = vpop.f32.mrb[170].mxu1 }
 0xe75   :  { %v13928_v38 = vpop.f32.mrb[171].mxu1 }
 0xe78   :  { %v8329_v31 = vpop.f32.mrb[172].mxu0 }
 0xe79   :  { %v13933_v63 = vpop.f32.mrb[173].mxu0  ;;  %v8671_v53 = vsel %vm3988_vm3, %v8329_v31, -inf }
 0xe7a   :  { %8672 = vmax.xlane.f32.xlu0 %v8671_v53  ;;  %v8332_v30 = vpop.f32.mrb[174].mxu0 }
 0xe7b   :  { %v13934_v21 = vpop.f32.mrb[175].mxu0  ;;  %v8377_v29 = vpop.f32.mrb[172].mxu1 }
 0xe7c   :  { %v13939_v34 = vpop.f32.mrb[173].mxu1  ;;  %v8674_v35 = vsel %vm3988_vm3, %v8377_v29, -inf }
 0xe7d   :  { %8675 = vmax.xlane.f32.xlu1 %v8674_v35  ;;  %v8380_v54 = vpop.f32.mrb[174].mxu1 }
 0xe7e   :  { %v13940_v11 = vpop.f32.mrb[175].mxu1 }
 0xe80   :  { %v8425_v49 = vpop.f32.mrb[176].mxu0 }
 0xe81   :  { %v13945_v10 = vpop.f32.mrb[177].mxu0  ;;  %v8677_v60 = vsel %vm3988_vm3, %v8425_v49, -inf }
 0xe82   :  { %8678 = vmax.xlane.f32.xlu0 %v8677_v60  ;;  %v8428_v44 = vpop.f32.mrb[178].mxu0 }
 0xe83   :  { %v13946_v3 = vpop.f32.mrb[179].mxu0  ;;  %v8473_v28 = vpop.f32.mrb[176].mxu1 }
 0xe84   :  { %v13951_v38 = vpop.f32.mrb[177].mxu1  ;;  %v8680_v63 = vsel %vm3988_vm3, %v8473_v28, -inf }
 0xe85   :  { %8681 = vmax.xlane.f32.xlu1 %v8680_v63  ;;  %v8476_v53 = vpop.f32.mrb[178].mxu1 }
 0xe86   :  { %v13952_v30 = vpop.f32.mrb[179].mxu1 }
 0xe88   :  { %v8521_v21 = vpop.f32.mrb[180].mxu0 }
 0xe89   :  { %v13957_v34 = vpop.f32.mrb[181].mxu0  ;;  %v8683_v35 = vsel %vm3988_vm3, %v8521_v21, -inf }
 0xe8a   :  { %8684 = vmax.xlane.f32.xlu0 %v8683_v35  ;;  %v8524_v54 = vpop.f32.mrb[182].mxu0 }
 0xe8b   :  { %v13958_v11 = vpop.f32.mrb[183].mxu0  ;;  %v8569_v10 = vpop.f32.mrb[180].mxu1 }
 0xe8c   :  { %v13963_v33 = vpop.f32.mrb[181].mxu1  ;;  %v8686_v60 = vsel %vm3988_vm3, %v8569_v10, -inf }
 0xe8d   :  { %8687 = vmax.xlane.f32.xlu1 %v8686_v60  ;;  %v8572_v44 = vpop.f32.mrb[182].mxu1 }
 0xe8e   :  { %v13964_v3 = vpop.f32.mrb[183].mxu1 }
 0xe90   :  { %v8617_v38 = vpop.f32.mrb[184].mxu0 }
 0xe91   :  { %v13969_v42 = vpop.f32.mrb[185].mxu0  ;;  %v8689_v63 = vsel %vm3988_vm3, %v8617_v38, -inf }
 0xe92   :  { %8690 = vmax.xlane.f32.xlu0 %v8689_v63  ;;  %v8620_v53 = vpop.f32.mrb[186].mxu0 }
 0xe93   :  { %v13970_v30 = vpop.f32.mrb[187].mxu0  ;;  %v8665_v34 = vpop.f32.mrb[184].mxu1 }
 0xe94   :  { %v13975_v22 = vpop.f32.mrb[185].mxu1  ;;  %v8692_v35 = vsel %vm3988_vm3, %v8665_v34, -inf }
 0xe95   :  { %8693 = vmax.xlane.f32.xlu1 %v8692_v35  ;;  %v8668_v54 = vpop.f32.mrb[186].mxu1 }
 0xe96   :  { %v13976_v11 = vpop.f32.mrb[187].mxu1 }
 0xf07   :  { %v8673_v33 = vpop.xlane.xlu0 %8672 }
 0xf08   :  { %v8695_v36 = vsub.f32 %v8329_v31, %v8673_v33 }
 0xf0a   :  { %v8703_v51 = vmul.f32 1.442695, %v8695_v36  ;;  %v8676_v60 = vpop.xlane.xlu1 %8675 }
 0xf0b   :  { %v8696_v44 = vsub.f32 %v8377_v29, %v8676_v60 }
 0xf0c   :  { %15216 = vpow2.f32 %v8703_v51 }
 0xf0d   :  { %v8705_v3 = vmul.f32 1.442695, %v8696_v44 }
 0xf0f   :  { %15218 = vpow2.f32 %v8705_v3  ;;  %v8679_v42 = vpop.xlane.xlu0 %8678 }
 0xf10   :  { %v8697_v39 = vsub.f32 %v8425_v49, %v8679_v42 }
 0xf12   :  { %v8707_v63 = vmul.f32 1.442695, %v8697_v39  ;;  %v8682_v53 = vpop.xlane.xlu1 %8681 }
 0xf13   :  { %v8698_v30 = vsub.f32 %v8473_v28, %v8682_v53 }
 0xf14   :  { %15220 = vpow2.f32 %v8707_v63 }
 0xf15   :  { %v8709_v22 = vmul.f32 1.442695, %v8698_v30 }
 0xf16   :  { %v15217_v48 = vpop.eup %15216 }
 0xf17   :  { %15222 = vpow2.f32 %v8709_v22  ;;  %v8685_v35 = vpop.xlane.xlu0 %8684  ;;  %v8719_v54 = vsel %vm3988_vm3, %v15217_v48, 0.0 }
 0xf18   :  { %v8699_v11 = vsub.f32 %v8521_v21, %v8685_v35  ;;  %8720 = vadd.xlane.f32.xlu0 %v8719_v54 }
 0xf19   :  { %v15219_v36 = vpop.eup %15218 }
 0xf1a   :  { %v8711_v31 = vmul.f32 1.442695, %v8699_v11  ;;  %v8688_v29 = vpop.xlane.xlu1 %8687  ;;  %v8722_v51 = vsel %vm3988_vm3, %v15219_v36, 0.0 }
 0xf1b   :  { %v8700_v33 = vsub.f32 %v8569_v10, %v8688_v29  ;;  %8723 = vadd.xlane.f32.xlu1 %v8722_v51 }
 0xf1c   :  { %15224 = vpow2.f32 %v8711_v31 }
 0xf1d   :  { %v8713_v39 = vmul.f32 1.442695, %v8700_v33 }
 0xf1e   :  { %v15221_v49 = vpop.eup %15220 }
 0xf1f   :  { %15226 = vpow2.f32 %v8713_v39  ;;  %v8691_v28 = vpop.xlane.xlu0 %8690  ;;  %v8725_v60 = vsel %vm3988_vm3, %v15221_v49, 0.0 }
 0xf20   :  { %v8701_v44 = vsub.f32 %v8617_v38, %v8691_v28  ;;  %8726 = vadd.xlane.f32.xlu0 %v8725_v60 }
 0xf21   :  { %v15223_v3 = vpop.eup %15222 }
 0xf22   :  { %v8715_v42 = vmul.f32 1.442695, %v8701_v44  ;;  %v8694_v21 = vpop.xlane.xlu1 %8693  ;;  %v8728_v63 = vsel %vm3988_vm3, %v15223_v3, 0.0  ;;  %v8861_v44 = vrot.slane %v17659_v58, 2 }
 0xf23   :  { %v8702_v53 = vsub.f32 %v8665_v34, %v8694_v21  ;;  %8729 = vadd.xlane.f32.xlu1 %v8728_v63 }
 0xf24   :  { %15228 = vpow2.f32 %v8715_v42 }
 0xf25   :  { %v8717_v30 = vmul.f32 1.442695, %v8702_v53  ;;  %v8908_v53 = vrot.slane %v17663_v50, 2 }
 0xf26   :  { %v17961_v10 = vpop.eup %15224 }
 0xf27   :  { %15230 = vpow2.f32 %v8717_v30  ;;  %v8731_v22 = vsel %vm3988_vm3, %v17961_v10, 0.0  ;;  %v8866_v30 = vsel %vm4089_vm2, %v8861_v44, 0 }
 0xf28   :  { %8732 = vadd.xlane.f32.xlu0 %v8731_v22 }
 0xf29   :  { %v17965_v35 = vpop.eup %15226 }
 0xf2a   :  { %v8734_v38 = vsel %vm3988_vm3, %v17965_v35, 0.0 }
 0xf2b   :  { %8735 = vadd.xlane.f32.xlu1 %v8734_v38 }
 0xf2e   :  { %v17969_v54 = vpop.eup %15228 }
 0xf2f   :  { %v8737_v34 = vsel %vm3988_vm3, %v17969_v54, 0.0 }
 0xf30   :  { %8738 = vadd.xlane.f32.xlu0 %v8737_v34 }
 0xf31   :  { %v17973_v11 = vpop.eup %15230 }
 0xf32   :  { %v8740_v31 = vsel %vm3988_vm3, %v17973_v11, 0.0 }
 0xf33   :  { %8741 = vadd.xlane.f32.xlu1 %v8740_v31 }
 0xfa5   :  { %v8721_v29 = vpop.xlane.xlu0 %8720 }
 0xfa6   :  { %15232 = vrcp.f32 %v8721_v29  ;;  %v8955_v29 = vrot.slane %v17669_v13, 2 }
 0xfa8   :  { %v8724_v51 = vpop.xlane.xlu1 %8723 }
 0xfa9   :  { %15234 = vrcp.f32 %v8724_v51 }
 0xfad   :  { %v8727_v33 = vpop.xlane.xlu0 %8726 }
 0xfae   :  { %15236 = vrcp.f32 %v8727_v33 }
 0xfb0   :  { %v15233_v39 = vpop.eup %15232  ;;  %v8730_v28 = vpop.xlane.xlu1 %8729 }
 0xfb1   :  { %v8751_v60 = vmul.f32 %v15233_v39, %v15217_v48  ;;  %15238 = vrcp.f32 %v8730_v28  ;;  %v9002_v28 = vrot.slane %v17681_v12, 2 }
 0xfb3   :  { %v15235_v42 = vpop.eup %15234  ;;  %v8759_v21 = vpack.c.bf16 %v8751_v60, %v8751_v60  ;;  %v8960_v60 = vsel %vm4089_vm2, %v8955_v29, 0 }
 0xfb4   :  { %v8752_v63 = vmul.f32 %v15235_v42, %v15219_v36  ;;  %v8913_v36 = vsel %vm4089_vm2, %v8908_v53, 0 }
 0xfb5   :  { %13980 = vmatmul.mubr.msk.bf16.vlgmr.msra.gmra.mrb[188].mxu0 %vm4085_vm4, %v8759_v21  ;;  %v8733_v22 = vpop.xlane.xlu0 %8732 }
 0xfb6   :  { %13990 = vmatpush3.bf16.msra.mxu0 %v8866_v30  ;;  %15240 = vrcp.f32 %v8733_v22  ;;  %v8760_v38 = vpack.c.bf16 %v8752_v63, %v8752_v63  ;;  %13991 = vmatprep.mubr.msk.bf16.mxu0 %vm15317_vm0, %v18968_v9  ;;  %v9049_v63 = vrot.slane %v17710_v61, 2 }
 0xfb7   :  { %14001 = vmatprep.subr.bf16.mxu0 %v18968_v9 }
 0xfb8   :  { %v15237_v48 = vpop.eup %15236  ;;  %13986 = vmatmul.mubr.msk.bf16.vlgmr.msra.gmra.mrb[188].mxu1 %vm4085_vm4, %v8760_v38  ;;  %v8736_v34 = vpop.xlane.xlu1 %8735  ;;  %v9096_v38 = vrot.slane %v17695_v5, 2 }
 0xfb9   :  { %v8753_v31 = vmul.f32 %v15237_v48, %v15221_v49  ;;  %13996 = vmatpush3.bf16.msra.mxu1 %v8913_v36  ;;  %15242 = vrcp.f32 %v8736_v34  ;;  %13997 = vmatprep.mubr.msk.bf16.mxu1 %vm15317_vm0, %v18968_v9  ;;  %v9054_v36 = vsel %vm4089_vm2, %v9049_v63, 0  ;;  %v18993_v63 = vld [vmem:[#allocation9_spill] sm:$0xff] }
 0xfba   :  { %14007 = vmatprep.subr.bf16.mxu1 %v18968_v9 }
 0xfbb   :  { %v15239_v51 = vpop.eup %15238  ;;  %v8761_v33 = vpack.c.bf16 %v8753_v31, %v8753_v31  ;;  %v9101_v31 = vsel %vm4089_vm2, %v9096_v38, 0 }
 0xfbc   :  { %v8754_v39 = vmul.f32 %v15239_v51, %v15223_v3  ;;  %v9007_v3 = vsel %vm4089_vm2, %v9002_v28, 0  ;;  %v9192_v28 = vrot.slane %v16730_v18, 3  ;;  %v9143_v18 = vrot.slane %v16750_v25, 3 }
 0xfbd   :  { %13992 = vmatmul.mubr.msk.bf16.vlgmr.msra.gmra.mrb[192].mxu0 %vm4085_vm4, %v8761_v33  ;;  %v8739_v44 = vpop.xlane.xlu0 %8738  ;;  %v9336_v25 = vrot.slane %v16773_v43, 3 }
 0xfbe   :  { %14002 = vmatpush3.bf16.msra.mxu0 %v8960_v60  ;;  %15244 = vrcp.f32 %v8739_v44  ;;  %v8762_v49 = vpack.c.bf16 %v8754_v39, %v8754_v39  ;;  %14003 = vmatprep.mubr.msk.bf16.mxu0 %vm15317_vm0, %v18968_v9 }
 0xfbf   :  { %14013 = vmatprep.subr.bf16.mxu0 %v18968_v9 }
 0xfc0   :  { %v15241_v42 = vpop.eup %15240  ;;  %13998 = vmatmul.mubr.msk.bf16.vlgmr.msra.gmra.mrb[192].mxu1 %vm4085_vm4, %v8762_v49  ;;  %v8742_v21 = vpop.xlane.xlu1 %8741 }
 0xfc1   :  { %v8755_v53 = vmul.f32 %v15241_v42, %v17961_v10  ;;  %14008 = vmatpush3.bf16.msra.mxu1 %v9007_v3  ;;  %15246 = vrcp.f32 %v8742_v21  ;;  %14009 = vmatprep.mubr.msk.bf16.mxu1 %vm15317_vm0, %v18968_v9  ;;  %v9191_v42 = vrot.slane %v16756_v26, 3  ;;  %v18992_v26 = vld [vmem:[#allocation8_spill] sm:$0xff]  ;;  %v9341_v21 = vsel %vm3619_vm1, %v9336_v25, 0 }
 0xfc2   :  { %14019 = vmatprep.subr.bf16.mxu1 %v18968_v9  ;;  %v9384_v3 = vrot.slane %v18992_v26, 3 }
 0xfc3   :  { %v15243_v30 = vpop.eup %15242  ;;  %v8763_v22 = vpack.c.bf16 %v8755_v53, %v8755_v53  ;;  %v9287_v53 = vrot.slane %v18993_v63, 3 }
 0xfc4   :  { %v8756_v48 = vmul.f32 %v15243_v30, %v17965_v35  ;;  %v9144_v35 = vrot.slane %v16727_v16, 3  ;;  %v9197_v16 = vsel %vm3619_vm1, %v9192_v28, 0  ;;  %v9389_v43 = vsel %vm3619_vm1, %v9384_v3, 0  ;;  %v19000_v28 = vld [vmem:[#allocation17_spill] sm:$0xff] }
 0xfc5   :  { %14004 = vmatmul.mubr.msk.bf16.vlgmr.msra.gmra.mrb[196].mxu0 %vm4085_vm4, %v8763_v22  ;;  %v18995_v22 = vld [vmem:[#allocation12_spill] sm:$0xff] }
 0xfc6   :  { %14014 = vmatpush3.bf16.msra.mxu0 %v9054_v36  ;;  %v8764_v34 = vpack.c.bf16 %v8756_v48, %v8756_v48  ;;  %14015 = vmatprep.mubr.msk.bf16.mxu0 %vm15317_vm0, %v18968_v9  ;;  %v9149_v60 = vsel %vm3619_vm1, %v9144_v35, 0  ;;  %v9335_v38 = vrot.slane %v18995_v22, 3  ;;  %v18996_v48 = vld [vmem:[#allocation11_spill] sm:$0xff]  ;;  %v18998_v35 = vld [vmem:[#allocation16_spill] sm:$0xff] }
 0xfc7   :  { %14025 = vmatprep.subr.bf16.mxu0 %v18968_v9  ;;  %v9480_v36 = vrot.slane %v18996_v48, 3 }
 0xfc8   :  { %v15245_v10 = vpop.eup %15244  ;;  %14010 = vmatmul.mubr.msk.bf16.vlgmr.msra.gmra.mrb[196].mxu1 %vm4085_vm4, %v8764_v34 }
 0xfc9   :  { %v8757_v29 = vmul.f32 %v15245_v10, %v17969_v54  ;;  %14020 = vmatpush3.bf16.msra.mxu1 %v9101_v31  ;;  %14021 = vmatprep.mubr.msk.bf16.mxu1 %vm15317_vm0, %v18968_v9  ;;  %v9240_v54 = vrot.slane %v16740_v24, 3  ;;  %v18997_v10 = vld [vmem:[#allocation13_spill] sm:$0xff] }
 0xfca   :  { %14031 = vmatprep.subr.bf16.mxu1 %v18968_v9  ;;  %v9383_v31 = vrot.slane %v18997_v10, 3 }
 0xfcb   :  { %v15247_v51 = vpop.eup %15246  ;;  %v8765_v33 = vpack.c.bf16 %v8757_v29, %v8757_v29  ;;  %v9245_v49 = vsel %vm3619_vm1, %v9240_v54, 0  ;;  %v9485_v29 = vsel %vm3619_vm1, %v9480_v36, 0 }
 0xfcc   :  { %v8758_v39 = vmul.f32 %v15247_v51, %v17973_v11  ;;  %v9288_v11 = vrot.slane %v16744_v59, 3  ;;  %v9239_v59 = vrot.slane %v16780_v52, 3  ;;  %v18994_v52 = vld [vmem:[#allocation10_spill] sm:$0xff]  ;;  %v9623_v51 = vrot.slane %v18998_v35, 3 }
 0xfcd   :  { %14016 = vmatmul.mubr.msk.bf16.vlgmr.msra.gmra.mrb[200].mxu0 %vm4085_vm4, %v8765_v33  ;;  %v9432_v30 = vrot.slane %v18994_v52, 3  ;;  %v18999_v33 = vld [vmem:[#allocation14_spill] sm:$0xff] }
 0xfce   :  { %v8766_v44 = vpack.c.bf16 %v8758_v39, %v8758_v39  ;;  %14027 = vmatprep.mubr.msk.bf16.mxu0 %vm15317_vm0, %v18968_v9  ;;  %v9293_v24 = vsel %vm3619_vm1, %v9288_v11, 0  ;;  %v9431_v39 = vrot.slane %v18999_v33, 3 }
 0xfcf   :  { %14026 = vmatpush3.bf16.xpose.msra.mxu0 %v9149_v60  ;;  %v9437_v34 = vsel %vm3619_vm1, %v9432_v30, 0  ;;  %v9670_v60 = vrot.slane %v19000_v28, 3 }
 0xfd0   :  { %14022 = vmatmul.mubr.msk.bf16.vlgmr.msra.gmra.mrb[200].mxu1 %vm4085_vm4, %v8766_v44  ;;  %14037 = vmatprep.subr.bf16.mxu0 %v18968_v9  ;;  %v9628_v44 = vsel %vm4089_vm2, %v9623_v51, 0 }
 0xfd1   :  { %14033 = vmatprep.mubr.msk.bf16.mxu1 %vm15317_vm0, %v18968_v9 }
 0xfd2   :  { %14032 = vmatpush3.bf16.xpose.msra.mxu1 %v9197_v16  ;;  %v19001_v16 = vld [vmem:[#allocation15_spill] sm:$0xff] }
 0xfd3   :  { %14043 = vmatprep.subr.bf16.mxu1 %v18968_v9  ;;  %v9479_v54 = vrot.slane %v19001_v16, 3 }
 0xfd6   :  { %14028 = vmatmul.mubr.msk.bf16.vlgmr.msra.gmra.mrb[204].mxu0 %vm3619_vm1, %v9143_v18  ;;  %v9675_v18 = vsel %vm4089_vm2, %v9670_v60, 0 }
 0xfd7   :  { %14038 = vmatpush3.bf16.xpose.msra.mxu0 %v9245_v49  ;;  %14039 = vmatprep.mubr.msk.bf16.mxu0 %vm15317_vm0, %v18968_v9 }
 0xfd8   :  { %14049 = vmatprep.subr.bf16.mxu0 %v18968_v9 }
 0xfd9   :  { %14034 = vmatmul.mubr.msk.bf16.vlgmr.msra.gmra.mrb[204].mxu1 %vm3619_vm1, %v9191_v42 }
 0xfda   :  { %14044 = vmatpush3.bf16.xpose.msra.mxu1 %v9293_v24  ;;  %14045 = vmatprep.mubr.msk.bf16.mxu1 %vm15317_vm0, %v18968_v9 }
 0xfdb   :  { %14055 = vmatprep.subr.bf16.mxu1 %v18968_v9 }
 0xfde   :  { %14040 = vmatmul.mubr.msk.bf16.vlgmr.msra.gmra.mrb[208].mxu0 %vm3619_vm1, %v9239_v59 }
 0xfdf   :  { %14050 = vmatpush3.bf16.xpose.msra.mxu0 %v9341_v21  ;;  %14051 = vmatprep.mubr.msk.bf16.mxu0 %vm15317_vm0, %v18968_v9 }
 0xfe0   :  { %14061 = vmatprep.subr.bf16.mxu0 %v18968_v9 }
 0xfe1   :  { %14046 = vmatmul.mubr.msk.bf16.vlgmr.msra.gmra.mrb[208].mxu1 %vm3619_vm1, %v9287_v53 }
 0xfe2   :  { %14056 = vmatpush3.bf16.xpose.msra.mxu1 %v9389_v43  ;;  %14057 = vmatprep.mubr.msk.bf16.mxu1 %vm15317_vm0, %v18968_v9 }
 0xfe3   :  { %14067 = vmatprep.subr.bf16.mxu1 %v18968_v9 }
 0xfe6   :  { %14052 = vmatmul.mubr.msk.bf16.vlgmr.msra.gmra.mrb[212].mxu0 %vm3619_vm1, %v9335_v38 }
 0xfe7   :  { %14062 = vmatpush3.bf16.xpose.msra.mxu0 %v9437_v34  ;;  %14063 = vmatprep.mubr.msk.bf16.mxu0 %vm15317_vm0, %v18968_v9 }
 0xfe8   :  { %14073 = vmatprep.subr.bf16.mxu0 %v18968_v9 }
 0xfe9   :  { %14058 = vmatmul.mubr.msk.bf16.vlgmr.msra.gmra.mrb[212].mxu1 %vm3619_vm1, %v9383_v31 }
 0xfea   :  { %14068 = vmatpush3.bf16.xpose.msra.mxu1 %v9485_v29  ;;  %14069 = vmatprep.mubr.msk.bf16.mxu1 %vm15317_vm0, %v18968_v9 }
 0xfeb   :  { %14079 = vmatprep.subr.bf16.mxu1 %v18968_v9 }
 0xfee   :  { %14064 = vmatmul.mubr.msk.bf16.vlgmr.msra.gmra.mrb[216].mxu0 %vm3619_vm1, %v9431_v39 }
 0xfef   :  { %14074 = vmatpush3.bf16.msra.mxu0 %v9628_v44  ;;  %14075 = vmatprep.mubr.msk.bf16.mxu0 %vm15317_vm0, %v18968_v9 }
 0xff0   :  { %14085 = vmatprep.subr.bf16.mxu0 %v18968_v9 }
 0xff1   :  { %14070 = vmatmul.mubr.msk.bf16.vlgmr.msra.gmra.mrb[216].mxu1 %vm3619_vm1, %v9479_v54 }
 0xff2   :  { %14080 = vmatpush3.bf16.msra.mxu1 %v9675_v18  ;;  %14081 = vmatprep.mubr.msk.bf16.mxu1 %vm15317_vm0, %v18968_v9 }
 0xff3   :  { %14091 = vmatprep.subr.bf16.mxu1 %v18968_v9 }
0x1088   :  { %v18085_v11 = vpop.f32.mrb[188].mxu0 }
0x1089   :  { %v13981_v49 = vpop.f32.mrb[189].mxu0 }
0x108a   :  { %v8811_v42 = vpop.f32.mrb[190].mxu0 }
0x108b   :  { %v13982_v24 = vpop.f32.mrb[191].mxu0  ;;  %v18087_v25 = vpop.f32.mrb[188].mxu1 }
0x108c   :  { %v13987_v59 = vpop.f32.mrb[189].mxu1 }
0x108d   :  { %v8858_v26 = vpop.f32.mrb[190].mxu1 }
0x108e   :  { %v13988_v3 = vpop.f32.mrb[191].mxu1 }
0x1090   :  { %v18089_v21 = vpop.f32.mrb[192].mxu0 }
0x1091   :  { %v13993_v63 = vpop.f32.mrb[193].mxu0 }
0x1092   :  { %v8905_v53 = vpop.f32.mrb[194].mxu0 }
0x1093   :  { %v13994_v43 = vpop.f32.mrb[195].mxu0  ;;  %v18091_v52 = vpop.f32.mrb[192].mxu1 }
0x1094   :  { %v13999_v30 = vpop.f32.mrb[193].mxu1 }
0x1095   :  { %v8952_v22 = vpop.f32.mrb[194].mxu1 }
0x1096   :  { %v14000_v38 = vpop.f32.mrb[195].mxu1 }
0x1098   :  { %v18093_v48 = vpop.f32.mrb[196].mxu0 }
0x1099   :  { %v14005_v36 = vpop.f32.mrb[197].mxu0 }
0x109a   :  { %v8999_v34 = vpop.f32.mrb[198].mxu0 }
0x109b   :  { %v14006_v10 = vpop.f32.mrb[199].mxu0  ;;  %v18095_v31 = vpop.f32.mrb[196].mxu1 }
0x109c   :  { %v14011_v29 = vpop.f32.mrb[197].mxu1 }
0x109d   :  { %v9046_v35 = vpop.f32.mrb[198].mxu1 }
0x109e   :  { %v14012_v51 = vpop.f32.mrb[199].mxu1 }
0x10a0   :  { %v18097_v33 = vpop.f32.mrb[200].mxu0 }
0x10a1   :  { %v14017_v39 = vpop.f32.mrb[201].mxu0 }
0x10a2   :  { %v9093_v28 = vpop.f32.mrb[202].mxu0 }
0x10a3   :  { %v14018_v60 = vpop.f32.mrb[203].mxu0  ;;  %v18099_v44 = vpop.f32.mrb[200].mxu1 }
0x10a4   :  { %v14023_v16 = vpop.f32.mrb[201].mxu1 }
0x10a5   :  { %v9140_v54 = vpop.f32.mrb[202].mxu1 }
0x10a6   :  { %v14024_v18 = vpop.f32.mrb[203].mxu1 }
0x10a9   :  { %v9185_v49 = vpop.f32.mrb[204].mxu0 }
0x10aa   :  { %v14029_v42 = vpop.f32.mrb[205].mxu0  ;;  %v9527_v24 = vsel %vm3988_vm3, %v9185_v49, -inf }
0x10ab   :  { %9528 = vmax.xlane.f32.xlu0 %v9527_v24  ;;  %v9188_v59 = vpop.f32.mrb[206].mxu0 }
0x10ac   :  { %v14030_v26 = vpop.f32.mrb[207].mxu0  ;;  %v9233_v3 = vpop.f32.mrb[204].mxu1 }
0x10ad   :  { %v14035_v63 = vpop.f32.mrb[205].mxu1  ;;  %v9530_v53 = vsel %vm3988_vm3, %v9233_v3, -inf }
0x10ae   :  { %9531 = vmax.xlane.f32.xlu1 %v9530_v53  ;;  %v9236_v43 = vpop.f32.mrb[206].mxu1 }
0x10af   :  { %v14036_v30 = vpop.f32.mrb[207].mxu1 }
0x10b1   :  { %v9281_v22 = vpop.f32.mrb[208].mxu0 }
0x10b2   :  { %v14041_v38 = vpop.f32.mrb[209].mxu0  ;;  %v9533_v36 = vsel %vm3988_vm3, %v9281_v22, -inf }
0x10b3   :  { %9534 = vmax.xlane.f32.xlu0 %v9533_v36  ;;  %v9284_v34 = vpop.f32.mrb[210].mxu0 }
0x10b4   :  { %v14042_v10 = vpop.f32.mrb[211].mxu0  ;;  %v9329_v29 = vpop.f32.mrb[208].mxu1 }
0x10b5   :  { %v14047_v35 = vpop.f32.mrb[209].mxu1  ;;  %v9536_v51 = vsel %vm3988_vm3, %v9329_v29, -inf }
0x10b6   :  { %9537 = vmax.xlane.f32.xlu1 %v9536_v51  ;;  %v9332_v39 = vpop.f32.mrb[210].mxu1 }
0x10b7   :  { %v14048_v28 = vpop.f32.mrb[211].mxu1 }
0x10b9   :  { %v9377_v60 = vpop.f32.mrb[212].mxu0 }
0x10ba   :  { %v14053_v16 = vpop.f32.mrb[213].mxu0  ;;  %v9539_v54 = vsel %vm3988_vm3, %v9377_v60, -inf }
0x10bb   :  { %9540 = vmax.xlane.f32.xlu0 %v9539_v54  ;;  %v9380_v18 = vpop.f32.mrb[214].mxu0 }
0x10bc   :  { %v14054_v42 = vpop.f32.mrb[215].mxu0  ;;  %v9425_v24 = vpop.f32.mrb[212].mxu1 }
0x10bd   :  { %v14059_v59 = vpop.f32.mrb[213].mxu1  ;;  %v9542_v26 = vsel %vm3988_vm3, %v9425_v24, -inf }
0x10be   :  { %9543 = vmax.xlane.f32.xlu1 %v9542_v26  ;;  %v9428_v63 = vpop.f32.mrb[214].mxu1 }
0x10bf   :  { %v14060_v53 = vpop.f32.mrb[215].mxu1 }
0x10c1   :  { %v9473_v43 = vpop.f32.mrb[216].mxu0 }
0x10c2   :  { %v14065_v30 = vpop.f32.mrb[217].mxu0  ;;  %v9545_v38 = vsel %vm3988_vm3, %v9473_v43, -inf }
0x10c3   :  { %9546 = vmax.xlane.f32.xlu0 %v9545_v38  ;;  %v9476_v36 = vpop.f32.mrb[218].mxu0 }
0x10c4   :  { %v14066_v34 = vpop.f32.mrb[219].mxu0  ;;  %v9521_v10 = vpop.f32.mrb[216].mxu1 }
0x10c5   :  { %v14071_v35 = vpop.f32.mrb[217].mxu1  ;;  %v9548_v51 = vsel %vm3988_vm3, %v9521_v10, -inf }
0x10c6   :  { %9549 = vmax.xlane.f32.xlu1 %v9548_v51  ;;  %v9524_v39 = vpop.f32.mrb[218].mxu1 }
0x10c7   :  { %v14072_v28 = vpop.f32.mrb[219].mxu1 }
0x1138   :  { %v9529_v16 = vpop.xlane.xlu0 %9528 }
0x1139   :  { %v9551_v54 = vsub.f32 %v9185_v49, %v9529_v16 }
0x113b   :  { %v9559_v18 = vmul.f32 1.442695, %v9551_v54  ;;  %v9532_v42 = vpop.xlane.xlu1 %9531 }
0x113c   :  { %v9552_v59 = vsub.f32 %v9233_v3, %v9532_v42 }
0x113d   :  { %15248 = vpow2.f32 %v9559_v18 }
0x113e   :  { %v9561_v26 = vmul.f32 1.442695, %v9552_v59 }
0x1140   :  { %15250 = vpow2.f32 %v9561_v26  ;;  %v9535_v63 = vpop.xlane.xlu0 %9534 }
0x1141   :  { %v9553_v53 = vsub.f32 %v9281_v22, %v9535_v63 }
0x1143   :  { %v9563_v30 = vmul.f32 1.442695, %v9553_v53  ;;  %v9538_v38 = vpop.xlane.xlu1 %9537 }
0x1144   :  { %v9554_v36 = vsub.f32 %v9329_v29, %v9538_v38 }
0x1145   :  { %15252 = vpow2.f32 %v9563_v30 }
0x1146   :  { %v9565_v34 = vmul.f32 1.442695, %v9554_v36 }
0x1147   :  { %v15249_v35 = vpop.eup %15248 }
0x1148   :  { %15254 = vpow2.f32 %v9565_v34  ;;  %v9541_v51 = vpop.xlane.xlu0 %9540  ;;  %v9575_v39 = vsel %vm3988_vm3, %v15249_v35, 0.0 }
0x1149   :  { %v9555_v28 = vsub.f32 %v9377_v60, %v9541_v51  ;;  %9576 = vadd.xlane.f32.xlu0 %v9575_v39 }
0x114a   :  { %v15251_v49 = vpop.eup %15250 }
0x114b   :  { %v9567_v16 = vmul.f32 1.442695, %v9555_v28  ;;  %v9544_v3 = vpop.xlane.xlu1 %9543  ;;  %v9578_v54 = vsel %vm3988_vm3, %v15251_v49, 0.0 }
0x114c   :  { %v9556_v18 = vsub.f32 %v9425_v24, %v9544_v3  ;;  %9579 = vadd.xlane.f32.xlu1 %v9578_v54 }
0x114d   :  { %15256 = vpow2.f32 %v9567_v16 }
0x114e   :  { %v9569_v22 = vmul.f32 1.442695, %v9556_v18 }
0x114f   :  { %v15253_v42 = vpop.eup %15252 }
0x1150   :  { %15258 = vpow2.f32 %v9569_v22  ;;  %v9547_v29 = vpop.xlane.xlu0 %9546  ;;  %v9581_v59 = vsel %vm3988_vm3, %v15253_v42, 0.0 }
0x1151   :  { %v9557_v26 = vsub.f32 %v9473_v43, %v9547_v29  ;;  %9582 = vadd.xlane.f32.xlu0 %v9581_v59 }
0x1152   :  { %v15255_v63 = vpop.eup %15254 }
0x1153   :  { %v9571_v53 = vmul.f32 1.442695, %v9557_v26  ;;  %v9550_v60 = vpop.xlane.xlu1 %9549  ;;  %v9584_v30 = vsel %vm3988_vm3, %v15255_v63, 0.0  ;;  %v9717_v26 = vrot.slane %v16992_v15, 3 }
0x1154   :  { %v9558_v38 = vsub.f32 %v9521_v10, %v9550_v60  ;;  %9585 = vadd.xlane.f32.xlu1 %v9584_v30 }
0x1155   :  { %15260 = vpow2.f32 %v9571_v53 }
0x1156   :  { %v9573_v36 = vmul.f32 1.442695, %v9558_v38  ;;  %v9764_v38 = vrot.slane %v17000_v47, 3 }
0x1157   :  { %v15257_v24 = vpop.eup %15256 }
0x1158   :  { %15262 = vpow2.f32 %v9573_v36  ;;  %v9587_v34 = vsel %vm3988_vm3, %v15257_v24, 0.0  ;;  %v9722_v36 = vsel %vm4089_vm2, %v9717_v26, 0  ;;  %v9769_v15 = vsel %vm4089_vm2, %v9764_v38, 0 }
0x1159   :  { %9588 = vadd.xlane.f32.xlu0 %v9587_v34  ;;  %v9905_v26 = vrot.slane %v17037_v57, 3  ;;  %v9952_v38 = vrot.slane %v17045_v6, 3  ;;  %v10000_v6 = vrot.slane %v17452_v4, 3 }
0x115a   :  { %v18114_v51 = vpop.eup %15258 }
0x115b   :  { %v9590_v43 = vsel %vm3988_vm3, %v18114_v51, 0.0 }
0x115c   :  { %9591 = vadd.xlane.f32.xlu1 %v9590_v43 }
0x115f   :  { %v18118_v39 = vpop.eup %15260 }
0x1160   :  { %v9593_v28 = vsel %vm3988_vm3, %v18118_v39, 0.0 }
0x1161   :  { %9594 = vadd.xlane.f32.xlu0 %v9593_v28  ;;  %v9811_v28 = vrot.slane %v17009_v37, 3 }
0x1162   :  { %v18122_v10 = vpop.eup %15262 }
0x1163   :  { %v9596_v16 = vsel %vm3988_vm3, %v18122_v10, 0.0 }
0x1164   :  { %9597 = vadd.xlane.f32.xlu1 %v9596_v16 }
0x11d6   :  { %v9577_v3 = vpop.xlane.xlu0 %9576 }
0x11d7   :  { %15264 = vrcp.f32 %v9577_v3 }
0x11d9   :  { %v9580_v54 = vpop.xlane.xlu1 %9579 }
0x11da   :  { %15266 = vrcp.f32 %v9580_v54 }
0x11de   :  { %v9583_v18 = vpop.xlane.xlu0 %9582 }
0x11df   :  { %15268 = vrcp.f32 %v9583_v18  ;;  %v9858_v18 = vrot.slane %v17022_v23, 3 }
0x11e1   :  { %v15265_v22 = vpop.eup %15264  ;;  %v9586_v29 = vpop.xlane.xlu1 %9585 }
0x11e2   :  { %v9607_v59 = vmul.f32 %v15265_v22, %v15249_v35  ;;  %15270 = vrcp.f32 %v9586_v29  ;;  %v9816_v22 = vsel %vm4089_vm2, %v9811_v28, 0 }
0x11e4   :  { %v15267_v53 = vpop.eup %15266  ;;  %v9615_v60 = vpack.c.bf16 %v9607_v59, %v9607_v59 }
0x11e5   :  { %v9608_v30 = vmul.f32 %v15267_v53, %v15251_v49 }
0x11e6   :  { %14076 = vmatmul.mubr.msk.bf16.vlgmr.msra.gmra.mrb[220].mxu0 %vm4085_vm4, %v9615_v60  ;;  %v9589_v34 = vpop.xlane.xlu0 %9588 }
0x11e7   :  { %14086 = vmatpush3.bf16.msra.mxu0 %v9722_v36  ;;  %15272 = vrcp.f32 %v9589_v34  ;;  %v9616_v43 = vpack.c.bf16 %v9608_v30, %v9608_v30  ;;  %14087 = vmatprep.mubr.msk.bf16.mxu0 %vm15317_vm0, %v18968_v9  ;;  %v9910_v36 = vsel %vm4089_vm2, %v9905_v26, 0  ;;  %v9957_v34 = vsel %vm4089_vm2, %v9952_v38, 0 }
0x11e8   :  { %14097 = vmatprep.subr.bf16.mxu0 %v18968_v9 }
0x11e9   :  { %v15269_v35 = vpop.eup %15268  ;;  %14082 = vmatmul.mubr.msk.bf16.vlgmr.msra.gmra.mrb[220].mxu1 %vm4085_vm4, %v9616_v43  ;;  %v9592_v49 = vpop.xlane.xlu1 %9591 }
0x11ea   :  { %v9609_v47 = vmul.f32 %v15269_v35, %v15253_v42  ;;  %14092 = vmatpush3.bf16.msra.mxu1 %v9769_v15  ;;  %15274 = vrcp.f32 %v9592_v49  ;;  %14093 = vmatprep.mubr.msk.bf16.mxu1 %vm15317_vm0, %v18968_v9  ;;  %v10048_v49 = vrot.slane %v17476_v17, 3  ;;  %v9999_v17 = vrot.slane %v17486_v0, 3 }
0x11eb   :  { %14103 = vmatprep.subr.bf16.mxu1 %v18968_v9  ;;  %v10192_v0 = vrot.slane %v17489_v27, 3 }
0x11ec   :  { %v15271_v16 = vpop.eup %15270  ;;  %v9617_v3 = vpack.c.bf16 %v9609_v47, %v9609_v47  ;;  %v10005_v47 = vsel %vm3619_vm1, %v10000_v6, 0  ;;  %v10053_v4 = vsel %vm3619_vm1, %v10048_v49, 0 }
0x11ed   :  { %v9610_v54 = vmul.f32 %v15271_v16, %v15255_v63  ;;  %v9863_v63 = vsel %vm4089_vm2, %v9858_v18, 0  ;;  %v10143_v18 = vrot.slane %v17527_v56, 3  ;;  %v10191_v56 = vrot.slane %v17497_v40, 3 }
0x11ee   :  { %14088 = vmatmul.mubr.msk.bf16.vlgmr.msra.gmra.mrb[224].mxu0 %vm4085_vm4, %v9617_v3  ;;  %v9595_v29 = vpop.xlane.xlu0 %9594  ;;  %v10047_v3 = vrot.slane %v17521_v46, 3  ;;  %v10095_v46 = vrot.slane %v17479_v1, 3  ;;  %v10288_v1 = vrot.slane %v17503_v2, 3  ;;  %v10479_v40 = vrot.slane %v17628_v19, 3 }
0x11ef   :  { %14098 = vmatpush3.bf16.msra.mxu0 %v9816_v22  ;;  %15276 = vrcp.f32 %v9595_v29  ;;  %v9618_v42 = vpack.c.bf16 %v9610_v54, %v9610_v54  ;;  %14099 = vmatprep.mubr.msk.bf16.mxu0 %vm15317_vm0, %v18968_v9  ;;  %v10197_v54 = vsel %vm3619_vm1, %v10192_v0, 0  ;;  %v10239_v29 = vrot.slane %v17543_v14, 3 }
0x11f0   :  { %14109 = vmatprep.subr.bf16.mxu0 %v18968_v9  ;;  %v10293_v22 = vsel %vm3619_vm1, %v10288_v1, 0  ;;  %v10287_v14 = vrot.slane %v17515_v55, 3 }
0x11f1   :  { %v15273_v37 = vpop.eup %15272  ;;  %14094 = vmatmul.mubr.msk.bf16.vlgmr.msra.gmra.mrb[224].mxu1 %vm4085_vm4, %v9618_v42  ;;  %v9598_v59 = vpop.xlane.xlu1 %9597  ;;  %v10484_v42 = vsel %vm4089_vm2, %v10479_v40, 0 }
0x11f2   :  { %v9611_v23 = vmul.f32 %v15273_v37, %v15257_v24  ;;  %14104 = vmatpush3.bf16.msra.mxu1 %v9863_v63  ;;  %15278 = vrcp.f32 %v9598_v59  ;;  %14105 = vmatprep.mubr.msk.bf16.mxu1 %vm15317_vm0, %v18968_v9  ;;  %v10335_v37 = vrot.slane %v17561_v20, 3 }
0x11f3   :  { %14115 = vmatprep.subr.bf16.mxu1 %v18968_v9 }
0x11f4   :  { %v15275_v53 = vpop.eup %15274  ;;  %v9619_v60 = vpack.c.bf16 %v9611_v23, %v9611_v23 }
0x11f5   :  { %v9612_v30 = vmul.f32 %v15275_v53, %v18114_v51 }
0x11f6   :  { %14100 = vmatmul.mubr.msk.bf16.vlgmr.msra.gmra.mrb[228].mxu0 %vm4085_vm4, %v9619_v60 }
0x11f7   :  { %14110 = vmatpush3.bf16.msra.mxu0 %v9910_v36  ;;  %v9620_v24 = vpack.c.bf16 %v9612_v30, %v9612_v30  ;;  %14111 = vmatprep.mubr.msk.bf16.mxu0 %vm15317_vm0, %v18968_v9 }
0x11f8   :  { %14121 = vmatprep.subr.bf16.mxu0 %v18968_v9 }
0x11f9   :  { %v15277_v57 = vpop.eup %15276  ;;  %14106 = vmatmul.mubr.msk.bf16.vlgmr.msra.gmra.mrb[228].mxu1 %vm4085_vm4, %v9620_v24 }
0x11fa   :  { %v9613_v51 = vmul.f32 %v15277_v57, %v18118_v39  ;;  %14116 = vmatpush3.bf16.msra.mxu1 %v9957_v34  ;;  %14117 = vmatprep.mubr.msk.bf16.mxu1 %vm15317_vm0, %v18968_v9  ;;  %v10096_v39 = vrot.slane %v17467_v7, 3 }
0x11fb   :  { %14127 = vmatprep.subr.bf16.mxu1 %v18968_v9 }
0x11fc   :  { %v15279_v43 = vpop.eup %15278  ;;  %v9621_v35 = vpack.c.bf16 %v9613_v51, %v9613_v51  ;;  %v10101_v16 = vsel %vm3619_vm1, %v10096_v39, 0 }
0x11fd   :  { %v9614_v15 = vmul.f32 %v15279_v43, %v18122_v10  ;;  %v10144_v10 = vrot.slane %v17523_v62, 3  ;;  %v10240_v62 = vrot.slane %v17535_v32, 3  ;;  %v10336_v32 = vrot.slane %v17549_v45, 3 }
0x11fe   :  { %14112 = vmatmul.mubr.msk.bf16.vlgmr.msra.gmra.mrb[232].mxu0 %vm4085_vm4, %v9621_v35  ;;  %v10526_v45 = vrot.slane %v17626_v8, 3 }
0x11ff   :  { %v9622_v28 = vpack.c.bf16 %v9614_v15, %v9614_v15  ;;  %14123 = vmatprep.mubr.msk.bf16.mxu0 %vm15317_vm0, %v18968_v9  ;;  %v10149_v7 = vsel %vm3619_vm1, %v10144_v10, 0  ;;  %v10245_v27 = vsel %vm3619_vm1, %v10240_v62, 0  ;;  %v10341_v2 = vsel %vm3619_vm1, %v10336_v32, 0 }
0x1200   :  { %14122 = vmatpush3.bf16.xpose.msra.mxu0 %v10005_v47  ;;  %v10531_v19 = vsel %vm4089_vm2, %v10526_v45, 0 }
0x1201   :  { %14118 = vmatmul.mubr.msk.bf16.vlgmr.msra.gmra.mrb[232].mxu1 %vm4085_vm4, %v9622_v28  ;;  %14133 = vmatprep.subr.bf16.mxu0 %v18968_v9 }
0x1202   :  { %14129 = vmatprep.mubr.msk.bf16.mxu1 %vm15317_vm0, %v18968_v9 }
0x1203   :  { %14128 = vmatpush3.bf16.xpose.msra.mxu1 %v10053_v4 }
0x1204   :  { %14139 = vmatprep.subr.bf16.mxu1 %v18968_v9 }
0x1207   :  { %14124 = vmatmul.mubr.msk.bf16.vlgmr.msra.gmra.mrb[236].mxu0 %vm3619_vm1, %v9999_v17 }
0x1208   :  { %14134 = vmatpush3.bf16.xpose.msra.mxu0 %v10101_v16  ;;  %14135 = vmatprep.mubr.msk.bf16.mxu0 %vm15317_vm0, %v18968_v9 }
0x1209   :  { %14145 = vmatprep.subr.bf16.mxu0 %v18968_v9 }
0x120a   :  { %14130 = vmatmul.mubr.msk.bf16.vlgmr.msra.gmra.mrb[236].mxu1 %vm3619_vm1, %v10047_v3 }
0x120b   :  { %14140 = vmatpush3.bf16.xpose.msra.mxu1 %v10149_v7  ;;  %14141 = vmatprep.mubr.msk.bf16.mxu1 %vm15317_vm0, %v18968_v9 }
0x120c   :  { %14151 = vmatprep.subr.bf16.mxu1 %v18968_v9 }
0x120f   :  { %14136 = vmatmul.mubr.msk.bf16.vlgmr.msra.gmra.mrb[240].mxu0 %vm3619_vm1, %v10095_v46 }
0x1210   :  { %14146 = vmatpush3.bf16.xpose.msra.mxu0 %v10197_v54  ;;  %14147 = vmatprep.mubr.msk.bf16.mxu0 %vm15317_vm0, %v18968_v9 }
0x1211   :  { %14157 = vmatprep.subr.bf16.mxu0 %v18968_v9 }
0x1212   :  { %14142 = vmatmul.mubr.msk.bf16.vlgmr.msra.gmra.mrb[240].mxu1 %vm3619_vm1, %v10143_v18 }
0x1213   :  { %14152 = vmatpush3.bf16.xpose.msra.mxu1 %v10245_v27  ;;  %14153 = vmatprep.mubr.msk.bf16.mxu1 %vm15317_vm0, %v18968_v9 }
0x1214   :  { %14163 = vmatprep.subr.bf16.mxu1 %v18968_v9 }
0x1217   :  { %14148 = vmatmul.mubr.msk.bf16.vlgmr.msra.gmra.mrb[244].mxu0 %vm3619_vm1, %v10191_v56 }
0x1218   :  { %14158 = vmatpush3.bf16.xpose.msra.mxu0 %v10293_v22  ;;  %14159 = vmatprep.mubr.msk.bf16.mxu0 %vm15317_vm0, %v18968_v9 }
0x1219   :  { %14169 = vmatprep.subr.bf16.mxu0 %v18968_v9 }
0x121a   :  { %14154 = vmatmul.mubr.msk.bf16.vlgmr.msra.gmra.mrb[244].mxu1 %vm3619_vm1, %v10239_v29 }
0x121b   :  { %14164 = vmatpush3.bf16.xpose.msra.mxu1 %v10341_v2  ;;  %14165 = vmatprep.mubr.msk.bf16.mxu1 %vm15317_vm0, %v18968_v9 }
0x121c   :  { %14175 = vmatprep.subr.bf16.mxu1 %v18968_v9 }
0x121f   :  { %14160 = vmatmul.mubr.msk.bf16.vlgmr.msra.gmra.mrb[248].mxu0 %vm3619_vm1, %v10287_v14 }
0x1220   :  { %14170 = vmatpush3.bf16.msra.mxu0 %v10484_v42  ;;  %14171 = vmatprep.mubr.msk.bf16.mxu0 %vm15317_vm0, %v18968_v9 }
0x1221   :  { %14181 = vmatprep.subr.bf16.mxu0 %v18968_v9 }
0x1222   :  { %14166 = vmatmul.mubr.msk.bf16.vlgmr.msra.gmra.mrb[248].mxu1 %vm3619_vm1, %v10335_v37 }
0x1223   :  { %14176 = vmatpush3.bf16.msra.mxu1 %v10531_v19  ;;  %14177 = vmatprep.mubr.msk.bf16.mxu1 %vm15317_vm0, %v18968_v9 }
0x1224   :  { %14187 = vmatprep.subr.bf16.mxu1 %v18968_v9 }
0x12b9   :  { %v18233_v55 = vpop.f32.mrb[220].mxu0 }
0x12ba   :  { %v14077_v8 = vpop.f32.mrb[221].mxu0 }
0x12bb   :  { %v9667_v20 = vpop.f32.mrb[222].mxu0 }
0x12bc   :  { %v14078_v63 = vpop.f32.mrb[223].mxu0  ;;  %v18235_v59 = vpop.f32.mrb[220].mxu1 }
0x12bd   :  { %v14083_v23 = vpop.f32.mrb[221].mxu1 }
0x12be   :  { %v9714_v26 = vpop.f32.mrb[222].mxu1 }
0x12bf   :  { %v14084_v53 = vpop.f32.mrb[223].mxu1 }
0x12c1   :  { %v18237_v60 = vpop.f32.mrb[224].mxu0 }
0x12c2   :  { %v14089_v30 = vpop.f32.mrb[225].mxu0 }
0x12c3   :  { %v9761_v38 = vpop.f32.mrb[226].mxu0 }
0x12c4   :  { %v14090_v36 = vpop.f32.mrb[227].mxu0  ;;  %v18239_v24 = vpop.f32.mrb[224].mxu1 }
0x12c5   :  { %v14095_v57 = vpop.f32.mrb[225].mxu1 }
0x12c6   :  { %v9808_v34 = vpop.f32.mrb[226].mxu1 }
0x12c7   :  { %v14096_v51 = vpop.f32.mrb[227].mxu1 }
0x12c9   :  { %v18241_v6 = vpop.f32.mrb[228].mxu0 }
0x12ca   :  { %v14101_v43 = vpop.f32.mrb[229].mxu0 }
0x12cb   :  { %v9855_v35 = vpop.f32.mrb[230].mxu0 }
0x12cc   :  { %v14102_v15 = vpop.f32.mrb[231].mxu0  ;;  %v18243_v49 = vpop.f32.mrb[228].mxu1 }
0x12cd   :  { %v14107_v47 = vpop.f32.mrb[229].mxu1 }
0x12ce   :  { %v9902_v28 = vpop.f32.mrb[230].mxu1 }
0x12cf   :  { %v14108_v4 = vpop.f32.mrb[231].mxu1 }
0x12d1   :  { %v18245_v39 = vpop.f32.mrb[232].mxu0 }
0x12d2   :  { %v14113_v17 = vpop.f32.mrb[233].mxu0 }
0x12d3   :  { %v9949_v10 = vpop.f32.mrb[234].mxu0 }
0x12d4   :  { %v14114_v16 = vpop.f32.mrb[235].mxu0  ;;  %v18247_v3 = vpop.f32.mrb[232].mxu1 }
0x12d5   :  { %v14119_v7 = vpop.f32.mrb[233].mxu1 }
0x12d6   :  { %v9996_v0 = vpop.f32.mrb[234].mxu1 }
0x12d7   :  { %v14120_v46 = vpop.f32.mrb[235].mxu1 }
0x12da   :  { %v10041_v62 = vpop.f32.mrb[236].mxu0 }
0x12db   :  { %v14125_v54 = vpop.f32.mrb[237].mxu0  ;;  %v10383_v18 = vsel %vm3988_vm3, %v10041_v62, -inf }
0x12dc   :  { %10384 = vmax.xlane.f32.xlu0 %v10383_v18  ;;  %v10044_v27 = vpop.f32.mrb[238].mxu0 }
0x12dd   :  { %v14126_v1 = vpop.f32.mrb[239].mxu0  ;;  %v10089_v56 = vpop.f32.mrb[236].mxu1 }
0x12de   :  { %v14131_v32 = vpop.f32.mrb[237].mxu1  ;;  %v10386_v22 = vsel %vm3988_vm3, %v10089_v56, -inf }
0x12df   :  { %10387 = vmax.xlane.f32.xlu1 %v10386_v22  ;;  %v10092_v29 = vpop.f32.mrb[238].mxu1 }
0x12e0   :  { %v14132_v2 = vpop.f32.mrb[239].mxu1 }
0x12e2   :  { %v10137_v40 = vpop.f32.mrb[240].mxu0 }
0x12e3   :  { %v14137_v14 = vpop.f32.mrb[241].mxu0  ;;  %v10389_v45 = vsel %vm3988_vm3, %v10137_v40, -inf }
0x12e4   :  { %10390 = vmax.xlane.f32.xlu0 %v10389_v45  ;;  %v10140_v42 = vpop.f32.mrb[242].mxu0 }
0x12e5   :  { %v14138_v37 = vpop.f32.mrb[243].mxu0  ;;  %v10185_v19 = vpop.f32.mrb[240].mxu1 }
0x12e6   :  { %v14143_v8 = vpop.f32.mrb[241].mxu1  ;;  %v10392_v20 = vsel %vm3988_vm3, %v10185_v19, -inf }
0x12e7   :  { %10393 = vmax.xlane.f32.xlu1 %v10392_v20  ;;  %v10188_v63 = vpop.f32.mrb[242].mxu1 }
0x12e8   :  { %v14144_v23 = vpop.f32.mrb[243].mxu1 }
0x12ea   :  { %v10233_v26 = vpop.f32.mrb[244].mxu0 }
0x12eb   :  { %v14149_v53 = vpop.f32.mrb[245].mxu0  ;;  %v10395_v30 = vsel %vm3988_vm3, %v10233_v26, -inf }
0x12ec   :  { %10396 = vmax.xlane.f32.xlu0 %v10395_v30  ;;  %v10236_v38 = vpop.f32.mrb[246].mxu0 }
0x12ed   :  { %v14150_v36 = vpop.f32.mrb[247].mxu0  ;;  %v10281_v57 = vpop.f32.mrb[244].mxu1 }
0x12ee   :  { %v14155_v34 = vpop.f32.mrb[245].mxu1  ;;  %v10398_v51 = vsel %vm3988_vm3, %v10281_v57, -inf }
0x12ef   :  { %10399 = vmax.xlane.f32.xlu1 %v10398_v51  ;;  %v10284_v43 = vpop.f32.mrb[246].mxu1 }
0x12f0   :  { %v14156_v35 = vpop.f32.mrb[247].mxu1 }
0x12f2   :  { %v10329_v15 = vpop.f32.mrb[248].mxu0 }
0x12f3   :  { %v14161_v47 = vpop.f32.mrb[249].mxu0  ;;  %v10401_v28 = vsel %vm3988_vm3, %v10329_v15, -inf }
0x12f4   :  { %10402 = vmax.xlane.f32.xlu0 %v10401_v28  ;;  %v10332_v4 = vpop.f32.mrb[250].mxu0 }
0x12f5   :  { %v14162_v17 = vpop.f32.mrb[251].mxu0  ;;  %v10377_v10 = vpop.f32.mrb[248].mxu1 }
0x12f6   :  { %v14167_v16 = vpop.f32.mrb[249].mxu1  ;;  %v10404_v7 = vsel %vm3988_vm3, %v10377_v10, -inf }
0x12f7   :  { %10405 = vmax.xlane.f32.xlu1 %v10404_v7  ;;  %v10380_v0 = vpop.f32.mrb[250].mxu1 }
0x12f8   :  { %v14168_v46 = vpop.f32.mrb[251].mxu1 }
0x1369   :  { %v10385_v54 = vpop.xlane.xlu0 %10384 }
0x136a   :  { %v10407_v18 = vsub.f32 %v10041_v62, %v10385_v54  ;;  %v19002_v54 = vld [vmem:[#allocation27_spill] sm:$0xff] }
0x136c   :  { %v10415_v27 = vmul.f32 1.442695, %v10407_v18  ;;  %v10388_v1 = vpop.xlane.xlu1 %10387  ;;  %v19003_v18 = vld [vmem:[#allocation26_spill] sm:$0xff] }
0x136d   :  { %v10408_v32 = vsub.f32 %v10089_v56, %v10388_v1  ;;  %v19005_v1 = vld [vmem:[#allocation30_spill] sm:$0xff] }
0x136e   :  { %15280 = vpow2.f32 %v10415_v27  ;;  %v19004_v27 = vld [vmem:[#allocation28_spill] sm:$0xff] }
0x136f   :  { %v10417_v22 = vmul.f32 1.442695, %v10408_v32  ;;  %v19006_v32 = vld [vmem:[#allocation29_spill] sm:$0xff] }
0x1371   :  { %15282 = vpow2.f32 %v10417_v22  ;;  %v10391_v29 = vpop.xlane.xlu0 %10390  ;;  %v19007_v22 = vld [vmem:[#allocation32_spill] sm:$0xff] }
0x1372   :  { %v10409_v2 = vsub.f32 %v10137_v40, %v10391_v29  ;;  %v19008_v29 = vld [vmem:[#allocation31_spill] sm:$0xff] }
0x1374   :  { %v10419_v14 = vmul.f32 1.442695, %v10409_v2  ;;  %v10394_v45 = vpop.xlane.xlu1 %10393  ;;  %v19009_v2 = vld [vmem:[#allocation42_spill] sm:$0xff] }
0x1375   :  { %v10410_v42 = vsub.f32 %v10185_v19, %v10394_v45  ;;  %v19011_v45 = vld [vmem:[#allocation43_spill] sm:$0xff] }
0x1376   :  { %15284 = vpow2.f32 %v10419_v14  ;;  %v19010_v14 = vld [vmem:[#allocation33_spill] sm:$0xff] }
0x1377   :  { %v10421_v37 = vmul.f32 1.442695, %v10410_v42  ;;  %v19012_v42 = vld [vmem:[#allocation44_spill] sm:$0xff] }
0x1378   :  { %v18257_v8 = vpop.eup %15280 }
0x1379   :  { %15286 = vpow2.f32 %v10421_v37  ;;  %v10397_v20 = vpop.xlane.xlu0 %10396  ;;  %v10431_v62 = vsel %vm3988_vm3, %v18257_v8, 0.0  ;;  %v19013_v37 = vld [vmem:[#allocation46_spill] sm:$0xff] }
0x137a   :  { %v10411_v63 = vsub.f32 %v10233_v26, %v10397_v20  ;;  %10432 = vadd.xlane.f32.xlu0 %v10431_v62  ;;  %v19014_v20 = vld [vmem:[#allocation45_spill] sm:$0xff]  ;;  %v19015_v62 = vld [vmem:[#allocation48_spill] sm:$0xff] }
0x137b   :  { %v18261_v56 = vpop.eup %15282 }
0x137c   :  { %v10423_v23 = vmul.f32 1.442695, %v10411_v63  ;;  %v10400_v53 = vpop.xlane.xlu1 %10399  ;;  %v10434_v40 = vsel %vm3988_vm3, %v18261_v56, 0.0  ;;  %v19016_v63 = vld [vmem:[#allocation47_spill] sm:$0xff] }
0x137d   :  { %v10412_v30 = vsub.f32 %v10281_v57, %v10400_v53  ;;  %10435 = vadd.xlane.f32.xlu1 %v10434_v40 }
0x137e   :  { %15288 = vpow2.f32 %v10423_v23  ;;  %v19017_v23 = vld [vmem:[#allocation49_spill] sm:$0xff] }
0x137f   :  { %v10425_v19 = vmul.f32 1.442695, %v10412_v30 }
0x1380   :  { %v18265_v38 = vpop.eup %15284 }
0x1381   :  { %15290 = vpow2.f32 %v10425_v19  ;;  %v10403_v36 = vpop.xlane.xlu0 %10402  ;;  %v10437_v34 = vsel %vm3988_vm3, %v18265_v38, 0.0  ;;  %v10620_v19 = vrot.slane %v17663_v50, 3 }
0x1382   :  { %v10413_v26 = vsub.f32 %v10329_v15, %v10403_v36  ;;  %10438 = vadd.xlane.f32.xlu0 %v10437_v34 }
0x1383   :  { %v18269_v51 = vpop.eup %15286 }
0x1384   :  { %v10427_v43 = vmul.f32 1.442695, %v10413_v26  ;;  %v10406_v35 = vpop.xlane.xlu1 %10405  ;;  %v10440_v47 = vsel %vm3988_vm3, %v18269_v51, 0.0  ;;  %v10667_v26 = vrot.slane %v17669_v13, 3 }
0x1385   :  { %v10414_v57 = vsub.f32 %v10377_v10, %v10406_v35  ;;  %10441 = vadd.xlane.f32.xlu1 %v10440_v47 }
0x1386   :  { %15292 = vpow2.f32 %v10427_v43 }
0x1387   :  { %v10429_v28 = vmul.f32 1.442695, %v10414_v57  ;;  %v10714_v57 = vrot.slane %v17681_v12, 3  ;;  %v10761_v12 = vrot.slane %v17710_v61, 3 }
0x1388   :  { %v18273_v4 = vpop.eup %15288 }
0x1389   :  { %15294 = vpow2.f32 %v10429_v28  ;;  %v10443_v17 = vsel %vm3988_vm3, %v18273_v4, 0.0  ;;  %v10672_v28 = vsel %vm4089_vm2, %v10667_v26, 0 }
0x138a   :  { %10444 = vadd.xlane.f32.xlu0 %v10443_v17 }
0x138b   :  { %v18277_v15 = vpop.eup %15290 }
0x138c   :  { %v10446_v16 = vsel %vm3988_vm3, %v18277_v15, 0.0 }
0x138d   :  { %10447 = vadd.xlane.f32.xlu1 %v10446_v16 }
0x1390   :  { %v18281_v7 = vpop.eup %15292 }
0x1391   :  { %v10449_v10 = vsel %vm3988_vm3, %v18281_v7, 0.0 }
0x1392   :  { %10450 = vadd.xlane.f32.xlu0 %v10449_v10 }
0x1393   :  { %v18285_v0 = vpop.eup %15294 }
0x1394   :  { %v10452_v46 = vsel %vm3988_vm3, %v18285_v0, 0.0 }
0x1395   :  { %10453 = vadd.xlane.f32.xlu1 %v10452_v46 }
0x13a6   :  { %10865 = vrot.lane.b32.xlu1 %v19002_v54, %s15318_s2 }
0x13a8   :  { %10863 = vrot.lane.b32.xlu0 %v19003_v18, %s15318_s2 }
0x13aa   :  { %10867 = vrot.lane.b32.xlu1 %v19004_v27, %s15318_s2  ;;  %v14866_v27 = vld [vmem:[%s18913_s3 + $0x4] ss:$16 sps:$4 sm:$0xff]  }
0x13ac   :  { %10871 = vrot.lane.b32.xlu0 %v19005_v1, %s15318_s2  ;;  %v10808_v1 = vrot.slane %v17695_v5, 3 }
0x13ae   :  { %10869 = vrot.lane.b32.xlu1 %v19006_v32, %s15318_s2 }
0x13b0   :  { %10875 = vrot.lane.b32.xlu0 %v19007_v22, %s15318_s2 }
0x13b2   :  { %10873 = vrot.lane.b32.xlu1 %v19008_v29, %s15318_s2 }
0x13b4   :  { %10895 = vrot.lane.b32.xlu0 %v19009_v2, %s15318_s2  ;;  %v14872_v2 = vld [vmem:[%s18913_s3 + $0xc] ss:$16 sps:$4 sm:$0xff]  }
0x13b6   :  { %10877 = vrot.lane.b32.xlu1 %v19010_v14, %s15318_s2 }
0x13b8   :  { %10899 = vrot.lane.b32.xlu0 %v19011_v45, %s15318_s2 }
0x13ba   :  { %10897 = vrot.lane.b32.xlu1 %v19012_v42, %s15318_s2 }
0x13bc   :  { %10903 = vrot.lane.b32.xlu0 %v19013_v37, %s15318_s2  ;;  %v14864_v37 = vld [vmem:[%s18913_s3] ss:$16 sps:$4 sm:$0xff]  }
0x13be   :  { %10901 = vrot.lane.b32.xlu1 %v19014_v20, %s15318_s2 }
0x13c0   :  { %10907 = vrot.lane.b32.xlu0 %v19015_v62, %s15318_s2 }
0x13c2   :  { %10905 = vrot.lane.b32.xlu1 %v19016_v63, %s15318_s2  ;;  %v14869_v63 = vld [vmem:[%s18913_s3 + $0x24] ss:$16 sps:$4 sm:$0xff]  }
0x13c4   :  { %10927 = vrot.lane.b32.xlu0 %v18085_v11, %s15318_s2 }
0x13c6   :  { %10909 = vrot.lane.b32.xlu1 %v19017_v23, %s15318_s2 }
0x13c8   :  { %10931 = vrot.lane.b32.xlu0 %v18089_v21, %s15318_s2 }
0x13ca   :  { %10929 = vrot.lane.b32.xlu1 %v18087_v25, %s15318_s2 }
0x13cc   :  { %10935 = vrot.lane.b32.xlu0 %v18093_v48, %s15318_s2 }
0x13ce   :  { %10933 = vrot.lane.b32.xlu1 %v18091_v52, %s15318_s2  ;;  %v10573_v52 = vrot.slane %v17659_v58, 3 }
0x13d0   :  { %10939 = vrot.lane.b32.xlu0 %v18097_v33, %s15318_s2 }
0x13d2   :  { %10937 = vrot.lane.b32.xlu1 %v18095_v31, %s15318_s2 }
0x13d6   :  { %10941 = vrot.lane.b32.xlu1 %v18099_v44, %s15318_s2  ;;  %v10578_v44 = vsel %vm4089_vm2, %v10573_v52, 0  ;;  %v14878_v52 = vld [vmem:[%s18913_s3 + $0x2c] ss:$16 sps:$4 sm:$0xff]  }
0x1407   :  { %v10433_v11 = vpop.xlane.xlu0 %10432 }
0x1408   :  { %15296 = vrcp.f32 %v10433_v11 }
0x140a   :  { %v10436_v21 = vpop.xlane.xlu1 %10435 }
0x140b   :  { %15298 = vrcp.f32 %v10436_v21 }
0x140f   :  { %v10439_v25 = vpop.xlane.xlu0 %10438 }
0x1410   :  { %15300 = vrcp.f32 %v10439_v25  ;;  %v19018_v25 = vld [vmem:[#allocation18_spill] sm:$0xff] }
0x1412   :  { %v15297_v53 = vpop.eup %15296  ;;  %v10442_v48 = vpop.xlane.xlu1 %10441 }
0x1413   :  { %v10463_v40 = vmul.f32 %v15297_v53, %v18257_v8  ;;  %15302 = vrcp.f32 %v10442_v48  ;;  %v10625_v8 = vsel %vm4089_vm2, %v10620_v19, 0  ;;  %v19019_v48 = vld [vmem:[#allocation34_spill] sm:$0xff] }
0x1415   :  { %v15299_v33 = vpop.eup %15298  ;;  %v10471_v30 = vpack.c.bf16 %v10463_v40, %v10463_v40 }
0x1416   :  { %v10464_v31 = vmul.f32 %v15299_v33, %v18261_v56 }
0x1417   :  { %14172 = vmatmul.mubr.msk.bf16.vlgmr.msra.gmra.mrb[252].mxu0 %vm4085_vm4, %v10471_v30  ;;  %v10445_v36 = vpop.xlane.xlu0 %10444  ;;  %v14875_v30 = vld [vmem:[%s18913_s3 + $0x44] ss:$16 sps:$4 sm:$0xff]  }
0x1418   :  { %14182 = vmatpush3.bf16.msra.mxu0 %v10578_v44  ;;  %15304 = vrcp.f32 %v10445_v36  ;;  %v10472_v34 = vpack.c.bf16 %v10464_v31, %v10464_v31  ;;  %14183 = vmatprep.mubr.msk.bf16.mxu0 %vm15317_vm0, %v18968_v9  ;;  %v14876_v44 = vld [vmem:[%s18913_s3 + $0x28] ss:$16 sps:$4 sm:$0xff]   ;;  %v19020_v36 = vld [vmem:[#allocation20_spill] sm:$0xff] }
0x1419   :  { %14193 = vmatprep.subr.bf16.mxu0 %v18968_v9 }
0x141a   :  { %v15301_v58 = vpop.eup %15300  ;;  %14178 = vmatmul.mubr.msk.bf16.vlgmr.msra.gmra.mrb[252].mxu1 %vm4085_vm4, %v10472_v34  ;;  %v10448_v56 = vpop.xlane.xlu1 %10447 }
0x141b   :  { %v10465_v50 = vmul.f32 %v15301_v58, %v18265_v38  ;;  %14188 = vmatpush3.bf16.msra.mxu1 %v10625_v8  ;;  %15306 = vrcp.f32 %v10448_v56  ;;  %14189 = vmatprep.mubr.msk.bf16.mxu1 %vm15317_vm0, %v18968_v9  ;;  %v19021_v58 = vld [vmem:[#allocation35_spill] sm:$0xff]  ;;  %v14873_v56 = vld [vmem:[%s18913_s3 + $0x40] ss:$16 sps:$4 sm:$0xff]  }
0x141c   :  { %14199 = vmatprep.subr.bf16.mxu1 %v18968_v9 }
0x141d   :  { %v15303_v43 = vpop.eup %15302  ;;  %v10473_v35 = vpack.c.bf16 %v10465_v50, %v10465_v50  ;;  %v14884_v50 = vld [vmem:[%s18913_s3 + $0x4c] ss:$16 sps:$4 sm:$0xff]  }
0x141e   :  { %v10466_v47 = vmul.f32 %v15303_v43, %v18269_v51  ;;  %v10719_v51 = vsel %vm4089_vm2, %v10714_v57, 0  ;;  %v14881_v43 = vld [vmem:[%s18913_s3 + $0x64] ss:$16 sps:$4 sm:$0xff]   ;;  %v14882_v57 = vld [vmem:[%s18913_s3 + $0x48] ss:$16 sps:$4 sm:$0xff]  }
0x141f   :  { %14184 = vmatmul.mubr.msk.bf16.vlgmr.msra.gmra.mrb[0].mxu0 %vm4085_vm4, %v10473_v35  ;;  %v10451_v38 = vpop.xlane.xlu0 %10450 }
0x1420   :  { %v10474_v17 = vpack.c.bf16 %v10466_v47, %v10466_v47  ;;  %14194 = vmatpush3.bf16.msra.mxu0 %v10672_v28  ;;  %15308 = vrcp.f32 %v10451_v38  ;;  %14195 = vmatprep.mubr.msk.bf16.mxu0 %vm15317_vm0, %v18968_v9  ;;  %v19022_v28 = vld [vmem:[#allocation22_spill] sm:$0xff] }
0x1421   :  { %14205 = vmatprep.subr.bf16.mxu0 %v18968_v9 }
0x1422   :  { %v15305_v13 = vpop.eup %15304  ;;  %14190 = vmatmul.mubr.msk.bf16.vlgmr.msra.gmra.mrb[0].mxu1 %vm4085_vm4, %v10474_v17  ;;  %v10454_v16 = vpop.xlane.xlu1 %10453  ;;  %v19023_v17 = vld [vmem:[#allocation38_spill] sm:$0xff] }
0x1423   :  { %v10467_v10 = vmul.f32 %v15305_v13, %v18273_v4  ;;  %14200 = vmatpush3.bf16.msra.mxu1 %v10719_v51  ;;  %15310 = vrcp.f32 %v10454_v16  ;;  %v10864_v46 = vpop.permute.xlu0 %10863  ;;  %14201 = vmatprep.mubr.msk.bf16.mxu1 %vm15317_vm0, %v18968_v9  ;;  %v10766_v4 = vsel %vm4089_vm2, %v10761_v12, 0  ;;  %v14879_v51 = vld [vmem:[%s18913_s3 + $0x60] ss:$16 sps:$4 sm:$0xff]   ;;  %v14890_v16 = vld [vmem:[%s18913_s3 + $0x6c] ss:$16 sps:$4 sm:$0xff]  }
0x1424   :  { %14211 = vmatprep.subr.bf16.mxu1 %v18968_v9  ;;  %v10983_v53 = vsel %vm3619_vm1, %v19018_v25, %v10864_v46  ;;  %v14894_v25 = vld [vmem:[%s18913_s3 + $0x88] ss:$16 sps:$4 sm:$0xff]  }
0x1425   :  { %v15307_v54 = vpop.eup %15306  ;;  %v10475_v18 = vpack.c.bf16 %v10467_v10, %v10467_v10  ;;  %v14887_v10 = vld [vmem:[%s18913_s3 + $0x84] ss:$16 sps:$4 sm:$0xff]  }
0x1426   :  { %v10468_v61 = vmul.f32 %v15307_v54, %v18277_v15  ;;  %v18372_v32 = vpop.permute.xlu1 %10865  ;;  %v10813_v15 = vsel %vm4089_vm2, %v10808_v1, 0  ;;  %v19024_v54 = vld [vmem:[#allocation19_spill] sm:$0xff] }
0x1427   :  { %14196 = vmatmul.mubr.msk.bf16.vlgmr.msra.gmra.mrb[4].mxu0 %vm4085_vm4, %v10475_v18  ;;  %v10872_v22 = vpop.permute.xlu0 %10871  ;;  %v10984_v18 = vsel %vm3619_vm1, %v19024_v54, %v18372_v32  ;;  %v14885_v32 = vld [vmem:[%s18913_s3 + $0x80] ss:$16 sps:$4 sm:$0xff]  }
0x1428   :  { %v10476_v29 = vpack.c.bf16 %v10468_v61, %v10468_v61  ;;  %14206 = vmatpush3.bf16.msra.mxu0 %v10766_v4  ;;  %14207 = vmatprep.mubr.msk.bf16.mxu0 %vm15317_vm0, %v18968_v9  ;;  %v10987_v38 = vsel %vm3619_vm1, %v19022_v28, %v10872_v22  ;;  %v14888_v4 = vld [vmem:[%s18913_s3 + $0x68] ss:$16 sps:$4 sm:$0xff]   ;;  %v19026_v22 = vld [vmem:[#allocation24_spill] sm:$0xff] }
0x1429   :  { %12057 = vmatprep.subr.bf16.mxu0 %v14866_v27  ;;  %v19025_v27 = vld [vmem:[#allocation36_spill] sm:$0xff] }
0x142a   :  { %v15309_v5 = vpop.eup %15308  ;;  %14202 = vmatmul.mubr.msk.bf16.vlgmr.msra.gmra.mrb[4].mxu1 %vm4085_vm4, %v10476_v29  ;;  %v10868_v14 = vpop.permute.xlu1 %10867  ;;  %v14903_v54 = vld [vmem:[%s18913_s3 + $0xe0] ss:$16 sps:$4 sm:$0xff]  }
0x142b   :  { %v10469_v45 = vmul.f32 %v15309_v5, %v18281_v7  ;;  %14212 = vmatpush3.bf16.msra.mxu1 %v10813_v15  ;;  %v10876_v42 = vpop.permute.xlu0 %10875  ;;  %14213 = vmatprep.mubr.msk.bf16.mxu1 %vm15317_vm0, %v18968_v9  ;;  %v14870_v9 = vld [vmem:[%s18913_s3 + $0x8] ss:$16 sps:$4 sm:$0xff]   ;;  %v10985_v34 = vsel %vm3619_vm1, %v19020_v36, %v10868_v14  ;;  %v19027_v5 = vld [vmem:[#allocation40_spill] sm:$0xff]  ;;  %v14896_v14 = vld [vmem:[%s18913_s3 + $0x8c] ss:$16 sps:$4 sm:$0xff]  }
0x142c   :  { %12143 = vmatprep.subr.bf16.mxu1 %v14872_v2  ;;  %v10989_v29 = vsel %vm3619_vm1, %v19026_v22, %v10876_v42  ;;  %v14893_v42 = vld [vmem:[%s18913_s3 + $0xa4] ss:$16 sps:$4 sm:$0xff]   ;;  %v19032_v36 = vld [vmem:[#allocation39_spill] sm:$0xff] }
0x142d   :  { %v15311_v20 = vpop.eup %15310  ;;  %v10477_v62 = vpack.c.bf16 %v10469_v45, %v10469_v45  ;;  %v14912_v22 = vld [vmem:[%s18913_s3 + $0xe8] ss:$16 sps:$4 sm:$0xff]  }
0x142e   :  { %v10470_v23 = vmul.f32 %v15311_v20, %v18285_v0  ;;  %v10870_v11 = vpop.permute.xlu1 %10869  ;;  %v14867_v0 = vld [vmem:[%s18913_s3 + $0x20] ss:$16 sps:$4 sm:$0xff]  }
0x142f   :  { %14208 = vmatmul.mubr.msk.bf16.vlgmr.msra.gmra.mrb[8].mxu0 %vm4085_vm4, %v10477_v62  ;;  %v10896_v7 = vpop.permute.xlu0 %10895 }
0x1430   :  { %v10478_v21 = vpack.c.bf16 %v10470_v23, %v10470_v23  ;;  %12058 = vmatpush1.bf16.msra.mxu0 %v14864_v37  ;;  %v10991_v40 = vsel %vm3619_vm1, %v19019_v48, %v10896_v7  ;;  %v19028_v37 = vld [vmem:[#allocation2_spill] sm:$0xff]  ;;  %v19029_v23 = vld [vmem:[#allocation21_spill] sm:$0xff] }
0x1431   :  { %v11047_v33 = vcombine.low %v10983_v53, %v10991_v40  ;;  %12059 = vmatprep.subr.bf16.mxu0 %v14869_v63  ;;  %v10986_v7 = vsel %vm3619_vm1, %v19029_v23, %v10870_v11  ;;  %v14891_v40 = vld [vmem:[%s18913_s3 + $0xa0] ss:$16 sps:$4 sm:$0xff]   ;;  %v14902_v11 = vld [vmem:[%s18913_s3 + $0xac] ss:$16 sps:$4 sm:$0xff]  }
0x1432   :  { %14214 = vmatmul.mubr.msk.bf16.vlgmr.msra.gmra.mrb[8].mxu1 %vm4085_vm4, %v10478_v21  ;;  %v10874_v31 = vpop.permute.xlu1 %10873 }
0x1433   :  { %12144 = vmatpush1.bf16.msra.mxu1 %v14870_v9  ;;  %v10900_v19 = vpop.permute.xlu0 %10899  ;;  %v11055_v20 = vrot.slane %v11047_v33, %v19028_v37  ;;  %v19030_v9 = vld [vmem:[#allocation37_spill] sm:$0xff] }
0x1434   :  { %12060 = vmatpush1.bf16.msra.mxu0 %v14867_v0  ;;  %v10993_v8 = vsel %vm3619_vm1, %v19021_v58, %v10900_v19  ;;  %12145 = vmatprep.subr.bf16.mxu1 %v14878_v52  ;;  %v14899_v0 = vld [vmem:[%s18913_s3 + $0xc4] ss:$16 sps:$4 sm:$0xff]   ;;  %v19031_v19 = vld [vmem:[#allocation23_spill] sm:$0xff] }
0x1435   :  { %v11081_v26 = vcombine.low %v10985_v34, %v10993_v8  ;;  %12061 = vmatprep.subr.bf16.mxu0 %v14875_v30  ;;  %v14900_v58 = vld [vmem:[%s18913_s3 + $0xa8] ss:$16 sps:$4 sm:$0xff]  }
0x1436   :  { %v18427_v35 = vpop.permute.xlu1 %10877 }
0x1437   :  { %12146 = vmatpush1.bf16.msra.mxu1 %v14876_v44  ;;  %v10904_v47 = vpop.permute.xlu0 %10903  ;;  %v11089_v52 = vrot.slane %v11081_v26, %v19028_v37  ;;  %v10988_v44 = vsel %vm3619_vm1, %v19031_v19, %v10874_v31  ;;  %v14908_v31 = vld [vmem:[%s18913_s3 + $0xcc] ss:$16 sps:$4 sm:$0xff]   ;;  %v14905_v26 = vld [vmem:[%s18913_s3 + $0xe4] ss:$16 sps:$4 sm:$0xff]  }
0x1438   :  { %12062 = vmatpush1.bf16.msra.mxu0 %v14873_v56  ;;  %v10995_v13 = vsel %vm3619_vm1, %v19023_v17, %v10904_v47  ;;  %12147 = vmatprep.subr.bf16.mxu1 %v14884_v50  ;;  %v14897_v50 = vld [vmem:[%s18913_s3 + $0xc0] ss:$16 sps:$4 sm:$0xff]   ;;  %v14944_v19 = vld [vmem:[%s18913_s3 + $0x18c] ss:$16 sps:$4 sm:$0xff]  }
0x1439   :  { %v11115_v12 = vcombine.low %v10987_v38, %v10995_v13  ;;  %12063 = vmatprep.subr.bf16.mxu0 %v14881_v43  ;;  %v19033_v38 = vld [vmem:[#allocation25_spill] sm:$0xff] }
0x143a   :  { %v10898_v46 = vpop.permute.xlu1 %10897  ;;  %v10990_v17 = vsel %vm3619_vm1, %v19033_v38, %v18427_v35  ;;  %v19034_v13 = vld [vmem:[#allocation41_spill] sm:$0xff]  ;;  %v14960_v38 = vld [vmem:[%s18913_s3 + $0x200] ss:$16 sps:$4 sm:$0xff]  }
0x143b   :  { %12148 = vmatpush1.bf16.msra.mxu1 %v14882_v57  ;;  %v10992_v1 = vsel %vm3619_vm1, %v19025_v27, %v10898_v46  ;;  %v10908_v61 = vpop.permute.xlu0 %10907  ;;  %v11123_v43 = vrot.slane %v11115_v12, %v19028_v37  ;;  %v14914_v35 = vld [vmem:[%s18913_s3 + $0xec] ss:$16 sps:$4 sm:$0xff]  }
0x143c   :  { %v11064_v2 = vcombine.low %v10984_v18, %v10992_v1  ;;  %12064 = vmatpush1.bf16.msra.mxu0 %v14879_v51  ;;  %v10997_v15 = vsel %vm3619_vm1, %v19027_v5, %v10908_v61  ;;  %12149 = vmatprep.subr.bf16.mxu1 %v14890_v16  ;;  %v14906_v16 = vld [vmem:[%s18913_s3 + $0xc8] ss:$16 sps:$4 sm:$0xff]   ;;  %v14911_v18 = vld [vmem:[%s18913_s3 + $0x104] ss:$16 sps:$4 sm:$0xff]   ;;  %v14920_v5 = vld [vmem:[%s18913_s3 + $0x10c] ss:$16 sps:$4 sm:$0xff]  }
0x143d   :  { %v11149_v45 = vcombine.low %v10989_v29, %v10997_v15  ;;  %12065 = vmatprep.subr.bf16.mxu0 %v14887_v10  ;;  %v14917_v15 = vld [vmem:[%s18913_s3 + $0x124] ss:$16 sps:$4 sm:$0xff]  }
0x143e   :  { %v11072_v62 = vrot.slane %v11064_v2, %v19028_v37  ;;  %v10902_v63 = vpop.permute.xlu1 %10901  ;;  %v14909_v2 = vld [vmem:[%s18913_s3 + $0x100] ss:$16 sps:$4 sm:$0xff]  }
0x143f   :  { %12150 = vmatpush1.bf16.msra.mxu1 %v14888_v4  ;;  %v10994_v21 = vsel %vm3619_vm1, %v19030_v9, %v10902_v63  ;;  %v11157_v61 = vrot.slane %v11149_v45, %v19028_v37  ;;  %v14918_v45 = vld [vmem:[%s18913_s3 + $0x108] ss:$16 sps:$4 sm:$0xff]   ;;  %v14923_v63 = vld [vmem:[%s18913_s3 + $0x144] ss:$16 sps:$4 sm:$0xff]   ;;  %v14926_v9 = vld [vmem:[%s18913_s3 + $0x12c] ss:$16 sps:$4 sm:$0xff]  }
0x1440   :  { %v13041_v53 = vcombine.low %v11055_v20, %v11072_v62  ;;  %v11098_v48 = vcombine.low %v10986_v7, %v10994_v21  ;;  %12066 = vmatpush1.bf16.msra.mxu0 %v14885_v32  ;;  %12151 = vmatprep.subr.bf16.mxu1 %v14896_v14  ;;  %v14924_v21 = vld [vmem:[%s18913_s3 + $0x128] ss:$16 sps:$4 sm:$0xff]  }
0x1441   :  { %12067 = vmatprep.subr.bf16.mxu0 %v14893_v42  ;;  %v14915_v42 = vld [vmem:[%s18913_s3 + $0x120] ss:$16 sps:$4 sm:$0xff]  }
0x1442   :  { %v11106_v33 = vrot.slane %v11098_v48, %v19028_v37  ;;  %v10906_v30 = vpop.permute.xlu1 %10905  ;;  %v11193_v10 = vrot.slane %v13041_v53, %v19028_v37  ;;  %v14932_v53 = vld [vmem:[%s18913_s3 + $0x14c] ss:$16 sps:$4 sm:$0xff]   ;;  %v14929_v48 = vld [vmem:[%s18913_s3 + $0x164] ss:$16 sps:$4 sm:$0xff]  }
0x1443   :  { %12152 = vmatpush1.bf16.msra.mxu1 %v14894_v25  ;;  %v10996_v34 = vsel %vm3619_vm1, %v19032_v36, %v10906_v30  ;;  %v14921_v25 = vld [vmem:[%s18913_s3 + $0x140] ss:$16 sps:$4 sm:$0xff]   ;;  %v14942_v36 = vld [vmem:[%s18913_s3 + $0x188] ss:$16 sps:$4 sm:$0xff]  }
0x1444   :  { %v13043_v8 = vcombine.low %v11089_v52, %v11106_v33  ;;  %v11132_v56 = vcombine.low %v10988_v44, %v10996_v34  ;;  %12068 = vmatpush1.bf16.msra.mxu0 %v14891_v40  ;;  %12153 = vmatprep.subr.bf16.mxu1 %v14902_v11  ;;  %v14930_v40 = vld [vmem:[%s18913_s3 + $0x148] ss:$16 sps:$4 sm:$0xff]   ;;  %v14927_v11 = vld [vmem:[%s18913_s3 + $0x160] ss:$16 sps:$4 sm:$0xff]   ;;  %v14935_v52 = vld [vmem:[%s18913_s3 + $0x184] ss:$16 sps:$4 sm:$0xff]  }
0x1445   :  { %12069 = vmatprep.subr.bf16.mxu0 %v14899_v0  ;;  %v14938_v0 = vld [vmem:[%s18913_s3 + $0x16c] ss:$16 sps:$4 sm:$0xff]   ;;  %v14936_v33 = vld [vmem:[%s18913_s3 + $0x168] ss:$16 sps:$4 sm:$0xff]   ;;  %v14933_v30 = vld [vmem:[%s18913_s3 + $0x180] ss:$16 sps:$4 sm:$0xff]  }
0x1446   :  { %v11140_v47 = vrot.slane %v11132_v56, %v19028_v37  ;;  %v10910_v57 = vpop.permute.xlu1 %10909  ;;  %v11207_v28 = vrot.slane %v13043_v8, %v19028_v37  ;;  %v14941_v44 = vld [vmem:[%s18913_s3 + $0x1a4] ss:$16 sps:$4 sm:$0xff]   ;;  %v14939_v34 = vld [vmem:[%s18913_s3 + $0x1a0] ss:$16 sps:$4 sm:$0xff]   ;;  %v14948_v56 = vld [vmem:[%s18913_s3 + $0x1a8] ss:$16 sps:$4 sm:$0xff]  }
0x1447   :  { %12154 = vmatpush1.bf16.msra.mxu1 %v14900_v58  ;;  %v10998_v51 = vsel %vm3619_vm1, %v19034_v13, %v10910_v57  ;;  %v14950_v58 = vld [vmem:[%s18913_s3 + $0x1ac] ss:$16 sps:$4 sm:$0xff]   ;;  %v14947_v8 = vld [vmem:[%s18913_s3 + $0x1c4] ss:$16 sps:$4 sm:$0xff]   ;;  %v14963_v13 = vld [vmem:[%s18913_s3 + $0x208] ss:$16 sps:$4 sm:$0xff]  }
0x1448   :  { %v13045_v12 = vcombine.low %v11123_v43, %v11140_v47  ;;  %v11166_v46 = vcombine.low %v10990_v17, %v10998_v51  ;;  %12070 = vmatpush1.bf16.msra.mxu0 %v14897_v50  ;;  %12155 = vmatprep.subr.bf16.mxu1 %v14908_v31  ;;  %v11215_v27 = vcombine.low %v11193_v10, %v11207_v28  ;;  %v14945_v50 = vld [vmem:[%s18913_s3 + $0x1c0] ss:$16 sps:$4 sm:$0xff]   ;;  %v14956_v31 = vld [vmem:[%s18913_s3 + $0x1cc] ss:$16 sps:$4 sm:$0xff]   ;;  %v14954_v43 = vld [vmem:[%s18913_s3 + $0x1c8] ss:$16 sps:$4 sm:$0xff]  }
0x1449   :  { %12071 = vmatprep.subr.bf16.mxu0 %v14905_v26  ;;  %v11216_v1 = vcombine.high %v11193_v10, %v11207_v28  ;;  %v14953_v26 = vld [vmem:[%s18913_s3 + $0x1e4] ss:$16 sps:$4 sm:$0xff]   ;;  %v14951_v47 = vld [vmem:[%s18913_s3 + $0x1e0] ss:$16 sps:$4 sm:$0xff]   ;;  %v14959_v57 = vld [vmem:[%s18913_s3 + $0x1ec] ss:$16 sps:$4 sm:$0xff]  }
0x144a   :  { %v11174_v4 = vrot.slane %v11166_v46, %v19028_v37  ;;  %v11229_v32 = vrot.slane %v13045_v12, %v19028_v37  ;;  %v14957_v28 = vld [vmem:[%s18913_s3 + $0x1e8] ss:$16 sps:$4 sm:$0xff]   ;;  %v14962_v17 = vld [vmem:[%s18913_s3 + $0x204] ss:$16 sps:$4 sm:$0xff]   ;;  %v14965_v51 = vld [vmem:[%s18913_s3 + $0x20c] ss:$16 sps:$4 sm:$0xff]  }
0x144b   :  { %12156 = vmatpush1.bf16.msra.mxu1 %v14906_v16  ;;  %v14968_v16 = vld [vmem:[%s18913_s3 + $0x224] ss:$16 sps:$4 sm:$0xff]   ;;  %v14971_v10 = vld [vmem:[%s18913_s3 + $0x22c] ss:$16 sps:$4 sm:$0xff]   ;;  %v14966_v12 = vld [vmem:[%s18913_s3 + $0x220] ss:$16 sps:$4 sm:$0xff]  }
0x144c   :  { %v13047_v29 = vcombine.low %v11157_v61, %v11174_v4  ;;  %12072 = vmatpush1.bf16.msra.mxu0 %v14903_v54  ;;  %12157 = vmatprep.subr.bf16.mxu1 %v14914_v35  ;;  %v14969_v46 = vld [vmem:[%s18913_s3 + $0x228] ss:$16 sps:$4 sm:$0xff]   ;;  %v14974_v54 = vld [vmem:[%s18913_s3 + $0x244] ss:$16 sps:$4 sm:$0xff]   ;;  %v14977_v35 = vld [vmem:[%s18913_s3 + $0x24c] ss:$16 sps:$4 sm:$0xff]  }
0x144d   :  { %12073 = vmatprep.subr.bf16.mxu0 %v14911_v18  ;;  %v14972_v18 = vld [vmem:[%s18913_s3 + $0x240] ss:$16 sps:$4 sm:$0xff]   ;;  %v14983_v61 = vld [vmem:[%s18913_s3 + $0x26c] ss:$16 sps:$4 sm:$0xff]  }
0x144e   :  { %v11243_v14 = vrot.slane %v13047_v29, %v19028_v37  ;;  %v14978_v4 = vld [vmem:[%s18913_s3 + $0x260] ss:$16 sps:$4 sm:$0xff]   ;;  %v14986_v29 = vld [vmem:[%s18913_s3 + $0x284] ss:$16 sps:$4 sm:$0xff]  }
0x144f   :  { %12158 = vmatpush1.bf16.msra.mxu1 %v14912_v22  ;;  %v14981_v22 = vld [vmem:[%s18913_s3 + $0x268] ss:$16 sps:$4 sm:$0xff]  }
0x1450   :  { %12074 = vmatpush1.bf16.msra.mxu0 %v14909_v2  ;;  %12159 = vmatprep.subr.bf16.mxu1 %v14920_v5  ;;  %v11251_v20 = vcombine.low %v11229_v32, %v11243_v14  ;;  %v11252_v62 = vcombine.high %v11229_v32, %v11243_v14  ;;  %v14989_v2 = vld [vmem:[%s18913_s3 + $0x28c] ss:$16 sps:$4 sm:$0xff]   ;;  %v14984_v5 = vld [vmem:[%s18913_s3 + $0x280] ss:$16 sps:$4 sm:$0xff]   ;;  %v14992_v32 = vld [vmem:[%s18913_s3 + $0x2a4] ss:$16 sps:$4 sm:$0xff]  }
0x1451   :  { %12075 = vmatprep.subr.bf16.mxu0 %v14917_v15  ;;  %v14987_v15 = vld [vmem:[%s18913_s3 + $0x288] ss:$16 sps:$4 sm:$0xff]   ;;  %v14995_v14 = vld [vmem:[%s18913_s3 + $0x2ac] ss:$16 sps:$4 sm:$0xff]  }
0x1452   :  { %v11263_v23 = vpack.c.bf16 %v11251_v20, %v11215_v27  ;;  %v11264_v7 = vpack.c.bf16 %v11252_v62, %v11216_v1  ;;  %v14975_v27 = vld [vmem:[%s18913_s3 + $0x248] ss:$16 sps:$4 sm:$0xff]   ;;  %v14980_v1 = vld [vmem:[%s18913_s3 + $0x264] ss:$16 sps:$4 sm:$0xff]   ;;  %v14996_v20 = vld [vmem:[%s18913_s3 + $0x2c0] ss:$16 sps:$4 sm:$0xff]  }
0x1453   :  { %12160 = vmatpush1.bf16.msra.mxu1 %v14918_v45  ;;  %v14990_v45 = vld [vmem:[%s18913_s3 + $0x2a0] ss:$16 sps:$4 sm:$0xff]   ;;  %v14998_v62 = vld [vmem:[%s18913_s3 + $0x2c4] ss:$16 sps:$4 sm:$0xff]  }
0x1454   :  { %12076 = vmatpush1.bf16.msra.mxu0 %v14915_v42  ;;  %12089 = vmatprep.mubr.bf16.mxu0 %v11264_v7  ;;  %v14993_v42 = vld [vmem:[%s18913_s3 + $0x2a8] ss:$16 sps:$4 sm:$0xff]  }
0x1455   :  { %12175 = vmatprep.mubr.bf16.mxu1 %v11264_v7  ;;  %12077 = vmatprep.subr.bf16.mxu0 %v14923_v63  ;;  %v14999_v63 = vld [vmem:[%s18913_s3 + $0x2c8] ss:$16 sps:$4 sm:$0xff]   ;;  %v15002_v7 = vld [vmem:[%s18913_s3 + $0x2e0] ss:$16 sps:$4 sm:$0xff]  }
0x1456   :  { %12161 = vmatprep.subr.bf16.mxu1 %v14926_v9  ;;  %v15004_v9 = vld [vmem:[%s18913_s3 + $0x2e4] ss:$16 sps:$4 sm:$0xff]  }
0x1457   :  { %12162 = vmatpush1.bf16.msra.mxu1 %v14924_v21  ;;  %v15005_v21 = vld [vmem:[%s18913_s3 + $0x2e8] ss:$16 sps:$4 sm:$0xff]  }
0x1458   :  { %12078 = vmatpush1.bf16.msra.mxu0 %v14921_v25  ;;  %12163 = vmatprep.subr.bf16.mxu1 %v14932_v53  ;;  %v15007_v25 = vld [vmem:[%s18913_s3 + $0x2ec] ss:$16 sps:$4 sm:$0xff]   ;;  %v15008_v53 = vld [vmem:[%s18913_s3 + $0x300] ss:$16 sps:$4 sm:$0xff]  }
0x1459   :  { %12079 = vmatprep.subr.bf16.mxu0 %v14929_v48  ;;  %v15010_v48 = vld [vmem:[%s18913_s3 + $0x304] ss:$16 sps:$4 sm:$0xff]  }
0x145b   :  { %12164 = vmatpush1.bf16.msra.mxu1 %v14930_v40 }
0x145c   :  { %12080 = vmatpush1.bf16.msra.mxu0 %v14927_v11  ;;  %12165 = vmatprep.subr.bf16.mxu1 %v14938_v0  ;;  %v15011_v11 = vld [vmem:[%s18913_s3 + $0x308] ss:$16 sps:$4 sm:$0xff]   ;;  %v15013_v0 = vld [vmem:[%s18913_s3 + $0x30c] ss:$16 sps:$4 sm:$0xff]  }
0x145d   :  { %12081 = vmatprep.subr.bf16.mxu0 %v14935_v52 }
0x145f   :  { %12166 = vmatpush1.bf16.msra.mxu1 %v14936_v33 }
0x1460   :  { %12082 = vmatpush1.bf16.msra.mxu0 %v14933_v30  ;;  %12167 = vmatprep.subr.bf16.mxu1 %v14944_v19 }
0x1461   :  { %12083 = vmatprep.subr.bf16.mxu0 %v14941_v44 }
0x1463   :  { %12168 = vmatpush1.bf16.msra.mxu1 %v14942_v36  ;;  %v15014_v36 = vld [vmem:[%s18913_s3 + $0x320] ss:$16 sps:$4 sm:$0xff]  }
0x1464   :  { %12084 = vmatpush1.bf16.msra.mxu0 %v14939_v34  ;;  %12169 = vmatprep.subr.bf16.mxu1 %v14950_v58  ;;  %v15016_v34 = vld [vmem:[%s18913_s3 + $0x324] ss:$16 sps:$4 sm:$0xff]  }
0x1465   :  { %12085 = vmatprep.subr.bf16.mxu0 %v14947_v8  ;;  %v15017_v8 = vld [vmem:[%s18913_s3 + $0x328] ss:$16 sps:$4 sm:$0xff]  }
0x1467   :  { %12170 = vmatpush1.bf16.msra.mxu1 %v14948_v56  ;;  %v15019_v56 = vld [vmem:[%s18913_s3 + $0x32c] ss:$16 sps:$4 sm:$0xff]  }
0x1468   :  { %12086 = vmatpush1.bf16.msra.mxu0 %v14945_v50  ;;  %12171 = vmatprep.subr.bf16.mxu1 %v14956_v31  ;;  %v15020_v31 = vld [vmem:[%s18913_s3 + $0x340] ss:$16 sps:$4 sm:$0xff]  }
0x1469   :  { %12087 = vmatprep.subr.bf16.mxu0 %v14953_v26  ;;  %v15022_v26 = vld [vmem:[%s18913_s3 + $0x344] ss:$16 sps:$4 sm:$0xff]  }
0x146b   :  { %12172 = vmatpush1.bf16.msra.mxu1 %v14954_v43 }
0x146c   :  { %12088 = vmatpush1.bf16.msra.mxu0 %v14951_v47  ;;  %12173 = vmatprep.subr.bf16.mxu1 %v14959_v57  ;;  %v15023_v47 = vld [vmem:[%s18913_s3 + $0x348] ss:$16 sps:$4 sm:$0xff]   ;;  %v15025_v57 = vld [vmem:[%s18913_s3 + $0x34c] ss:$16 sps:$4 sm:$0xff]  }
0x146d   :  { %12100 = vmatprep.subr.bf16.mxu0 %v14962_v17 }
0x146f   :  { %12090 = vmatmul.mubr.bf16.vlgmr.msra.gmra.mrb[12].mxu0 %v11263_v23  ;;  %12174 = vmatpush1.bf16.msra.mxu1 %v14957_v28 }
0x1470   :  { %12186 = vmatprep.subr.bf16.mxu1 %v14965_v51  ;;  %12101 = vmatpush1.bf16.msra.mxu0 %v14960_v38 }
0x1471   :  { %12102 = vmatprep.subr.bf16.mxu0 %v14968_v16  ;;  %v15026_v16 = vld [vmem:[%s18913_s3 + $0x360] ss:$16 sps:$4 sm:$0xff]  }
0x1472   :  { %12176 = vmatmul.mubr.bf16.vlgmr.msra.gmra.mrb[12].mxu1 %v11263_v23  ;;  %v15001_v23 = vld [vmem:[%s18913_s3 + $0x2cc] ss:$16 sps:$4 sm:$0xff]  }
0x1473   :  { %12187 = vmatpush1.bf16.msra.mxu1 %v14963_v13 }
0x1474   :  { %12188 = vmatprep.subr.bf16.mxu1 %v14971_v10  ;;  %12103 = vmatpush1.bf16.msra.mxu0 %v14966_v12  ;;  %v15028_v10 = vld [vmem:[%s18913_s3 + $0x364] ss:$16 sps:$4 sm:$0xff]  }
0x1475   :  { %12104 = vmatprep.subr.bf16.mxu0 %v14974_v54  ;;  %v15031_v54 = vld [vmem:[%s18913_s3 + $0x36c] ss:$16 sps:$4 sm:$0xff]  }
0x1477   :  { %12189 = vmatpush1.bf16.msra.mxu1 %v14969_v46  ;;  %v15029_v46 = vld [vmem:[%s18913_s3 + $0x368] ss:$16 sps:$4 sm:$0xff]  }
0x1478   :  { %12190 = vmatprep.subr.bf16.mxu1 %v14977_v35  ;;  %12105 = vmatpush1.bf16.msra.mxu0 %v14972_v18  ;;  %v15032_v18 = vld [vmem:[%s18913_s3 + $0x380] ss:$16 sps:$4 sm:$0xff]  }
0x1479   :  { %12106 = vmatprep.subr.bf16.mxu0 %v14980_v1 }
0x147b   :  { %12191 = vmatpush1.bf16.msra.mxu1 %v14975_v27  ;;  %v15034_v27 = vld [vmem:[%s18913_s3 + $0x384] ss:$16 sps:$4 sm:$0xff]  }
0x147c   :  { %12192 = vmatprep.subr.bf16.mxu1 %v14983_v61  ;;  %12107 = vmatpush1.bf16.msra.mxu0 %v14978_v4  ;;  %v15035_v61 = vld [vmem:[%s18913_s3 + $0x388] ss:$16 sps:$4 sm:$0xff]   ;;  %v15037_v4 = vld [vmem:[%s18913_s3 + $0x38c] ss:$16 sps:$4 sm:$0xff]  }
0x147d   :  { %12108 = vmatprep.subr.bf16.mxu0 %v14986_v29 }
0x147f   :  { %12193 = vmatpush1.bf16.msra.mxu1 %v14981_v22 }
0x1480   :  { %12194 = vmatprep.subr.bf16.mxu1 %v14989_v2  ;;  %12109 = vmatpush1.bf16.msra.mxu0 %v14984_v5 }
0x1481   :  { %12110 = vmatprep.subr.bf16.mxu0 %v14992_v32  ;;  %v15038_v32 = vld [vmem:[%s18913_s3 + $0x3a0] ss:$16 sps:$4 sm:$0xff]  }
0x1483   :  { %12195 = vmatpush1.bf16.msra.mxu1 %v14987_v15 }
0x1484   :  { %12196 = vmatprep.subr.bf16.mxu1 %v14995_v14  ;;  %12111 = vmatpush1.bf16.msra.mxu0 %v14990_v45  ;;  %v15040_v14 = vld [vmem:[%s18913_s3 + $0x3a4] ss:$16 sps:$4 sm:$0xff]  }
0x1485   :  { %12112 = vmatprep.subr.bf16.mxu0 %v14998_v62 }
0x1487   :  { %12197 = vmatpush1.bf16.msra.mxu1 %v14993_v42  ;;  %v15041_v42 = vld [vmem:[%s18913_s3 + $0x3a8] ss:$16 sps:$4 sm:$0xff]  }
0x1488   :  { %12198 = vmatprep.subr.bf16.mxu1 %v15001_v23  ;;  %12113 = vmatpush1.bf16.msra.mxu0 %v14996_v20  ;;  %v15043_v20 = vld [vmem:[%s18913_s3 + $0x3ac] ss:$16 sps:$4 sm:$0xff]   ;;  %v15044_v23 = vld [vmem:[%s18913_s3 + $0x3c0] ss:$16 sps:$4 sm:$0xff]  }
0x1489   :  { %12114 = vmatprep.subr.bf16.mxu0 %v15004_v9 }
0x148b   :  { %12199 = vmatpush1.bf16.msra.mxu1 %v14999_v63  ;;  %v15046_v63 = vld [vmem:[%s18913_s3 + $0x3c4] ss:$16 sps:$4 sm:$0xff]  }
0x148c   :  { %12200 = vmatprep.subr.bf16.mxu1 %v15007_v25  ;;  %12115 = vmatpush1.bf16.msra.mxu0 %v15002_v7  ;;  %v15049_v7 = vld [vmem:[%s18913_s3 + $0x3cc] ss:$16 sps:$4 sm:$0xff]  }
0x148d   :  { %12116 = vmatprep.subr.bf16.mxu0 %v15010_v48  ;;  %v15055_v48 = vld [vmem:[%s18913_s3 + $0x3ec] ss:$16 sps:$4 sm:$0xff]  }
0x148f   :  { %12201 = vmatpush1.bf16.msra.mxu1 %v15005_v21  ;;  %v15047_v21 = vld [vmem:[%s18913_s3 + $0x3c8] ss:$16 sps:$4 sm:$0xff]  }
0x1490   :  { %12202 = vmatprep.subr.bf16.mxu1 %v15013_v0  ;;  %12117 = vmatpush1.bf16.msra.mxu0 %v15008_v53  ;;  %v15052_v53 = vld [vmem:[%s18913_s3 + $0x3e4] ss:$16 sps:$4 sm:$0xff]  }
0x1491   :  { %12118 = vmatprep.subr.bf16.mxu0 %v15016_v34  ;;  %v10930_v34 = vpop.permute.xlu1 %10929 }
0x1493   :  { %12203 = vmatpush1.bf16.msra.mxu1 %v15011_v11 }
0x1494   :  { %12204 = vmatprep.subr.bf16.mxu1 %v15019_v56  ;;  %12119 = vmatpush1.bf16.msra.mxu0 %v15014_v36  ;;  %v10928_v36 = vpop.permute.xlu0 %10927 }
0x1495   :  { %12120 = vmatprep.subr.bf16.mxu0 %v15022_v26 }
0x1497   :  { %12205 = vmatpush1.bf16.msra.mxu1 %v15017_v8  ;;  %v10934_v8 = vpop.permute.xlu1 %10933 }
0x1498   :  { %12206 = vmatprep.subr.bf16.mxu1 %v15025_v57  ;;  %12121 = vmatpush1.bf16.msra.mxu0 %v15020_v31 }
0x1499   :  { %12122 = vmatprep.subr.bf16.mxu0 %v15028_v10 }
0x149b   :  { %12207 = vmatpush1.bf16.msra.mxu1 %v15023_v47  ;;  %v10999_v47 = vsel %vm3619_vm1, %v17935_v41, %v10928_v36 }
0x149c   :  { %12208 = vmatprep.subr.bf16.mxu1 %v15031_v54  ;;  %12123 = vmatpush1.bf16.msra.mxu0 %v15026_v16  ;;  %v19036_v54 = vld [vmem:[#allocation51_spill] sm:$0xff] }
0x149d   :  { %12124 = vmatprep.subr.bf16.mxu0 %v15034_v27 }
0x149f   :  { %12209 = vmatpush1.bf16.msra.mxu1 %v15029_v46 }
0x14a0   :  { %12210 = vmatprep.subr.bf16.mxu1 %v15037_v4  ;;  %12125 = vmatpush1.bf16.msra.mxu0 %v15032_v18 }
0x14a1   :  { %12126 = vmatprep.subr.bf16.mxu0 %v15040_v14 }
0x14a3   :  { %12211 = vmatpush1.bf16.msra.mxu1 %v15035_v61 }
0x14a4   :  { %12212 = vmatprep.subr.bf16.mxu1 %v15043_v20  ;;  %12127 = vmatpush1.bf16.msra.mxu0 %v15038_v32 }
0x14a5   :  { %12128 = vmatprep.subr.bf16.mxu0 %v15046_v63 }
0x14a7   :  { %12213 = vmatpush1.bf16.msra.mxu1 %v15041_v42 }
0x14a8   :  { %12214 = vmatprep.subr.bf16.mxu1 %v15049_v7  ;;  %12129 = vmatpush1.bf16.msra.mxu0 %v15044_v23 }
0x14a9   :  { %12130 = vmatprep.subr.bf16.mxu0 %v15052_v53  ;;  %v19040_v53 = vld [vmem:[#allocation55_spill] sm:$0xff] }
0x14ab   :  { %12215 = vmatpush1.bf16.msra.mxu1 %v15047_v21 }
0x14ac   :  { %12216 = vmatprep.subr.bf16.mxu1 %v15055_v48 }
0x14ea   :  { %v10520_v40 = vpop.f32.mrb[252].mxu0 }
0x14eb   :  { %10959 = vrot.lane.b32.xlu0 %v10520_v40, %s15318_s2  ;;  %v14173_v52 = vpop.f32.mrb[253].mxu0 }
0x14ec   :  { %v10523_v33 = vpop.f32.mrb[254].mxu0  ;;  %v15050_v52 = vld [vmem:[%s18913_s3 + $0x3e0] ss:$16 sps:$4 sm:$0xff]  }
0x14ed   :  { %v14174_v30 = vpop.f32.mrb[255].mxu0  ;;  %v10567_v19 = vpop.f32.mrb[252].mxu1  ;;  %12131 = vmatpush1.bf16.msra.mxu0 %v15050_v52 }
0x14ee   :  { %10961 = vrot.lane.b32.xlu1 %v10567_v19, %s15318_s2  ;;  %v14179_v44 = vpop.f32.mrb[253].mxu1  ;;  %v15053_v30 = vld [vmem:[%s18913_s3 + $0x3e8] ss:$16 sps:$4 sm:$0xff]  }
0x14ef   :  { %v10570_v58 = vpop.f32.mrb[254].mxu1  ;;  %12217 = vmatpush1.bf16.msra.mxu1 %v15053_v30 }
0x14f0   :  { %v14180_v50 = vpop.f32.mrb[255].mxu1  ;;  %v10932_v58 = vpop.permute.xlu0 %10931 }
0x14f1   :  { %v10938_v50 = vpop.permute.xlu1 %10937  ;;  %v11001_v41 = vsel %vm3619_vm1, %v19036_v54, %v10932_v58 }
0x14f2   :  { %v10614_v43 = vpop.f32.mrb[0].mxu0 }
0x14f3   :  { %10963 = vrot.lane.b32.xlu0 %v10614_v43, %s15318_s2  ;;  %v14185_v28 = vpop.f32.mrb[1].mxu0 }
0x14f4   :  { %v10617_v38 = vpop.f32.mrb[2].mxu0  ;;  %v10936_v56 = vpop.permute.xlu0 %10935 }
0x14f5   :  { %v14186_v17 = vpop.f32.mrb[3].mxu0  ;;  %v10661_v13 = vpop.f32.mrb[0].mxu1 }
0x14f6   :  { %10965 = vrot.lane.b32.xlu1 %v10661_v13, %s15318_s2  ;;  %v14191_v51 = vpop.f32.mrb[1].mxu1  ;;  %v10942_v26 = vpop.permute.xlu1 %10941  ;;  %v19035_v17 = vld [vmem:[#allocation50_spill] sm:$0xff] }
0x14f7   :  { %v10664_v12 = vpop.f32.mrb[2].mxu1  ;;  %v11000_v13 = vsel %vm3619_vm1, %v19035_v17, %v10930_v34  ;;  %v19045_v17 = vld [vmem:[#allocation7_spill] sm:$0xff] }
0x14f8   :  { %v14192_v35 = vpop.f32.mrb[3].mxu1  ;;  %v10940_v31 = vpop.permute.xlu0 %10939 }
0x14f9   :  { %v11005_v48 = vsel %vm3619_vm1, %v19040_v53, %v10940_v31 }
0x14fa   :  { %v10708_v1 = vpop.f32.mrb[4].mxu0 }
0x14fb   :  { %10967 = vrot.lane.b32.xlu0 %v10708_v1, %s15318_s2  ;;  %v14197_v22 = vpop.f32.mrb[5].mxu0  ;;  %v19037_v1 = vld [vmem:[#allocation52_spill] sm:$0xff] }
0x14fc   :  { %v10711_v29 = vpop.f32.mrb[6].mxu0  ;;  %v11002_v61 = vsel %vm3619_vm1, %v19037_v1, %v10934_v8 }
0x14fd   :  { %v14198_v2 = vpop.f32.mrb[7].mxu0  ;;  %v10755_v5 = vpop.f32.mrb[4].mxu1 }
0x14fe   :  { %10969 = vrot.lane.b32.xlu1 %v10755_v5, %s15318_s2  ;;  %v14203_v15 = vpop.f32.mrb[5].mxu1  ;;  %v19038_v5 = vld [vmem:[#allocation53_spill] sm:$0xff] }
0x14ff   :  { %v10758_v45 = vpop.f32.mrb[6].mxu1  ;;  %v11003_v15 = vsel %vm3619_vm1, %v19038_v5, %v10936_v56 }
0x1500   :  { %v14204_v62 = vpop.f32.mrb[7].mxu1 }
0x1502   :  { %v10802_v9 = vpop.f32.mrb[8].mxu0 }
0x1503   :  { %10971 = vrot.lane.b32.xlu0 %v10802_v9, %s15318_s2  ;;  %v14209_v25 = vpop.f32.mrb[9].mxu0 }
0x1504   :  { %v10805_v40 = vpop.f32.mrb[10].mxu0 }
0x1505   :  { %v14210_v11 = vpop.f32.mrb[11].mxu0  ;;  %v10849_v0 = vpop.f32.mrb[8].mxu1 }
0x1506   :  { %10973 = vrot.lane.b32.xlu1 %v10849_v0, %s15318_s2  ;;  %v14215_v33 = vpop.f32.mrb[9].mxu1 }
0x1507   :  { %v10852_v19 = vpop.f32.mrb[10].mxu1  ;;  %v19041_v33 = vld [vmem:[#allocation56_spill] sm:$0xff] }
0x1508   :  { %v14216_v44 = vpop.f32.mrb[11].mxu1 }
0x155d   :  { %v10960_v43 = vpop.permute.xlu0 %10959 }
0x155e   :  { %v11007_v57 = vsel %vm3619_vm1, %v18233_v55, %v10960_v43 }
0x155f   :  { %v11048_v28 = vcombine.low %v10999_v47, %v11007_v57  ;;  %v19043_v47 = vld [vmem:[#allocation5_spill] sm:$0xff] }
0x1560   :  { %v10962_v38 = vpop.permute.xlu1 %10961 }
0x1561   :  { %v11008_v51 = vsel %vm3619_vm1, %v18235_v59, %v10962_v38  ;;  %v11062_v10 = vrot.slane %v11048_v28, %v19028_v37  ;;  %v19044_v28 = vld [vmem:[#allocation6_spill] sm:$0xff] }
0x1562   :  { %v11065_v16 = vcombine.low %v11000_v13, %v11008_v51 }
0x1564   :  { %v11079_v12 = vrot.slane %v11065_v16, %v19028_v37 }
0x1565   :  { %v10964_v46 = vpop.permute.xlu0 %10963 }
0x1566   :  { %v13042_v35 = vcombine.low %v11062_v10, %v11079_v12  ;;  %v11009_v55 = vsel %vm3619_vm1, %v18237_v60, %v10964_v46 }
0x1567   :  { %v11082_v18 = vcombine.low %v11001_v41, %v11009_v55 }
0x1568   :  { %v10966_v27 = vpop.permute.xlu1 %10965  ;;  %v11200_v42 = vrot.slane %v13042_v35, %v19028_v37 }
0x1569   :  { %v11010_v59 = vsel %vm3619_vm1, %v18239_v24, %v10966_v27  ;;  %v11096_v22 = vrot.slane %v11082_v18, %v19028_v37  ;;  %v19039_v24 = vld [vmem:[#allocation54_spill] sm:$0xff] }
0x156a   :  { %v11099_v4 = vcombine.low %v11002_v61, %v11010_v59  ;;  %v11004_v62 = vsel %vm3619_vm1, %v19039_v24, %v10938_v50 }
0x156c   :  { %v11113_v29 = vrot.slane %v11099_v4, %v19028_v37 }
0x156d   :  { %v10968_v2 = vpop.permute.xlu0 %10967 }
0x156e   :  { %v13044_v32 = vcombine.low %v11096_v22, %v11113_v29  ;;  %v11011_v60 = vsel %vm3619_vm1, %v18241_v6, %v10968_v2 }
0x156f   :  { %v11116_v14 = vcombine.low %v11003_v15, %v11011_v60 }
0x1570   :  { %v10970_v45 = vpop.permute.xlu1 %10969  ;;  %v11214_v20 = vrot.slane %v13044_v32, %v19028_v37 }
0x1571   :  { %v11012_v63 = vsel %vm3619_vm1, %v18243_v49, %v10970_v45  ;;  %v11130_v21 = vrot.slane %v11116_v14, %v19028_v37  ;;  %v11006_v49 = vsel %vm3619_vm1, %v19041_v33, %v10942_v26  ;;  %v19042_v26 = vld [vmem:[#allocation4_spill] sm:$0xff] }
0x1572   :  { %v11133_v23 = vcombine.low %v11004_v62, %v11012_v63  ;;  %v11217_v7 = vcombine.low %v11200_v42, %v11214_v20  ;;  %v11218_v9 = vcombine.high %v11200_v42, %v11214_v20  ;;  %v19046_v63 = vld [vmem:[#allocation3_spill] sm:$0xff] }
0x1574   :  { %v11147_v25 = vrot.slane %v11133_v23, %v19028_v37 }
0x1575   :  { %v10972_v6 = vpop.permute.xlu0 %10971 }
0x1576   :  { %v13046_v40 = vcombine.low %v11130_v21, %v11147_v25  ;;  %v11013_v11 = vsel %vm3619_vm1, %v18245_v39, %v10972_v6 }
0x1577   :  { %v11150_v0 = vcombine.low %v11005_v48, %v11013_v11 }
0x1578   :  { %v10974_v52 = vpop.permute.xlu1 %10973  ;;  %v11236_v58 = vrot.slane %v13046_v40, %v19028_v37 }
0x1579   :  { %v11014_v30 = vsel %vm3619_vm1, %v18247_v3, %v10974_v52  ;;  %v11164_v44 = vrot.slane %v11150_v0, %v19028_v37  ;;  %v11395_v3 = vld [vmem:[%s18914_s4] sm:$0xf] }
0x157a   :  { %v11167_v19 = vcombine.low %v11006_v49, %v11014_v30  ;;  %v11400_v43 = vrot.slane %v11395_v3, %v19042_v26  ;;  %v11408_v57 = vrot.slane %v11395_v3, %v19043_v47  ;;  %v11404_v38 = vrot.slane %v11395_v3, %v19044_v28 }
0x157b   :  { %v11412_v13 = vrot.slane %v11395_v3, %v19045_v17 }
0x157c   :  { %v11181_v36 = vrot.slane %v11167_v19, %v19028_v37 }
0x157e   :  { %v13048_v34 = vcombine.low %v11164_v44, %v11181_v36 }
0x1580   :  { %v11250_v8 = vrot.slane %v13048_v34, %v19028_v37 }
0x1582   :  { %v11253_v56 = vcombine.low %v11236_v58, %v11250_v8  ;;  %v11254_v39 = vcombine.high %v11236_v58, %v11250_v8 }
0x1584   :  { %v11265_v50 = vpack.c.bf16 %v11253_v56, %v11217_v7  ;;  %v11266_v31 = vpack.c.bf16 %v11254_v39, %v11218_v9 }
0x1586   :  { %12132 = vmatprep.mubr.bf16.mxu0 %v11266_v31  ;;  %12218 = vmatprep.mubr.bf16.mxu1 %v11266_v31 }
0x1587   :  { %12133 = vmatmul.mubr.bf16.vlgmr.msra.gmra.mrb[12].mxu0 %v11265_v50  ;;  %12219 = vmatmul.mubr.bf16.vlgmr.msra.gmra.mrb[12].mxu1 %v11265_v50 }
0x165a   :  { %v12134_v51 = vpop.f32.mrb[12].mxu0  ;;  %v12220_v16 = vpop.f32.mrb[12].mxu1 }
0x165b   :  { %v14241_v10 = vadd.f32 %v12134_v51, %v11400_v43  ;;  %v14245_v12 = vadd.f32 %v12220_v16, %v11408_v57  ;;  %v12136_v46 = vpop.f32.mrb[13].mxu0  ;;  %v12222_v54 = vpop.f32.mrb[13].mxu1 }
0x165c   :  { %v14242_v41 = vadd.f32 %v12136_v46, %v11404_v38  ;;  %v14246_v35 = vadd.f32 %v12222_v54, %v11412_v13  ;;  %v12138_v55 = vpop.f32.mrb[14].mxu0  ;;  %v12224_v18 = vpop.f32.mrb[14].mxu1 }
0x165d   :  { %v14243_v27 = vadd.f32 %v12138_v55, %v11400_v43  ;;  %v14247_v1 = vadd.f32 %v12224_v18, %v11408_v57  ;;  %v12140_v61 = vpop.f32.mrb[15].mxu0  ;;  %v12226_v59 = vpop.f32.mrb[15].mxu1 }
0x165e   :  { %v12237_v4 = vcombine.low %v14241_v10, %v14242_v41  ;;  %v12238_v22 = vcombine.high %v14241_v10, %v14242_v41  ;;  %v12239_v29 = vcombine.low %v14245_v12, %v14246_v35  ;;  %v12240_v2 = vcombine.high %v14245_v12, %v14246_v35 }
0x165f   :  { %v14244_v5 = vadd.f32 %v12140_v61, %v11404_v38  ;;  %v14248_v15 = vadd.f32 %v12226_v59, %v11412_v13 }
0x1660   :  { %v12247_v32 = vrot.slane %v12237_v4, %v19028_v37  ;;  %v12254_v60 = vrot.slane %v12238_v22, %v19028_v37  ;;  %v12261_v14 = vrot.slane %v12239_v29, %v19028_v37  ;;  %v12268_v45 = vrot.slane %v12240_v2, %v19028_v37 }
0x1661   :  { %v12273_v42 = vcombine.low %v14243_v27, %v14244_v5  ;;  %v12274_v20 = vcombine.high %v14243_v27, %v14244_v5  ;;  %v12275_v24 = vcombine.low %v14247_v1, %v14248_v15  ;;  %v12276_v62 = vcombine.high %v14247_v1, %v14248_v15 }
0x1662   :  { %v12325_v23 = vrot.slane %v12247_v32, %v19046_v63  ;;  %v12343_v7 = vrot.slane %v12254_v60, %v19046_v63  ;;  %v12332_v9 = vrot.slane %v12261_v14, %v19046_v63  ;;  %v12350_v21 = vrot.slane %v12268_v45, %v19046_v63 }
0x1663   :  { %v12283_v25 = vrot.slane %v12273_v42, %v19028_v37  ;;  %v12290_v6 = vrot.slane %v12274_v20, %v19028_v37  ;;  %v12297_v53 = vrot.slane %v12275_v24, %v19028_v37  ;;  %v12304_v48 = vrot.slane %v12276_v62, %v19028_v37 }
0x1664   :  { %v13177_v40 = vcombine.low %v12325_v23, %v12343_v7  ;;  %v13181_v11 = vcombine.high %v12325_v23, %v12343_v7  ;;  %v13178_v0 = vcombine.low %v12332_v9, %v12350_v21  ;;  %v13182_v52 = vcombine.high %v12332_v9, %v12350_v21 }
0x1665   :  { %v12361_v33 = vrot.slane %v12283_v25, %v19046_v63  ;;  %v12379_v49 = vrot.slane %v12290_v6, %v19046_v63  ;;  %v12368_v30 = vrot.slane %v12297_v53, %v19046_v63  ;;  %v12386_v19 = vrot.slane %v12304_v48, %v19046_v63 }
0x1666   :  { %v12407_v8 = vrot.slane %v13177_v40, %v19028_v37  ;;  %v12443_v56 = vrot.slane %v13181_v11, %v19028_v37  ;;  %v12414_v26 = vrot.slane %v13178_v0, %v19028_v37  ;;  %v12450_v43 = vrot.slane %v13182_v52, %v19028_v37 }
0x1667   :  { %v13179_v44 = vcombine.low %v12361_v33, %v12379_v49  ;;  %v13183_v36 = vcombine.high %v12361_v33, %v12379_v49  ;;  %v13180_v34 = vcombine.low %v12368_v30, %v12386_v19  ;;  %v13184_v58 = vcombine.high %v12368_v30, %v12386_v19 }
0x1669   :  { %v12421_v39 = vrot.slane %v13179_v44, %v19028_v37  ;;  %v12457_v50 = vrot.slane %v13183_v36, %v19028_v37  ;;  %v12428_v31 = vrot.slane %v13180_v34, %v19028_v37  ;;  %v12464_v3 = vrot.slane %v13184_v58, %v19028_v37 }
0x166b   :  { %v12429_v47 = vcombine.low %v12407_v8, %v12421_v39  ;;  %v12430_v57 = vcombine.high %v12407_v8, %v12421_v39  ;;  %v12465_v28 = vcombine.low %v12443_v56, %v12457_v50  ;;  %v12466_v38 = vcombine.high %v12443_v56, %v12457_v50 }
0x166c   :  { %v12431_v17 = vcombine.low %v12414_v26, %v12428_v31  ;;  %v12432_v13 = vcombine.high %v12414_v26, %v12428_v31  ;;  %v12467_v51 = vcombine.low %v12450_v43, %v12464_v3  ;;  %v12468_v16 = vcombine.high %v12450_v43, %v12464_v3 }
0x166d   :  { %v13189_v10 = vpack.c.bf16 %v12430_v57, %v12429_v47  ;;  %v13191_v12 = vpack.c.bf16 %v12466_v38, %v12465_v28 }
0x166e   :  { %v13190_v46 = vpack.c.bf16 %v12432_v13, %v12431_v17  ;;  %v13192_v54 = vpack.c.bf16 %v12468_v16, %v12467_v51 }
0x166f   :  { %12509 = vst [vmem:[%s18915_s5] sm:$0xff] %v13189_v10  ;;  %12511 = vst [vmem:[%s18915_s5 + $0x10] sm:$0xff] %v13191_v12 }
0x1670   :  { %12510 = vst [vmem:[%s18915_s5 + $0x8] sm:$0xff] %v13190_v46  ;;  %12512 = vst [vmem:[%s18915_s5 + $0x18] sm:$0xff] %v13192_v54 }

</bundles_post_ra>
